<compile_context>
chip_gen: v5e
topology: v5e:2x2
jax: 0.10.0
libtpu: 0.0.40
codegen_flags: <defaults>
</compile_context>

<pallas_src>
import math
import functools

import numpy as np
import jax
import jax.numpy as jnp
from jax.experimental import pallas as pl
from jax.experimental.pallas import tpu as pltpu


LN_EPS = 1e-5          # PyTorch nn.Transformer default layer_norm_eps
NEG = -1e9             # additive mask value
GEN_PAD = 128          # lane-dense generator output width


# ---------------------------------------------------------------------------
# Pallas plumbing
# ---------------------------------------------------------------------------

def _vmem():
    return pl.BlockSpec(memory_space=pltpu.MemorySpace.VMEM)


# ---------------------------------------------------------------------------
# In-kernel helpers (traced inside the single fused kernel)
# ---------------------------------------------------------------------------

def _dot(a, b):
    return jnp.dot(a, b, preferred_element_type=jnp.float32)


def _ln(x, g, b):
    mu = jnp.mean(x, axis=-1, keepdims=True)
    var = jnp.mean((x - mu) ** 2, axis=-1, keepdims=True)
    return (x - mu) * jax.lax.rsqrt(var + LN_EPS) * g + b


def _mha(q, k, v, mask, wo, bo, nhead):
    """q: (Lq,E), k/v: (Lk,E), mask: (Lq,Lk) additive.  Returns (Lq,E) incl. out-proj.

    Per-head 2-D matmuls; out-projection folded per head (partial sums), so no
    (H, Lq, dh) tensor or in-kernel concatenation is materialized.
    """
    E = q.shape[-1]
    dh = E // nhead
    scale = 1.0 / math.sqrt(dh)
    acc = None
    for h in range(nhead):
        sl = slice(h * dh, (h + 1) * dh)
        qh, kh, vh = q[:, sl], k[:, sl], v[:, sl]
        s = jax.lax.dot_general(qh, kh, (((1,), (1,)), ((), ())),
                                preferred_element_type=jnp.float32) * scale
        s = s + mask
        m = jnp.max(s, axis=-1, keepdims=True)
        p = jnp.exp(s - m)
        p = p * pl.reciprocal(jnp.sum(p, axis=-1, keepdims=True), approx=True)
        oh = _dot(p, vh)                       # (Lq, dh)
        part = _dot(oh, wo[sl, :])             # (Lq, E)
        acc = part if acc is None else acc + part
    return acc + bo


def _ffn(x, w1, b1, w2, b2):
    h = jnp.maximum(_dot(x, w1) + b1, 0.0)
    return _dot(h, w2) + b2


# ---------------------------------------------------------------------------
# The single fused forward kernel
# ---------------------------------------------------------------------------

def _fused_forward_kernel(*refs, names, nhead, n_enc, n_dec, s_src, n_atoms):
    n_in = len(names)
    r = dict(zip(names, refs[:n_in]))
    o_ref = refs[n_in]           # (T, GEN_PAD) padded logits
    src_buf = refs[n_in + 1]     # (S, E) scratch: encoder input assembly

    # ---- atom node embedding: linear + PE row 0 (batch-first quirk) ----
    atom = _dot(r["atom_feats"][...], r["atom_w"][...]) + r["atom_b"][...] + r["pe0"][...]

    # ---- encoder input: [src token emb (+PE) ; atom emb (+PE)] ----
    src_buf[0:s_src, :] = r["src_tok_pe"][...]
    src_buf[s_src:s_src + n_atoms, :] = atom
    x = src_buf[...]                                            # (S, E)

    # ---- target (edge) embedding construction ----
    a0 = _dot(r["sel0"][...], atom)                             # atom_emb[li0]
    a1 = _dot(r["sel1"][...], atom)                             # atom_emb[li1]
    atom_pairs = _dot(a0, r["ba_w0"][...]) + _dot(a1, r["ba_w1"][...]) + r["ba_b"][...]
    # right-shifted mol_edges: pre-shifted selection matrices + shifted adj
    # gather; bias zeroed on row 0 via rowmask (no eye-matmul, no roll).
    a0s = _dot(r["sel0s"][...], atom)
    a1s = _dot(r["sel1s"][...], atom)
    edges = (_dot(a0s, r["be_w0"][...]) + _dot(a1s, r["be_w1"][...])
             + _dot(r["adj_shift"][...], r["be_wadj"][...])
             + r["rowmask"][...] * r["be_b"][...])
    y = _dot(edges, r["b_we"][...]) + _dot(atom_pairs, r["b_wp"][...]) + r["b_b"][...]

    E = x.shape[-1]
    src_add = r["src_add"][...]
    tgt_add = r["tgt_add"][...]
    mem_add = r["mem_add"][...]

    # ---- encoder stack (post-norm, ReLU FFN; static unroll) ----
    for l in range(n_enc):
        qkv = _dot(x, r["enc_wqkv"][l]) + r["enc_bqkv"][l]
        a = _mha(qkv[:, :E], qkv[:, E:2 * E], qkv[:, 2 * E:], src_add,
                 r["enc_wo"][l], r["enc_bo"][l], nhead)
        x = _ln(x + a, r["enc_n1g"][l], r["enc_n1b"][l])
        ff = _ffn(x, r["enc_w1"][l], r["enc_b1"][l], r["enc_w2"][l], r["enc_b2"][l])
        x = _ln(x + ff, r["enc_n2g"][l], r["enc_n2b"][l])
    mem = _ln(x, r["enc_norm_g"][...], r["enc_norm_b"][...])

    # ---- decoder stack ----
    for l in range(n_dec):
        qkv = _dot(y, r["dec_sa_wqkv"][l]) + r["dec_sa_bqkv"][l]
        a = _mha(qkv[:, :E], qkv[:, E:2 * E], qkv[:, 2 * E:], tgt_add,
                 r["dec_sa_wo"][l], r["dec_sa_bo"][l], nhead)
        y = _ln(y + a, r["dec_n1g"][l], r["dec_n1b"][l])
        q = _dot(y, r["dec_ca_wq"][l]) + r["dec_ca_bq"][l]
        kv = _dot(mem, r["dec_ca_wkv"][l]) + r["dec_ca_bkv"][l]
        a2 = _mha(q, kv[:, :E], kv[:, E:], mem_add,
                  r["dec_ca_wo"][l], r["dec_ca_bo"][l], nhead)
        y = _ln(y + a2, r["dec_n2g"][l], r["dec_n2b"][l])
        ff = _ffn(y, r["dec_w1"][l], r["dec_b1"][l], r["dec_w2"][l], r["dec_b2"][l])
        y = _ln(y + ff, r["dec_n3g"][l], r["dec_n3b"][l])

    # ---- final LayerNorm + generator (lane-dense padded output) ----
    yn = _ln(y, r["dec_norm_g"][...], r["dec_norm_b"][...])
    o_ref[...] = _dot(yn, r["gen_w"][...]) + r["gen_b"][...]


# ---------------------------------------------------------------------------
# Host-side constants (hoisted; constant-folded under jit)
# ---------------------------------------------------------------------------

@functools.lru_cache(maxsize=None)
def _edge_consts(n_atoms):
    # torch.tril_indices(offset=-1) row-major order
    li0, li1 = [], []
    for i in range(n_atoms):
        for j in range(i):
            li0.append(i)
            li1.append(j)
    li0 = np.asarray(li0, np.int32)
    li1 = np.asarray(li1, np.int32)
    t = li0.shape[0]
    sel0 = np.zeros((t, n_atoms), np.float32)
    sel1 = np.zeros((t, n_atoms), np.float32)
    sel0[np.arange(t), li0] = 1.0
    sel1[np.arange(t), li1] = 1.0
    # right-shifted selections: row 0 -> zeros, row i selects li*[i-1]
    sel0s = np.zeros((t, n_atoms), np.float32)
    sel1s = np.zeros((t, n_atoms), np.float32)
    if t > 1:
        sel0s[np.arange(1, t), li0[:-1]] = 1.0
        sel1s[np.arange(1, t), li1[:-1]] = 1.0
    rowmask = np.ones((t, 1), np.float32)
    rowmask[0, 0] = 0.0
    return li0, li1, sel0, sel1, sel0s, sel1s, rowmask


def make_pos_embedding(emb_size, maxlen=64):
    den = jnp.exp(-jnp.arange(0, emb_size, 2, dtype=jnp.float32)
                  * math.log(10000.0) / emb_size)
    pos = jnp.arange(0, maxlen, dtype=jnp.float32).reshape(maxlen, 1)
    pe = jnp.zeros((maxlen, emb_size), jnp.float32)
    pe = pe.at[:, 0::2].set(jnp.sin(pos * den))
    pe = pe.at[:, 1::2].set(jnp.cos(pos * den))
    return pe


# ---------------------------------------------------------------------------
# Forward (jit-wrapped at the call site)
# ---------------------------------------------------------------------------

def seq2graph_forward(params, src, trg, atom_node_in, src_mask, tgt_mask,
                      src_padding_mask, tgt_padding_mask,
                      memory_key_padding_mask, *, cfg):
    emb = cfg["emb_size"]
    nhead = cfg["nhead"]
    sqrt_e = math.sqrt(emb)
    # Faithful to the reference: pos_embedding[:x.size(0)] with batch-first x
    # and batch=1 means only PE row 0 is broadcast-added.  Dropout = identity.
    pe0 = params["pos_embedding"][:1]                                   # (1, E)

    # --- embedding gathers (dynamic gathers stay in JAX glue, fused by jit) ---
    src_tok = jnp.take(params["msp_tok_emb"], src[0], axis=0) * sqrt_e + pe0  # (Ss,E)
    atom_feats = atom_node_in[0].astype(jnp.float32)                    # (N, F)
    s_src = src_tok.shape[0]
    n_atoms = atom_feats.shape[0]
    S = s_src + n_atoms

    li0, li1, sel0, sel1, sel0s, sel1s, rowmask = _edge_consts(n_atoms)
    T = li0.shape[0]

    adj_emb = jnp.take(params["tgt_tok_emb"], trg[0], axis=0) * sqrt_e  # (N,N,E)
    adj_sel = adj_emb[li0, li1]                                         # (T, E)
    adj_shift = jnp.concatenate(
        [jnp.zeros((1, emb), jnp.float32), adj_sel[:-1]], axis=0)       # (T, E)

    # --- additive attention masks (batch = 1) ---
    src_add = (src_mask + jnp.where(src_padding_mask[0], NEG, 0.0)[None, :]
               ).astype(jnp.float32)                                    # (S, S)
    tgt_add = (tgt_mask + jnp.where(tgt_padding_mask[0], NEG, 0.0)[None, :]
               ).astype(jnp.float32)                                    # (T, T)
    mem_add = jnp.broadcast_to(
        jnp.where(memory_key_padding_mask[0], NEG, 0.0)[None, :], (T, S)
    ).astype(jnp.float32)                                               # (T, S)

    # --- one fused pallas_call for the whole network ---
    named = [
        ("src_tok_pe", src_tok),
        ("atom_feats", atom_feats),
        ("pe0", pe0),
        ("sel0", jnp.asarray(sel0)), ("sel1", jnp.asarray(sel1)),
        ("sel0s", jnp.asarray(sel0s)), ("sel1s", jnp.asarray(sel1s)),
        ("rowmask", jnp.asarray(rowmask)),
        ("adj_shift", adj_shift),
        ("src_add", src_add), ("tgt_add", tgt_add), ("mem_add", mem_add),
        ("atom_w", params["atom_w"]), ("atom_b", params["atom_b"]),
        ("ba_w0", params["ba_w0"]), ("ba_w1", params["ba_w1"]), ("ba_b", params["ba_b"]),
        ("be_w0", params["be_w0"]), ("be_w1", params["be_w1"]),
        ("be_wadj", params["be_wadj"]), ("be_b", params["be_b"]),
        ("b_we", params["b_we"]), ("b_wp", params["b_wp"]), ("b_b", params["b_b"]),
    ]
    for k, v in params["enc"].items():
        named.append(("enc_" + k, v))
    named.append(("enc_norm_g", params["enc_norm_g"]))
    named.append(("enc_norm_b", params["enc_norm_b"]))
    for k, v in params["dec"].items():
        named.append(("dec_" + k, v))
    named.append(("dec_norm_g", params["dec_norm_g"]))
    named.append(("dec_norm_b", params["dec_norm_b"]))
    named.append(("gen_w", params["gen_w_pad"]))
    named.append(("gen_b", params["gen_b_pad"]))

    names = tuple(n for n, _ in named)
    args = [a for _, a in named]

    kern = functools.partial(
        _fused_forward_kernel, names=names, nhead=nhead,
        n_enc=cfg["num_encoder_layers"], n_dec=cfg["num_decoder_layers"],
        s_src=s_src, n_atoms=n_atoms)

    logits_pad = pl.pallas_call(
        kern,
        out_shape=jax.ShapeDtypeStruct((T, GEN_PAD), jnp.float32),
        in_specs=[_vmem()] * len(args),
        out_specs=_vmem(),
        scratch_shapes=[pltpu.VMEM((S, emb), jnp.float32)],
        compiler_params=pltpu.CompilerParams(vmem_limit_bytes=32 * 1024 * 1024),
    )(*args)

    vocab = cfg["tgt_vocab_size"]
    return logits_pad[:, :vocab][:, None, :]                            # (T, B=1, V)


# ---------------------------------------------------------------------------
# Deterministic parameter init.
# Weights pre-transposed ((in, out)); biases (1, out); per-layer params stacked
# along a leading layer axis; generator zero-padded to GEN_PAD lanes.
# ---------------------------------------------------------------------------

def init_params(key, cfg):
    emb = cfg["emb_size"]
    ff = cfg["dim_feedforward"]
    n_enc = cfg["num_encoder_layers"]
    n_dec = cfg["num_decoder_layers"]
    vocab = cfg["tgt_vocab_size"]
    keys = iter(jax.random.split(key, 256))

    def w(*shape):
        return 0.02 * jax.random.normal(next(keys), shape, jnp.float32)

    def b(*shape):
        return jnp.zeros(shape, jnp.float32)

    enc = dict(
        wqkv=w(n_enc, emb, 3 * emb), bqkv=b(n_enc, 1, 3 * emb),
        wo=w(n_enc, emb, emb), bo=b(n_enc, 1, emb),
        n1g=jnp.ones((n_enc, 1, emb), jnp.float32), n1b=b(n_enc, 1, emb),
        n2g=jnp.ones((n_enc, 1, emb), jnp.float32), n2b=b(n_enc, 1, emb),
        w1=w(n_enc, emb, ff), b1=b(n_enc, 1, ff),
        w2=w(n_enc, ff, emb), b2=b(n_enc, 1, emb))

    dec = dict(
        sa_wqkv=w(n_dec, emb, 3 * emb), sa_bqkv=b(n_dec, 1, 3 * emb),
        sa_wo=w(n_dec, emb, emb), sa_bo=b(n_dec, 1, emb),
        ca_wq=w(n_dec, emb, emb), ca_bq=b(n_dec, 1, emb),
        ca_wkv=w(n_dec, emb, 2 * emb), ca_bkv=b(n_dec, 1, 2 * emb),
        ca_wo=w(n_dec, emb, emb), ca_bo=b(n_dec, 1, emb),
        n1g=jnp.ones((n_dec, 1, emb), jnp.float32), n1b=b(n_dec, 1, emb),
        n2g=jnp.ones((n_dec, 1, emb), jnp.float32), n2b=b(n_dec, 1, emb),
        n3g=jnp.ones((n_dec, 1, emb), jnp.float32), n3b=b(n_dec, 1, emb),
        w1=w(n_dec, emb, ff), b1=b(n_dec, 1, ff),
        w2=w(n_dec, ff, emb), b2=b(n_dec, 1, emb))

    ba_w = w(2 * emb, emb)   # bond_in_decoder_linear_atoms: [a0 | a1]
    be_w = w(3 * emb, emb)   # bond_in_decoder_linear_edges: [a0 | a1 | adj]
    b_w = w(2 * emb, emb)    # bond_in_decoder_linear:       [edge | pair]

    gen_w = w(emb, vocab)
    gen_w_pad = jnp.zeros((emb, GEN_PAD), jnp.float32).at[:, :vocab].set(gen_w)
    gen_b_pad = jnp.zeros((1, GEN_PAD), jnp.float32)

    params = dict(
        pos_embedding=make_pos_embedding(emb, cfg["maxlen"]),
        msp_tok_emb=0.02 * jax.random.normal(next(keys),
                                             (cfg["src_vocab_size"], emb), jnp.float32),
        tgt_tok_emb=0.02 * jax.random.normal(next(keys),
                                             (cfg["tgt_vocab_size"], emb), jnp.float32),
        # atom_node_emb (TokenEmbedding over num_atom_types) exists in the
        # reference __init__ but is unused in forward(); omitted on purpose.
        atom_w=w(cfg["atom_node_in_feat_size"], emb), atom_b=b(1, emb),
        ba_w0=ba_w[:emb], ba_w1=ba_w[emb:], ba_b=b(1, emb),
        be_w0=be_w[:emb], be_w1=be_w[emb:2 * emb], be_wadj=be_w[2 * emb:],
        be_b=b(1, emb),
        b_we=b_w[:emb], b_wp=b_w[emb:], b_b=b(1, emb),
        gen_w_pad=gen_w_pad, gen_b_pad=gen_b_pad,
        enc=enc, dec=dec,
        enc_norm_g=jnp.ones((1, emb), jnp.float32), enc_norm_b=b(1, emb),
        dec_norm_g=jnp.ones((1, emb), jnp.float32), dec_norm_b=b(1, emb),
    )
    return params


# ---------------------------------------------------------------------------
# Main
# ---------------------------------------------------------------------------

if __name__ == "__main__":
    cfg = dict(emb_size=32, nhead=4, num_encoder_layers=2, num_decoder_layers=2,
               dim_feedforward=64, src_vocab_size=20, tgt_vocab_size=6,
               num_atom_types=8, atom_node_in_feat_size=10, maxlen=64)

    key = jax.random.PRNGKey(0)
    pkey, dkey = jax.random.split(key)
    params = init_params(pkey, cfg)

    k1, k2, k3 = jax.random.split(dkey, 3)
    S_src, N_atoms = 8, 6
    src = jax.random.randint(k1, (1, S_src), 0, cfg["src_vocab_size"], dtype=jnp.int32)
    trg = jax.random.randint(k2, (1, N_atoms, N_atoms), 0, cfg["tgt_vocab_size"],
                             dtype=jnp.int32)
    atom_node_in = jax.random.normal(
        k3, (1, N_atoms, cfg["atom_node_in_feat_size"]), jnp.float32)
    # num_atoms_in_mol is an unused argument of the reference forward().

    S_total = S_src + N_atoms                 # encoder sequence length (concat)
    T = N_atoms * (N_atoms - 1) // 2          # number of lower-tri edge tokens

    src_mask = jnp.zeros((S_total, S_total), jnp.float32)
    tgt_mask = jnp.where(jnp.triu(jnp.ones((T, T), jnp.float32), k=1) > 0,
                         NEG, 0.0).astype(jnp.float32)     # causal mask
    src_padding_mask = jnp.zeros((1, S_total), dtype=bool)
    tgt_padding_mask = jnp.zeros((1, T), dtype=bool)
    memory_key_padding_mask = jnp.zeros((1, S_total), dtype=bool)

    # Biggest lever per review: jit the whole forward (one XLA program, one
    # pallas custom call inside).
    fwd = jax.jit(functools.partial(seq2graph_forward, cfg=cfg))
    out = fwd(params, src, trg, atom_node_in, src_mask, tgt_mask,
              src_padding_mask, tgt_padding_mask, memory_key_padding_mask)
    jax.block_until_ready(out)

    assert out.shape == (T, 1, cfg["tgt_vocab_size"]), out.shape
    assert bool(jnp.all(jnp.isfinite(out)))
    print("KERNEL_OK")
</pallas_src>

<mosaic_0001>
module attributes {stable_mosaic.version = 11 : i64} {
  func.func @_fused_forward_kernel(%arg0: memref<8x32xf32, #tpu.memory_space<vmem>>, %arg1: memref<6x10xf32, #tpu.memory_space<vmem>>, %arg2: memref<1x32xf32, #tpu.memory_space<vmem>>, %arg3: memref<15x6xf32, #tpu.memory_space<vmem>>, %arg4: memref<15x6xf32, #tpu.memory_space<vmem>>, %arg5: memref<15x6xf32, #tpu.memory_space<vmem>>, %arg6: memref<15x6xf32, #tpu.memory_space<vmem>>, %arg7: memref<15x1xf32, #tpu.memory_space<vmem>>, %arg8: memref<15x32xf32, #tpu.memory_space<vmem>>, %arg9: memref<14x14xf32, #tpu.memory_space<vmem>>, %arg10: memref<15x15xf32, #tpu.memory_space<vmem>>, %arg11: memref<15x14xf32, #tpu.memory_space<vmem>>, %arg12: memref<10x32xf32, #tpu.memory_space<vmem>>, %arg13: memref<1x32xf32, #tpu.memory_space<vmem>>, %arg14: memref<32x32xf32, #tpu.memory_space<vmem>>, %arg15: memref<32x32xf32, #tpu.memory_space<vmem>>, %arg16: memref<1x32xf32, #tpu.memory_space<vmem>>, %arg17: memref<32x32xf32, #tpu.memory_space<vmem>>, %arg18: memref<32x32xf32, #tpu.memory_space<vmem>>, %arg19: memref<32x32xf32, #tpu.memory_space<vmem>>, %arg20: memref<1x32xf32, #tpu.memory_space<vmem>>, %arg21: memref<32x32xf32, #tpu.memory_space<vmem>>, %arg22: memref<32x32xf32, #tpu.memory_space<vmem>>, %arg23: memref<1x32xf32, #tpu.memory_space<vmem>>, %arg24: memref<2x1x64xf32, #tpu.memory_space<vmem>>, %arg25: memref<2x1x32xf32, #tpu.memory_space<vmem>>, %arg26: memref<2x1x32xf32, #tpu.memory_space<vmem>>, %arg27: memref<2x1x96xf32, #tpu.memory_space<vmem>>, %arg28: memref<2x1x32xf32, #tpu.memory_space<vmem>>, %arg29: memref<2x1x32xf32, #tpu.memory_space<vmem>>, %arg30: memref<2x1x32xf32, #tpu.memory_space<vmem>>, %arg31: memref<2x1x32xf32, #tpu.memory_space<vmem>>, %arg32: memref<2x32x64xf32, #tpu.memory_space<vmem>>, %arg33: memref<2x64x32xf32, #tpu.memory_space<vmem>>, %arg34: memref<2x32x32xf32, #tpu.memory_space<vmem>>, %arg35: memref<2x32x96xf32, #tpu.memory_space<vmem>>, %arg36: memref<1x32xf32, #tpu.memory_space<vmem>>, %arg37: memref<1x32xf32, #tpu.memory_space<vmem>>, %arg38: memref<2x1x64xf32, #tpu.memory_space<vmem>>, %arg39: memref<2x1x32xf32, #tpu.memory_space<vmem>>, %arg40: memref<2x1x64xf32, #tpu.memory_space<vmem>>, %arg41: memref<2x1x32xf32, #tpu.memory_space<vmem>>, %arg42: memref<2x1x32xf32, #tpu.memory_space<vmem>>, %arg43: memref<2x32x64xf32, #tpu.memory_space<vmem>>, %arg44: memref<2x32x32xf32, #tpu.memory_space<vmem>>, %arg45: memref<2x32x32xf32, #tpu.memory_space<vmem>>, %arg46: memref<2x1x32xf32, #tpu.memory_space<vmem>>, %arg47: memref<2x1x32xf32, #tpu.memory_space<vmem>>, %arg48: memref<2x1x32xf32, #tpu.memory_space<vmem>>, %arg49: memref<2x1x32xf32, #tpu.memory_space<vmem>>, %arg50: memref<2x1x32xf32, #tpu.memory_space<vmem>>, %arg51: memref<2x1x32xf32, #tpu.memory_space<vmem>>, %arg52: memref<2x1x32xf32, #tpu.memory_space<vmem>>, %arg53: memref<2x1x96xf32, #tpu.memory_space<vmem>>, %arg54: memref<2x32x32xf32, #tpu.memory_space<vmem>>, %arg55: memref<2x32x96xf32, #tpu.memory_space<vmem>>, %arg56: memref<2x32x64xf32, #tpu.memory_space<vmem>>, %arg57: memref<2x64x32xf32, #tpu.memory_space<vmem>>, %arg58: memref<1x32xf32, #tpu.memory_space<vmem>>, %arg59: memref<1x32xf32, #tpu.memory_space<vmem>>, %arg60: memref<32x128xf32, #tpu.memory_space<vmem>>, %arg61: memref<1x128xf32, #tpu.memory_space<vmem>>, %arg62: memref<15x128xf32, #tpu.memory_space<vmem>>, %arg63: memref<14x32xf32, #tpu.memory_space<vmem>>) attributes {dimension_semantics = [], scalar_prefetch = 0 : i64, scratch_operands = 1 : i64, tpu.core_type = #tpu.core_type<tc>} {
    %c0 = arith.constant 0 : index
    %c0_0 = arith.constant 0 : index
    %0 = vector.load %arg1[%c0, %c0_0] : memref<6x10xf32, #tpu.memory_space<vmem>>, vector<6x10xf32>
    %c0_1 = arith.constant 0 : index
    %c0_2 = arith.constant 0 : index
    %1 = vector.load %arg12[%c0_1, %c0_2] : memref<10x32xf32, #tpu.memory_space<vmem>>, vector<10x32xf32>
    %cst = arith.constant dense<0.000000e+00> : vector<6x32xf32>
    %2 = tpu.matmul %0, %1, %cst {dimension_numbers = #tpu.dot_dimension_numbers<[1], [0], [0], [1], [0, 0, 1, 1], [], []>} : vector<6x10xf32>, vector<10x32xf32>, vector<6x32xf32> -> vector<6x32xf32>
    %c0_3 = arith.constant 0 : index
    %c0_4 = arith.constant 0 : index
    %3 = vector.load %arg13[%c0_3, %c0_4] : memref<1x32xf32, #tpu.memory_space<vmem>>, vector<1x32xf32>
    %4 = vector.broadcast %3 : vector<1x32xf32> to vector<6x32xf32>
    %5 = arith.addf %2, %4 : vector<6x32xf32>
    %c0_5 = arith.constant 0 : index
    %c0_6 = arith.constant 0 : index
    %6 = vector.load %arg2[%c0_5, %c0_6] : memref<1x32xf32, #tpu.memory_space<vmem>>, vector<1x32xf32>
    %7 = vector.broadcast %6 : vector<1x32xf32> to vector<6x32xf32>
    %8 = arith.addf %5, %7 : vector<6x32xf32>
    %c0_7 = arith.constant 0 : index
    %c0_8 = arith.constant 0 : index
    %9 = vector.load %arg0[%c0_7, %c0_8] : memref<8x32xf32, #tpu.memory_space<vmem>>, vector<8x32xf32>
    %c0_9 = arith.constant 0 : index
    %c0_10 = arith.constant 0 : index
    %10 = vector.load %arg63[%c0_9, %c0_10] : memref<14x32xf32, #tpu.memory_space<vmem>>, vector<8x32xf32>
    tpu.vector_store %arg63[%c0_9, %c0_10], %9 {strides = array<i32>} : memref<14x32xf32, #tpu.memory_space<vmem>>, vector<8x32xf32>,
    %c8 = arith.constant 8 : index
    %c0_11 = arith.constant 0 : index
    %11 = vector.load %arg63[%c8, %c0_11] : memref<14x32xf32, #tpu.memory_space<vmem>>, vector<6x32xf32>
    tpu.vector_store %arg63[%c8, %c0_11], %8 {strides = array<i32>} : memref<14x32xf32, #tpu.memory_space<vmem>>, vector<6x32xf32>,
    %c0_12 = arith.constant 0 : index
    %c0_13 = arith.constant 0 : index
    %12 = vector.load %arg63[%c0_12, %c0_13] : memref<14x32xf32, #tpu.memory_space<vmem>>, vector<14x32xf32>
    %c0_14 = arith.constant 0 : index
    %c0_15 = arith.constant 0 : index
    %13 = vector.load %arg3[%c0_14, %c0_15] : memref<15x6xf32, #tpu.memory_space<vmem>>, vector<15x6xf32>
    %cst_16 = arith.constant dense<0.000000e+00> : vector<15x32xf32>
    %14 = tpu.matmul %13, %8, %cst_16 {dimension_numbers = #tpu.dot_dimension_numbers<[1], [0], [0], [1], [0, 0, 1, 1], [], []>} : vector<15x6xf32>, vector<6x32xf32>, vector<15x32xf32> -> vector<15x32xf32>
    %c0_17 = arith.constant 0 : index
    %c0_18 = arith.constant 0 : index
    %15 = vector.load %arg4[%c0_17, %c0_18] : memref<15x6xf32, #tpu.memory_space<vmem>>, vector<15x6xf32>
    %cst_19 = arith.constant dense<0.000000e+00> : vector<15x32xf32>
    %16 = tpu.matmul %15, %8, %cst_19 {dimension_numbers = #tpu.dot_dimension_numbers<[1], [0], [0], [1], [0, 0, 1, 1], [], []>} : vector<15x6xf32>, vector<6x32xf32>, vector<15x32xf32> -> vector<15x32xf32>
    %c0_20 = arith.constant 0 : index
    %c0_21 = arith.constant 0 : index
    %17 = vector.load %arg14[%c0_20, %c0_21] : memref<32x32xf32, #tpu.memory_space<vmem>>, vector<32x32xf32>
    %cst_22 = arith.constant dense<0.000000e+00> : vector<15x32xf32>
    %18 = tpu.matmul %14, %17, %cst_22 {dimension_numbers = #tpu.dot_dimension_numbers<[1], [0], [0], [1], [0, 0, 1, 1], [], []>} : vector<15x32xf32>, vector<32x32xf32>, vector<15x32xf32> -> vector<15x32xf32>
    %c0_23 = arith.constant 0 : index
    %c0_24 = arith.constant 0 : index
    %19 = vector.load %arg15[%c0_23, %c0_24] : memref<32x32xf32, #tpu.memory_space<vmem>>, vector<32x32xf32>
    %cst_25 = arith.constant dense<0.000000e+00> : vector<15x32xf32>
    %20 = tpu.matmul %16, %19, %cst_25 {dimension_numbers = #tpu.dot_dimension_numbers<[1], [0], [0], [1], [0, 0, 1, 1], [], []>} : vector<15x32xf32>, vector<32x32xf32>, vector<15x32xf32> -> vector<15x32xf32>
    %21 = arith.addf %18, %20 : vector<15x32xf32>
    %c0_26 = arith.constant 0 : index
    %c0_27 = arith.constant 0 : index
    %22 = vector.load %arg16[%c0_26, %c0_27] : memref<1x32xf32, #tpu.memory_space<vmem>>, vector<1x32xf32>
    %23 = vector.broadcast %22 : vector<1x32xf32> to vector<15x32xf32>
    %24 = arith.addf %21, %23 : vector<15x32xf32>
    %c0_28 = arith.constant 0 : index
    %c0_29 = arith.constant 0 : index
    %25 = vector.load %arg5[%c0_28, %c0_29] : memref<15x6xf32, #tpu.memory_space<vmem>>, vector<15x6xf32>
    %cst_30 = arith.constant dense<0.000000e+00> : vector<15x32xf32>
    %26 = tpu.matmul %25, %8, %cst_30 {dimension_numbers = #tpu.dot_dimension_numbers<[1], [0], [0], [1], [0, 0, 1, 1], [], []>} : vector<15x6xf32>, vector<6x32xf32>, vector<15x32xf32> -> vector<15x32xf32>
    %c0_31 = arith.constant 0 : index
    %c0_32 = arith.constant 0 : index
    %27 = vector.load %arg6[%c0_31, %c0_32] : memref<15x6xf32, #tpu.memory_space<vmem>>, vector<15x6xf32>
    %cst_33 = arith.constant dense<0.000000e+00> : vector<15x32xf32>
    %28 = tpu.matmul %27, %8, %cst_33 {dimension_numbers = #tpu.dot_dimension_numbers<[1], [0], [0], [1], [0, 0, 1, 1], [], []>} : vector<15x6xf32>, vector<6x32xf32>, vector<15x32xf32> -> vector<15x32xf32>
    %c0_34 = arith.constant 0 : index
    %c0_35 = arith.constant 0 : index
    %29 = vector.load %arg17[%c0_34, %c0_35] : memref<32x32xf32, #tpu.memory_space<vmem>>, vector<32x32xf32>
    %cst_36 = arith.constant dense<0.000000e+00> : vector<15x32xf32>
    %30 = tpu.matmul %26, %29, %cst_36 {dimension_numbers = #tpu.dot_dimension_numbers<[1], [0], [0], [1], [0, 0, 1, 1], [], []>} : vector<15x32xf32>, vector<32x32xf32>, vector<15x32xf32> -> vector<15x32xf32>
    %c0_37 = arith.constant 0 : index
    %c0_38 = arith.constant 0 : index
    %31 = vector.load %arg18[%c0_37, %c0_38] : memref<32x32xf32, #tpu.memory_space<vmem>>, vector<32x32xf32>
    %cst_39 = arith.constant dense<0.000000e+00> : vector<15x32xf32>
    %32 = tpu.matmul %28, %31, %cst_39 {dimension_numbers = #tpu.dot_dimension_numbers<[1], [0], [0], [1], [0, 0, 1, 1], [], []>} : vector<15x32xf32>, vector<32x32xf32>, vector<15x32xf32> -> vector<15x32xf32>
    %33 = arith.addf %30, %32 : vector<15x32xf32>
    %c0_40 = arith.constant 0 : index
    %c0_41 = arith.constant 0 : index
    %34 = vector.load %arg8[%c0_40, %c0_41] : memref<15x32xf32, #tpu.memory_space<vmem>>, vector<15x32xf32>
    %c0_42 = arith.constant 0 : index
    %c0_43 = arith.constant 0 : index
    %35 = vector.load %arg19[%c0_42, %c0_43] : memref<32x32xf32, #tpu.memory_space<vmem>>, vector<32x32xf32>
    %cst_44 = arith.constant dense<0.000000e+00> : vector<15x32xf32>
    %36 = tpu.matmul %34, %35, %cst_44 {dimension_numbers = #tpu.dot_dimension_numbers<[1], [0], [0], [1], [0, 0, 1, 1], [], []>} : vector<15x32xf32>, vector<32x32xf32>, vector<15x32xf32> -> vector<15x32xf32>
    %37 = arith.addf %33, %36 : vector<15x32xf32>
    %c0_45 = arith.constant 0 : index
    %c0_46 = arith.constant 0 : index
    %38 = vector.load %arg7[%c0_45, %c0_46] : memref<15x1xf32, #tpu.memory_space<vmem>>, vector<15x1xf32>
    %c0_47 = arith.constant 0 : index
    %c0_48 = arith.constant 0 : index
    %39 = vector.load %arg20[%c0_47, %c0_48] : memref<1x32xf32, #tpu.memory_space<vmem>>, vector<1x32xf32>
    %40 = vector.broadcast %38 : vector<15x1xf32> to vector<15x32xf32>
    %41 = vector.broadcast %39 : vector<1x32xf32> to vector<15x32xf32>
    %42 = arith.mulf %40, %41 : vector<15x32xf32>
    %43 = arith.addf %37, %42 : vector<15x32xf32>
    %c0_49 = arith.constant 0 : index
    %c0_50 = arith.constant 0 : index
    %44 = vector.load %arg21[%c0_49, %c0_50] : memref<32x32xf32, #tpu.memory_space<vmem>>, vector<32x32xf32>
    %cst_51 = arith.constant dense<0.000000e+00> : vector<15x32xf32>
    %45 = tpu.matmul %43, %44, %cst_51 {dimension_numbers = #tpu.dot_dimension_numbers<[1], [0], [0], [1], [0, 0, 1, 1], [], []>} : vector<15x32xf32>, vector<32x32xf32>, vector<15x32xf32> -> vector<15x32xf32>
    %c0_52 = arith.constant 0 : index
    %c0_53 = arith.constant 0 : index
    %46 = vector.load %arg22[%c0_52, %c0_53] : memref<32x32xf32, #tpu.memory_space<vmem>>, vector<32x32xf32>
    %cst_54 = arith.constant dense<0.000000e+00> : vector<15x32xf32>
    %47 = tpu.matmul %24, %46, %cst_54 {dimension_numbers = #tpu.dot_dimension_numbers<[1], [0], [0], [1], [0, 0, 1, 1], [], []>} : vector<15x32xf32>, vector<32x32xf32>, vector<15x32xf32> -> vector<15x32xf32>
    %48 = arith.addf %45, %47 : vector<15x32xf32>
    %c0_55 = arith.constant 0 : index
    %c0_56 = arith.constant 0 : index
    %49 = vector.load %arg23[%c0_55, %c0_56] : memref<1x32xf32, #tpu.memory_space<vmem>>, vector<1x32xf32>
    %50 = vector.broadcast %49 : vector<1x32xf32> to vector<15x32xf32>
    %51 = arith.addf %48, %50 : vector<15x32xf32>
    %c0_57 = arith.constant 0 : index
    %c0_58 = arith.constant 0 : index
    %52 = vector.load %arg9[%c0_57, %c0_58] : memref<14x14xf32, #tpu.memory_space<vmem>>, vector<14x14xf32>
    %c0_59 = arith.constant 0 : index
    %c0_60 = arith.constant 0 : index
    %53 = vector.load %arg10[%c0_59, %c0_60] : memref<15x15xf32, #tpu.memory_space<vmem>>, vector<15x15xf32>
    %c0_61 = arith.constant 0 : index
    %c0_62 = arith.constant 0 : index
    %54 = vector.load %arg11[%c0_61, %c0_62] : memref<15x14xf32, #tpu.memory_space<vmem>>, vector<15x14xf32>
    %c0_63 = arith.constant 0 : index
    %c0_64 = arith.constant 0 : index
    %c0_65 = arith.constant 0 : index
    %55 = vector.load %arg35[%c0_63, %c0_64, %c0_65] : memref<2x32x96xf32, #tpu.memory_space<vmem>>, vector<1x32x96xf32>
    %56 = vector.shape_cast %55 : vector<1x32x96xf32> to vector<32x96xf32>
    %cst_66 = arith.constant dense<0.000000e+00> : vector<14x96xf32>
    %57 = tpu.matmul %12, %56, %cst_66 {dimension_numbers = #tpu.dot_dimension_numbers<[1], [0], [0], [1], [0, 0, 1, 1], [], []>} : vector<14x32xf32>, vector<32x96xf32>, vector<14x96xf32> -> vector<14x96xf32>
    %c0_67 = arith.constant 0 : index
    %c0_68 = arith.constant 0 : index
    %c0_69 = arith.constant 0 : index
    %58 = vector.load %arg27[%c0_67, %c0_68, %c0_69] : memref<2x1x96xf32, #tpu.memory_space<vmem>>, vector<1x1x96xf32>
    %59 = vector.shape_cast %58 : vector<1x1x96xf32> to vector<1x96xf32>
    %60 = vector.broadcast %59 : vector<1x96xf32> to vector<14x96xf32>
    %61 = arith.addf %57, %60 : vector<14x96xf32>
    %62 = vector.extract_strided_slice %61 {offsets = [0, 0], sizes = [14, 32], strides = [1, 1]} : vector<14x96xf32> to vector<14x32xf32>
    %63 = vector.extract_strided_slice %61 {offsets = [0, 32], sizes = [14, 32], strides = [1, 1]} : vector<14x96xf32> to vector<14x32xf32>
    %64 = vector.extract_strided_slice %61 {offsets = [0, 64], sizes = [14, 32], strides = [1, 1]} : vector<14x96xf32> to vector<14x32xf32>
    %c0_70 = arith.constant 0 : index
    %c0_71 = arith.constant 0 : index
    %c0_72 = arith.constant 0 : index
    %65 = vector.load %arg34[%c0_70, %c0_71, %c0_72] : memref<2x32x32xf32, #tpu.memory_space<vmem>>, vector<1x32x32xf32>
    %66 = vector.shape_cast %65 : vector<1x32x32xf32> to vector<32x32xf32>
    %c0_73 = arith.constant 0 : index
    %c0_74 = arith.constant 0 : index
    %c0_75 = arith.constant 0 : index
    %67 = vector.load %arg26[%c0_73, %c0_74, %c0_75] : memref<2x1x32xf32, #tpu.memory_space<vmem>>, vector<1x1x32xf32>
    %68 = vector.shape_cast %67 : vector<1x1x32xf32> to vector<1x32xf32>
    %69 = vector.extract_strided_slice %62 {offsets = [0, 0], sizes = [14, 8], strides = [1, 1]} : vector<14x32xf32> to vector<14x8xf32>
    %70 = vector.extract_strided_slice %63 {offsets = [0, 0], sizes = [14, 8], strides = [1, 1]} : vector<14x32xf32> to vector<14x8xf32>
    %71 = vector.extract_strided_slice %64 {offsets = [0, 0], sizes = [14, 8], strides = [1, 1]} : vector<14x32xf32> to vector<14x8xf32>
    %cst_76 = arith.constant dense<0.000000e+00> : vector<14x14xf32>
    %72 = tpu.matmul %69, %70, %cst_76 {dimension_numbers = #tpu.dot_dimension_numbers<[1], [1], [0], [0], [0, 0, 1, 0], [], []>} : vector<14x8xf32>, vector<14x8xf32>, vector<14x14xf32> -> vector<14x14xf32>
    %cst_77 = arith.constant 0.353553385 : f32
    %73 = vector.broadcast %cst_77 : f32 to vector<14x14xf32>
    %74 = arith.mulf %72, %73 : vector<14x14xf32>
    %75 = arith.addf %74, %52 : vector<14x14xf32>
    %cst_78 = arith.constant dense<0xFF800000> : vector<14xf32>
    %76 = vector.multi_reduction <maximumf>, %75, %cst_78 [1] : vector<14x14xf32> to vector<14xf32>
    %77 = vector.shape_cast %76 : vector<14xf32> to vector<14x1xf32>
    %78 = vector.broadcast %77 : vector<14x1xf32> to vector<14x14xf32>
    %79 = arith.subf %75, %78 : vector<14x14xf32>
    %80 = math.exp %79 : vector<14x14xf32>
    %cst_79 = arith.constant dense<0.000000e+00> : vector<14xf32>
    %81 = vector.multi_reduction <add>, %80, %cst_79 [1] : vector<14x14xf32> to vector<14xf32>
    %82 = vector.shape_cast %81 : vector<14xf32> to vector<14x1xf32>
    %83 = tpu.reciprocal %82 {approx = true} : vector<14x1xf32> -> vector<14x1xf32>
    %84 = vector.broadcast %83 : vector<14x1xf32> to vector<14x14xf32>
    %85 = arith.mulf %80, %84 : vector<14x14xf32>
    %cst_80 = arith.constant dense<0.000000e+00> : vector<14x8xf32>
    %86 = tpu.matmul %85, %71, %cst_80 {dimension_numbers = #tpu.dot_dimension_numbers<[1], [0], [0], [1], [0, 0, 1, 1], [], []>} : vector<14x14xf32>, vector<14x8xf32>, vector<14x8xf32> -> vector<14x8xf32>
    %87 = vector.extract_strided_slice %66 {offsets = [0, 0], sizes = [8, 32], strides = [1, 1]} : vector<32x32xf32> to vector<8x32xf32>
    %cst_81 = arith.constant dense<0.000000e+00> : vector<14x32xf32>
    %88 = tpu.matmul %86, %87, %cst_81 {dimension_numbers = #tpu.dot_dimension_numbers<[1], [0], [0], [1], [0, 0, 1, 1], [], []>} : vector<14x8xf32>, vector<8x32xf32>, vector<14x32xf32> -> vector<14x32xf32>
    %89 = vector.extract_strided_slice %62 {offsets = [0, 8], sizes = [14, 8], strides = [1, 1]} : vector<14x32xf32> to vector<14x8xf32>
    %90 = vector.extract_strided_slice %63 {offsets = [0, 8], sizes = [14, 8], strides = [1, 1]} : vector<14x32xf32> to vector<14x8xf32>
    %91 = vector.extract_strided_slice %64 {offsets = [0, 8], sizes = [14, 8], strides = [1, 1]} : vector<14x32xf32> to vector<14x8xf32>
    %cst_82 = arith.constant dense<0.000000e+00> : vector<14x14xf32>
    %92 = tpu.matmul %89, %90, %cst_82 {dimension_numbers = #tpu.dot_dimension_numbers<[1], [1], [0], [0], [0, 0, 1, 0], [], []>} : vector<14x8xf32>, vector<14x8xf32>, vector<14x14xf32> -> vector<14x14xf32>
    %cst_83 = arith.constant 0.353553385 : f32
    %93 = vector.broadcast %cst_83 : f32 to vector<14x14xf32>
    %94 = arith.mulf %92, %93 : vector<14x14xf32>
    %95 = arith.addf %94, %52 : vector<14x14xf32>
    %cst_84 = arith.constant dense<0xFF800000> : vector<14xf32>
    %96 = vector.multi_reduction <maximumf>, %95, %cst_84 [1] : vector<14x14xf32> to vector<14xf32>
    %97 = vector.shape_cast %96 : vector<14xf32> to vector<14x1xf32>
    %98 = vector.broadcast %97 : vector<14x1xf32> to vector<14x14xf32>
    %99 = arith.subf %95, %98 : vector<14x14xf32>
    %100 = math.exp %99 : vector<14x14xf32>
    %cst_85 = arith.constant dense<0.000000e+00> : vector<14xf32>
    %101 = vector.multi_reduction <add>, %100, %cst_85 [1] : vector<14x14xf32> to vector<14xf32>
    %102 = vector.shape_cast %101 : vector<14xf32> to vector<14x1xf32>
    %103 = tpu.reciprocal %102 {approx = true} : vector<14x1xf32> -> vector<14x1xf32>
    %104 = vector.broadcast %103 : vector<14x1xf32> to vector<14x14xf32>
    %105 = arith.mulf %100, %104 : vector<14x14xf32>
    %cst_86 = arith.constant dense<0.000000e+00> : vector<14x8xf32>
    %106 = tpu.matmul %105, %91, %cst_86 {dimension_numbers = #tpu.dot_dimension_numbers<[1], [0], [0], [1], [0, 0, 1, 1], [], []>} : vector<14x14xf32>, vector<14x8xf32>, vector<14x8xf32> -> vector<14x8xf32>
    %107 = vector.extract_strided_slice %66 {offsets = [8, 0], sizes = [8, 32], strides = [1, 1]} : vector<32x32xf32> to vector<8x32xf32>
    %cst_87 = arith.constant dense<0.000000e+00> : vector<14x32xf32>
    %108 = tpu.matmul %106, %107, %cst_87 {dimension_numbers = #tpu.dot_dimension_numbers<[1], [0], [0], [1], [0, 0, 1, 1], [], []>} : vector<14x8xf32>, vector<8x32xf32>, vector<14x32xf32> -> vector<14x32xf32>
    %109 = arith.addf %88, %108 : vector<14x32xf32>
    %110 = vector.extract_strided_slice %62 {offsets = [0, 16], sizes = [14, 8], strides = [1, 1]} : vector<14x32xf32> to vector<14x8xf32>
    %111 = vector.extract_strided_slice %63 {offsets = [0, 16], sizes = [14, 8], strides = [1, 1]} : vector<14x32xf32> to vector<14x8xf32>
    %112 = vector.extract_strided_slice %64 {offsets = [0, 16], sizes = [14, 8], strides = [1, 1]} : vector<14x32xf32> to vector<14x8xf32>
    %cst_88 = arith.constant dense<0.000000e+00> : vector<14x14xf32>
    %113 = tpu.matmul %110, %111, %cst_88 {dimension_numbers = #tpu.dot_dimension_numbers<[1], [1], [0], [0], [0, 0, 1, 0], [], []>} : vector<14x8xf32>, vector<14x8xf32>, vector<14x14xf32> -> vector<14x14xf32>
    %cst_89 = arith.constant 0.353553385 : f32
    %114 = vector.broadcast %cst_89 : f32 to vector<14x14xf32>
    %115 = arith.mulf %113, %114 : vector<14x14xf32>
    %116 = arith.addf %115, %52 : vector<14x14xf32>
    %cst_90 = arith.constant dense<0xFF800000> : vector<14xf32>
    %117 = vector.multi_reduction <maximumf>, %116, %cst_90 [1] : vector<14x14xf32> to vector<14xf32>
    %118 = vector.shape_cast %117 : vector<14xf32> to vector<14x1xf32>
    %119 = vector.broadcast %118 : vector<14x1xf32> to vector<14x14xf32>
    %120 = arith.subf %116, %119 : vector<14x14xf32>
    %121 = math.exp %120 : vector<14x14xf32>
    %cst_91 = arith.constant dense<0.000000e+00> : vector<14xf32>
    %122 = vector.multi_reduction <add>, %121, %cst_91 [1] : vector<14x14xf32> to vector<14xf32>
    %123 = vector.shape_cast %122 : vector<14xf32> to vector<14x1xf32>
    %124 = tpu.reciprocal %123 {approx = true} : vector<14x1xf32> -> vector<14x1xf32>
    %125 = vector.broadcast %124 : vector<14x1xf32> to vector<14x14xf32>
    %126 = arith.mulf %121, %125 : vector<14x14xf32>
    %cst_92 = arith.constant dense<0.000000e+00> : vector<14x8xf32>
    %127 = tpu.matmul %126, %112, %cst_92 {dimension_numbers = #tpu.dot_dimension_numbers<[1], [0], [0], [1], [0, 0, 1, 1], [], []>} : vector<14x14xf32>, vector<14x8xf32>, vector<14x8xf32> -> vector<14x8xf32>
    %128 = vector.extract_strided_slice %66 {offsets = [16, 0], sizes = [8, 32], strides = [1, 1]} : vector<32x32xf32> to vector<8x32xf32>
    %cst_93 = arith.constant dense<0.000000e+00> : vector<14x32xf32>
    %129 = tpu.matmul %127, %128, %cst_93 {dimension_numbers = #tpu.dot_dimension_numbers<[1], [0], [0], [1], [0, 0, 1, 1], [], []>} : vector<14x8xf32>, vector<8x32xf32>, vector<14x32xf32> -> vector<14x32xf32>
    %130 = arith.addf %109, %129 : vector<14x32xf32>
    %131 = vector.extract_strided_slice %62 {offsets = [0, 24], sizes = [14, 8], strides = [1, 1]} : vector<14x32xf32> to vector<14x8xf32>
    %132 = vector.extract_strided_slice %63 {offsets = [0, 24], sizes = [14, 8], strides = [1, 1]} : vector<14x32xf32> to vector<14x8xf32>
    %133 = vector.extract_strided_slice %64 {offsets = [0, 24], sizes = [14, 8], strides = [1, 1]} : vector<14x32xf32> to vector<14x8xf32>
    %cst_94 = arith.constant dense<0.000000e+00> : vector<14x14xf32>
    %134 = tpu.matmul %131, %132, %cst_94 {dimension_numbers = #tpu.dot_dimension_numbers<[1], [1], [0], [0], [0, 0, 1, 0], [], []>} : vector<14x8xf32>, vector<14x8xf32>, vector<14x14xf32> -> vector<14x14xf32>
    %cst_95 = arith.constant 0.353553385 : f32
    %135 = vector.broadcast %cst_95 : f32 to vector<14x14xf32>
    %136 = arith.mulf %134, %135 : vector<14x14xf32>
    %137 = arith.addf %136, %52 : vector<14x14xf32>
    %cst_96 = arith.constant dense<0xFF800000> : vector<14xf32>
    %138 = vector.multi_reduction <maximumf>, %137, %cst_96 [1] : vector<14x14xf32> to vector<14xf32>
    %139 = vector.shape_cast %138 : vector<14xf32> to vector<14x1xf32>
    %140 = vector.broadcast %139 : vector<14x1xf32> to vector<14x14xf32>
    %141 = arith.subf %137, %140 : vector<14x14xf32>
    %142 = math.exp %141 : vector<14x14xf32>
    %cst_97 = arith.constant dense<0.000000e+00> : vector<14xf32>
    %143 = vector.multi_reduction <add>, %142, %cst_97 [1] : vector<14x14xf32> to vector<14xf32>
    %144 = vector.shape_cast %143 : vector<14xf32> to vector<14x1xf32>
    %145 = tpu.reciprocal %144 {approx = true} : vector<14x1xf32> -> vector<14x1xf32>
    %146 = vector.broadcast %145 : vector<14x1xf32> to vector<14x14xf32>
    %147 = arith.mulf %142, %146 : vector<14x14xf32>
    %cst_98 = arith.constant dense<0.000000e+00> : vector<14x8xf32>
    %148 = tpu.matmul %147, %133, %cst_98 {dimension_numbers = #tpu.dot_dimension_numbers<[1], [0], [0], [1], [0, 0, 1, 1], [], []>} : vector<14x14xf32>, vector<14x8xf32>, vector<14x8xf32> -> vector<14x8xf32>
    %149 = vector.extract_strided_slice %66 {offsets = [24, 0], sizes = [8, 32], strides = [1, 1]} : vector<32x32xf32> to vector<8x32xf32>
    %cst_99 = arith.constant dense<0.000000e+00> : vector<14x32xf32>
    %150 = tpu.matmul %148, %149, %cst_99 {dimension_numbers = #tpu.dot_dimension_numbers<[1], [0], [0], [1], [0, 0, 1, 1], [], []>} : vector<14x8xf32>, vector<8x32xf32>, vector<14x32xf32> -> vector<14x32xf32>
    %151 = arith.addf %130, %150 : vector<14x32xf32>
    %152 = vector.broadcast %68 : vector<1x32xf32> to vector<14x32xf32>
    %153 = arith.addf %151, %152 : vector<14x32xf32>
    %154 = arith.addf %12, %153 : vector<14x32xf32>
    %c0_100 = arith.constant 0 : index
    %c0_101 = arith.constant 0 : index
    %c0_102 = arith.constant 0 : index
    %155 = vector.load %arg29[%c0_100, %c0_101, %c0_102] : memref<2x1x32xf32, #tpu.memory_space<vmem>>, vector<1x1x32xf32>
    %156 = vector.shape_cast %155 : vector<1x1x32xf32> to vector<1x32xf32>
    %c0_103 = arith.constant 0 : index
    %c0_104 = arith.constant 0 : index
    %c0_105 = arith.constant 0 : index
    %157 = vector.load %arg28[%c0_103, %c0_104, %c0_105] : memref<2x1x32xf32, #tpu.memory_space<vmem>>, vector<1x1x32xf32>
    %158 = vector.shape_cast %157 : vector<1x1x32xf32> to vector<1x32xf32>
    %cst_106 = arith.constant dense<0.000000e+00> : vector<14xf32>
    %159 = vector.multi_reduction <add>, %154, %cst_106 [1] : vector<14x32xf32> to vector<14xf32>
    %160 = vector.shape_cast %159 : vector<14xf32> to vector<14x1xf32>
    %cst_107 = arith.constant 3.200000e+01 : f32
    %161 = vector.broadcast %cst_107 : f32 to vector<14x1xf32>
    %162 = arith.divf %160, %161 : vector<14x1xf32>
    %163 = vector.broadcast %162 : vector<14x1xf32> to vector<14x32xf32>
    %164 = arith.subf %154, %163 : vector<14x32xf32>
    %165 = arith.mulf %164, %164 : vector<14x32xf32>
    %cst_108 = arith.constant dense<0.000000e+00> : vector<14xf32>
    %166 = vector.multi_reduction <add>, %165, %cst_108 [1] : vector<14x32xf32> to vector<14xf32>
    %167 = vector.shape_cast %166 : vector<14xf32> to vector<14x1xf32>
    %cst_109 = arith.constant 3.200000e+01 : f32
    %168 = vector.broadcast %cst_109 : f32 to vector<14x1xf32>
    %169 = arith.divf %167, %168 : vector<14x1xf32>
    %170 = vector.broadcast %162 : vector<14x1xf32> to vector<14x32xf32>
    %171 = arith.subf %154, %170 : vector<14x32xf32>
    %cst_110 = arith.constant 9.99999974E-6 : f32
    %172 = vector.broadcast %cst_110 : f32 to vector<14x1xf32>
    %173 = arith.addf %169, %172 : vector<14x1xf32>
    %174 = math.rsqrt %173 : vector<14x1xf32>
    %175 = vector.broadcast %174 : vector<14x1xf32> to vector<14x32xf32>
    %176 = arith.mulf %171, %175 : vector<14x32xf32>
    %177 = vector.broadcast %156 : vector<1x32xf32> to vector<14x32xf32>
    %178 = arith.mulf %176, %177 : vector<14x32xf32>
    %179 = vector.broadcast %158 : vector<1x32xf32> to vector<14x32xf32>
    %180 = arith.addf %178, %179 : vector<14x32xf32>
    %c0_111 = arith.constant 0 : index
    %c0_112 = arith.constant 0 : index
    %c0_113 = arith.constant 0 : index
    %181 = vector.load %arg32[%c0_111, %c0_112, %c0_113] : memref<2x32x64xf32, #tpu.memory_space<vmem>>, vector<1x32x64xf32>
    %182 = vector.shape_cast %181 : vector<1x32x64xf32> to vector<32x64xf32>
    %c0_114 = arith.constant 0 : index
    %c0_115 = arith.constant 0 : index
    %c0_116 = arith.constant 0 : index
    %183 = vector.load %arg24[%c0_114, %c0_115, %c0_116] : memref<2x1x64xf32, #tpu.memory_space<vmem>>, vector<1x1x64xf32>
    %184 = vector.shape_cast %183 : vector<1x1x64xf32> to vector<1x64xf32>
    %c0_117 = arith.constant 0 : index
    %c0_118 = arith.constant 0 : index
    %c0_119 = arith.constant 0 : index
    %185 = vector.load %arg33[%c0_117, %c0_118, %c0_119] : memref<2x64x32xf32, #tpu.memory_space<vmem>>, vector<1x64x32xf32>
    %186 = vector.shape_cast %185 : vector<1x64x32xf32> to vector<64x32xf32>
    %c0_120 = arith.constant 0 : index
    %c0_121 = arith.constant 0 : index
    %c0_122 = arith.constant 0 : index
    %187 = vector.load %arg25[%c0_120, %c0_121, %c0_122] : memref<2x1x32xf32, #tpu.memory_space<vmem>>, vector<1x1x32xf32>
    %188 = vector.shape_cast %187 : vector<1x1x32xf32> to vector<1x32xf32>
    %cst_123 = arith.constant dense<0.000000e+00> : vector<14x64xf32>
    %189 = tpu.matmul %180, %182, %cst_123 {dimension_numbers = #tpu.dot_dimension_numbers<[1], [0], [0], [1], [0, 0, 1, 1], [], []>} : vector<14x32xf32>, vector<32x64xf32>, vector<14x64xf32> -> vector<14x64xf32>
    %190 = vector.broadcast %184 : vector<1x64xf32> to vector<14x64xf32>
    %191 = arith.addf %189, %190 : vector<14x64xf32>
    %cst_124 = arith.constant 0.000000e+00 : f32
    %192 = vector.broadcast %cst_124 : f32 to vector<14x64xf32>
    %193 = arith.maximumf %191, %192 : vector<14x64xf32>
    %cst_125 = arith.constant dense<0.000000e+00> : vector<14x32xf32>
    %194 = tpu.matmul %193, %186, %cst_125 {dimension_numbers = #tpu.dot_dimension_numbers<[1], [0], [0], [1], [0, 0, 1, 1], [], []>} : vector<14x64xf32>, vector<64x32xf32>, vector<14x32xf32> -> vector<14x32xf32>
    %195 = vector.broadcast %188 : vector<1x32xf32> to vector<14x32xf32>
    %196 = arith.addf %194, %195 : vector<14x32xf32>
    %197 = arith.addf %180, %196 : vector<14x32xf32>
    %c0_126 = arith.constant 0 : index
    %c0_127 = arith.constant 0 : index
    %c0_128 = arith.constant 0 : index
    %198 = vector.load %arg31[%c0_126, %c0_127, %c0_128] : memref<2x1x32xf32, #tpu.memory_space<vmem>>, vector<1x1x32xf32>
    %199 = vector.shape_cast %198 : vector<1x1x32xf32> to vector<1x32xf32>
    %c0_129 = arith.constant 0 : index
    %c0_130 = arith.constant 0 : index
    %c0_131 = arith.constant 0 : index
    %200 = vector.load %arg30[%c0_129, %c0_130, %c0_131] : memref<2x1x32xf32, #tpu.memory_space<vmem>>, vector<1x1x32xf32>
    %201 = vector.shape_cast %200 : vector<1x1x32xf32> to vector<1x32xf32>
    %cst_132 = arith.constant dense<0.000000e+00> : vector<14xf32>
    %202 = vector.multi_reduction <add>, %197, %cst_132 [1] : vector<14x32xf32> to vector<14xf32>
    %203 = vector.shape_cast %202 : vector<14xf32> to vector<14x1xf32>
    %cst_133 = arith.constant 3.200000e+01 : f32
    %204 = vector.broadcast %cst_133 : f32 to vector<14x1xf32>
    %205 = arith.divf %203, %204 : vector<14x1xf32>
    %206 = vector.broadcast %205 : vector<14x1xf32> to vector<14x32xf32>
    %207 = arith.subf %197, %206 : vector<14x32xf32>
    %208 = arith.mulf %207, %207 : vector<14x32xf32>
    %cst_134 = arith.constant dense<0.000000e+00> : vector<14xf32>
    %209 = vector.multi_reduction <add>, %208, %cst_134 [1] : vector<14x32xf32> to vector<14xf32>
    %210 = vector.shape_cast %209 : vector<14xf32> to vector<14x1xf32>
    %cst_135 = arith.constant 3.200000e+01 : f32
    %211 = vector.broadcast %cst_135 : f32 to vector<14x1xf32>
    %212 = arith.divf %210, %211 : vector<14x1xf32>
    %213 = vector.broadcast %205 : vector<14x1xf32> to vector<14x32xf32>
    %214 = arith.subf %197, %213 : vector<14x32xf32>
    %cst_136 = arith.constant 9.99999974E-6 : f32
    %215 = vector.broadcast %cst_136 : f32 to vector<14x1xf32>
    %216 = arith.addf %212, %215 : vector<14x1xf32>
    %217 = math.rsqrt %216 : vector<14x1xf32>
    %218 = vector.broadcast %217 : vector<14x1xf32> to vector<14x32xf32>
    %219 = arith.mulf %214, %218 : vector<14x32xf32>
    %220 = vector.broadcast %199 : vector<1x32xf32> to vector<14x32xf32>
    %221 = arith.mulf %219, %220 : vector<14x32xf32>
    %222 = vector.broadcast %201 : vector<1x32xf32> to vector<14x32xf32>
    %223 = arith.addf %221, %222 : vector<14x32xf32>
    %c1 = arith.constant 1 : index
    %c0_137 = arith.constant 0 : index
    %c0_138 = arith.constant 0 : index
    %224 = vector.load %arg35[%c1, %c0_137, %c0_138] : memref<2x32x96xf32, #tpu.memory_space<vmem>>, vector<1x32x96xf32>
    %225 = vector.shape_cast %224 : vector<1x32x96xf32> to vector<32x96xf32>
    %cst_139 = arith.constant dense<0.000000e+00> : vector<14x96xf32>
    %226 = tpu.matmul %223, %225, %cst_139 {dimension_numbers = #tpu.dot_dimension_numbers<[1], [0], [0], [1], [0, 0, 1, 1], [], []>} : vector<14x32xf32>, vector<32x96xf32>, vector<14x96xf32> -> vector<14x96xf32>
    %c1_140 = arith.constant 1 : index
    %c0_141 = arith.constant 0 : index
    %c0_142 = arith.constant 0 : index
    %227 = vector.load %arg27[%c1_140, %c0_141, %c0_142] : memref<2x1x96xf32, #tpu.memory_space<vmem>>, vector<1x1x96xf32>
    %228 = vector.shape_cast %227 : vector<1x1x96xf32> to vector<1x96xf32>
    %229 = vector.broadcast %228 : vector<1x96xf32> to vector<14x96xf32>
    %230 = arith.addf %226, %229 : vector<14x96xf32>
    %231 = vector.extract_strided_slice %230 {offsets = [0, 0], sizes = [14, 32], strides = [1, 1]} : vector<14x96xf32> to vector<14x32xf32>
    %232 = vector.extract_strided_slice %230 {offsets = [0, 32], sizes = [14, 32], strides = [1, 1]} : vector<14x96xf32> to vector<14x32xf32>
    %233 = vector.extract_strided_slice %230 {offsets = [0, 64], sizes = [14, 32], strides = [1, 1]} : vector<14x96xf32> to vector<14x32xf32>
    %c1_143 = arith.constant 1 : index
    %c0_144 = arith.constant 0 : index
    %c0_145 = arith.constant 0 : index
    %234 = vector.load %arg34[%c1_143, %c0_144, %c0_145] : memref<2x32x32xf32, #tpu.memory_space<vmem>>, vector<1x32x32xf32>
    %235 = vector.shape_cast %234 : vector<1x32x32xf32> to vector<32x32xf32>
    %c1_146 = arith.constant 1 : index
    %c0_147 = arith.constant 0 : index
    %c0_148 = arith.constant 0 : index
    %236 = vector.load %arg26[%c1_146, %c0_147, %c0_148] : memref<2x1x32xf32, #tpu.memory_space<vmem>>, vector<1x1x32xf32>
    %237 = vector.shape_cast %236 : vector<1x1x32xf32> to vector<1x32xf32>
    %238 = vector.extract_strided_slice %231 {offsets = [0, 0], sizes = [14, 8], strides = [1, 1]} : vector<14x32xf32> to vector<14x8xf32>
    %239 = vector.extract_strided_slice %232 {offsets = [0, 0], sizes = [14, 8], strides = [1, 1]} : vector<14x32xf32> to vector<14x8xf32>
    %240 = vector.extract_strided_slice %233 {offsets = [0, 0], sizes = [14, 8], strides = [1, 1]} : vector<14x32xf32> to vector<14x8xf32>
    %cst_149 = arith.constant dense<0.000000e+00> : vector<14x14xf32>
    %241 = tpu.matmul %238, %239, %cst_149 {dimension_numbers = #tpu.dot_dimension_numbers<[1], [1], [0], [0], [0, 0, 1, 0], [], []>} : vector<14x8xf32>, vector<14x8xf32>, vector<14x14xf32> -> vector<14x14xf32>
    %cst_150 = arith.constant 0.353553385 : f32
    %242 = vector.broadcast %cst_150 : f32 to vector<14x14xf32>
    %243 = arith.mulf %241, %242 : vector<14x14xf32>
    %244 = arith.addf %243, %52 : vector<14x14xf32>
    %cst_151 = arith.constant dense<0xFF800000> : vector<14xf32>
    %245 = vector.multi_reduction <maximumf>, %244, %cst_151 [1] : vector<14x14xf32> to vector<14xf32>
    %246 = vector.shape_cast %245 : vector<14xf32> to vector<14x1xf32>
    %247 = vector.broadcast %246 : vector<14x1xf32> to vector<14x14xf32>
    %248 = arith.subf %244, %247 : vector<14x14xf32>
    %249 = math.exp %248 : vector<14x14xf32>
    %cst_152 = arith.constant dense<0.000000e+00> : vector<14xf32>
    %250 = vector.multi_reduction <add>, %249, %cst_152 [1] : vector<14x14xf32> to vector<14xf32>
    %251 = vector.shape_cast %250 : vector<14xf32> to vector<14x1xf32>
    %252 = tpu.reciprocal %251 {approx = true} : vector<14x1xf32> -> vector<14x1xf32>
    %253 = vector.broadcast %252 : vector<14x1xf32> to vector<14x14xf32>
    %254 = arith.mulf %249, %253 : vector<14x14xf32>
    %cst_153 = arith.constant dense<0.000000e+00> : vector<14x8xf32>
    %255 = tpu.matmul %254, %240, %cst_153 {dimension_numbers = #tpu.dot_dimension_numbers<[1], [0], [0], [1], [0, 0, 1, 1], [], []>} : vector<14x14xf32>, vector<14x8xf32>, vector<14x8xf32> -> vector<14x8xf32>
    %256 = vector.extract_strided_slice %235 {offsets = [0, 0], sizes = [8, 32], strides = [1, 1]} : vector<32x32xf32> to vector<8x32xf32>
    %cst_154 = arith.constant dense<0.000000e+00> : vector<14x32xf32>
    %257 = tpu.matmul %255, %256, %cst_154 {dimension_numbers = #tpu.dot_dimension_numbers<[1], [0], [0], [1], [0, 0, 1, 1], [], []>} : vector<14x8xf32>, vector<8x32xf32>, vector<14x32xf32> -> vector<14x32xf32>
    %258 = vector.extract_strided_slice %231 {offsets = [0, 8], sizes = [14, 8], strides = [1, 1]} : vector<14x32xf32> to vector<14x8xf32>
    %259 = vector.extract_strided_slice %232 {offsets = [0, 8], sizes = [14, 8], strides = [1, 1]} : vector<14x32xf32> to vector<14x8xf32>
    %260 = vector.extract_strided_slice %233 {offsets = [0, 8], sizes = [14, 8], strides = [1, 1]} : vector<14x32xf32> to vector<14x8xf32>
    %cst_155 = arith.constant dense<0.000000e+00> : vector<14x14xf32>
    %261 = tpu.matmul %258, %259, %cst_155 {dimension_numbers = #tpu.dot_dimension_numbers<[1], [1], [0], [0], [0, 0, 1, 0], [], []>} : vector<14x8xf32>, vector<14x8xf32>, vector<14x14xf32> -> vector<14x14xf32>
    %cst_156 = arith.constant 0.353553385 : f32
    %262 = vector.broadcast %cst_156 : f32 to vector<14x14xf32>
    %263 = arith.mulf %261, %262 : vector<14x14xf32>
    %264 = arith.addf %263, %52 : vector<14x14xf32>
    %cst_157 = arith.constant dense<0xFF800000> : vector<14xf32>
    %265 = vector.multi_reduction <maximumf>, %264, %cst_157 [1] : vector<14x14xf32> to vector<14xf32>
    %266 = vector.shape_cast %265 : vector<14xf32> to vector<14x1xf32>
    %267 = vector.broadcast %266 : vector<14x1xf32> to vector<14x14xf32>
    %268 = arith.subf %264, %267 : vector<14x14xf32>
    %269 = math.exp %268 : vector<14x14xf32>
    %cst_158 = arith.constant dense<0.000000e+00> : vector<14xf32>
    %270 = vector.multi_reduction <add>, %269, %cst_158 [1] : vector<14x14xf32> to vector<14xf32>
    %271 = vector.shape_cast %270 : vector<14xf32> to vector<14x1xf32>
    %272 = tpu.reciprocal %271 {approx = true} : vector<14x1xf32> -> vector<14x1xf32>
    %273 = vector.broadcast %272 : vector<14x1xf32> to vector<14x14xf32>
    %274 = arith.mulf %269, %273 : vector<14x14xf32>
    %cst_159 = arith.constant dense<0.000000e+00> : vector<14x8xf32>
    %275 = tpu.matmul %274, %260, %cst_159 {dimension_numbers = #tpu.dot_dimension_numbers<[1], [0], [0], [1], [0, 0, 1, 1], [], []>} : vector<14x14xf32>, vector<14x8xf32>, vector<14x8xf32> -> vector<14x8xf32>
    %276 = vector.extract_strided_slice %235 {offsets = [8, 0], sizes = [8, 32], strides = [1, 1]} : vector<32x32xf32> to vector<8x32xf32>
    %cst_160 = arith.constant dense<0.000000e+00> : vector<14x32xf32>
    %277 = tpu.matmul %275, %276, %cst_160 {dimension_numbers = #tpu.dot_dimension_numbers<[1], [0], [0], [1], [0, 0, 1, 1], [], []>} : vector<14x8xf32>, vector<8x32xf32>, vector<14x32xf32> -> vector<14x32xf32>
    %278 = arith.addf %257, %277 : vector<14x32xf32>
    %279 = vector.extract_strided_slice %231 {offsets = [0, 16], sizes = [14, 8], strides = [1, 1]} : vector<14x32xf32> to vector<14x8xf32>
    %280 = vector.extract_strided_slice %232 {offsets = [0, 16], sizes = [14, 8], strides = [1, 1]} : vector<14x32xf32> to vector<14x8xf32>
    %281 = vector.extract_strided_slice %233 {offsets = [0, 16], sizes = [14, 8], strides = [1, 1]} : vector<14x32xf32> to vector<14x8xf32>
    %cst_161 = arith.constant dense<0.000000e+00> : vector<14x14xf32>
    %282 = tpu.matmul %279, %280, %cst_161 {dimension_numbers = #tpu.dot_dimension_numbers<[1], [1], [0], [0], [0, 0, 1, 0], [], []>} : vector<14x8xf32>, vector<14x8xf32>, vector<14x14xf32> -> vector<14x14xf32>
    %cst_162 = arith.constant 0.353553385 : f32
    %283 = vector.broadcast %cst_162 : f32 to vector<14x14xf32>
    %284 = arith.mulf %282, %283 : vector<14x14xf32>
    %285 = arith.addf %284, %52 : vector<14x14xf32>
    %cst_163 = arith.constant dense<0xFF800000> : vector<14xf32>
    %286 = vector.multi_reduction <maximumf>, %285, %cst_163 [1] : vector<14x14xf32> to vector<14xf32>
    %287 = vector.shape_cast %286 : vector<14xf32> to vector<14x1xf32>
    %288 = vector.broadcast %287 : vector<14x1xf32> to vector<14x14xf32>
    %289 = arith.subf %285, %288 : vector<14x14xf32>
    %290 = math.exp %289 : vector<14x14xf32>
    %cst_164 = arith.constant dense<0.000000e+00> : vector<14xf32>
    %291 = vector.multi_reduction <add>, %290, %cst_164 [1] : vector<14x14xf32> to vector<14xf32>
    %292 = vector.shape_cast %291 : vector<14xf32> to vector<14x1xf32>
    %293 = tpu.reciprocal %292 {approx = true} : vector<14x1xf32> -> vector<14x1xf32>
    %294 = vector.broadcast %293 : vector<14x1xf32> to vector<14x14xf32>
    %295 = arith.mulf %290, %294 : vector<14x14xf32>
    %cst_165 = arith.constant dense<0.000000e+00> : vector<14x8xf32>
    %296 = tpu.matmul %295, %281, %cst_165 {dimension_numbers = #tpu.dot_dimension_numbers<[1], [0], [0], [1], [0, 0, 1, 1], [], []>} : vector<14x14xf32>, vector<14x8xf32>, vector<14x8xf32> -> vector<14x8xf32>
    %297 = vector.extract_strided_slice %235 {offsets = [16, 0], sizes = [8, 32], strides = [1, 1]} : vector<32x32xf32> to vector<8x32xf32>
    %cst_166 = arith.constant dense<0.000000e+00> : vector<14x32xf32>
    %298 = tpu.matmul %296, %297, %cst_166 {dimension_numbers = #tpu.dot_dimension_numbers<[1], [0], [0], [1], [0, 0, 1, 1], [], []>} : vector<14x8xf32>, vector<8x32xf32>, vector<14x32xf32> -> vector<14x32xf32>
    %299 = arith.addf %278, %298 : vector<14x32xf32>
    %300 = vector.extract_strided_slice %231 {offsets = [0, 24], sizes = [14, 8], strides = [1, 1]} : vector<14x32xf32> to vector<14x8xf32>
    %301 = vector.extract_strided_slice %232 {offsets = [0, 24], sizes = [14, 8], strides = [1, 1]} : vector<14x32xf32> to vector<14x8xf32>
    %302 = vector.extract_strided_slice %233 {offsets = [0, 24], sizes = [14, 8], strides = [1, 1]} : vector<14x32xf32> to vector<14x8xf32>
    %cst_167 = arith.constant dense<0.000000e+00> : vector<14x14xf32>
    %303 = tpu.matmul %300, %301, %cst_167 {dimension_numbers = #tpu.dot_dimension_numbers<[1], [1], [0], [0], [0, 0, 1, 0], [], []>} : vector<14x8xf32>, vector<14x8xf32>, vector<14x14xf32> -> vector<14x14xf32>
    %cst_168 = arith.constant 0.353553385 : f32
    %304 = vector.broadcast %cst_168 : f32 to vector<14x14xf32>
    %305 = arith.mulf %303, %304 : vector<14x14xf32>
    %306 = arith.addf %305, %52 : vector<14x14xf32>
    %cst_169 = arith.constant dense<0xFF800000> : vector<14xf32>
    %307 = vector.multi_reduction <maximumf>, %306, %cst_169 [1] : vector<14x14xf32> to vector<14xf32>
    %308 = vector.shape_cast %307 : vector<14xf32> to vector<14x1xf32>
    %309 = vector.broadcast %308 : vector<14x1xf32> to vector<14x14xf32>
    %310 = arith.subf %306, %309 : vector<14x14xf32>
    %311 = math.exp %310 : vector<14x14xf32>
    %cst_170 = arith.constant dense<0.000000e+00> : vector<14xf32>
    %312 = vector.multi_reduction <add>, %311, %cst_170 [1] : vector<14x14xf32> to vector<14xf32>
    %313 = vector.shape_cast %312 : vector<14xf32> to vector<14x1xf32>
    %314 = tpu.reciprocal %313 {approx = true} : vector<14x1xf32> -> vector<14x1xf32>
    %315 = vector.broadcast %314 : vector<14x1xf32> to vector<14x14xf32>
    %316 = arith.mulf %311, %315 : vector<14x14xf32>
    %cst_171 = arith.constant dense<0.000000e+00> : vector<14x8xf32>
    %317 = tpu.matmul %316, %302, %cst_171 {dimension_numbers = #tpu.dot_dimension_numbers<[1], [0], [0], [1], [0, 0, 1, 1], [], []>} : vector<14x14xf32>, vector<14x8xf32>, vector<14x8xf32> -> vector<14x8xf32>
    %318 = vector.extract_strided_slice %235 {offsets = [24, 0], sizes = [8, 32], strides = [1, 1]} : vector<32x32xf32> to vector<8x32xf32>
    %cst_172 = arith.constant dense<0.000000e+00> : vector<14x32xf32>
    %319 = tpu.matmul %317, %318, %cst_172 {dimension_numbers = #tpu.dot_dimension_numbers<[1], [0], [0], [1], [0, 0, 1, 1], [], []>} : vector<14x8xf32>, vector<8x32xf32>, vector<14x32xf32> -> vector<14x32xf32>
    %320 = arith.addf %299, %319 : vector<14x32xf32>
    %321 = vector.broadcast %237 : vector<1x32xf32> to vector<14x32xf32>
    %322 = arith.addf %320, %321 : vector<14x32xf32>
    %323 = arith.addf %223, %322 : vector<14x32xf32>
    %c1_173 = arith.constant 1 : index
    %c0_174 = arith.constant 0 : index
    %c0_175 = arith.constant 0 : index
    %324 = vector.load %arg29[%c1_173, %c0_174, %c0_175] : memref<2x1x32xf32, #tpu.memory_space<vmem>>, vector<1x1x32xf32>
    %325 = vector.shape_cast %324 : vector<1x1x32xf32> to vector<1x32xf32>
    %c1_176 = arith.constant 1 : index
    %c0_177 = arith.constant 0 : index
    %c0_178 = arith.constant 0 : index
    %326 = vector.load %arg28[%c1_176, %c0_177, %c0_178] : memref<2x1x32xf32, #tpu.memory_space<vmem>>, vector<1x1x32xf32>
    %327 = vector.shape_cast %326 : vector<1x1x32xf32> to vector<1x32xf32>
    %cst_179 = arith.constant dense<0.000000e+00> : vector<14xf32>
    %328 = vector.multi_reduction <add>, %323, %cst_179 [1] : vector<14x32xf32> to vector<14xf32>
    %329 = vector.shape_cast %328 : vector<14xf32> to vector<14x1xf32>
    %cst_180 = arith.constant 3.200000e+01 : f32
    %330 = vector.broadcast %cst_180 : f32 to vector<14x1xf32>
    %331 = arith.divf %329, %330 : vector<14x1xf32>
    %332 = vector.broadcast %331 : vector<14x1xf32> to vector<14x32xf32>
    %333 = arith.subf %323, %332 : vector<14x32xf32>
    %334 = arith.mulf %333, %333 : vector<14x32xf32>
    %cst_181 = arith.constant dense<0.000000e+00> : vector<14xf32>
    %335 = vector.multi_reduction <add>, %334, %cst_181 [1] : vector<14x32xf32> to vector<14xf32>
    %336 = vector.shape_cast %335 : vector<14xf32> to vector<14x1xf32>
    %cst_182 = arith.constant 3.200000e+01 : f32
    %337 = vector.broadcast %cst_182 : f32 to vector<14x1xf32>
    %338 = arith.divf %336, %337 : vector<14x1xf32>
    %339 = vector.broadcast %331 : vector<14x1xf32> to vector<14x32xf32>
    %340 = arith.subf %323, %339 : vector<14x32xf32>
    %cst_183 = arith.constant 9.99999974E-6 : f32
    %341 = vector.broadcast %cst_183 : f32 to vector<14x1xf32>
    %342 = arith.addf %338, %341 : vector<14x1xf32>
    %343 = math.rsqrt %342 : vector<14x1xf32>
    %344 = vector.broadcast %343 : vector<14x1xf32> to vector<14x32xf32>
    %345 = arith.mulf %340, %344 : vector<14x32xf32>
    %346 = vector.broadcast %325 : vector<1x32xf32> to vector<14x32xf32>
    %347 = arith.mulf %345, %346 : vector<14x32xf32>
    %348 = vector.broadcast %327 : vector<1x32xf32> to vector<14x32xf32>
    %349 = arith.addf %347, %348 : vector<14x32xf32>
    %c1_184 = arith.constant 1 : index
    %c0_185 = arith.constant 0 : index
    %c0_186 = arith.constant 0 : index
    %350 = vector.load %arg32[%c1_184, %c0_185, %c0_186] : memref<2x32x64xf32, #tpu.memory_space<vmem>>, vector<1x32x64xf32>
    %351 = vector.shape_cast %350 : vector<1x32x64xf32> to vector<32x64xf32>
    %c1_187 = arith.constant 1 : index
    %c0_188 = arith.constant 0 : index
    %c0_189 = arith.constant 0 : index
    %352 = vector.load %arg24[%c1_187, %c0_188, %c0_189] : memref<2x1x64xf32, #tpu.memory_space<vmem>>, vector<1x1x64xf32>
    %353 = vector.shape_cast %352 : vector<1x1x64xf32> to vector<1x64xf32>
    %c1_190 = arith.constant 1 : index
    %c0_191 = arith.constant 0 : index
    %c0_192 = arith.constant 0 : index
    %354 = vector.load %arg33[%c1_190, %c0_191, %c0_192] : memref<2x64x32xf32, #tpu.memory_space<vmem>>, vector<1x64x32xf32>
    %355 = vector.shape_cast %354 : vector<1x64x32xf32> to vector<64x32xf32>
    %c1_193 = arith.constant 1 : index
    %c0_194 = arith.constant 0 : index
    %c0_195 = arith.constant 0 : index
    %356 = vector.load %arg25[%c1_193, %c0_194, %c0_195] : memref<2x1x32xf32, #tpu.memory_space<vmem>>, vector<1x1x32xf32>
    %357 = vector.shape_cast %356 : vector<1x1x32xf32> to vector<1x32xf32>
    %cst_196 = arith.constant dense<0.000000e+00> : vector<14x64xf32>
    %358 = tpu.matmul %349, %351, %cst_196 {dimension_numbers = #tpu.dot_dimension_numbers<[1], [0], [0], [1], [0, 0, 1, 1], [], []>} : vector<14x32xf32>, vector<32x64xf32>, vector<14x64xf32> -> vector<14x64xf32>
    %359 = vector.broadcast %353 : vector<1x64xf32> to vector<14x64xf32>
    %360 = arith.addf %358, %359 : vector<14x64xf32>
    %cst_197 = arith.constant 0.000000e+00 : f32
    %361 = vector.broadcast %cst_197 : f32 to vector<14x64xf32>
    %362 = arith.maximumf %360, %361 : vector<14x64xf32>
    %cst_198 = arith.constant dense<0.000000e+00> : vector<14x32xf32>
    %363 = tpu.matmul %362, %355, %cst_198 {dimension_numbers = #tpu.dot_dimension_numbers<[1], [0], [0], [1], [0, 0, 1, 1], [], []>} : vector<14x64xf32>, vector<64x32xf32>, vector<14x32xf32> -> vector<14x32xf32>
    %364 = vector.broadcast %357 : vector<1x32xf32> to vector<14x32xf32>
    %365 = arith.addf %363, %364 : vector<14x32xf32>
    %366 = arith.addf %349, %365 : vector<14x32xf32>
    %c1_199 = arith.constant 1 : index
    %c0_200 = arith.constant 0 : index
    %c0_201 = arith.constant 0 : index
    %367 = vector.load %arg31[%c1_199, %c0_200, %c0_201] : memref<2x1x32xf32, #tpu.memory_space<vmem>>, vector<1x1x32xf32>
    %368 = vector.shape_cast %367 : vector<1x1x32xf32> to vector<1x32xf32>
    %c1_202 = arith.constant 1 : index
    %c0_203 = arith.constant 0 : index
    %c0_204 = arith.constant 0 : index
    %369 = vector.load %arg30[%c1_202, %c0_203, %c0_204] : memref<2x1x32xf32, #tpu.memory_space<vmem>>, vector<1x1x32xf32>
    %370 = vector.shape_cast %369 : vector<1x1x32xf32> to vector<1x32xf32>
    %cst_205 = arith.constant dense<0.000000e+00> : vector<14xf32>
    %371 = vector.multi_reduction <add>, %366, %cst_205 [1] : vector<14x32xf32> to vector<14xf32>
    %372 = vector.shape_cast %371 : vector<14xf32> to vector<14x1xf32>
    %cst_206 = arith.constant 3.200000e+01 : f32
    %373 = vector.broadcast %cst_206 : f32 to vector<14x1xf32>
    %374 = arith.divf %372, %373 : vector<14x1xf32>
    %375 = vector.broadcast %374 : vector<14x1xf32> to vector<14x32xf32>
    %376 = arith.subf %366, %375 : vector<14x32xf32>
    %377 = arith.mulf %376, %376 : vector<14x32xf32>
    %cst_207 = arith.constant dense<0.000000e+00> : vector<14xf32>
    %378 = vector.multi_reduction <add>, %377, %cst_207 [1] : vector<14x32xf32> to vector<14xf32>
    %379 = vector.shape_cast %378 : vector<14xf32> to vector<14x1xf32>
    %cst_208 = arith.constant 3.200000e+01 : f32
    %380 = vector.broadcast %cst_208 : f32 to vector<14x1xf32>
    %381 = arith.divf %379, %380 : vector<14x1xf32>
    %382 = vector.broadcast %374 : vector<14x1xf32> to vector<14x32xf32>
    %383 = arith.subf %366, %382 : vector<14x32xf32>
    %cst_209 = arith.constant 9.99999974E-6 : f32
    %384 = vector.broadcast %cst_209 : f32 to vector<14x1xf32>
    %385 = arith.addf %381, %384 : vector<14x1xf32>
    %386 = math.rsqrt %385 : vector<14x1xf32>
    %387 = vector.broadcast %386 : vector<14x1xf32> to vector<14x32xf32>
    %388 = arith.mulf %383, %387 : vector<14x32xf32>
    %389 = vector.broadcast %368 : vector<1x32xf32> to vector<14x32xf32>
    %390 = arith.mulf %388, %389 : vector<14x32xf32>
    %391 = vector.broadcast %370 : vector<1x32xf32> to vector<14x32xf32>
    %392 = arith.addf %390, %391 : vector<14x32xf32>
    %c0_210 = arith.constant 0 : index
    %c0_211 = arith.constant 0 : index
    %393 = vector.load %arg36[%c0_210, %c0_211] : memref<1x32xf32, #tpu.memory_space<vmem>>, vector<1x32xf32>
    %c0_212 = arith.constant 0 : index
    %c0_213 = arith.constant 0 : index
    %394 = vector.load %arg37[%c0_212, %c0_213] : memref<1x32xf32, #tpu.memory_space<vmem>>, vector<1x32xf32>
    %cst_214 = arith.constant dense<0.000000e+00> : vector<14xf32>
    %395 = vector.multi_reduction <add>, %392, %cst_214 [1] : vector<14x32xf32> to vector<14xf32>
    %396 = vector.shape_cast %395 : vector<14xf32> to vector<14x1xf32>
    %cst_215 = arith.constant 3.200000e+01 : f32
    %397 = vector.broadcast %cst_215 : f32 to vector<14x1xf32>
    %398 = arith.divf %396, %397 : vector<14x1xf32>
    %399 = vector.broadcast %398 : vector<14x1xf32> to vector<14x32xf32>
    %400 = arith.subf %392, %399 : vector<14x32xf32>
    %401 = arith.mulf %400, %400 : vector<14x32xf32>
    %cst_216 = arith.constant dense<0.000000e+00> : vector<14xf32>
    %402 = vector.multi_reduction <add>, %401, %cst_216 [1] : vector<14x32xf32> to vector<14xf32>
    %403 = vector.shape_cast %402 : vector<14xf32> to vector<14x1xf32>
    %cst_217 = arith.constant 3.200000e+01 : f32
    %404 = vector.broadcast %cst_217 : f32 to vector<14x1xf32>
    %405 = arith.divf %403, %404 : vector<14x1xf32>
    %406 = vector.broadcast %398 : vector<14x1xf32> to vector<14x32xf32>
    %407 = arith.subf %392, %406 : vector<14x32xf32>
    %cst_218 = arith.constant 9.99999974E-6 : f32
    %408 = vector.broadcast %cst_218 : f32 to vector<14x1xf32>
    %409 = arith.addf %405, %408 : vector<14x1xf32>
    %410 = math.rsqrt %409 : vector<14x1xf32>
    %411 = vector.broadcast %410 : vector<14x1xf32> to vector<14x32xf32>
    %412 = arith.mulf %407, %411 : vector<14x32xf32>
    %413 = vector.broadcast %393 : vector<1x32xf32> to vector<14x32xf32>
    %414 = arith.mulf %412, %413 : vector<14x32xf32>
    %415 = vector.broadcast %394 : vector<1x32xf32> to vector<14x32xf32>
    %416 = arith.addf %414, %415 : vector<14x32xf32>
    %c0_219 = arith.constant 0 : index
    %c0_220 = arith.constant 0 : index
    %c0_221 = arith.constant 0 : index
    %417 = vector.load %arg55[%c0_219, %c0_220, %c0_221] : memref<2x32x96xf32, #tpu.memory_space<vmem>>, vector<1x32x96xf32>
    %418 = vector.shape_cast %417 : vector<1x32x96xf32> to vector<32x96xf32>
    %cst_222 = arith.constant dense<0.000000e+00> : vector<15x96xf32>
    %419 = tpu.matmul %51, %418, %cst_222 {dimension_numbers = #tpu.dot_dimension_numbers<[1], [0], [0], [1], [0, 0, 1, 1], [], []>} : vector<15x32xf32>, vector<32x96xf32>, vector<15x96xf32> -> vector<15x96xf32>
    %c0_223 = arith.constant 0 : index
    %c0_224 = arith.constant 0 : index
    %c0_225 = arith.constant 0 : index
    %420 = vector.load %arg53[%c0_223, %c0_224, %c0_225] : memref<2x1x96xf32, #tpu.memory_space<vmem>>, vector<1x1x96xf32>
    %421 = vector.shape_cast %420 : vector<1x1x96xf32> to vector<1x96xf32>
    %422 = vector.broadcast %421 : vector<1x96xf32> to vector<15x96xf32>
    %423 = arith.addf %419, %422 : vector<15x96xf32>
    %424 = vector.extract_strided_slice %423 {offsets = [0, 0], sizes = [15, 32], strides = [1, 1]} : vector<15x96xf32> to vector<15x32xf32>
    %425 = vector.extract_strided_slice %423 {offsets = [0, 32], sizes = [15, 32], strides = [1, 1]} : vector<15x96xf32> to vector<15x32xf32>
    %426 = vector.extract_strided_slice %423 {offsets = [0, 64], sizes = [15, 32], strides = [1, 1]} : vector<15x96xf32> to vector<15x32xf32>
    %c0_226 = arith.constant 0 : index
    %c0_227 = arith.constant 0 : index
    %c0_228 = arith.constant 0 : index
    %427 = vector.load %arg54[%c0_226, %c0_227, %c0_228] : memref<2x32x32xf32, #tpu.memory_space<vmem>>, vector<1x32x32xf32>
    %428 = vector.shape_cast %427 : vector<1x32x32xf32> to vector<32x32xf32>
    %c0_229 = arith.constant 0 : index
    %c0_230 = arith.constant 0 : index
    %c0_231 = arith.constant 0 : index
    %429 = vector.load %arg52[%c0_229, %c0_230, %c0_231] : memref<2x1x32xf32, #tpu.memory_space<vmem>>, vector<1x1x32xf32>
    %430 = vector.shape_cast %429 : vector<1x1x32xf32> to vector<1x32xf32>
    %431 = vector.extract_strided_slice %424 {offsets = [0, 0], sizes = [15, 8], strides = [1, 1]} : vector<15x32xf32> to vector<15x8xf32>
    %432 = vector.extract_strided_slice %425 {offsets = [0, 0], sizes = [15, 8], strides = [1, 1]} : vector<15x32xf32> to vector<15x8xf32>
    %433 = vector.extract_strided_slice %426 {offsets = [0, 0], sizes = [15, 8], strides = [1, 1]} : vector<15x32xf32> to vector<15x8xf32>
    %cst_232 = arith.constant dense<0.000000e+00> : vector<15x15xf32>
    %434 = tpu.matmul %431, %432, %cst_232 {dimension_numbers = #tpu.dot_dimension_numbers<[1], [1], [0], [0], [0, 0, 1, 0], [], []>} : vector<15x8xf32>, vector<15x8xf32>, vector<15x15xf32> -> vector<15x15xf32>
    %cst_233 = arith.constant 0.353553385 : f32
    %435 = vector.broadcast %cst_233 : f32 to vector<15x15xf32>
    %436 = arith.mulf %434, %435 : vector<15x15xf32>
    %437 = arith.addf %436, %53 : vector<15x15xf32>
    %cst_234 = arith.constant dense<0xFF800000> : vector<15xf32>
    %438 = vector.multi_reduction <maximumf>, %437, %cst_234 [1] : vector<15x15xf32> to vector<15xf32>
    %439 = vector.shape_cast %438 : vector<15xf32> to vector<15x1xf32>
    %440 = vector.broadcast %439 : vector<15x1xf32> to vector<15x15xf32>
    %441 = arith.subf %437, %440 : vector<15x15xf32>
    %442 = math.exp %441 : vector<15x15xf32>
    %cst_235 = arith.constant dense<0.000000e+00> : vector<15xf32>
    %443 = vector.multi_reduction <add>, %442, %cst_235 [1] : vector<15x15xf32> to vector<15xf32>
    %444 = vector.shape_cast %443 : vector<15xf32> to vector<15x1xf32>
    %445 = tpu.reciprocal %444 {approx = true} : vector<15x1xf32> -> vector<15x1xf32>
    %446 = vector.broadcast %445 : vector<15x1xf32> to vector<15x15xf32>
    %447 = arith.mulf %442, %446 : vector<15x15xf32>
    %cst_236 = arith.constant dense<0.000000e+00> : vector<15x8xf32>
    %448 = tpu.matmul %447, %433, %cst_236 {dimension_numbers = #tpu.dot_dimension_numbers<[1], [0], [0], [1], [0, 0, 1, 1], [], []>} : vector<15x15xf32>, vector<15x8xf32>, vector<15x8xf32> -> vector<15x8xf32>
    %449 = vector.extract_strided_slice %428 {offsets = [0, 0], sizes = [8, 32], strides = [1, 1]} : vector<32x32xf32> to vector<8x32xf32>
    %cst_237 = arith.constant dense<0.000000e+00> : vector<15x32xf32>
    %450 = tpu.matmul %448, %449, %cst_237 {dimension_numbers = #tpu.dot_dimension_numbers<[1], [0], [0], [1], [0, 0, 1, 1], [], []>} : vector<15x8xf32>, vector<8x32xf32>, vector<15x32xf32> -> vector<15x32xf32>
    %451 = vector.extract_strided_slice %424 {offsets = [0, 8], sizes = [15, 8], strides = [1, 1]} : vector<15x32xf32> to vector<15x8xf32>
    %452 = vector.extract_strided_slice %425 {offsets = [0, 8], sizes = [15, 8], strides = [1, 1]} : vector<15x32xf32> to vector<15x8xf32>
    %453 = vector.extract_strided_slice %426 {offsets = [0, 8], sizes = [15, 8], strides = [1, 1]} : vector<15x32xf32> to vector<15x8xf32>
    %cst_238 = arith.constant dense<0.000000e+00> : vector<15x15xf32>
    %454 = tpu.matmul %451, %452, %cst_238 {dimension_numbers = #tpu.dot_dimension_numbers<[1], [1], [0], [0], [0, 0, 1, 0], [], []>} : vector<15x8xf32>, vector<15x8xf32>, vector<15x15xf32> -> vector<15x15xf32>
    %cst_239 = arith.constant 0.353553385 : f32
    %455 = vector.broadcast %cst_239 : f32 to vector<15x15xf32>
    %456 = arith.mulf %454, %455 : vector<15x15xf32>
    %457 = arith.addf %456, %53 : vector<15x15xf32>
    %cst_240 = arith.constant dense<0xFF800000> : vector<15xf32>
    %458 = vector.multi_reduction <maximumf>, %457, %cst_240 [1] : vector<15x15xf32> to vector<15xf32>
    %459 = vector.shape_cast %458 : vector<15xf32> to vector<15x1xf32>
    %460 = vector.broadcast %459 : vector<15x1xf32> to vector<15x15xf32>
    %461 = arith.subf %457, %460 : vector<15x15xf32>
    %462 = math.exp %461 : vector<15x15xf32>
    %cst_241 = arith.constant dense<0.000000e+00> : vector<15xf32>
    %463 = vector.multi_reduction <add>, %462, %cst_241 [1] : vector<15x15xf32> to vector<15xf32>
    %464 = vector.shape_cast %463 : vector<15xf32> to vector<15x1xf32>
    %465 = tpu.reciprocal %464 {approx = true} : vector<15x1xf32> -> vector<15x1xf32>
    %466 = vector.broadcast %465 : vector<15x1xf32> to vector<15x15xf32>
    %467 = arith.mulf %462, %466 : vector<15x15xf32>
    %cst_242 = arith.constant dense<0.000000e+00> : vector<15x8xf32>
    %468 = tpu.matmul %467, %453, %cst_242 {dimension_numbers = #tpu.dot_dimension_numbers<[1], [0], [0], [1], [0, 0, 1, 1], [], []>} : vector<15x15xf32>, vector<15x8xf32>, vector<15x8xf32> -> vector<15x8xf32>
    %469 = vector.extract_strided_slice %428 {offsets = [8, 0], sizes = [8, 32], strides = [1, 1]} : vector<32x32xf32> to vector<8x32xf32>
    %cst_243 = arith.constant dense<0.000000e+00> : vector<15x32xf32>
    %470 = tpu.matmul %468, %469, %cst_243 {dimension_numbers = #tpu.dot_dimension_numbers<[1], [0], [0], [1], [0, 0, 1, 1], [], []>} : vector<15x8xf32>, vector<8x32xf32>, vector<15x32xf32> -> vector<15x32xf32>
    %471 = arith.addf %450, %470 : vector<15x32xf32>
    %472 = vector.extract_strided_slice %424 {offsets = [0, 16], sizes = [15, 8], strides = [1, 1]} : vector<15x32xf32> to vector<15x8xf32>
    %473 = vector.extract_strided_slice %425 {offsets = [0, 16], sizes = [15, 8], strides = [1, 1]} : vector<15x32xf32> to vector<15x8xf32>
    %474 = vector.extract_strided_slice %426 {offsets = [0, 16], sizes = [15, 8], strides = [1, 1]} : vector<15x32xf32> to vector<15x8xf32>
    %cst_244 = arith.constant dense<0.000000e+00> : vector<15x15xf32>
    %475 = tpu.matmul %472, %473, %cst_244 {dimension_numbers = #tpu.dot_dimension_numbers<[1], [1], [0], [0], [0, 0, 1, 0], [], []>} : vector<15x8xf32>, vector<15x8xf32>, vector<15x15xf32> -> vector<15x15xf32>
    %cst_245 = arith.constant 0.353553385 : f32
    %476 = vector.broadcast %cst_245 : f32 to vector<15x15xf32>
    %477 = arith.mulf %475, %476 : vector<15x15xf32>
    %478 = arith.addf %477, %53 : vector<15x15xf32>
    %cst_246 = arith.constant dense<0xFF800000> : vector<15xf32>
    %479 = vector.multi_reduction <maximumf>, %478, %cst_246 [1] : vector<15x15xf32> to vector<15xf32>
    %480 = vector.shape_cast %479 : vector<15xf32> to vector<15x1xf32>
    %481 = vector.broadcast %480 : vector<15x1xf32> to vector<15x15xf32>
    %482 = arith.subf %478, %481 : vector<15x15xf32>
    %483 = math.exp %482 : vector<15x15xf32>
    %cst_247 = arith.constant dense<0.000000e+00> : vector<15xf32>
    %484 = vector.multi_reduction <add>, %483, %cst_247 [1] : vector<15x15xf32> to vector<15xf32>
    %485 = vector.shape_cast %484 : vector<15xf32> to vector<15x1xf32>
    %486 = tpu.reciprocal %485 {approx = true} : vector<15x1xf32> -> vector<15x1xf32>
    %487 = vector.broadcast %486 : vector<15x1xf32> to vector<15x15xf32>
    %488 = arith.mulf %483, %487 : vector<15x15xf32>
    %cst_248 = arith.constant dense<0.000000e+00> : vector<15x8xf32>
    %489 = tpu.matmul %488, %474, %cst_248 {dimension_numbers = #tpu.dot_dimension_numbers<[1], [0], [0], [1], [0, 0, 1, 1], [], []>} : vector<15x15xf32>, vector<15x8xf32>, vector<15x8xf32> -> vector<15x8xf32>
    %490 = vector.extract_strided_slice %428 {offsets = [16, 0], sizes = [8, 32], strides = [1, 1]} : vector<32x32xf32> to vector<8x32xf32>
    %cst_249 = arith.constant dense<0.000000e+00> : vector<15x32xf32>
    %491 = tpu.matmul %489, %490, %cst_249 {dimension_numbers = #tpu.dot_dimension_numbers<[1], [0], [0], [1], [0, 0, 1, 1], [], []>} : vector<15x8xf32>, vector<8x32xf32>, vector<15x32xf32> -> vector<15x32xf32>
    %492 = arith.addf %471, %491 : vector<15x32xf32>
    %493 = vector.extract_strided_slice %424 {offsets = [0, 24], sizes = [15, 8], strides = [1, 1]} : vector<15x32xf32> to vector<15x8xf32>
    %494 = vector.extract_strided_slice %425 {offsets = [0, 24], sizes = [15, 8], strides = [1, 1]} : vector<15x32xf32> to vector<15x8xf32>
    %495 = vector.extract_strided_slice %426 {offsets = [0, 24], sizes = [15, 8], strides = [1, 1]} : vector<15x32xf32> to vector<15x8xf32>
    %cst_250 = arith.constant dense<0.000000e+00> : vector<15x15xf32>
    %496 = tpu.matmul %493, %494, %cst_250 {dimension_numbers = #tpu.dot_dimension_numbers<[1], [1], [0], [0], [0, 0, 1, 0], [], []>} : vector<15x8xf32>, vector<15x8xf32>, vector<15x15xf32> -> vector<15x15xf32>
    %cst_251 = arith.constant 0.353553385 : f32
    %497 = vector.broadcast %cst_251 : f32 to vector<15x15xf32>
    %498 = arith.mulf %496, %497 : vector<15x15xf32>
    %499 = arith.addf %498, %53 : vector<15x15xf32>
    %cst_252 = arith.constant dense<0xFF800000> : vector<15xf32>
    %500 = vector.multi_reduction <maximumf>, %499, %cst_252 [1] : vector<15x15xf32> to vector<15xf32>
    %501 = vector.shape_cast %500 : vector<15xf32> to vector<15x1xf32>
    %502 = vector.broadcast %501 : vector<15x1xf32> to vector<15x15xf32>
    %503 = arith.subf %499, %502 : vector<15x15xf32>
    %504 = math.exp %503 : vector<15x15xf32>
    %cst_253 = arith.constant dense<0.000000e+00> : vector<15xf32>
    %505 = vector.multi_reduction <add>, %504, %cst_253 [1] : vector<15x15xf32> to vector<15xf32>
    %506 = vector.shape_cast %505 : vector<15xf32> to vector<15x1xf32>
    %507 = tpu.reciprocal %506 {approx = true} : vector<15x1xf32> -> vector<15x1xf32>
    %508 = vector.broadcast %507 : vector<15x1xf32> to vector<15x15xf32>
    %509 = arith.mulf %504, %508 : vector<15x15xf32>
    %cst_254 = arith.constant dense<0.000000e+00> : vector<15x8xf32>
    %510 = tpu.matmul %509, %495, %cst_254 {dimension_numbers = #tpu.dot_dimension_numbers<[1], [0], [0], [1], [0, 0, 1, 1], [], []>} : vector<15x15xf32>, vector<15x8xf32>, vector<15x8xf32> -> vector<15x8xf32>
    %511 = vector.extract_strided_slice %428 {offsets = [24, 0], sizes = [8, 32], strides = [1, 1]} : vector<32x32xf32> to vector<8x32xf32>
    %cst_255 = arith.constant dense<0.000000e+00> : vector<15x32xf32>
    %512 = tpu.matmul %510, %511, %cst_255 {dimension_numbers = #tpu.dot_dimension_numbers<[1], [0], [0], [1], [0, 0, 1, 1], [], []>} : vector<15x8xf32>, vector<8x32xf32>, vector<15x32xf32> -> vector<15x32xf32>
    %513 = arith.addf %492, %512 : vector<15x32xf32>
    %514 = vector.broadcast %430 : vector<1x32xf32> to vector<15x32xf32>
    %515 = arith.addf %513, %514 : vector<15x32xf32>
    %516 = arith.addf %51, %515 : vector<15x32xf32>
    %c0_256 = arith.constant 0 : index
    %c0_257 = arith.constant 0 : index
    %c0_258 = arith.constant 0 : index
    %517 = vector.load %arg47[%c0_256, %c0_257, %c0_258] : memref<2x1x32xf32, #tpu.memory_space<vmem>>, vector<1x1x32xf32>
    %518 = vector.shape_cast %517 : vector<1x1x32xf32> to vector<1x32xf32>
    %c0_259 = arith.constant 0 : index
    %c0_260 = arith.constant 0 : index
    %c0_261 = arith.constant 0 : index
    %519 = vector.load %arg46[%c0_259, %c0_260, %c0_261] : memref<2x1x32xf32, #tpu.memory_space<vmem>>, vector<1x1x32xf32>
    %520 = vector.shape_cast %519 : vector<1x1x32xf32> to vector<1x32xf32>
    %cst_262 = arith.constant dense<0.000000e+00> : vector<15xf32>
    %521 = vector.multi_reduction <add>, %516, %cst_262 [1] : vector<15x32xf32> to vector<15xf32>
    %522 = vector.shape_cast %521 : vector<15xf32> to vector<15x1xf32>
    %cst_263 = arith.constant 3.200000e+01 : f32
    %523 = vector.broadcast %cst_263 : f32 to vector<15x1xf32>
    %524 = arith.divf %522, %523 : vector<15x1xf32>
    %525 = vector.broadcast %524 : vector<15x1xf32> to vector<15x32xf32>
    %526 = arith.subf %516, %525 : vector<15x32xf32>
    %527 = arith.mulf %526, %526 : vector<15x32xf32>
    %cst_264 = arith.constant dense<0.000000e+00> : vector<15xf32>
    %528 = vector.multi_reduction <add>, %527, %cst_264 [1] : vector<15x32xf32> to vector<15xf32>
    %529 = vector.shape_cast %528 : vector<15xf32> to vector<15x1xf32>
    %cst_265 = arith.constant 3.200000e+01 : f32
    %530 = vector.broadcast %cst_265 : f32 to vector<15x1xf32>
    %531 = arith.divf %529, %530 : vector<15x1xf32>
    %532 = vector.broadcast %524 : vector<15x1xf32> to vector<15x32xf32>
    %533 = arith.subf %516, %532 : vector<15x32xf32>
    %cst_266 = arith.constant 9.99999974E-6 : f32
    %534 = vector.broadcast %cst_266 : f32 to vector<15x1xf32>
    %535 = arith.addf %531, %534 : vector<15x1xf32>
    %536 = math.rsqrt %535 : vector<15x1xf32>
    %537 = vector.broadcast %536 : vector<15x1xf32> to vector<15x32xf32>
    %538 = arith.mulf %533, %537 : vector<15x32xf32>
    %539 = vector.broadcast %518 : vector<1x32xf32> to vector<15x32xf32>
    %540 = arith.mulf %538, %539 : vector<15x32xf32>
    %541 = vector.broadcast %520 : vector<1x32xf32> to vector<15x32xf32>
    %542 = arith.addf %540, %541 : vector<15x32xf32>
    %c0_267 = arith.constant 0 : index
    %c0_268 = arith.constant 0 : index
    %c0_269 = arith.constant 0 : index
    %543 = vector.load %arg45[%c0_267, %c0_268, %c0_269] : memref<2x32x32xf32, #tpu.memory_space<vmem>>, vector<1x32x32xf32>
    %544 = vector.shape_cast %543 : vector<1x32x32xf32> to vector<32x32xf32>
    %cst_270 = arith.constant dense<0.000000e+00> : vector<15x32xf32>
    %545 = tpu.matmul %542, %544, %cst_270 {dimension_numbers = #tpu.dot_dimension_numbers<[1], [0], [0], [1], [0, 0, 1, 1], [], []>} : vector<15x32xf32>, vector<32x32xf32>, vector<15x32xf32> -> vector<15x32xf32>
    %c0_271 = arith.constant 0 : index
    %c0_272 = arith.constant 0 : index
    %c0_273 = arith.constant 0 : index
    %546 = vector.load %arg42[%c0_271, %c0_272, %c0_273] : memref<2x1x32xf32, #tpu.memory_space<vmem>>, vector<1x1x32xf32>
    %547 = vector.shape_cast %546 : vector<1x1x32xf32> to vector<1x32xf32>
    %548 = vector.broadcast %547 : vector<1x32xf32> to vector<15x32xf32>
    %549 = arith.addf %545, %548 : vector<15x32xf32>
    %c0_274 = arith.constant 0 : index
    %c0_275 = arith.constant 0 : index
    %c0_276 = arith.constant 0 : index
    %550 = vector.load %arg43[%c0_274, %c0_275, %c0_276] : memref<2x32x64xf32, #tpu.memory_space<vmem>>, vector<1x32x64xf32>
    %551 = vector.shape_cast %550 : vector<1x32x64xf32> to vector<32x64xf32>
    %cst_277 = arith.constant dense<0.000000e+00> : vector<14x64xf32>
    %552 = tpu.matmul %416, %551, %cst_277 {dimension_numbers = #tpu.dot_dimension_numbers<[1], [0], [0], [1], [0, 0, 1, 1], [], []>} : vector<14x32xf32>, vector<32x64xf32>, vector<14x64xf32> -> vector<14x64xf32>
    %c0_278 = arith.constant 0 : index
    %c0_279 = arith.constant 0 : index
    %c0_280 = arith.constant 0 : index
    %553 = vector.load %arg40[%c0_278, %c0_279, %c0_280] : memref<2x1x64xf32, #tpu.memory_space<vmem>>, vector<1x1x64xf32>
    %554 = vector.shape_cast %553 : vector<1x1x64xf32> to vector<1x64xf32>
    %555 = vector.broadcast %554 : vector<1x64xf32> to vector<14x64xf32>
    %556 = arith.addf %552, %555 : vector<14x64xf32>
    %557 = vector.extract_strided_slice %556 {offsets = [0, 0], sizes = [14, 32], strides = [1, 1]} : vector<14x64xf32> to vector<14x32xf32>
    %558 = vector.extract_strided_slice %556 {offsets = [0, 32], sizes = [14, 32], strides = [1, 1]} : vector<14x64xf32> to vector<14x32xf32>
    %c0_281 = arith.constant 0 : index
    %c0_282 = arith.constant 0 : index
    %c0_283 = arith.constant 0 : index
    %559 = vector.load %arg44[%c0_281, %c0_282, %c0_283] : memref<2x32x32xf32, #tpu.memory_space<vmem>>, vector<1x32x32xf32>
    %560 = vector.shape_cast %559 : vector<1x32x32xf32> to vector<32x32xf32>
    %c0_284 = arith.constant 0 : index
    %c0_285 = arith.constant 0 : index
    %c0_286 = arith.constant 0 : index
    %561 = vector.load %arg41[%c0_284, %c0_285, %c0_286] : memref<2x1x32xf32, #tpu.memory_space<vmem>>, vector<1x1x32xf32>
    %562 = vector.shape_cast %561 : vector<1x1x32xf32> to vector<1x32xf32>
    %563 = vector.extract_strided_slice %549 {offsets = [0, 0], sizes = [15, 8], strides = [1, 1]} : vector<15x32xf32> to vector<15x8xf32>
    %564 = vector.extract_strided_slice %557 {offsets = [0, 0], sizes = [14, 8], strides = [1, 1]} : vector<14x32xf32> to vector<14x8xf32>
    %565 = vector.extract_strided_slice %558 {offsets = [0, 0], sizes = [14, 8], strides = [1, 1]} : vector<14x32xf32> to vector<14x8xf32>
    %cst_287 = arith.constant dense<0.000000e+00> : vector<15x14xf32>
    %566 = tpu.matmul %563, %564, %cst_287 {dimension_numbers = #tpu.dot_dimension_numbers<[1], [1], [0], [0], [0, 0, 1, 0], [], []>} : vector<15x8xf32>, vector<14x8xf32>, vector<15x14xf32> -> vector<15x14xf32>
    %cst_288 = arith.constant 0.353553385 : f32
    %567 = vector.broadcast %cst_288 : f32 to vector<15x14xf32>
    %568 = arith.mulf %566, %567 : vector<15x14xf32>
    %569 = arith.addf %568, %54 : vector<15x14xf32>
    %cst_289 = arith.constant dense<0xFF800000> : vector<15xf32>
    %570 = vector.multi_reduction <maximumf>, %569, %cst_289 [1] : vector<15x14xf32> to vector<15xf32>
    %571 = vector.shape_cast %570 : vector<15xf32> to vector<15x1xf32>
    %572 = vector.broadcast %571 : vector<15x1xf32> to vector<15x14xf32>
    %573 = arith.subf %569, %572 : vector<15x14xf32>
    %574 = math.exp %573 : vector<15x14xf32>
    %cst_290 = arith.constant dense<0.000000e+00> : vector<15xf32>
    %575 = vector.multi_reduction <add>, %574, %cst_290 [1] : vector<15x14xf32> to vector<15xf32>
    %576 = vector.shape_cast %575 : vector<15xf32> to vector<15x1xf32>
    %577 = tpu.reciprocal %576 {approx = true} : vector<15x1xf32> -> vector<15x1xf32>
    %578 = vector.broadcast %577 : vector<15x1xf32> to vector<15x14xf32>
    %579 = arith.mulf %574, %578 : vector<15x14xf32>
    %cst_291 = arith.constant dense<0.000000e+00> : vector<15x8xf32>
    %580 = tpu.matmul %579, %565, %cst_291 {dimension_numbers = #tpu.dot_dimension_numbers<[1], [0], [0], [1], [0, 0, 1, 1], [], []>} : vector<15x14xf32>, vector<14x8xf32>, vector<15x8xf32> -> vector<15x8xf32>
    %581 = vector.extract_strided_slice %560 {offsets = [0, 0], sizes = [8, 32], strides = [1, 1]} : vector<32x32xf32> to vector<8x32xf32>
    %cst_292 = arith.constant dense<0.000000e+00> : vector<15x32xf32>
    %582 = tpu.matmul %580, %581, %cst_292 {dimension_numbers = #tpu.dot_dimension_numbers<[1], [0], [0], [1], [0, 0, 1, 1], [], []>} : vector<15x8xf32>, vector<8x32xf32>, vector<15x32xf32> -> vector<15x32xf32>
    %583 = vector.extract_strided_slice %549 {offsets = [0, 8], sizes = [15, 8], strides = [1, 1]} : vector<15x32xf32> to vector<15x8xf32>
    %584 = vector.extract_strided_slice %557 {offsets = [0, 8], sizes = [14, 8], strides = [1, 1]} : vector<14x32xf32> to vector<14x8xf32>
    %585 = vector.extract_strided_slice %558 {offsets = [0, 8], sizes = [14, 8], strides = [1, 1]} : vector<14x32xf32> to vector<14x8xf32>
    %cst_293 = arith.constant dense<0.000000e+00> : vector<15x14xf32>
    %586 = tpu.matmul %583, %584, %cst_293 {dimension_numbers = #tpu.dot_dimension_numbers<[1], [1], [0], [0], [0, 0, 1, 0], [], []>} : vector<15x8xf32>, vector<14x8xf32>, vector<15x14xf32> -> vector<15x14xf32>
    %cst_294 = arith.constant 0.353553385 : f32
    %587 = vector.broadcast %cst_294 : f32 to vector<15x14xf32>
    %588 = arith.mulf %586, %587 : vector<15x14xf32>
    %589 = arith.addf %588, %54 : vector<15x14xf32>
    %cst_295 = arith.constant dense<0xFF800000> : vector<15xf32>
    %590 = vector.multi_reduction <maximumf>, %589, %cst_295 [1] : vector<15x14xf32> to vector<15xf32>
    %591 = vector.shape_cast %590 : vector<15xf32> to vector<15x1xf32>
    %592 = vector.broadcast %591 : vector<15x1xf32> to vector<15x14xf32>
    %593 = arith.subf %589, %592 : vector<15x14xf32>
    %594 = math.exp %593 : vector<15x14xf32>
    %cst_296 = arith.constant dense<0.000000e+00> : vector<15xf32>
    %595 = vector.multi_reduction <add>, %594, %cst_296 [1] : vector<15x14xf32> to vector<15xf32>
    %596 = vector.shape_cast %595 : vector<15xf32> to vector<15x1xf32>
    %597 = tpu.reciprocal %596 {approx = true} : vector<15x1xf32> -> vector<15x1xf32>
    %598 = vector.broadcast %597 : vector<15x1xf32> to vector<15x14xf32>
    %599 = arith.mulf %594, %598 : vector<15x14xf32>
    %cst_297 = arith.constant dense<0.000000e+00> : vector<15x8xf32>
    %600 = tpu.matmul %599, %585, %cst_297 {dimension_numbers = #tpu.dot_dimension_numbers<[1], [0], [0], [1], [0, 0, 1, 1], [], []>} : vector<15x14xf32>, vector<14x8xf32>, vector<15x8xf32> -> vector<15x8xf32>
    %601 = vector.extract_strided_slice %560 {offsets = [8, 0], sizes = [8, 32], strides = [1, 1]} : vector<32x32xf32> to vector<8x32xf32>
    %cst_298 = arith.constant dense<0.000000e+00> : vector<15x32xf32>
    %602 = tpu.matmul %600, %601, %cst_298 {dimension_numbers = #tpu.dot_dimension_numbers<[1], [0], [0], [1], [0, 0, 1, 1], [], []>} : vector<15x8xf32>, vector<8x32xf32>, vector<15x32xf32> -> vector<15x32xf32>
    %603 = arith.addf %582, %602 : vector<15x32xf32>
    %604 = vector.extract_strided_slice %549 {offsets = [0, 16], sizes = [15, 8], strides = [1, 1]} : vector<15x32xf32> to vector<15x8xf32>
    %605 = vector.extract_strided_slice %557 {offsets = [0, 16], sizes = [14, 8], strides = [1, 1]} : vector<14x32xf32> to vector<14x8xf32>
    %606 = vector.extract_strided_slice %558 {offsets = [0, 16], sizes = [14, 8], strides = [1, 1]} : vector<14x32xf32> to vector<14x8xf32>
    %cst_299 = arith.constant dense<0.000000e+00> : vector<15x14xf32>
    %607 = tpu.matmul %604, %605, %cst_299 {dimension_numbers = #tpu.dot_dimension_numbers<[1], [1], [0], [0], [0, 0, 1, 0], [], []>} : vector<15x8xf32>, vector<14x8xf32>, vector<15x14xf32> -> vector<15x14xf32>
    %cst_300 = arith.constant 0.353553385 : f32
    %608 = vector.broadcast %cst_300 : f32 to vector<15x14xf32>
    %609 = arith.mulf %607, %608 : vector<15x14xf32>
    %610 = arith.addf %609, %54 : vector<15x14xf32>
    %cst_301 = arith.constant dense<0xFF800000> : vector<15xf32>
    %611 = vector.multi_reduction <maximumf>, %610, %cst_301 [1] : vector<15x14xf32> to vector<15xf32>
    %612 = vector.shape_cast %611 : vector<15xf32> to vector<15x1xf32>
    %613 = vector.broadcast %612 : vector<15x1xf32> to vector<15x14xf32>
    %614 = arith.subf %610, %613 : vector<15x14xf32>
    %615 = math.exp %614 : vector<15x14xf32>
    %cst_302 = arith.constant dense<0.000000e+00> : vector<15xf32>
    %616 = vector.multi_reduction <add>, %615, %cst_302 [1] : vector<15x14xf32> to vector<15xf32>
    %617 = vector.shape_cast %616 : vector<15xf32> to vector<15x1xf32>
    %618 = tpu.reciprocal %617 {approx = true} : vector<15x1xf32> -> vector<15x1xf32>
    %619 = vector.broadcast %618 : vector<15x1xf32> to vector<15x14xf32>
    %620 = arith.mulf %615, %619 : vector<15x14xf32>
    %cst_303 = arith.constant dense<0.000000e+00> : vector<15x8xf32>
    %621 = tpu.matmul %620, %606, %cst_303 {dimension_numbers = #tpu.dot_dimension_numbers<[1], [0], [0], [1], [0, 0, 1, 1], [], []>} : vector<15x14xf32>, vector<14x8xf32>, vector<15x8xf32> -> vector<15x8xf32>
    %622 = vector.extract_strided_slice %560 {offsets = [16, 0], sizes = [8, 32], strides = [1, 1]} : vector<32x32xf32> to vector<8x32xf32>
    %cst_304 = arith.constant dense<0.000000e+00> : vector<15x32xf32>
    %623 = tpu.matmul %621, %622, %cst_304 {dimension_numbers = #tpu.dot_dimension_numbers<[1], [0], [0], [1], [0, 0, 1, 1], [], []>} : vector<15x8xf32>, vector<8x32xf32>, vector<15x32xf32> -> vector<15x32xf32>
    %624 = arith.addf %603, %623 : vector<15x32xf32>
    %625 = vector.extract_strided_slice %549 {offsets = [0, 24], sizes = [15, 8], strides = [1, 1]} : vector<15x32xf32> to vector<15x8xf32>
    %626 = vector.extract_strided_slice %557 {offsets = [0, 24], sizes = [14, 8], strides = [1, 1]} : vector<14x32xf32> to vector<14x8xf32>
    %627 = vector.extract_strided_slice %558 {offsets = [0, 24], sizes = [14, 8], strides = [1, 1]} : vector<14x32xf32> to vector<14x8xf32>
    %cst_305 = arith.constant dense<0.000000e+00> : vector<15x14xf32>
    %628 = tpu.matmul %625, %626, %cst_305 {dimension_numbers = #tpu.dot_dimension_numbers<[1], [1], [0], [0], [0, 0, 1, 0], [], []>} : vector<15x8xf32>, vector<14x8xf32>, vector<15x14xf32> -> vector<15x14xf32>
    %cst_306 = arith.constant 0.353553385 : f32
    %629 = vector.broadcast %cst_306 : f32 to vector<15x14xf32>
    %630 = arith.mulf %628, %629 : vector<15x14xf32>
    %631 = arith.addf %630, %54 : vector<15x14xf32>
    %cst_307 = arith.constant dense<0xFF800000> : vector<15xf32>
    %632 = vector.multi_reduction <maximumf>, %631, %cst_307 [1] : vector<15x14xf32> to vector<15xf32>
    %633 = vector.shape_cast %632 : vector<15xf32> to vector<15x1xf32>
    %634 = vector.broadcast %633 : vector<15x1xf32> to vector<15x14xf32>
    %635 = arith.subf %631, %634 : vector<15x14xf32>
    %636 = math.exp %635 : vector<15x14xf32>
    %cst_308 = arith.constant dense<0.000000e+00> : vector<15xf32>
    %637 = vector.multi_reduction <add>, %636, %cst_308 [1] : vector<15x14xf32> to vector<15xf32>
    %638 = vector.shape_cast %637 : vector<15xf32> to vector<15x1xf32>
    %639 = tpu.reciprocal %638 {approx = true} : vector<15x1xf32> -> vector<15x1xf32>
    %640 = vector.broadcast %639 : vector<15x1xf32> to vector<15x14xf32>
    %641 = arith.mulf %636, %640 : vector<15x14xf32>
    %cst_309 = arith.constant dense<0.000000e+00> : vector<15x8xf32>
    %642 = tpu.matmul %641, %627, %cst_309 {dimension_numbers = #tpu.dot_dimension_numbers<[1], [0], [0], [1], [0, 0, 1, 1], [], []>} : vector<15x14xf32>, vector<14x8xf32>, vector<15x8xf32> -> vector<15x8xf32>
    %643 = vector.extract_strided_slice %560 {offsets = [24, 0], sizes = [8, 32], strides = [1, 1]} : vector<32x32xf32> to vector<8x32xf32>
    %cst_310 = arith.constant dense<0.000000e+00> : vector<15x32xf32>
    %644 = tpu.matmul %642, %643, %cst_310 {dimension_numbers = #tpu.dot_dimension_numbers<[1], [0], [0], [1], [0, 0, 1, 1], [], []>} : vector<15x8xf32>, vector<8x32xf32>, vector<15x32xf32> -> vector<15x32xf32>
    %645 = arith.addf %624, %644 : vector<15x32xf32>
    %646 = vector.broadcast %562 : vector<1x32xf32> to vector<15x32xf32>
    %647 = arith.addf %645, %646 : vector<15x32xf32>
    %648 = arith.addf %542, %647 : vector<15x32xf32>
    %c0_311 = arith.constant 0 : index
    %c0_312 = arith.constant 0 : index
    %c0_313 = arith.constant 0 : index
    %649 = vector.load %arg49[%c0_311, %c0_312, %c0_313] : memref<2x1x32xf32, #tpu.memory_space<vmem>>, vector<1x1x32xf32>
    %650 = vector.shape_cast %649 : vector<1x1x32xf32> to vector<1x32xf32>
    %c0_314 = arith.constant 0 : index
    %c0_315 = arith.constant 0 : index
    %c0_316 = arith.constant 0 : index
    %651 = vector.load %arg48[%c0_314, %c0_315, %c0_316] : memref<2x1x32xf32, #tpu.memory_space<vmem>>, vector<1x1x32xf32>
    %652 = vector.shape_cast %651 : vector<1x1x32xf32> to vector<1x32xf32>
    %cst_317 = arith.constant dense<0.000000e+00> : vector<15xf32>
    %653 = vector.multi_reduction <add>, %648, %cst_317 [1] : vector<15x32xf32> to vector<15xf32>
    %654 = vector.shape_cast %653 : vector<15xf32> to vector<15x1xf32>
    %cst_318 = arith.constant 3.200000e+01 : f32
    %655 = vector.broadcast %cst_318 : f32 to vector<15x1xf32>
    %656 = arith.divf %654, %655 : vector<15x1xf32>
    %657 = vector.broadcast %656 : vector<15x1xf32> to vector<15x32xf32>
    %658 = arith.subf %648, %657 : vector<15x32xf32>
    %659 = arith.mulf %658, %658 : vector<15x32xf32>
    %cst_319 = arith.constant dense<0.000000e+00> : vector<15xf32>
    %660 = vector.multi_reduction <add>, %659, %cst_319 [1] : vector<15x32xf32> to vector<15xf32>
    %661 = vector.shape_cast %660 : vector<15xf32> to vector<15x1xf32>
    %cst_320 = arith.constant 3.200000e+01 : f32
    %662 = vector.broadcast %cst_320 : f32 to vector<15x1xf32>
    %663 = arith.divf %661, %662 : vector<15x1xf32>
    %664 = vector.broadcast %656 : vector<15x1xf32> to vector<15x32xf32>
    %665 = arith.subf %648, %664 : vector<15x32xf32>
    %cst_321 = arith.constant 9.99999974E-6 : f32
    %666 = vector.broadcast %cst_321 : f32 to vector<15x1xf32>
    %667 = arith.addf %663, %666 : vector<15x1xf32>
    %668 = math.rsqrt %667 : vector<15x1xf32>
    %669 = vector.broadcast %668 : vector<15x1xf32> to vector<15x32xf32>
    %670 = arith.mulf %665, %669 : vector<15x32xf32>
    %671 = vector.broadcast %650 : vector<1x32xf32> to vector<15x32xf32>
    %672 = arith.mulf %670, %671 : vector<15x32xf32>
    %673 = vector.broadcast %652 : vector<1x32xf32> to vector<15x32xf32>
    %674 = arith.addf %672, %673 : vector<15x32xf32>
    %c0_322 = arith.constant 0 : index
    %c0_323 = arith.constant 0 : index
    %c0_324 = arith.constant 0 : index
    %675 = vector.load %arg56[%c0_322, %c0_323, %c0_324] : memref<2x32x64xf32, #tpu.memory_space<vmem>>, vector<1x32x64xf32>
    %676 = vector.shape_cast %675 : vector<1x32x64xf32> to vector<32x64xf32>
    %c0_325 = arith.constant 0 : index
    %c0_326 = arith.constant 0 : index
    %c0_327 = arith.constant 0 : index
    %677 = vector.load %arg38[%c0_325, %c0_326, %c0_327] : memref<2x1x64xf32, #tpu.memory_space<vmem>>, vector<1x1x64xf32>
    %678 = vector.shape_cast %677 : vector<1x1x64xf32> to vector<1x64xf32>
    %c0_328 = arith.constant 0 : index
    %c0_329 = arith.constant 0 : index
    %c0_330 = arith.constant 0 : index
    %679 = vector.load %arg57[%c0_328, %c0_329, %c0_330] : memref<2x64x32xf32, #tpu.memory_space<vmem>>, vector<1x64x32xf32>
    %680 = vector.shape_cast %679 : vector<1x64x32xf32> to vector<64x32xf32>
    %c0_331 = arith.constant 0 : index
    %c0_332 = arith.constant 0 : index
    %c0_333 = arith.constant 0 : index
    %681 = vector.load %arg39[%c0_331, %c0_332, %c0_333] : memref<2x1x32xf32, #tpu.memory_space<vmem>>, vector<1x1x32xf32>
    %682 = vector.shape_cast %681 : vector<1x1x32xf32> to vector<1x32xf32>
    %cst_334 = arith.constant dense<0.000000e+00> : vector<15x64xf32>
    %683 = tpu.matmul %674, %676, %cst_334 {dimension_numbers = #tpu.dot_dimension_numbers<[1], [0], [0], [1], [0, 0, 1, 1], [], []>} : vector<15x32xf32>, vector<32x64xf32>, vector<15x64xf32> -> vector<15x64xf32>
    %684 = vector.broadcast %678 : vector<1x64xf32> to vector<15x64xf32>
    %685 = arith.addf %683, %684 : vector<15x64xf32>
    %cst_335 = arith.constant 0.000000e+00 : f32
    %686 = vector.broadcast %cst_335 : f32 to vector<15x64xf32>
    %687 = arith.maximumf %685, %686 : vector<15x64xf32>
    %cst_336 = arith.constant dense<0.000000e+00> : vector<15x32xf32>
    %688 = tpu.matmul %687, %680, %cst_336 {dimension_numbers = #tpu.dot_dimension_numbers<[1], [0], [0], [1], [0, 0, 1, 1], [], []>} : vector<15x64xf32>, vector<64x32xf32>, vector<15x32xf32> -> vector<15x32xf32>
    %689 = vector.broadcast %682 : vector<1x32xf32> to vector<15x32xf32>
    %690 = arith.addf %688, %689 : vector<15x32xf32>
    %691 = arith.addf %674, %690 : vector<15x32xf32>
    %c0_337 = arith.constant 0 : index
    %c0_338 = arith.constant 0 : index
    %c0_339 = arith.constant 0 : index
    %692 = vector.load %arg51[%c0_337, %c0_338, %c0_339] : memref<2x1x32xf32, #tpu.memory_space<vmem>>, vector<1x1x32xf32>
    %693 = vector.shape_cast %692 : vector<1x1x32xf32> to vector<1x32xf32>
    %c0_340 = arith.constant 0 : index
    %c0_341 = arith.constant 0 : index
    %c0_342 = arith.constant 0 : index
    %694 = vector.load %arg50[%c0_340, %c0_341, %c0_342] : memref<2x1x32xf32, #tpu.memory_space<vmem>>, vector<1x1x32xf32>
    %695 = vector.shape_cast %694 : vector<1x1x32xf32> to vector<1x32xf32>
    %cst_343 = arith.constant dense<0.000000e+00> : vector<15xf32>
    %696 = vector.multi_reduction <add>, %691, %cst_343 [1] : vector<15x32xf32> to vector<15xf32>
    %697 = vector.shape_cast %696 : vector<15xf32> to vector<15x1xf32>
    %cst_344 = arith.constant 3.200000e+01 : f32
    %698 = vector.broadcast %cst_344 : f32 to vector<15x1xf32>
    %699 = arith.divf %697, %698 : vector<15x1xf32>
    %700 = vector.broadcast %699 : vector<15x1xf32> to vector<15x32xf32>
    %701 = arith.subf %691, %700 : vector<15x32xf32>
    %702 = arith.mulf %701, %701 : vector<15x32xf32>
    %cst_345 = arith.constant dense<0.000000e+00> : vector<15xf32>
    %703 = vector.multi_reduction <add>, %702, %cst_345 [1] : vector<15x32xf32> to vector<15xf32>
    %704 = vector.shape_cast %703 : vector<15xf32> to vector<15x1xf32>
    %cst_346 = arith.constant 3.200000e+01 : f32
    %705 = vector.broadcast %cst_346 : f32 to vector<15x1xf32>
    %706 = arith.divf %704, %705 : vector<15x1xf32>
    %707 = vector.broadcast %699 : vector<15x1xf32> to vector<15x32xf32>
    %708 = arith.subf %691, %707 : vector<15x32xf32>
    %cst_347 = arith.constant 9.99999974E-6 : f32
    %709 = vector.broadcast %cst_347 : f32 to vector<15x1xf32>
    %710 = arith.addf %706, %709 : vector<15x1xf32>
    %711 = math.rsqrt %710 : vector<15x1xf32>
    %712 = vector.broadcast %711 : vector<15x1xf32> to vector<15x32xf32>
    %713 = arith.mulf %708, %712 : vector<15x32xf32>
    %714 = vector.broadcast %693 : vector<1x32xf32> to vector<15x32xf32>
    %715 = arith.mulf %713, %714 : vector<15x32xf32>
    %716 = vector.broadcast %695 : vector<1x32xf32> to vector<15x32xf32>
    %717 = arith.addf %715, %716 : vector<15x32xf32>
    %c1_348 = arith.constant 1 : index
    %c0_349 = arith.constant 0 : index
    %c0_350 = arith.constant 0 : index
    %718 = vector.load %arg55[%c1_348, %c0_349, %c0_350] : memref<2x32x96xf32, #tpu.memory_space<vmem>>, vector<1x32x96xf32>
    %719 = vector.shape_cast %718 : vector<1x32x96xf32> to vector<32x96xf32>
    %cst_351 = arith.constant dense<0.000000e+00> : vector<15x96xf32>
    %720 = tpu.matmul %717, %719, %cst_351 {dimension_numbers = #tpu.dot_dimension_numbers<[1], [0], [0], [1], [0, 0, 1, 1], [], []>} : vector<15x32xf32>, vector<32x96xf32>, vector<15x96xf32> -> vector<15x96xf32>
    %c1_352 = arith.constant 1 : index
    %c0_353 = arith.constant 0 : index
    %c0_354 = arith.constant 0 : index
    %721 = vector.load %arg53[%c1_352, %c0_353, %c0_354] : memref<2x1x96xf32, #tpu.memory_space<vmem>>, vector<1x1x96xf32>
    %722 = vector.shape_cast %721 : vector<1x1x96xf32> to vector<1x96xf32>
    %723 = vector.broadcast %722 : vector<1x96xf32> to vector<15x96xf32>
    %724 = arith.addf %720, %723 : vector<15x96xf32>
    %725 = vector.extract_strided_slice %724 {offsets = [0, 0], sizes = [15, 32], strides = [1, 1]} : vector<15x96xf32> to vector<15x32xf32>
    %726 = vector.extract_strided_slice %724 {offsets = [0, 32], sizes = [15, 32], strides = [1, 1]} : vector<15x96xf32> to vector<15x32xf32>
    %727 = vector.extract_strided_slice %724 {offsets = [0, 64], sizes = [15, 32], strides = [1, 1]} : vector<15x96xf32> to vector<15x32xf32>
    %c1_355 = arith.constant 1 : index
    %c0_356 = arith.constant 0 : index
    %c0_357 = arith.constant 0 : index
    %728 = vector.load %arg54[%c1_355, %c0_356, %c0_357] : memref<2x32x32xf32, #tpu.memory_space<vmem>>, vector<1x32x32xf32>
    %729 = vector.shape_cast %728 : vector<1x32x32xf32> to vector<32x32xf32>
    %c1_358 = arith.constant 1 : index
    %c0_359 = arith.constant 0 : index
    %c0_360 = arith.constant 0 : index
    %730 = vector.load %arg52[%c1_358, %c0_359, %c0_360] : memref<2x1x32xf32, #tpu.memory_space<vmem>>, vector<1x1x32xf32>
    %731 = vector.shape_cast %730 : vector<1x1x32xf32> to vector<1x32xf32>
    %732 = vector.extract_strided_slice %725 {offsets = [0, 0], sizes = [15, 8], strides = [1, 1]} : vector<15x32xf32> to vector<15x8xf32>
    %733 = vector.extract_strided_slice %726 {offsets = [0, 0], sizes = [15, 8], strides = [1, 1]} : vector<15x32xf32> to vector<15x8xf32>
    %734 = vector.extract_strided_slice %727 {offsets = [0, 0], sizes = [15, 8], strides = [1, 1]} : vector<15x32xf32> to vector<15x8xf32>
    %cst_361 = arith.constant dense<0.000000e+00> : vector<15x15xf32>
    %735 = tpu.matmul %732, %733, %cst_361 {dimension_numbers = #tpu.dot_dimension_numbers<[1], [1], [0], [0], [0, 0, 1, 0], [], []>} : vector<15x8xf32>, vector<15x8xf32>, vector<15x15xf32> -> vector<15x15xf32>
    %cst_362 = arith.constant 0.353553385 : f32
    %736 = vector.broadcast %cst_362 : f32 to vector<15x15xf32>
    %737 = arith.mulf %735, %736 : vector<15x15xf32>
    %738 = arith.addf %737, %53 : vector<15x15xf32>
    %cst_363 = arith.constant dense<0xFF800000> : vector<15xf32>
    %739 = vector.multi_reduction <maximumf>, %738, %cst_363 [1] : vector<15x15xf32> to vector<15xf32>
    %740 = vector.shape_cast %739 : vector<15xf32> to vector<15x1xf32>
    %741 = vector.broadcast %740 : vector<15x1xf32> to vector<15x15xf32>
    %742 = arith.subf %738, %741 : vector<15x15xf32>
    %743 = math.exp %742 : vector<15x15xf32>
    %cst_364 = arith.constant dense<0.000000e+00> : vector<15xf32>
    %744 = vector.multi_reduction <add>, %743, %cst_364 [1] : vector<15x15xf32> to vector<15xf32>
    %745 = vector.shape_cast %744 : vector<15xf32> to vector<15x1xf32>
    %746 = tpu.reciprocal %745 {approx = true} : vector<15x1xf32> -> vector<15x1xf32>
    %747 = vector.broadcast %746 : vector<15x1xf32> to vector<15x15xf32>
    %748 = arith.mulf %743, %747 : vector<15x15xf32>
    %cst_365 = arith.constant dense<0.000000e+00> : vector<15x8xf32>
    %749 = tpu.matmul %748, %734, %cst_365 {dimension_numbers = #tpu.dot_dimension_numbers<[1], [0], [0], [1], [0, 0, 1, 1], [], []>} : vector<15x15xf32>, vector<15x8xf32>, vector<15x8xf32> -> vector<15x8xf32>
    %750 = vector.extract_strided_slice %729 {offsets = [0, 0], sizes = [8, 32], strides = [1, 1]} : vector<32x32xf32> to vector<8x32xf32>
    %cst_366 = arith.constant dense<0.000000e+00> : vector<15x32xf32>
    %751 = tpu.matmul %749, %750, %cst_366 {dimension_numbers = #tpu.dot_dimension_numbers<[1], [0], [0], [1], [0, 0, 1, 1], [], []>} : vector<15x8xf32>, vector<8x32xf32>, vector<15x32xf32> -> vector<15x32xf32>
    %752 = vector.extract_strided_slice %725 {offsets = [0, 8], sizes = [15, 8], strides = [1, 1]} : vector<15x32xf32> to vector<15x8xf32>
    %753 = vector.extract_strided_slice %726 {offsets = [0, 8], sizes = [15, 8], strides = [1, 1]} : vector<15x32xf32> to vector<15x8xf32>
    %754 = vector.extract_strided_slice %727 {offsets = [0, 8], sizes = [15, 8], strides = [1, 1]} : vector<15x32xf32> to vector<15x8xf32>
    %cst_367 = arith.constant dense<0.000000e+00> : vector<15x15xf32>
    %755 = tpu.matmul %752, %753, %cst_367 {dimension_numbers = #tpu.dot_dimension_numbers<[1], [1], [0], [0], [0, 0, 1, 0], [], []>} : vector<15x8xf32>, vector<15x8xf32>, vector<15x15xf32> -> vector<15x15xf32>
    %cst_368 = arith.constant 0.353553385 : f32
    %756 = vector.broadcast %cst_368 : f32 to vector<15x15xf32>
    %757 = arith.mulf %755, %756 : vector<15x15xf32>
    %758 = arith.addf %757, %53 : vector<15x15xf32>
    %cst_369 = arith.constant dense<0xFF800000> : vector<15xf32>
    %759 = vector.multi_reduction <maximumf>, %758, %cst_369 [1] : vector<15x15xf32> to vector<15xf32>
    %760 = vector.shape_cast %759 : vector<15xf32> to vector<15x1xf32>
    %761 = vector.broadcast %760 : vector<15x1xf32> to vector<15x15xf32>
    %762 = arith.subf %758, %761 : vector<15x15xf32>
    %763 = math.exp %762 : vector<15x15xf32>
    %cst_370 = arith.constant dense<0.000000e+00> : vector<15xf32>
    %764 = vector.multi_reduction <add>, %763, %cst_370 [1] : vector<15x15xf32> to vector<15xf32>
    %765 = vector.shape_cast %764 : vector<15xf32> to vector<15x1xf32>
    %766 = tpu.reciprocal %765 {approx = true} : vector<15x1xf32> -> vector<15x1xf32>
    %767 = vector.broadcast %766 : vector<15x1xf32> to vector<15x15xf32>
    %768 = arith.mulf %763, %767 : vector<15x15xf32>
    %cst_371 = arith.constant dense<0.000000e+00> : vector<15x8xf32>
    %769 = tpu.matmul %768, %754, %cst_371 {dimension_numbers = #tpu.dot_dimension_numbers<[1], [0], [0], [1], [0, 0, 1, 1], [], []>} : vector<15x15xf32>, vector<15x8xf32>, vector<15x8xf32> -> vector<15x8xf32>
    %770 = vector.extract_strided_slice %729 {offsets = [8, 0], sizes = [8, 32], strides = [1, 1]} : vector<32x32xf32> to vector<8x32xf32>
    %cst_372 = arith.constant dense<0.000000e+00> : vector<15x32xf32>
    %771 = tpu.matmul %769, %770, %cst_372 {dimension_numbers = #tpu.dot_dimension_numbers<[1], [0], [0], [1], [0, 0, 1, 1], [], []>} : vector<15x8xf32>, vector<8x32xf32>, vector<15x32xf32> -> vector<15x32xf32>
    %772 = arith.addf %751, %771 : vector<15x32xf32>
    %773 = vector.extract_strided_slice %725 {offsets = [0, 16], sizes = [15, 8], strides = [1, 1]} : vector<15x32xf32> to vector<15x8xf32>
    %774 = vector.extract_strided_slice %726 {offsets = [0, 16], sizes = [15, 8], strides = [1, 1]} : vector<15x32xf32> to vector<15x8xf32>
    %775 = vector.extract_strided_slice %727 {offsets = [0, 16], sizes = [15, 8], strides = [1, 1]} : vector<15x32xf32> to vector<15x8xf32>
    %cst_373 = arith.constant dense<0.000000e+00> : vector<15x15xf32>
    %776 = tpu.matmul %773, %774, %cst_373 {dimension_numbers = #tpu.dot_dimension_numbers<[1], [1], [0], [0], [0, 0, 1, 0], [], []>} : vector<15x8xf32>, vector<15x8xf32>, vector<15x15xf32> -> vector<15x15xf32>
    %cst_374 = arith.constant 0.353553385 : f32
    %777 = vector.broadcast %cst_374 : f32 to vector<15x15xf32>
    %778 = arith.mulf %776, %777 : vector<15x15xf32>
    %779 = arith.addf %778, %53 : vector<15x15xf32>
    %cst_375 = arith.constant dense<0xFF800000> : vector<15xf32>
    %780 = vector.multi_reduction <maximumf>, %779, %cst_375 [1] : vector<15x15xf32> to vector<15xf32>
    %781 = vector.shape_cast %780 : vector<15xf32> to vector<15x1xf32>
    %782 = vector.broadcast %781 : vector<15x1xf32> to vector<15x15xf32>
    %783 = arith.subf %779, %782 : vector<15x15xf32>
    %784 = math.exp %783 : vector<15x15xf32>
    %cst_376 = arith.constant dense<0.000000e+00> : vector<15xf32>
    %785 = vector.multi_reduction <add>, %784, %cst_376 [1] : vector<15x15xf32> to vector<15xf32>
    %786 = vector.shape_cast %785 : vector<15xf32> to vector<15x1xf32>
    %787 = tpu.reciprocal %786 {approx = true} : vector<15x1xf32> -> vector<15x1xf32>
    %788 = vector.broadcast %787 : vector<15x1xf32> to vector<15x15xf32>
    %789 = arith.mulf %784, %788 : vector<15x15xf32>
    %cst_377 = arith.constant dense<0.000000e+00> : vector<15x8xf32>
    %790 = tpu.matmul %789, %775, %cst_377 {dimension_numbers = #tpu.dot_dimension_numbers<[1], [0], [0], [1], [0, 0, 1, 1], [], []>} : vector<15x15xf32>, vector<15x8xf32>, vector<15x8xf32> -> vector<15x8xf32>
    %791 = vector.extract_strided_slice %729 {offsets = [16, 0], sizes = [8, 32], strides = [1, 1]} : vector<32x32xf32> to vector<8x32xf32>
    %cst_378 = arith.constant dense<0.000000e+00> : vector<15x32xf32>
    %792 = tpu.matmul %790, %791, %cst_378 {dimension_numbers = #tpu.dot_dimension_numbers<[1], [0], [0], [1], [0, 0, 1, 1], [], []>} : vector<15x8xf32>, vector<8x32xf32>, vector<15x32xf32> -> vector<15x32xf32>
    %793 = arith.addf %772, %792 : vector<15x32xf32>
    %794 = vector.extract_strided_slice %725 {offsets = [0, 24], sizes = [15, 8], strides = [1, 1]} : vector<15x32xf32> to vector<15x8xf32>
    %795 = vector.extract_strided_slice %726 {offsets = [0, 24], sizes = [15, 8], strides = [1, 1]} : vector<15x32xf32> to vector<15x8xf32>
    %796 = vector.extract_strided_slice %727 {offsets = [0, 24], sizes = [15, 8], strides = [1, 1]} : vector<15x32xf32> to vector<15x8xf32>
    %cst_379 = arith.constant dense<0.000000e+00> : vector<15x15xf32>
    %797 = tpu.matmul %794, %795, %cst_379 {dimension_numbers = #tpu.dot_dimension_numbers<[1], [1], [0], [0], [0, 0, 1, 0], [], []>} : vector<15x8xf32>, vector<15x8xf32>, vector<15x15xf32> -> vector<15x15xf32>
    %cst_380 = arith.constant 0.353553385 : f32
    %798 = vector.broadcast %cst_380 : f32 to vector<15x15xf32>
    %799 = arith.mulf %797, %798 : vector<15x15xf32>
    %800 = arith.addf %799, %53 : vector<15x15xf32>
    %cst_381 = arith.constant dense<0xFF800000> : vector<15xf32>
    %801 = vector.multi_reduction <maximumf>, %800, %cst_381 [1] : vector<15x15xf32> to vector<15xf32>
    %802 = vector.shape_cast %801 : vector<15xf32> to vector<15x1xf32>
    %803 = vector.broadcast %802 : vector<15x1xf32> to vector<15x15xf32>
    %804 = arith.subf %800, %803 : vector<15x15xf32>
    %805 = math.exp %804 : vector<15x15xf32>
    %cst_382 = arith.constant dense<0.000000e+00> : vector<15xf32>
    %806 = vector.multi_reduction <add>, %805, %cst_382 [1] : vector<15x15xf32> to vector<15xf32>
    %807 = vector.shape_cast %806 : vector<15xf32> to vector<15x1xf32>
    %808 = tpu.reciprocal %807 {approx = true} : vector<15x1xf32> -> vector<15x1xf32>
    %809 = vector.broadcast %808 : vector<15x1xf32> to vector<15x15xf32>
    %810 = arith.mulf %805, %809 : vector<15x15xf32>
    %cst_383 = arith.constant dense<0.000000e+00> : vector<15x8xf32>
    %811 = tpu.matmul %810, %796, %cst_383 {dimension_numbers = #tpu.dot_dimension_numbers<[1], [0], [0], [1], [0, 0, 1, 1], [], []>} : vector<15x15xf32>, vector<15x8xf32>, vector<15x8xf32> -> vector<15x8xf32>
    %812 = vector.extract_strided_slice %729 {offsets = [24, 0], sizes = [8, 32], strides = [1, 1]} : vector<32x32xf32> to vector<8x32xf32>
    %cst_384 = arith.constant dense<0.000000e+00> : vector<15x32xf32>
    %813 = tpu.matmul %811, %812, %cst_384 {dimension_numbers = #tpu.dot_dimension_numbers<[1], [0], [0], [1], [0, 0, 1, 1], [], []>} : vector<15x8xf32>, vector<8x32xf32>, vector<15x32xf32> -> vector<15x32xf32>
    %814 = arith.addf %793, %813 : vector<15x32xf32>
    %815 = vector.broadcast %731 : vector<1x32xf32> to vector<15x32xf32>
    %816 = arith.addf %814, %815 : vector<15x32xf32>
    %817 = arith.addf %717, %816 : vector<15x32xf32>
    %c1_385 = arith.constant 1 : index
    %c0_386 = arith.constant 0 : index
    %c0_387 = arith.constant 0 : index
    %818 = vector.load %arg47[%c1_385, %c0_386, %c0_387] : memref<2x1x32xf32, #tpu.memory_space<vmem>>, vector<1x1x32xf32>
    %819 = vector.shape_cast %818 : vector<1x1x32xf32> to vector<1x32xf32>
    %c1_388 = arith.constant 1 : index
    %c0_389 = arith.constant 0 : index
    %c0_390 = arith.constant 0 : index
    %820 = vector.load %arg46[%c1_388, %c0_389, %c0_390] : memref<2x1x32xf32, #tpu.memory_space<vmem>>, vector<1x1x32xf32>
    %821 = vector.shape_cast %820 : vector<1x1x32xf32> to vector<1x32xf32>
    %cst_391 = arith.constant dense<0.000000e+00> : vector<15xf32>
    %822 = vector.multi_reduction <add>, %817, %cst_391 [1] : vector<15x32xf32> to vector<15xf32>
    %823 = vector.shape_cast %822 : vector<15xf32> to vector<15x1xf32>
    %cst_392 = arith.constant 3.200000e+01 : f32
    %824 = vector.broadcast %cst_392 : f32 to vector<15x1xf32>
    %825 = arith.divf %823, %824 : vector<15x1xf32>
    %826 = vector.broadcast %825 : vector<15x1xf32> to vector<15x32xf32>
    %827 = arith.subf %817, %826 : vector<15x32xf32>
    %828 = arith.mulf %827, %827 : vector<15x32xf32>
    %cst_393 = arith.constant dense<0.000000e+00> : vector<15xf32>
    %829 = vector.multi_reduction <add>, %828, %cst_393 [1] : vector<15x32xf32> to vector<15xf32>
    %830 = vector.shape_cast %829 : vector<15xf32> to vector<15x1xf32>
    %cst_394 = arith.constant 3.200000e+01 : f32
    %831 = vector.broadcast %cst_394 : f32 to vector<15x1xf32>
    %832 = arith.divf %830, %831 : vector<15x1xf32>
    %833 = vector.broadcast %825 : vector<15x1xf32> to vector<15x32xf32>
    %834 = arith.subf %817, %833 : vector<15x32xf32>
    %cst_395 = arith.constant 9.99999974E-6 : f32
    %835 = vector.broadcast %cst_395 : f32 to vector<15x1xf32>
    %836 = arith.addf %832, %835 : vector<15x1xf32>
    %837 = math.rsqrt %836 : vector<15x1xf32>
    %838 = vector.broadcast %837 : vector<15x1xf32> to vector<15x32xf32>
    %839 = arith.mulf %834, %838 : vector<15x32xf32>
    %840 = vector.broadcast %819 : vector<1x32xf32> to vector<15x32xf32>
    %841 = arith.mulf %839, %840 : vector<15x32xf32>
    %842 = vector.broadcast %821 : vector<1x32xf32> to vector<15x32xf32>
    %843 = arith.addf %841, %842 : vector<15x32xf32>
    %c1_396 = arith.constant 1 : index
    %c0_397 = arith.constant 0 : index
    %c0_398 = arith.constant 0 : index
    %844 = vector.load %arg45[%c1_396, %c0_397, %c0_398] : memref<2x32x32xf32, #tpu.memory_space<vmem>>, vector<1x32x32xf32>
    %845 = vector.shape_cast %844 : vector<1x32x32xf32> to vector<32x32xf32>
    %cst_399 = arith.constant dense<0.000000e+00> : vector<15x32xf32>
    %846 = tpu.matmul %843, %845, %cst_399 {dimension_numbers = #tpu.dot_dimension_numbers<[1], [0], [0], [1], [0, 0, 1, 1], [], []>} : vector<15x32xf32>, vector<32x32xf32>, vector<15x32xf32> -> vector<15x32xf32>
    %c1_400 = arith.constant 1 : index
    %c0_401 = arith.constant 0 : index
    %c0_402 = arith.constant 0 : index
    %847 = vector.load %arg42[%c1_400, %c0_401, %c0_402] : memref<2x1x32xf32, #tpu.memory_space<vmem>>, vector<1x1x32xf32>
    %848 = vector.shape_cast %847 : vector<1x1x32xf32> to vector<1x32xf32>
    %849 = vector.broadcast %848 : vector<1x32xf32> to vector<15x32xf32>
    %850 = arith.addf %846, %849 : vector<15x32xf32>
    %c1_403 = arith.constant 1 : index
    %c0_404 = arith.constant 0 : index
    %c0_405 = arith.constant 0 : index
    %851 = vector.load %arg43[%c1_403, %c0_404, %c0_405] : memref<2x32x64xf32, #tpu.memory_space<vmem>>, vector<1x32x64xf32>
    %852 = vector.shape_cast %851 : vector<1x32x64xf32> to vector<32x64xf32>
    %cst_406 = arith.constant dense<0.000000e+00> : vector<14x64xf32>
    %853 = tpu.matmul %416, %852, %cst_406 {dimension_numbers = #tpu.dot_dimension_numbers<[1], [0], [0], [1], [0, 0, 1, 1], [], []>} : vector<14x32xf32>, vector<32x64xf32>, vector<14x64xf32> -> vector<14x64xf32>
    %c1_407 = arith.constant 1 : index
    %c0_408 = arith.constant 0 : index
    %c0_409 = arith.constant 0 : index
    %854 = vector.load %arg40[%c1_407, %c0_408, %c0_409] : memref<2x1x64xf32, #tpu.memory_space<vmem>>, vector<1x1x64xf32>
    %855 = vector.shape_cast %854 : vector<1x1x64xf32> to vector<1x64xf32>
    %856 = vector.broadcast %855 : vector<1x64xf32> to vector<14x64xf32>
    %857 = arith.addf %853, %856 : vector<14x64xf32>
    %858 = vector.extract_strided_slice %857 {offsets = [0, 0], sizes = [14, 32], strides = [1, 1]} : vector<14x64xf32> to vector<14x32xf32>
    %859 = vector.extract_strided_slice %857 {offsets = [0, 32], sizes = [14, 32], strides = [1, 1]} : vector<14x64xf32> to vector<14x32xf32>
    %c1_410 = arith.constant 1 : index
    %c0_411 = arith.constant 0 : index
    %c0_412 = arith.constant 0 : index
    %860 = vector.load %arg44[%c1_410, %c0_411, %c0_412] : memref<2x32x32xf32, #tpu.memory_space<vmem>>, vector<1x32x32xf32>
    %861 = vector.shape_cast %860 : vector<1x32x32xf32> to vector<32x32xf32>
    %c1_413 = arith.constant 1 : index
    %c0_414 = arith.constant 0 : index
    %c0_415 = arith.constant 0 : index
    %862 = vector.load %arg41[%c1_413, %c0_414, %c0_415] : memref<2x1x32xf32, #tpu.memory_space<vmem>>, vector<1x1x32xf32>
    %863 = vector.shape_cast %862 : vector<1x1x32xf32> to vector<1x32xf32>
    %864 = vector.extract_strided_slice %850 {offsets = [0, 0], sizes = [15, 8], strides = [1, 1]} : vector<15x32xf32> to vector<15x8xf32>
    %865 = vector.extract_strided_slice %858 {offsets = [0, 0], sizes = [14, 8], strides = [1, 1]} : vector<14x32xf32> to vector<14x8xf32>
    %866 = vector.extract_strided_slice %859 {offsets = [0, 0], sizes = [14, 8], strides = [1, 1]} : vector<14x32xf32> to vector<14x8xf32>
    %cst_416 = arith.constant dense<0.000000e+00> : vector<15x14xf32>
    %867 = tpu.matmul %864, %865, %cst_416 {dimension_numbers = #tpu.dot_dimension_numbers<[1], [1], [0], [0], [0, 0, 1, 0], [], []>} : vector<15x8xf32>, vector<14x8xf32>, vector<15x14xf32> -> vector<15x14xf32>
    %cst_417 = arith.constant 0.353553385 : f32
    %868 = vector.broadcast %cst_417 : f32 to vector<15x14xf32>
    %869 = arith.mulf %867, %868 : vector<15x14xf32>
    %870 = arith.addf %869, %54 : vector<15x14xf32>
    %cst_418 = arith.constant dense<0xFF800000> : vector<15xf32>
    %871 = vector.multi_reduction <maximumf>, %870, %cst_418 [1] : vector<15x14xf32> to vector<15xf32>
    %872 = vector.shape_cast %871 : vector<15xf32> to vector<15x1xf32>
    %873 = vector.broadcast %872 : vector<15x1xf32> to vector<15x14xf32>
    %874 = arith.subf %870, %873 : vector<15x14xf32>
    %875 = math.exp %874 : vector<15x14xf32>
    %cst_419 = arith.constant dense<0.000000e+00> : vector<15xf32>
    %876 = vector.multi_reduction <add>, %875, %cst_419 [1] : vector<15x14xf32> to vector<15xf32>
    %877 = vector.shape_cast %876 : vector<15xf32> to vector<15x1xf32>
    %878 = tpu.reciprocal %877 {approx = true} : vector<15x1xf32> -> vector<15x1xf32>
    %879 = vector.broadcast %878 : vector<15x1xf32> to vector<15x14xf32>
    %880 = arith.mulf %875, %879 : vector<15x14xf32>
    %cst_420 = arith.constant dense<0.000000e+00> : vector<15x8xf32>
    %881 = tpu.matmul %880, %866, %cst_420 {dimension_numbers = #tpu.dot_dimension_numbers<[1], [0], [0], [1], [0, 0, 1, 1], [], []>} : vector<15x14xf32>, vector<14x8xf32>, vector<15x8xf32> -> vector<15x8xf32>
    %882 = vector.extract_strided_slice %861 {offsets = [0, 0], sizes = [8, 32], strides = [1, 1]} : vector<32x32xf32> to vector<8x32xf32>
    %cst_421 = arith.constant dense<0.000000e+00> : vector<15x32xf32>
    %883 = tpu.matmul %881, %882, %cst_421 {dimension_numbers = #tpu.dot_dimension_numbers<[1], [0], [0], [1], [0, 0, 1, 1], [], []>} : vector<15x8xf32>, vector<8x32xf32>, vector<15x32xf32> -> vector<15x32xf32>
    %884 = vector.extract_strided_slice %850 {offsets = [0, 8], sizes = [15, 8], strides = [1, 1]} : vector<15x32xf32> to vector<15x8xf32>
    %885 = vector.extract_strided_slice %858 {offsets = [0, 8], sizes = [14, 8], strides = [1, 1]} : vector<14x32xf32> to vector<14x8xf32>
    %886 = vector.extract_strided_slice %859 {offsets = [0, 8], sizes = [14, 8], strides = [1, 1]} : vector<14x32xf32> to vector<14x8xf32>
    %cst_422 = arith.constant dense<0.000000e+00> : vector<15x14xf32>
    %887 = tpu.matmul %884, %885, %cst_422 {dimension_numbers = #tpu.dot_dimension_numbers<[1], [1], [0], [0], [0, 0, 1, 0], [], []>} : vector<15x8xf32>, vector<14x8xf32>, vector<15x14xf32> -> vector<15x14xf32>
    %cst_423 = arith.constant 0.353553385 : f32
    %888 = vector.broadcast %cst_423 : f32 to vector<15x14xf32>
    %889 = arith.mulf %887, %888 : vector<15x14xf32>
    %890 = arith.addf %889, %54 : vector<15x14xf32>
    %cst_424 = arith.constant dense<0xFF800000> : vector<15xf32>
    %891 = vector.multi_reduction <maximumf>, %890, %cst_424 [1] : vector<15x14xf32> to vector<15xf32>
    %892 = vector.shape_cast %891 : vector<15xf32> to vector<15x1xf32>
    %893 = vector.broadcast %892 : vector<15x1xf32> to vector<15x14xf32>
    %894 = arith.subf %890, %893 : vector<15x14xf32>
    %895 = math.exp %894 : vector<15x14xf32>
    %cst_425 = arith.constant dense<0.000000e+00> : vector<15xf32>
    %896 = vector.multi_reduction <add>, %895, %cst_425 [1] : vector<15x14xf32> to vector<15xf32>
    %897 = vector.shape_cast %896 : vector<15xf32> to vector<15x1xf32>
    %898 = tpu.reciprocal %897 {approx = true} : vector<15x1xf32> -> vector<15x1xf32>
    %899 = vector.broadcast %898 : vector<15x1xf32> to vector<15x14xf32>
    %900 = arith.mulf %895, %899 : vector<15x14xf32>
    %cst_426 = arith.constant dense<0.000000e+00> : vector<15x8xf32>
    %901 = tpu.matmul %900, %886, %cst_426 {dimension_numbers = #tpu.dot_dimension_numbers<[1], [0], [0], [1], [0, 0, 1, 1], [], []>} : vector<15x14xf32>, vector<14x8xf32>, vector<15x8xf32> -> vector<15x8xf32>
    %902 = vector.extract_strided_slice %861 {offsets = [8, 0], sizes = [8, 32], strides = [1, 1]} : vector<32x32xf32> to vector<8x32xf32>
    %cst_427 = arith.constant dense<0.000000e+00> : vector<15x32xf32>
    %903 = tpu.matmul %901, %902, %cst_427 {dimension_numbers = #tpu.dot_dimension_numbers<[1], [0], [0], [1], [0, 0, 1, 1], [], []>} : vector<15x8xf32>, vector<8x32xf32>, vector<15x32xf32> -> vector<15x32xf32>
    %904 = arith.addf %883, %903 : vector<15x32xf32>
    %905 = vector.extract_strided_slice %850 {offsets = [0, 16], sizes = [15, 8], strides = [1, 1]} : vector<15x32xf32> to vector<15x8xf32>
    %906 = vector.extract_strided_slice %858 {offsets = [0, 16], sizes = [14, 8], strides = [1, 1]} : vector<14x32xf32> to vector<14x8xf32>
    %907 = vector.extract_strided_slice %859 {offsets = [0, 16], sizes = [14, 8], strides = [1, 1]} : vector<14x32xf32> to vector<14x8xf32>
    %cst_428 = arith.constant dense<0.000000e+00> : vector<15x14xf32>
    %908 = tpu.matmul %905, %906, %cst_428 {dimension_numbers = #tpu.dot_dimension_numbers<[1], [1], [0], [0], [0, 0, 1, 0], [], []>} : vector<15x8xf32>, vector<14x8xf32>, vector<15x14xf32> -> vector<15x14xf32>
    %cst_429 = arith.constant 0.353553385 : f32
    %909 = vector.broadcast %cst_429 : f32 to vector<15x14xf32>
    %910 = arith.mulf %908, %909 : vector<15x14xf32>
    %911 = arith.addf %910, %54 : vector<15x14xf32>
    %cst_430 = arith.constant dense<0xFF800000> : vector<15xf32>
    %912 = vector.multi_reduction <maximumf>, %911, %cst_430 [1] : vector<15x14xf32> to vector<15xf32>
    %913 = vector.shape_cast %912 : vector<15xf32> to vector<15x1xf32>
    %914 = vector.broadcast %913 : vector<15x1xf32> to vector<15x14xf32>
    %915 = arith.subf %911, %914 : vector<15x14xf32>
    %916 = math.exp %915 : vector<15x14xf32>
    %cst_431 = arith.constant dense<0.000000e+00> : vector<15xf32>
    %917 = vector.multi_reduction <add>, %916, %cst_431 [1] : vector<15x14xf32> to vector<15xf32>
    %918 = vector.shape_cast %917 : vector<15xf32> to vector<15x1xf32>
    %919 = tpu.reciprocal %918 {approx = true} : vector<15x1xf32> -> vector<15x1xf32>
    %920 = vector.broadcast %919 : vector<15x1xf32> to vector<15x14xf32>
    %921 = arith.mulf %916, %920 : vector<15x14xf32>
    %cst_432 = arith.constant dense<0.000000e+00> : vector<15x8xf32>
    %922 = tpu.matmul %921, %907, %cst_432 {dimension_numbers = #tpu.dot_dimension_numbers<[1], [0], [0], [1], [0, 0, 1, 1], [], []>} : vector<15x14xf32>, vector<14x8xf32>, vector<15x8xf32> -> vector<15x8xf32>
    %923 = vector.extract_strided_slice %861 {offsets = [16, 0], sizes = [8, 32], strides = [1, 1]} : vector<32x32xf32> to vector<8x32xf32>
    %cst_433 = arith.constant dense<0.000000e+00> : vector<15x32xf32>
    %924 = tpu.matmul %922, %923, %cst_433 {dimension_numbers = #tpu.dot_dimension_numbers<[1], [0], [0], [1], [0, 0, 1, 1], [], []>} : vector<15x8xf32>, vector<8x32xf32>, vector<15x32xf32> -> vector<15x32xf32>
    %925 = arith.addf %904, %924 : vector<15x32xf32>
    %926 = vector.extract_strided_slice %850 {offsets = [0, 24], sizes = [15, 8], strides = [1, 1]} : vector<15x32xf32> to vector<15x8xf32>
    %927 = vector.extract_strided_slice %858 {offsets = [0, 24], sizes = [14, 8], strides = [1, 1]} : vector<14x32xf32> to vector<14x8xf32>
    %928 = vector.extract_strided_slice %859 {offsets = [0, 24], sizes = [14, 8], strides = [1, 1]} : vector<14x32xf32> to vector<14x8xf32>
    %cst_434 = arith.constant dense<0.000000e+00> : vector<15x14xf32>
    %929 = tpu.matmul %926, %927, %cst_434 {dimension_numbers = #tpu.dot_dimension_numbers<[1], [1], [0], [0], [0, 0, 1, 0], [], []>} : vector<15x8xf32>, vector<14x8xf32>, vector<15x14xf32> -> vector<15x14xf32>
    %cst_435 = arith.constant 0.353553385 : f32
    %930 = vector.broadcast %cst_435 : f32 to vector<15x14xf32>
    %931 = arith.mulf %929, %930 : vector<15x14xf32>
    %932 = arith.addf %931, %54 : vector<15x14xf32>
    %cst_436 = arith.constant dense<0xFF800000> : vector<15xf32>
    %933 = vector.multi_reduction <maximumf>, %932, %cst_436 [1] : vector<15x14xf32> to vector<15xf32>
    %934 = vector.shape_cast %933 : vector<15xf32> to vector<15x1xf32>
    %935 = vector.broadcast %934 : vector<15x1xf32> to vector<15x14xf32>
    %936 = arith.subf %932, %935 : vector<15x14xf32>
    %937 = math.exp %936 : vector<15x14xf32>
    %cst_437 = arith.constant dense<0.000000e+00> : vector<15xf32>
    %938 = vector.multi_reduction <add>, %937, %cst_437 [1] : vector<15x14xf32> to vector<15xf32>
    %939 = vector.shape_cast %938 : vector<15xf32> to vector<15x1xf32>
    %940 = tpu.reciprocal %939 {approx = true} : vector<15x1xf32> -> vector<15x1xf32>
    %941 = vector.broadcast %940 : vector<15x1xf32> to vector<15x14xf32>
    %942 = arith.mulf %937, %941 : vector<15x14xf32>
    %cst_438 = arith.constant dense<0.000000e+00> : vector<15x8xf32>
    %943 = tpu.matmul %942, %928, %cst_438 {dimension_numbers = #tpu.dot_dimension_numbers<[1], [0], [0], [1], [0, 0, 1, 1], [], []>} : vector<15x14xf32>, vector<14x8xf32>, vector<15x8xf32> -> vector<15x8xf32>
    %944 = vector.extract_strided_slice %861 {offsets = [24, 0], sizes = [8, 32], strides = [1, 1]} : vector<32x32xf32> to vector<8x32xf32>
    %cst_439 = arith.constant dense<0.000000e+00> : vector<15x32xf32>
    %945 = tpu.matmul %943, %944, %cst_439 {dimension_numbers = #tpu.dot_dimension_numbers<[1], [0], [0], [1], [0, 0, 1, 1], [], []>} : vector<15x8xf32>, vector<8x32xf32>, vector<15x32xf32> -> vector<15x32xf32>
    %946 = arith.addf %925, %945 : vector<15x32xf32>
    %947 = vector.broadcast %863 : vector<1x32xf32> to vector<15x32xf32>
    %948 = arith.addf %946, %947 : vector<15x32xf32>
    %949 = arith.addf %843, %948 : vector<15x32xf32>
    %c1_440 = arith.constant 1 : index
    %c0_441 = arith.constant 0 : index
    %c0_442 = arith.constant 0 : index
    %950 = vector.load %arg49[%c1_440, %c0_441, %c0_442] : memref<2x1x32xf32, #tpu.memory_space<vmem>>, vector<1x1x32xf32>
    %951 = vector.shape_cast %950 : vector<1x1x32xf32> to vector<1x32xf32>
    %c1_443 = arith.constant 1 : index
    %c0_444 = arith.constant 0 : index
    %c0_445 = arith.constant 0 : index
    %952 = vector.load %arg48[%c1_443, %c0_444, %c0_445] : memref<2x1x32xf32, #tpu.memory_space<vmem>>, vector<1x1x32xf32>
    %953 = vector.shape_cast %952 : vector<1x1x32xf32> to vector<1x32xf32>
    %cst_446 = arith.constant dense<0.000000e+00> : vector<15xf32>
    %954 = vector.multi_reduction <add>, %949, %cst_446 [1] : vector<15x32xf32> to vector<15xf32>
    %955 = vector.shape_cast %954 : vector<15xf32> to vector<15x1xf32>
    %cst_447 = arith.constant 3.200000e+01 : f32
    %956 = vector.broadcast %cst_447 : f32 to vector<15x1xf32>
    %957 = arith.divf %955, %956 : vector<15x1xf32>
    %958 = vector.broadcast %957 : vector<15x1xf32> to vector<15x32xf32>
    %959 = arith.subf %949, %958 : vector<15x32xf32>
    %960 = arith.mulf %959, %959 : vector<15x32xf32>
    %cst_448 = arith.constant dense<0.000000e+00> : vector<15xf32>
    %961 = vector.multi_reduction <add>, %960, %cst_448 [1] : vector<15x32xf32> to vector<15xf32>
    %962 = vector.shape_cast %961 : vector<15xf32> to vector<15x1xf32>
    %cst_449 = arith.constant 3.200000e+01 : f32
    %963 = vector.broadcast %cst_449 : f32 to vector<15x1xf32>
    %964 = arith.divf %962, %963 : vector<15x1xf32>
    %965 = vector.broadcast %957 : vector<15x1xf32> to vector<15x32xf32>
    %966 = arith.subf %949, %965 : vector<15x32xf32>
    %cst_450 = arith.constant 9.99999974E-6 : f32
    %967 = vector.broadcast %cst_450 : f32 to vector<15x1xf32>
    %968 = arith.addf %964, %967 : vector<15x1xf32>
    %969 = math.rsqrt %968 : vector<15x1xf32>
    %970 = vector.broadcast %969 : vector<15x1xf32> to vector<15x32xf32>
    %971 = arith.mulf %966, %970 : vector<15x32xf32>
    %972 = vector.broadcast %951 : vector<1x32xf32> to vector<15x32xf32>
    %973 = arith.mulf %971, %972 : vector<15x32xf32>
    %974 = vector.broadcast %953 : vector<1x32xf32> to vector<15x32xf32>
    %975 = arith.addf %973, %974 : vector<15x32xf32>
    %c1_451 = arith.constant 1 : index
    %c0_452 = arith.constant 0 : index
    %c0_453 = arith.constant 0 : index
    %976 = vector.load %arg56[%c1_451, %c0_452, %c0_453] : memref<2x32x64xf32, #tpu.memory_space<vmem>>, vector<1x32x64xf32>
    %977 = vector.shape_cast %976 : vector<1x32x64xf32> to vector<32x64xf32>
    %c1_454 = arith.constant 1 : index
    %c0_455 = arith.constant 0 : index
    %c0_456 = arith.constant 0 : index
    %978 = vector.load %arg38[%c1_454, %c0_455, %c0_456] : memref<2x1x64xf32, #tpu.memory_space<vmem>>, vector<1x1x64xf32>
    %979 = vector.shape_cast %978 : vector<1x1x64xf32> to vector<1x64xf32>
    %c1_457 = arith.constant 1 : index
    %c0_458 = arith.constant 0 : index
    %c0_459 = arith.constant 0 : index
    %980 = vector.load %arg57[%c1_457, %c0_458, %c0_459] : memref<2x64x32xf32, #tpu.memory_space<vmem>>, vector<1x64x32xf32>
    %981 = vector.shape_cast %980 : vector<1x64x32xf32> to vector<64x32xf32>
    %c1_460 = arith.constant 1 : index
    %c0_461 = arith.constant 0 : index
    %c0_462 = arith.constant 0 : index
    %982 = vector.load %arg39[%c1_460, %c0_461, %c0_462] : memref<2x1x32xf32, #tpu.memory_space<vmem>>, vector<1x1x32xf32>
    %983 = vector.shape_cast %982 : vector<1x1x32xf32> to vector<1x32xf32>
    %cst_463 = arith.constant dense<0.000000e+00> : vector<15x64xf32>
    %984 = tpu.matmul %975, %977, %cst_463 {dimension_numbers = #tpu.dot_dimension_numbers<[1], [0], [0], [1], [0, 0, 1, 1], [], []>} : vector<15x32xf32>, vector<32x64xf32>, vector<15x64xf32> -> vector<15x64xf32>
    %985 = vector.broadcast %979 : vector<1x64xf32> to vector<15x64xf32>
    %986 = arith.addf %984, %985 : vector<15x64xf32>
    %cst_464 = arith.constant 0.000000e+00 : f32
    %987 = vector.broadcast %cst_464 : f32 to vector<15x64xf32>
    %988 = arith.maximumf %986, %987 : vector<15x64xf32>
    %cst_465 = arith.constant dense<0.000000e+00> : vector<15x32xf32>
    %989 = tpu.matmul %988, %981, %cst_465 {dimension_numbers = #tpu.dot_dimension_numbers<[1], [0], [0], [1], [0, 0, 1, 1], [], []>} : vector<15x64xf32>, vector<64x32xf32>, vector<15x32xf32> -> vector<15x32xf32>
    %990 = vector.broadcast %983 : vector<1x32xf32> to vector<15x32xf32>
    %991 = arith.addf %989, %990 : vector<15x32xf32>
    %992 = arith.addf %975, %991 : vector<15x32xf32>
    %c1_466 = arith.constant 1 : index
    %c0_467 = arith.constant 0 : index
    %c0_468 = arith.constant 0 : index
    %993 = vector.load %arg51[%c1_466, %c0_467, %c0_468] : memref<2x1x32xf32, #tpu.memory_space<vmem>>, vector<1x1x32xf32>
    %994 = vector.shape_cast %993 : vector<1x1x32xf32> to vector<1x32xf32>
    %c1_469 = arith.constant 1 : index
    %c0_470 = arith.constant 0 : index
    %c0_471 = arith.constant 0 : index
    %995 = vector.load %arg50[%c1_469, %c0_470, %c0_471] : memref<2x1x32xf32, #tpu.memory_space<vmem>>, vector<1x1x32xf32>
    %996 = vector.shape_cast %995 : vector<1x1x32xf32> to vector<1x32xf32>
    %cst_472 = arith.constant dense<0.000000e+00> : vector<15xf32>
    %997 = vector.multi_reduction <add>, %992, %cst_472 [1] : vector<15x32xf32> to vector<15xf32>
    %998 = vector.shape_cast %997 : vector<15xf32> to vector<15x1xf32>
    %cst_473 = arith.constant 3.200000e+01 : f32
    %999 = vector.broadcast %cst_473 : f32 to vector<15x1xf32>
    %1000 = arith.divf %998, %999 : vector<15x1xf32>
    %1001 = vector.broadcast %1000 : vector<15x1xf32> to vector<15x32xf32>
    %1002 = arith.subf %992, %1001 : vector<15x32xf32>
    %1003 = arith.mulf %1002, %1002 : vector<15x32xf32>
    %cst_474 = arith.constant dense<0.000000e+00> : vector<15xf32>
    %1004 = vector.multi_reduction <add>, %1003, %cst_474 [1] : vector<15x32xf32> to vector<15xf32>
    %1005 = vector.shape_cast %1004 : vector<15xf32> to vector<15x1xf32>
    %cst_475 = arith.constant 3.200000e+01 : f32
    %1006 = vector.broadcast %cst_475 : f32 to vector<15x1xf32>
    %1007 = arith.divf %1005, %1006 : vector<15x1xf32>
    %1008 = vector.broadcast %1000 : vector<15x1xf32> to vector<15x32xf32>
    %1009 = arith.subf %992, %1008 : vector<15x32xf32>
    %cst_476 = arith.constant 9.99999974E-6 : f32
    %1010 = vector.broadcast %cst_476 : f32 to vector<15x1xf32>
    %1011 = arith.addf %1007, %1010 : vector<15x1xf32>
    %1012 = math.rsqrt %1011 : vector<15x1xf32>
    %1013 = vector.broadcast %1012 : vector<15x1xf32> to vector<15x32xf32>
    %1014 = arith.mulf %1009, %1013 : vector<15x32xf32>
    %1015 = vector.broadcast %994 : vector<1x32xf32> to vector<15x32xf32>
    %1016 = arith.mulf %1014, %1015 : vector<15x32xf32>
    %1017 = vector.broadcast %996 : vector<1x32xf32> to vector<15x32xf32>
    %1018 = arith.addf %1016, %1017 : vector<15x32xf32>
    %c0_477 = arith.constant 0 : index
    %c0_478 = arith.constant 0 : index
    %1019 = vector.load %arg58[%c0_477, %c0_478] : memref<1x32xf32, #tpu.memory_space<vmem>>, vector<1x32xf32>
    %c0_479 = arith.constant 0 : index
    %c0_480 = arith.constant 0 : index
    %1020 = vector.load %arg59[%c0_479, %c0_480] : memref<1x32xf32, #tpu.memory_space<vmem>>, vector<1x32xf32>
    %cst_481 = arith.constant dense<0.000000e+00> : vector<15xf32>
    %1021 = vector.multi_reduction <add>, %1018, %cst_481 [1] : vector<15x32xf32> to vector<15xf32>
    %1022 = vector.shape_cast %1021 : vector<15xf32> to vector<15x1xf32>
    %cst_482 = arith.constant 3.200000e+01 : f32
    %1023 = vector.broadcast %cst_482 : f32 to vector<15x1xf32>
    %1024 = arith.divf %1022, %1023 : vector<15x1xf32>
    %1025 = vector.broadcast %1024 : vector<15x1xf32> to vector<15x32xf32>
    %1026 = arith.subf %1018, %1025 : vector<15x32xf32>
    %1027 = arith.mulf %1026, %1026 : vector<15x32xf32>
    %cst_483 = arith.constant dense<0.000000e+00> : vector<15xf32>
    %1028 = vector.multi_reduction <add>, %1027, %cst_483 [1] : vector<15x32xf32> to vector<15xf32>
    %1029 = vector.shape_cast %1028 : vector<15xf32> to vector<15x1xf32>
    %cst_484 = arith.constant 3.200000e+01 : f32
    %1030 = vector.broadcast %cst_484 : f32 to vector<15x1xf32>
    %1031 = arith.divf %1029, %1030 : vector<15x1xf32>
    %1032 = vector.broadcast %1024 : vector<15x1xf32> to vector<15x32xf32>
    %1033 = arith.subf %1018, %1032 : vector<15x32xf32>
    %cst_485 = arith.constant 9.99999974E-6 : f32
    %1034 = vector.broadcast %cst_485 : f32 to vector<15x1xf32>
    %1035 = arith.addf %1031, %1034 : vector<15x1xf32>
    %1036 = math.rsqrt %1035 : vector<15x1xf32>
    %1037 = vector.broadcast %1036 : vector<15x1xf32> to vector<15x32xf32>
    %1038 = arith.mulf %1033, %1037 : vector<15x32xf32>
    %1039 = vector.broadcast %1019 : vector<1x32xf32> to vector<15x32xf32>
    %1040 = arith.mulf %1038, %1039 : vector<15x32xf32>
    %1041 = vector.broadcast %1020 : vector<1x32xf32> to vector<15x32xf32>
    %1042 = arith.addf %1040, %1041 : vector<15x32xf32>
    %c0_486 = arith.constant 0 : index
    %c0_487 = arith.constant 0 : index
    %1043 = vector.load %arg60[%c0_486, %c0_487] : memref<32x128xf32, #tpu.memory_space<vmem>>, vector<32x128xf32>
    %cst_488 = arith.constant dense<0.000000e+00> : vector<15x128xf32>
    %1044 = tpu.matmul %1042, %1043, %cst_488 {dimension_numbers = #tpu.dot_dimension_numbers<[1], [0], [0], [1], [0, 0, 1, 1], [], []>} : vector<15x32xf32>, vector<32x128xf32>, vector<15x128xf32> -> vector<15x128xf32>
    %c0_489 = arith.constant 0 : index
    %c0_490 = arith.constant 0 : index
    %1045 = vector.load %arg61[%c0_489, %c0_490] : memref<1x128xf32, #tpu.memory_space<vmem>>, vector<1x128xf32>
    %1046 = vector.broadcast %1045 : vector<1x128xf32> to vector<15x128xf32>
    %1047 = arith.addf %1044, %1046 : vector<15x128xf32>
    %c0_491 = arith.constant 0 : index
    %c0_492 = arith.constant 0 : index
    %1048 = vector.load %arg62[%c0_491, %c0_492] : memref<15x128xf32, #tpu.memory_space<vmem>>, vector<15x128xf32>
    tpu.vector_store %arg62[%c0_491, %c0_492], %1047 {strides = array<i32>} : memref<15x128xf32, #tpu.memory_space<vmem>>, vector<15x128xf32>,
    return
  }
}

</mosaic_0001>

<bundles_post_ra>
// kernel: seq2graph_forward.1
= control target key start
LH: loop header
LB: loop body
LE: loop exit
PB: predicated region body
PF: predicated region fallthrough
CT: control target
= control target key end

     0   :  { %s6813_s6 = smov 1   ;;  %s6814_s10 = smov 2   ;;  %s8516_s0 = inlined_call_operand.smem [shape: u32[63], index: -1, kind: input, shape index: {}] }
   0x1   :  { %s6916_s5 = sld [smem:[%s8516_s0]]   ;;  %s6815_s14 = smov 3  }
   0x2   :  { %s6921_s9 = sld [smem:[%s8516_s0 + %s6813_s6]]   ;;  %s6816_s18 = smov 4  }
   0x3   :  { %s6926_s13 = sld [smem:[%s8516_s0 + %s6814_s10]]   ;;  %s6817_s22 = smov 5  }
   0x4   :  { %s6931_s17 = sld [smem:[%s8516_s0 + %s6815_s14]]   ;;  %s6818_s26 = smov 6  }
   0x5   :  { %s6936_s21 = sld [smem:[%s8516_s0 + %s6816_s18]]   ;;  %s6819_s30 = smov 7  }
   0x6   :  { %s6941_s25 = sld [smem:[%s8516_s0 + %s6817_s22]]   ;;  %s6820_s4 = smov 8  }
   0x7   :  { %8559 = sst [smem:[#allocation41_spill]] %s6916_s5  ;;  %s6821_s10 = smov 9  }
   0x8   :  { %8560 = sst [smem:[#allocation42_spill]] %s6921_s9  ;;  %s6822_s15 = smov 10  }
   0x9   :  { %8561 = sst [smem:[#allocation43_spill]] %s6926_s13  ;;  %s6823_s20 = smov 11  }
   0xa   :  { %8562 = sst [smem:[#allocation44_spill]] %s6931_s17  ;;  %s6825_s1 = smov 13  }
   0xb   :  { %8563 = sst [smem:[#allocation45_spill]] %s6936_s21  ;;  %s6826_s7 = smov 14  }
   0xc   :  { %8564 = sst [smem:[#allocation46_spill]] %s6941_s25  ;;  %s6828_s22 = smov 16  }
   0xd   :  { %s6946_s29 = sld [smem:[%s8516_s0 + %s6818_s26]]   ;;  %s6824_s26 = smov 12  }
   0xe   :  { %s6951_s3 = sld [smem:[%s8516_s0 + %s6819_s30]]   ;;  %s6829_s28 = smov 17  }
   0xf   :  { %s6956_s8 = sld [smem:[%s8516_s0 + %s6820_s4]]  }
  0x10   :  { %s6961_s14 = sld [smem:[%s8516_s0 + %s6821_s10]]  }
  0x11   :  { %s6966_s19 = sld [smem:[%s8516_s0 + %s6822_s15]]   ;;  %s6827_s15 = smov 15  }
  0x12   :  { %s6971_s24 = sld [smem:[%s8516_s0 + %s6823_s20]]  }
  0x13   :  { %8565 = sst [smem:[#allocation47_spill]] %s6946_s29 }
  0x14   :  { %8566 = sst [smem:[#allocation48_spill]] %s6951_s3 }
  0x15   :  { %8567 = sst [smem:[#allocation49_spill]] %s6956_s8 }
  0x16   :  { %8568 = sst [smem:[#allocation50_spill]] %s6961_s14 }
  0x17   :  { %8569 = sst [smem:[#allocation51_spill]] %s6966_s19 }
  0x18   :  { %8570 = sst [smem:[#allocation52_spill]] %s6971_s24 }
  0x19   :  { %s6976_s30 = sld [smem:[%s8516_s0 + %s6824_s26]]  }
  0x1a   :  { %s6981_s6 = sld [smem:[%s8516_s0 + %s6825_s1]]  }
  0x1b   :  { %s6986_s12 = sld [smem:[%s8516_s0 + %s6826_s7]]   ;;  %s6830_s7 = smov 18  }
  0x1c   :  { %s6991_s20 = sld [smem:[%s8516_s0 + %s6827_s15]]   ;;  %s6831_s15 = smov 19  }
  0x1d   :  { %s6996_s27 = sld [smem:[%s8516_s0 + %s6828_s22]]   ;;  %s6832_s22 = smov 20  }
  0x1e   :  { %s7001_s4 = sld [smem:[%s8516_s0 + %s6829_s28]]   ;;  %s6833_s28 = smov 21  }
  0x1f   :  { %8571 = sst [smem:[#allocation53_spill]] %s6976_s30 }
  0x20   :  { %s7006_s24 = sld [smem:[%s8516_s0 + %s6830_s7]]   ;;  %s6834_s7 = smov 22  }
  0x21   :  { %8572 = sst [smem:[#allocation54_spill]] %s6986_s12 }
  0x22   :  { %8573 = sst [smem:[#allocation55_spill]] %s6991_s20 }
  0x23   :  { %s7011_s19 = sld [smem:[%s8516_s0 + %s6831_s15]]   ;;  %s6835_s15 = smov 23  }
  0x24   :  { %8574 = sst [smem:[#allocation56_spill]] %s7001_s4 }
  0x25   :  { %s7016_s3 = sld [smem:[%s8516_s0 + %s6832_s22]]   ;;  %s6836_s22 = smov 24  }
  0x26   :  { %8575 = sst [smem:[#allocation57_spill]] %s7006_s24 }
  0x27   :  { %s7021_s14 = sld [smem:[%s8516_s0 + %s6833_s28]]   ;;  %s6837_s28 = smov 25  }
  0x28   :  { %s7026_s5 = sld [smem:[%s8516_s0 + %s6834_s7]]   ;;  %s6838_s7 = smov 26  }
  0x29   :  { %8576 = sst [smem:[#allocation58_spill]] %s7011_s19 }
  0x2a   :  { %s7031_s8 = sld [smem:[%s8516_s0 + %s6835_s15]]   ;;  %s6839_s15 = smov 27  }
  0x2b   :  { %s7036_s19 = sld [smem:[%s8516_s0 + %s6836_s22]]   ;;  %s6840_s22 = smov 28  }
  0x2c   :  { %s7051_s4 = sld [smem:[%s8516_s0 + %s6839_s15]]   ;;  %s6843_s15 = smov 31  }
  0x2d   :  { %8577 = sst [smem:[#allocation59_spill]] %s7021_s14 }
  0x2e   :  { %8578 = sst [smem:[#allocation60_spill]] %s7026_s5 }
  0x2f   :  { %s7041_s14 = sld [smem:[%s8516_s0 + %s6837_s28]]   ;;  %s6841_s28 = smov 29  }
  0x30   :  { %s7046_s5 = sld [smem:[%s8516_s0 + %s6838_s7]]   ;;  %s6842_s7 = smov 30  }
  0x31   :  { %8579 = sst [smem:[#allocation61_spill]] %s7036_s19 }
  0x32   :  { %8582 = sst [smem:[#allocation64_spill]] %s7051_s4 }
  0x33   :  { %s7056_s19 = sld [smem:[%s8516_s0 + %s6840_s22]]   ;;  %s6844_s22 = smov 32  }
  0x34   :  { %s7071_s4 = sld [smem:[%s8516_s0 + %s6843_s15]]   ;;  %s6847_s15 = smov 35  }
  0x35   :  { %8580 = sst [smem:[#allocation62_spill]] %s7041_s14 }
  0x36   :  { %8581 = sst [smem:[#allocation63_spill]] %s7046_s5 }
  0x37   :  { %s7061_s14 = sld [smem:[%s8516_s0 + %s6841_s28]]   ;;  %s6845_s28 = smov 33  }
  0x38   :  { %s7066_s5 = sld [smem:[%s8516_s0 + %s6842_s7]]   ;;  %s6846_s7 = smov 34  }
  0x39   :  { %8583 = sst [smem:[#allocation65_spill]] %s7056_s19 }
  0x3a   :  { %8586 = sst [smem:[#allocation68_spill]] %s7071_s4 }
  0x3b   :  { %s7076_s19 = sld [smem:[%s8516_s0 + %s6844_s22]]   ;;  %s6848_s22 = smov 36  }
  0x3c   :  { %s7091_s4 = sld [smem:[%s8516_s0 + %s6847_s15]]   ;;  %s6851_s15 = smov 39  }
  0x3d   :  { %8584 = sst [smem:[#allocation66_spill]] %s7061_s14 }
  0x3e   :  { %8585 = sst [smem:[#allocation67_spill]] %s7066_s5 }
  0x3f   :  { %s7081_s14 = sld [smem:[%s8516_s0 + %s6845_s28]]   ;;  %s6849_s28 = smov 37  }
  0x40   :  { %s7086_s5 = sld [smem:[%s8516_s0 + %s6846_s7]]   ;;  %s6850_s7 = smov 38  }
  0x41   :  { %8587 = sst [smem:[#allocation69_spill]] %s7076_s19 }
  0x42   :  { %8590 = sst [smem:[#allocation72_spill]] %s7091_s4 }
  0x43   :  { %s7096_s19 = sld [smem:[%s8516_s0 + %s6848_s22]]   ;;  %s6852_s22 = smov 40  }
  0x44   :  { %s7111_s4 = sld [smem:[%s8516_s0 + %s6851_s15]]   ;;  %s6855_s15 = smov 43  }
  0x45   :  { %8588 = sst [smem:[#allocation70_spill]] %s7081_s14 }
  0x46   :  { %8589 = sst [smem:[#allocation71_spill]] %s7086_s5 }
  0x47   :  { %s7101_s14 = sld [smem:[%s8516_s0 + %s6849_s28]]   ;;  %s6853_s28 = smov 41  }
  0x48   :  { %s7106_s5 = sld [smem:[%s8516_s0 + %s6850_s7]]   ;;  %s6854_s7 = smov 42  }
  0x49   :  { %s7116_s24 = sld [smem:[%s8516_s0 + %s6852_s22]]   ;;  %s6856_s22 = smov 44  }
  0x4a   :  { %8592 = sst [smem:[#allocation74_spill]] %s7111_s4 }
  0x4b   :  { %s7121_s25 = sld [smem:[%s8516_s0 + %s6853_s28]]   ;;  %s6857_s28 = smov 45  }
  0x4c   :  { %s7131_s4 = sld [smem:[%s8516_s0 + %s6855_s15]]   ;;  %s6859_s15 = smov 47  }
  0x4e   :  { %8591 = sst [smem:[#allocation73_spill]] %s7106_s5 }
  0x4f   :  { %8593 = sst [smem:[#allocation75_spill]] %s7116_s24 }
  0x50   :  { %s7126_s5 = sld [smem:[%s8516_s0 + %s6854_s7]]   ;;  %s6858_s7 = smov 46  }
  0x51   :  { %8594 = sst [smem:[#allocation76_spill]] %s7121_s25 }
  0x52   :  { %8595 = sst [smem:[#allocation77_spill]] %s7131_s4 }
  0x53   :  { %s7136_s24 = sld [smem:[%s8516_s0 + %s6856_s22]]   ;;  %s6860_s22 = smov 48  }
  0x54   :  { %s7141_s25 = sld [smem:[%s8516_s0 + %s6857_s28]]   ;;  %s6861_s28 = smov 49  }
  0x55   :  { %s7146_s29 = sld [smem:[%s8516_s0 + %s6858_s7]]   ;;  %s6862_s7 = smov 50  }
  0x56   :  { %s7151_s4 = sld [smem:[%s8516_s0 + %s6859_s15]]   ;;  %s6863_s15 = smov 51  }
  0x57   :  { %s7166_s20 = sld [smem:[%s8516_s0 + %s6862_s7]]   ;;  %s6866_s7 = smov 54  }
  0x58   :  { %s7171_s21 = sld [smem:[%s8516_s0 + %s6863_s15]]   ;;  %s6867_s15 = smov 55  }
  0x59   :  { %8596 = sst [smem:[#allocation78_spill]] %s7136_s24 }
  0x5a   :  { %8597 = sst [smem:[#allocation79_spill]] %s7141_s25 }
  0x5b   :  { %s7156_s24 = sld [smem:[%s8516_s0 + %s6860_s22]]   ;;  %s6864_s22 = smov 52  }
  0x5c   :  { %s7161_s25 = sld [smem:[%s8516_s0 + %s6861_s28]]   ;;  %s6865_s28 = smov 53  }
  0x5d   :  { %s7176_s17 = sld [smem:[%s8516_s0 + %s6864_s22]]   ;;  %s6868_s22 = smov 56  }
  0x5e   :  { %8598 = sst [smem:[#allocation80_spill]] %s7171_s21 }
  0x5f   :  { %s7181_s13 = sld [smem:[%s8516_s0 + %s6865_s28]]   ;;  %s6869_s28 = smov 57  }
  0x60   :  { %s7186_s12 = sld [smem:[%s8516_s0 + %s6866_s7]]   ;;  %s6870_s7 = smov 58  }
  0x61   :  { %s7191_s9 = sld [smem:[%s8516_s0 + %s6867_s15]]   ;;  %s6871_s15 = smov 59  }
  0x62   :  { %s7196_s30 = sld [smem:[%s8516_s0 + %s6868_s22]]   ;;  %s6872_s22 = smov 60  }
  0x65   :  { %8599 = sst [smem:[#allocation81_spill]] %s7181_s13 }
  0x66   :  { %8600 = sst [smem:[#allocation82_spill]] %s7186_s12 }
  0x67   :  { %8601 = sst [smem:[#allocation83_spill]] %s7191_s9 }
  0x68   :  { %8602 = sst [smem:[#allocation84_spill]] %s7196_s30 }
  0x69   :  { %s7201_s13 = sld [smem:[%s8516_s0 + %s6869_s28]]   ;;  %s6873_s28 = smov 61  }
  0x6a   :  { %s7206_s12 = sld [smem:[%s8516_s0 + %s6870_s7]]   ;;  %s6874_s7 = smov 62  }
  0x6b   :  { %s7211_s9 = sld [smem:[%s8516_s0 + %s6871_s15]]  }
  0x6c   :  { %s7216_s30 = sld [smem:[%s8516_s0 + %s6872_s22]]  }
  0x6d   :  { %s7226_s21 = sld [smem:[%s8516_s0 + %s6874_s7]]  }
  0x6f   :  { %8603 = sst [smem:[#allocation85_spill]] %s7201_s13 }
  0x70   :  { %s7221_s13 = sld [smem:[%s8516_s0 + %s6873_s28]]  }
  0x71   :  { %130 = vsyncpa [#allocation4], 0 }
  0x72   :  { %131 = vsyncpa [#allocation6], 0 }
  0x73   :  { %132 = vsyncpa [#allocation9], 0 }
  0x74   :  { %133 = vsyncpa [#allocation12], 0 }
  0x75   :  { %134 = vsyncpa [#allocation15], 0 }
  0x76   :  { %135 = vsyncpa [#allocation18], 0 }
  0x77   :  { %136 = vsyncpa [#allocation21], 0 }
  0x78   :  { %137 = vsyncpa [#allocation24], 0 }
  0x79   :  { %138 = vsyncpa [#allocation27], 0  ;;  %s186_s15 = sshll.u32 %s6996_s27, 4  ;;  %s187_s15 = int_to_ptr.hbm [resolvable:$true] %s186_s15 }
  0x7a   :  { %139 = vsyncpa [#allocation30], 0  ;;  %s6875_s16 = smov [#allocation5]   ;;  %s218_s0 = sshll.u32 %s7031_s8, 4  ;;  %s219_s0 = int_to_ptr.hbm [resolvable:$true] %s218_s0 }
  0x7b   :  { %s188_s18 = sshll.u32 %s6875_s16, 4  ;;  %s6361_s22 = sshra.s32 %s187_s15, 4  ;;  %s189_s18 = int_to_ptr.vmem [resolvable:$true] %s188_s18  ;;  %s6362_s22 = int_to_ptr.hbm [resolvable:$true] %s6361_s22 }
  0x7c   :  { %s6363_s23 = scalar_lea.hbm %s6362_s22, 1  ;;  %s6365_s26 = scalar_lea.hbm %s6996_s27, 1 }
  0x7d   :  { %p6364_p0 = scmp.ne.s32.totalorder %s6362_s22, %s6363_s23  ;;  %p6366_p1 = scmp.lt.s32.totalorder %s6362_s22, %s6996_s27 }
  0x7e   :  { %p6367_p2 = scmp.lt.s32.totalorder %s6365_s26, %s6363_s23 }
  0x80   :  { %p6368_p3 = por %p6367_p2, %p6366_p1 }
  0x82   :  { %p6369_p4 = pnand %p6368_p3, %p6364_p0 }
  0x84   :  { %6372 = shalt.err (!%p6369_p4)
}
  0x85   :  { %191 = dma.hbm_to_vmem [thread:$0]  %s187_s15, 16, %s189_s18, [#allocation6]  }
  0x86   :  { %s6876_s28 = smov [#allocation8]   ;;  %s264_s2 = sshll.u32 %s7101_s14, 4  ;;  %s265_s2 = int_to_ptr.hbm [resolvable:$true] %s264_s2 }
  0x87   :  { %s220_s1 = sshll.u32 %s6876_s28, 4  ;;  %s6385_s7 = sshra.s32 %s219_s0, 4  ;;  %s221_s1 = int_to_ptr.vmem [resolvable:$true] %s220_s1  ;;  %s6386_s7 = int_to_ptr.hbm [resolvable:$true] %s6385_s7 }
  0x88   :  { %s6387_s10 = scalar_lea.hbm %s6386_s7, 1  ;;  %s6389_s11 = scalar_lea.hbm %s7031_s8, 1 }
  0x89   :  { %p6388_p5 = scmp.ne.s32.totalorder %s6386_s7, %s6387_s10  ;;  %p6390_p6 = scmp.lt.s32.totalorder %s6386_s7, %s7031_s8 }
  0x8a   :  { %p6391_p7 = scmp.lt.s32.totalorder %s6389_s11, %s6387_s10 }
  0x8c   :  { %p6392_p8 = por %p6391_p7, %p6390_p6 }
  0x8e   :  { %p6393_p9 = pnand %p6392_p8, %p6388_p5 }
  0x90   :  { %6396 = shalt.err (!%p6393_p9)
}
  0x91   :  { %223 = dma.hbm_to_vmem [thread:$0]  %s219_s0, 16, %s221_s1, [#allocation9]  }
  0x92   :  { %s6877_s27 = smov [#allocation11]   ;;  %s301_s16 = sshll.u32 %s7146_s29, 4  ;;  %s302_s16 = int_to_ptr.hbm [resolvable:$true] %s301_s16 }
  0x93   :  { %s266_s15 = sshll.u32 %s6877_s27, 4  ;;  %s6409_s18 = sshra.s32 %s265_s2, 4  ;;  %s267_s15 = int_to_ptr.vmem [resolvable:$true] %s266_s15  ;;  %s6410_s18 = int_to_ptr.hbm [resolvable:$true] %s6409_s18 }
  0x94   :  { %s6411_s22 = scalar_lea.hbm %s6410_s18, 1  ;;  %s6413_s23 = scalar_lea.hbm %s7101_s14, 1 }
  0x95   :  { %p6412_p10 = scmp.ne.s32.totalorder %s6410_s18, %s6411_s22  ;;  %p6414_p11 = scmp.lt.s32.totalorder %s6410_s18, %s7101_s14 }
  0x96   :  { %p6415_p12 = scmp.lt.s32.totalorder %s6413_s23, %s6411_s22 }
  0x98   :  { %p6416_p13 = por %p6415_p12, %p6414_p11 }
  0x9a   :  { %p6417_p0 = pnand %p6416_p13, %p6412_p10 }
  0x9c   :  { %6420 = shalt.err (!%p6417_p0)
}
  0x9d   :  { %269 = dma.hbm_to_vmem [thread:$0]  %s265_s2, 16, %s267_s15, [#allocation12]  }
  0x9e   :  { %s6878_s8 = smov [#allocation14]   ;;  %s327_s26 = sshll.u32 %s7156_s24, 4  ;;  %s7239_s26 = int_to_ptr.hbm [resolvable:$true] %s327_s26 }
  0x9f   :  { %s303_s0 = sshll.u32 %s6878_s8, 4  ;;  %s6433_s28 = sshra.s32 %s302_s16, 4  ;;  %s304_s0 = int_to_ptr.vmem [resolvable:$true] %s303_s0  ;;  %s6434_s28 = int_to_ptr.hbm [resolvable:$true] %s6433_s28 }
  0xa0   :  { %s6435_s1 = scalar_lea.hbm %s6434_s28, 2  ;;  %s6437_s14 = scalar_lea.hbm %s7146_s29, 2 }
  0xa1   :  { %p6436_p1 = scmp.ne.s32.totalorder %s6434_s28, %s6435_s1  ;;  %p6438_p2 = scmp.lt.s32.totalorder %s6434_s28, %s7146_s29 }
  0xa2   :  { %p6439_p3 = scmp.lt.s32.totalorder %s6437_s14, %s6435_s1 }
  0xa4   :  { %p6440_p4 = por %p6439_p3, %p6438_p2 }
  0xa6   :  { %p6441_p5 = pnand %p6440_p4, %p6436_p1 }
  0xa8   :  { %6444 = shalt.err (!%p6441_p5)
}
  0xa9   :  { %s6879_s2 = smov 16   ;;  %s6880_s7 = smov 1  }
  0xaa   :  { %309 = dma.hbm_to_vmem [thread:$0]  %s302_s16, 32, %s304_s0, [#allocation15], %s6879_s2, %s6879_s2, %s6880_s7  }
  0xab   :  { %s353_s10 = sshll.u32 %s7166_s20, 4  ;;  %s6881_s11 = smov [#allocation17]   ;;  %s7247_s10 = int_to_ptr.hbm [resolvable:$true] %s353_s10 }
  0xac   :  { %s329_s27 = sshll.u32 %s6881_s11, 4  ;;  %s6457_s29 = sshra.s32 %s7239_s26, 4  ;;  %s330_s27 = int_to_ptr.vmem [resolvable:$true] %s329_s27  ;;  %s6458_s29 = int_to_ptr.hbm [resolvable:$true] %s6457_s29 }
  0xad   :  { %s6459_s15 = scalar_lea.hbm %s6458_s29, 2  ;;  %s6461_s18 = scalar_lea.hbm %s7156_s24, 2 }
  0xae   :  { %p6460_p6 = scmp.ne.s32.totalorder %s6458_s29, %s6459_s15  ;;  %p6462_p7 = scmp.lt.s32.totalorder %s6458_s29, %s7156_s24 }
  0xaf   :  { %p6463_p8 = scmp.lt.s32.totalorder %s6461_s18, %s6459_s15 }
  0xb1   :  { %p6464_p9 = por %p6463_p8, %p6462_p7 }
  0xb3   :  { %p6465_p10 = pnand %p6464_p9, %p6460_p6 }
  0xb5   :  { %6468 = shalt.err (!%p6465_p10)
}
  0xb6   :  { %335 = dma.hbm_to_vmem [thread:$0]  %s7239_s26, 32, %s330_s27, [#allocation18], %s6879_s2, %s6879_s2, %s6880_s7  }
  0xb7   :  { %s6882_s16 = smov [#allocation20]   ;;  %s379_s23 = sshll.u32 %s7176_s17, 4  ;;  %s7257_s23 = int_to_ptr.hbm [resolvable:$true] %s379_s23 }
  0xb8   :  { %s355_s22 = sshll.u32 %s6882_s16, 4  ;;  %s6481_s24 = sshra.s32 %s7247_s10, 4  ;;  %s356_s22 = int_to_ptr.vmem [resolvable:$true] %s355_s22  ;;  %s6482_s24 = int_to_ptr.hbm [resolvable:$true] %s6481_s24 }
  0xb9   :  { %s6483_s8 = scalar_lea.hbm %s6482_s24, 2  ;;  %s6485_s0 = scalar_lea.hbm %s7166_s20, 2 }
  0xba   :  { %p6484_p11 = scmp.ne.s32.totalorder %s6482_s24, %s6483_s8  ;;  %p6486_p12 = scmp.lt.s32.totalorder %s6482_s24, %s7166_s20 }
  0xbb   :  { %p6487_p13 = scmp.lt.s32.totalorder %s6485_s0, %s6483_s8 }
  0xbd   :  { %p6488_p0 = por %p6487_p13, %p6486_p12 }
  0xbf   :  { %p6489_p1 = pnand %p6488_p0, %p6484_p11 }
  0xc1   :  { %6492 = shalt.err (!%p6489_p1)
}
  0xc2   :  { %361 = dma.hbm_to_vmem [thread:$0]  %s7247_s10, 32, %s356_s22, [#allocation21], %s6879_s2, %s6879_s2, %s6880_s7  }
  0xc3   :  { %s414_s26 = sshll.u32 %s7206_s12, 4  ;;  %s6883_s28 = smov [#allocation23]   ;;  %s415_s26 = int_to_ptr.hbm [resolvable:$true] %s414_s26 }
  0xc4   :  { %s381_s1 = sshll.u32 %s6883_s28, 4  ;;  %s6505_s14 = sshra.s32 %s7257_s23, 4  ;;  %s382_s1 = int_to_ptr.vmem [resolvable:$true] %s381_s1  ;;  %s6506_s14 = int_to_ptr.hbm [resolvable:$true] %s6505_s14 }
  0xc5   :  { %s6507_s20 = scalar_lea.hbm %s6506_s14, 2  ;;  %s6509_s11 = scalar_lea.hbm %s7176_s17, 2 }
  0xc6   :  { %p6508_p2 = scmp.ne.s32.totalorder %s6506_s14, %s6507_s20  ;;  %p6510_p3 = scmp.lt.s32.totalorder %s6506_s14, %s7176_s17 }
  0xc7   :  { %p6511_p4 = scmp.lt.s32.totalorder %s6509_s11, %s6507_s20 }
  0xc9   :  { %p6512_p5 = por %p6511_p4, %p6510_p3 }
  0xcb   :  { %p6513_p6 = pnand %p6512_p5, %p6508_p2 }
  0xcd   :  { %6516 = shalt.err (!%p6513_p6)
}
  0xce   :  { %387 = dma.hbm_to_vmem [thread:$0]  %s7257_s23, 32, %s382_s1, [#allocation24], %s6879_s2, %s6879_s2, %s6880_s7  }
  0xcf   :  { %s6884_s10 = smov [#allocation26]   ;;  %s171_s29 = sshll.u32 %s6981_s6, 4  ;;  %s172_s29 = int_to_ptr.hbm [resolvable:$true] %s171_s29 }
  0xd0   :  { %s416_s27 = sshll.u32 %s6884_s10, 4  ;;  %s6529_s15 = sshra.s32 %s415_s26, 4  ;;  %s417_s27 = int_to_ptr.vmem [resolvable:$true] %s416_s27  ;;  %s6530_s15 = int_to_ptr.hbm [resolvable:$true] %s6529_s15 }
  0xd1   :  { %s6531_s17 = scalar_lea.hbm %s6530_s15, 1  ;;  %s6533_s18 = scalar_lea.hbm %s7206_s12, 1 }
  0xd2   :  { %p6532_p7 = scmp.ne.s32.totalorder %s6530_s15, %s6531_s17  ;;  %p6534_p8 = scmp.lt.s32.totalorder %s6530_s15, %s7206_s12 }
  0xd3   :  { %p6535_p9 = scmp.lt.s32.totalorder %s6533_s18, %s6531_s17 }
  0xd5   :  { %p6536_p10 = por %p6535_p9, %p6534_p8 }
  0xd7   :  { %p6537_p11 = pnand %p6536_p10, %p6532_p7 }
  0xd9   :  { %6540 = shalt.err (!%p6537_p11)
}
  0xda   :  { %419 = dma.hbm_to_vmem [thread:$0]  %s415_s26, 16, %s417_s27, [#allocation27]  }
  0xdb   :  { %s203_s16 = sshll.u32 %s7016_s3, 4  ;;  %s6885_s22 = smov [#allocation3]   ;;  %s204_s16 = int_to_ptr.hbm [resolvable:$true] %s203_s16 }
  0xdc   :  { %s173_s23 = sshll.u32 %s6885_s22, 4  ;;  %s6553_s24 = sshra.s32 %s172_s29, 4  ;;  %s174_s23 = int_to_ptr.vmem [resolvable:$true] %s173_s23  ;;  %s6554_s24 = int_to_ptr.hbm [resolvable:$true] %s6553_s24 }
  0xdd   :  { %s6555_s8 = scalar_lea.hbm %s6554_s24, 1  ;;  %s6557_s0 = scalar_lea.hbm %s6981_s6, 1 }
  0xde   :  { %p6556_p12 = scmp.ne.s32.totalorder %s6554_s24, %s6555_s8  ;;  %p6558_p13 = scmp.lt.s32.totalorder %s6554_s24, %s6981_s6 }
  0xdf   :  { %p6559_p0 = scmp.lt.s32.totalorder %s6557_s0, %s6555_s8 }
  0xe1   :  { %p6560_p1 = por %p6559_p0, %p6558_p13 }
  0xe3   :  { %p6561_p2 = pnand %p6560_p1, %p6556_p12 }
  0xe5   :  { %6564 = shalt.err (!%p6561_p2)
}
  0xe6   :  { %176 = dma.hbm_to_vmem [thread:$0]  %s172_s29, 16, %s174_s23, [#allocation4]  }
  0xe7   :  { %s6886_s12 = smov [#allocation7]   ;;  %s253_s28 = sshll.u32 %s7096_s19, 4  ;;  %s254_s28 = int_to_ptr.hbm [resolvable:$true] %s253_s28 }
  0xe8   :  { %s205_s26 = sshll.u32 %s6886_s12, 4  ;;  %s6577_s1 = sshra.s32 %s204_s16, 4  ;;  %s206_s26 = int_to_ptr.vmem [resolvable:$true] %s205_s26  ;;  %s6578_s1 = int_to_ptr.hbm [resolvable:$true] %s6577_s1 }
  0xe9   :  { %s6579_s14 = scalar_lea.hbm %s6578_s1, 1  ;;  %s6581_s20 = scalar_lea.hbm %s7016_s3, 1 }
  0xea   :  { %p6580_p3 = scmp.ne.s32.totalorder %s6578_s1, %s6579_s14  ;;  %p6582_p4 = scmp.lt.s32.totalorder %s6578_s1, %s7016_s3 }
  0xeb   :  { %p6583_p5 = scmp.lt.s32.totalorder %s6581_s20, %s6579_s14 }
  0xed   :  { %p6584_p6 = por %p6583_p5, %p6582_p4 }
  0xef   :  { %p6585_p7 = pnand %p6584_p6, %p6580_p3 }
  0xf1   :  { %6588 = shalt.err (!%p6585_p7)
}
  0xf2   :  { %208 = dma.hbm_to_vmem [thread:$0]  %s204_s16, 16, %s206_s26, [#allocation6]  }
  0xf3   :  { %s282_s6 = sshll.u32 %s7126_s5, 4  ;;  %s6887_s11 = smov [#allocation10]   ;;  %s7284_s6 = int_to_ptr.hbm [resolvable:$true] %s282_s6 }
  0xf4   :  { %s255_s10 = sshll.u32 %s6887_s11, 4  ;;  %s6601_s27 = sshra.s32 %s254_s28, 4  ;;  %s256_s10 = int_to_ptr.vmem [resolvable:$true] %s255_s10  ;;  %s6602_s27 = int_to_ptr.hbm [resolvable:$true] %s6601_s27 }
  0xf5   :  { %s6603_s29 = scalar_lea.hbm %s6602_s27, 1  ;;  %s6605_s15 = scalar_lea.hbm %s7096_s19, 1 }
  0xf6   :  { %p6604_p8 = scmp.ne.s32.totalorder %s6602_s27, %s6603_s29  ;;  %p6606_p9 = scmp.lt.s32.totalorder %s6602_s27, %s7096_s19 }
  0xf7   :  { %p6607_p10 = scmp.lt.s32.totalorder %s6605_s15, %s6603_s29 }
  0xf9   :  { %p6608_p11 = por %p6607_p10, %p6606_p9 }
  0xfb   :  { %p6609_p12 = pnand %p6608_p11, %p6604_p8 }
  0xfd   :  { %6612 = shalt.err (!%p6609_p12)
}
  0xfe   :  { %258 = dma.hbm_to_vmem [thread:$0]  %s254_s28, 16, %s256_s10, [#allocation9]  }
  0xff   :  { %s6888_s3 = smov [#allocation13]   ;;  %s314_s18 = sshll.u32 %s7151_s4, 4  ;;  %s7289_s18 = int_to_ptr.hbm [resolvable:$true] %s314_s18 }
 0x100   :  { %s284_s17 = sshll.u32 %s6888_s3, 4  ;;  %s6625_s16 = sshra.s32 %s7284_s6, 4  ;;  %s285_s17 = int_to_ptr.vmem [resolvable:$true] %s284_s17  ;;  %s6626_s16 = int_to_ptr.hbm [resolvable:$true] %s6625_s16 }
 0x101   :  { %s6627_s22 = scalar_lea.hbm %s6626_s16, 2  ;;  %s6629_s19 = scalar_lea.hbm %s7126_s5, 2 }
 0x102   :  { %p6628_p13 = scmp.ne.s32.totalorder %s6626_s16, %s6627_s22  ;;  %p6630_p0 = scmp.lt.s32.totalorder %s6626_s16, %s7126_s5 }
 0x103   :  { %p6631_p1 = scmp.lt.s32.totalorder %s6629_s19, %s6627_s22 }
 0x105   :  { %p6632_p2 = por %p6631_p1, %p6630_p0 }
 0x107   :  { %p6633_p3 = pnand %p6632_p2, %p6628_p13 }
 0x109   :  { %6636 = shalt.err (!%p6633_p3)
}
 0x10a   :  { %290 = dma.hbm_to_vmem [thread:$0]  %s7284_s6, 32, %s285_s17, [#allocation12], %s6879_s2, %s6879_s2, %s6880_s7  }
 0x10b   :  { %s340_s23 = sshll.u32 %s7161_s25, 4  ;;  %s6889_s24 = smov [#allocation16]   ;;  %s7299_s23 = int_to_ptr.hbm [resolvable:$true] %s340_s23 }
 0x10c   :  { %s316_s8 = sshll.u32 %s6889_s24, 4  ;;  %s6649_s5 = sshra.s32 %s7289_s18, 4  ;;  %s317_s8 = int_to_ptr.vmem [resolvable:$true] %s316_s8  ;;  %s6650_s5 = int_to_ptr.hbm [resolvable:$true] %s6649_s5 }
 0x10d   :  { %s6651_s0 = scalar_lea.hbm %s6650_s5, 2  ;;  %s6653_s12 = scalar_lea.hbm %s7151_s4, 2 }
 0x10e   :  { %p6652_p4 = scmp.ne.s32.totalorder %s6650_s5, %s6651_s0  ;;  %p6654_p5 = scmp.lt.s32.totalorder %s6650_s5, %s7151_s4 }
 0x10f   :  { %p6655_p6 = scmp.lt.s32.totalorder %s6653_s12, %s6651_s0 }
 0x111   :  { %p6656_p7 = por %p6655_p6, %p6654_p5 }
 0x113   :  { %p6657_p8 = pnand %p6656_p7, %p6652_p4 }
 0x115   :  { %6660 = shalt.err (!%p6657_p8)
}
 0x116   :  { %s8604_s26 = sld [smem:[#allocation80_spill]]  ;;  %s6890_s28 = smov [#allocation19]  }
 0x117   :  { %322 = dma.hbm_to_vmem [thread:$0]  %s7289_s18, 32, %s317_s8, [#allocation15], %s6879_s2, %s6879_s2, %s6880_s7  }
 0x118   :  { %s342_s1 = sshll.u32 %s6890_s28, 4  ;;  %s6673_s4 = sshra.s32 %s7299_s23, 4  ;;  %s343_s1 = int_to_ptr.vmem [resolvable:$true] %s342_s1  ;;  %s6674_s4 = int_to_ptr.hbm [resolvable:$true] %s6673_s4 }
 0x119   :  { %s6675_s20 = scalar_lea.hbm %s6674_s4, 2  ;;  %s6677_s6 = scalar_lea.hbm %s7161_s25, 2 }
 0x11a   :  { %p6676_p9 = scmp.ne.s32.totalorder %s6674_s4, %s6675_s20  ;;  %p6678_p10 = scmp.lt.s32.totalorder %s6674_s4, %s7161_s25 }
 0x11b   :  { %p6679_p11 = scmp.lt.s32.totalorder %s6677_s6, %s6675_s20 }
 0x11c   :  { %s366_s14 = sshll.u32 %s8604_s26, 4  ;;  %s7309_s14 = int_to_ptr.hbm [resolvable:$true] %s366_s14 }
 0x11d   :  { %p6680_p12 = por %p6679_p11, %p6678_p10 }
 0x11f   :  { %p6681_p13 = pnand %p6680_p12, %p6676_p9 }
 0x121   :  { %6684 = shalt.err (!%p6681_p13)
}
 0x122   :  { %s8605_s11 = sld [smem:[#allocation81_spill]]  ;;  %s6891_s27 = smov [#allocation22]  }
 0x123   :  { %348 = dma.hbm_to_vmem [thread:$0]  %s7299_s23, 32, %s343_s1, [#allocation18], %s6879_s2, %s6879_s2, %s6880_s7  }
 0x124   :  { %s368_s29 = sshll.u32 %s6891_s27, 4  ;;  %s6697_s25 = sshra.s32 %s7309_s14, 4  ;;  %s369_s29 = int_to_ptr.vmem [resolvable:$true] %s368_s29  ;;  %s6698_s25 = int_to_ptr.hbm [resolvable:$true] %s6697_s25 }
 0x125   :  { %s6699_s15 = scalar_lea.hbm %s6698_s25, 2  ;;  %s6701_s3 = scalar_lea.hbm %s8604_s26, 2 }
 0x126   :  { %p6700_p0 = scmp.ne.s32.totalorder %s6698_s25, %s6699_s15  ;;  %p6702_p1 = scmp.lt.s32.totalorder %s6698_s25, %s8604_s26 }
 0x127   :  { %p6703_p2 = scmp.lt.s32.totalorder %s6701_s3, %s6699_s15 }
 0x128   :  { %s392_s10 = sshll.u32 %s8605_s11, 4  ;;  %s7319_s10 = int_to_ptr.hbm [resolvable:$true] %s392_s10 }
 0x129   :  { %p6704_p3 = por %p6703_p2, %p6702_p1 }
 0x12b   :  { %p6705_p4 = pnand %p6704_p3, %p6700_p0 }
 0x12d   :  { %6708 = shalt.err (!%p6705_p4)
}
 0x12e   :  { %374 = dma.hbm_to_vmem [thread:$0]  %s7309_s14, 32, %s369_s29, [#allocation21], %s6879_s2, %s6879_s2, %s6880_s7  }
 0x12f   :  { %s6892_s17 = smov [#allocation25]   ;;  %s425_s16 = sshll.u32 %s7211_s9, 4  ;;  %s426_s16 = int_to_ptr.hbm [resolvable:$true] %s425_s16 }
 0x130   :  { %s394_s18 = sshll.u32 %s6892_s17, 4  ;;  %s6721_s22 = sshra.s32 %s7319_s10, 4  ;;  %s395_s18 = int_to_ptr.vmem [resolvable:$true] %s394_s18  ;;  %s6722_s22 = int_to_ptr.hbm [resolvable:$true] %s6721_s22 }
 0x131   :  { %s6723_s19 = scalar_lea.hbm %s6722_s22, 2  ;;  %s6725_s23 = scalar_lea.hbm %s8605_s11, 2 }
 0x132   :  { %p6724_p5 = scmp.ne.s32.totalorder %s6722_s22, %s6723_s19  ;;  %p6726_p6 = scmp.lt.s32.totalorder %s6722_s22, %s8605_s11 }
 0x133   :  { %p6727_p7 = scmp.lt.s32.totalorder %s6725_s23, %s6723_s19 }
 0x135   :  { %p6728_p8 = por %p6727_p7, %p6726_p6 }
 0x137   :  { %p6729_p9 = pnand %p6728_p8, %p6724_p5 }
 0x139   :  { %6732 = shalt.err (!%p6729_p9)
}
 0x13a   :  { %400 = dma.hbm_to_vmem [thread:$0]  %s7319_s10, 32, %s395_s18, [#allocation24], %s6879_s2, %s6879_s2, %s6880_s7  }
 0x13b   :  { %s438_s24 = sshll.u32 %s7221_s13, 4  ;;  %s6893_s8 = smov [#allocation28]   ;;  %s439_s24 = int_to_ptr.hbm [resolvable:$true] %s438_s24 }
 0x13c   :  { %s427_s5 = sshll.u32 %s6893_s8, 4  ;;  %s6745_s0 = sshra.s32 %s426_s16, 4  ;;  %s428_s5 = int_to_ptr.vmem [resolvable:$true] %s427_s5  ;;  %s6746_s0 = int_to_ptr.hbm [resolvable:$true] %s6745_s0 }
 0x13d   :  { %s6747_s12 = scalar_lea.hbm %s6746_s0, 1  ;;  %s6749_s26 = scalar_lea.hbm %s7211_s9, 1 }
 0x13e   :  { %p6748_p10 = scmp.ne.s32.totalorder %s6746_s0, %s6747_s12  ;;  %p6750_p11 = scmp.lt.s32.totalorder %s6746_s0, %s7211_s9 }
 0x13f   :  { %p6751_p12 = scmp.lt.s32.totalorder %s6749_s26, %s6747_s12 }
 0x141   :  { %p6752_p13 = por %p6751_p12, %p6750_p11 }
 0x143   :  { %p6753_p0 = pnand %p6752_p13, %p6748_p10 }
 0x145   :  { %6756 = shalt.err (!%p6753_p0)
}
 0x146   :  { %430 = dma.hbm_to_vmem [thread:$0]  %s426_s16, 16, %s428_s5, [#allocation27]  }
 0x147   :  { %s6894_s28 = smov [#allocation29]   ;;  %s6769_s7 = sshra.s32 %s439_s24, 4  ;;  %s6770_s7 = int_to_ptr.hbm [resolvable:$true] %s6769_s7 }
 0x148   :  { %s440_s2 = sshll.u32 %s6894_s28, 4  ;;  %s6771_s1 = scalar_lea.hbm %s6770_s7, 1  ;;  %s441_s2 = int_to_ptr.vmem [resolvable:$true] %s440_s2 }
 0x149   :  { %p6772_p1 = scmp.ne.s32.totalorder %s6770_s7, %s6771_s1  ;;  %s6773_s14 = scalar_lea.hbm %s7221_s13, 1 }
 0x14a   :  { %p6774_p2 = scmp.lt.s32.totalorder %s6770_s7, %s7221_s13  ;;  %p6775_p3 = scmp.lt.s32.totalorder %s6773_s14, %s6771_s1 }
 0x14c   :  { %p6776_p4 = por %p6775_p3, %p6774_p2 }
 0x14e   :  { %p6777_p5 = pnand %p6776_p4, %p6772_p1 }
 0x150   :  { %6780 = shalt.err (!%p6777_p5)
}
 0x151   :  { %443 = dma.hbm_to_vmem [thread:$0]  %s439_s24, 16, %s441_s2, [#allocation30]  }
 0x152   :  { %6793 = dma.done.wait [#allocation4], 16  }
 0x153   :  { %6794 = vsyncadd [#allocation4], 4294967280 }
 0x154   :  { %6795 = dma.done.wait [#allocation6], 32  }
 0x155   :  { %6796 = vsyncadd [#allocation6], 4294967264 }
 0x156   :  { %6797 = dma.done.wait [#allocation9], 32  }
 0x157   :  { %6798 = vsyncadd [#allocation9], 4294967264 }
 0x158   :  { %6799 = dma.done.wait [#allocation12], 48  }
 0x159   :  { %6800 = vsyncadd [#allocation12], 4294967248 }
 0x15a   :  { %6801 = dma.done.wait [#allocation15], 64  }
 0x15b   :  { %6802 = vsyncadd [#allocation15], 4294967232 }
 0x15c   :  { %6803 = dma.done.wait [#allocation18], 64  }
 0x15d   :  { %6804 = vsyncadd [#allocation18], 4294967232 }
 0x15e   :  { %6805 = dma.done.wait [#allocation21], 64  }
 0x15f   :  { %6806 = vsyncadd [#allocation21], 4294967232 }
 0x160   :  { %6807 = dma.done.wait [#allocation24], 64  }
 0x161   :  { %6808 = vsyncadd [#allocation24], 4294967232 }
 0x162   :  { %6809 = dma.done.wait [#allocation27], 32  }
 0x163   :  { %6810 = vsyncadd [#allocation27], 4294967264 }
 0x164   :  { %6811 = dma.done.wait [#allocation30], 16  }
 0x165   :  { %6812 = vsyncadd [#allocation30], 4294967280  ;;  %s8606_s9 = sld [smem:[#allocation53_spill]]  ;;  %vm527_vm0 = vcmask 1041408   ;;  %vm523_vm1 = vcmask 80896   ;;  %vm559_vm2 = vcmask 259072  }
 0x166   :  { %s8607_s13 = sld [smem:[#allocation42_spill]]  ;;  %v6061_v7 = vld [vmem:[#allocation3] ss:$0 sm:$0xff]  ;;  %vm572_vm3 = vcmask 1045504   ;;  %vm565_vm4 = vcmask 48128   ;;  %vm557_vm5 = vcmask 261120  }
 0x167   :  { %s8608_s4 = sld [smem:[#allocation54_spill]]  ;;  %v6063_v54 = vld [vmem:[#allocation5] ss:$0 sm:$0xff]  ;;  %s6895_s24 = smov 96   ;;  %vm1013_vm6 = vcmask 64512   ;;  %vm1049_vm7 = vcmask 113664  }
 0x168   :  { %s8609_s20 = sld [smem:[#allocation43_spill]]  ;;  %vm1053_vm8 = vcmask 111616   ;;  %s6896_s5 = smov 64  }
 0x169   :  { %s8610_s6 = sld [smem:[#allocation44_spill]]  ;;  %s6897_s0 = smov 88  }
 0x16a   :  { %s8611_s11 = sld [smem:[#allocation45_spill]]  ;;  %s6898_s12 = smov 120  }
 0x16b   :  { %v518_v0 = vld [vmem:[%s8606_s9 + $0x8] sm:$0x3]  ;;  %v517_v1 = vld [vmem:[%s8606_s9] sm:$0xff]  ;;  %s8612_s10 = sld [smem:[#allocation55_spill]]  ;;  %s6899_s26 = smov 104  }
 0x16c   :  { %5618 = vmatpush.msk.msra.mxu0 %vm527_vm0, %v518_v0  ;;  %v516_v2 = vld [vmem:[%s8607_s13] sm:$0x3f]  ;;  %s8613_s27 = sld [smem:[#allocation47_spill]]  ;;  %s6900_s28 = smov 112   ;;  %vm1653_vm0 = vcmask 523264  }
 0x16d   :  { %v633_v3 = vld [vmem:[%s8608_s4 + $0x18] sm:$0xff]  ;;  %v632_v4 = vld [vmem:[%s8608_s4 + $0x10] sm:$0xff]  ;;  %v631_v5 = vld [vmem:[%s8608_s4 + $0x8] sm:$0xff]  ;;  %s8614_s29 = sld [smem:[#allocation46_spill]]  ;;  %s6902_s7 = smov 80  }
 0x16e   :  { %546 = vmatpush.msra.mxu0 %v517_v1  ;;  %v630_v6 = vld [vmem:[%s8608_s4] sm:$0xff]  ;;  %s8615_s25 = sld [smem:[#allocation57_spill]]  ;;  %s6903_s14 = smov 72  }
 0x16f   :  { %5619 = vmatmul.msk.f32.vlgmr.msra.gmra.mxu0 %vm523_vm1, %v516_v2  ;;  %v6062_v8 = vld [vmem:[%s8609_s20] ss:$0 sm:$0xff]  ;;  %v564_v15 = vld [vmem:[%s8610_s6 + $0x8] sm:$0x7f]  ;;  %s8616_s15 = sld [smem:[#allocation56_spill]]  ;;  %s6904_s9 = smov 56  }
 0x170   :  { %685 = vmatpush.msrb.mxu0 %v633_v3  ;;  %v563_v12 = vld [vmem:[%s8610_s6] sm:$0xff]  ;;  %v600_v14 = vld [vmem:[%s8611_s11 + $0x8] sm:$0x7f]  ;;  %s8617_s3 = sld [smem:[#allocation60_spill]]  ;;  %s6905_s13 = smov 40  }
 0x171   :  { %v599_v13 = vld [vmem:[%s8611_s11] sm:$0xff]  ;;  %v637_v16 = vld [vmem:[%s8612_s10 + $0x18] sm:$0xff]  ;;  %v636_v17 = vld [vmem:[%s8612_s10 + $0x10] sm:$0xff]  ;;  %s8618_s17 = sld [smem:[#allocation58_spill]]  ;;  %s6906_s4 = smov 48  }
 0x172   :  { %686 = vmatpush.msrb.mxu0 %v632_v4  ;;  %656 = vmatpush.msra.mxu3 %v637_v16  ;;  %v733_v18 = vld [vmem:[%s8613_s27] sm:$0xff]  ;;  %v635_v19 = vld [vmem:[%s8612_s10 + $0x8] sm:$0xff]  ;;  %s8619_s18 = sld [smem:[#allocation49_spill]] }
 0x173   :  { %v634_v20 = vld [vmem:[%s8612_s10] sm:$0xff]  ;;  %v734_v21 = vld [vmem:[%s8613_s27 + $0x8] sm:$0x7f]  ;;  %s8620_s16 = sld [smem:[#allocation41_spill]] }
 0x174   :  { %687 = vmatpush.msrb.mxu0 %v631_v5  ;;  %657 = vmatpush.msra.mxu3 %v636_v17  ;;  %v702_v26 = vld [vmem:[%s8614_s29] sm:$0xff]  ;;  %v703_v27 = vld [vmem:[%s8614_s29 + $0x8] sm:$0x7f]  ;;  %v771_v28 = vld [vmem:[%s8615_s25 + $0x18] sm:$0xff]  ;;  %s8621_s22 = sld [smem:[#allocation72_spill]] }
 0x175   :  { %v770_v29 = vld [vmem:[%s8615_s25 + $0x10] sm:$0xff]  ;;  %v769_v30 = vld [vmem:[%s8615_s25 + $0x8] sm:$0xff]  ;;  %v768_v32 = vld [vmem:[%s8615_s25] sm:$0xff]  ;;  %s8622_s19 = sld [smem:[#allocation64_spill]] }
 0x176   :  { %688 = vmatpush.msrb.mxu0 %v630_v6  ;;  %658 = vmatpush.msra.mxu3 %v635_v19  ;;  %v767_v33 = vld [vmem:[%s8616_s15 + $0x18] sm:$0xff]  ;;  %v766_v35 = vld [vmem:[%s8616_s15 + $0x10] sm:$0xff]  ;;  %v765_v38 = vld [vmem:[%s8616_s15 + $0x8] sm:$0xff]  ;;  %s8623_s23 = sld [smem:[#allocation50_spill]] }
 0x177   :  { %v894_v34 = vld [vmem:[%s8617_s3 + $0x18] sm:$0xff]  ;;  %v893_v37 = vld [vmem:[%s8617_s3 + $0x10] sm:$0xff]  ;;  %v892_v40 = vld [vmem:[%s8617_s3 + $0x8] sm:$0xff]  ;;  %s8624_s8 = sld [smem:[#allocation59_spill]] }
 0x178   :  { %659 = vmatpush.msra.mxu3 %v634_v20  ;;  %819 = vmatpush.msra.mxu0 %v767_v33  ;;  %v835_v36 = vld [vmem:[%s8618_s17 + $0x18] sm:$0xff]  ;;  %v834_v39 = vld [vmem:[%s8618_s17 + $0x10] sm:$0xff]  ;;  %v764_v41 = vld [vmem:[%s8616_s15] sm:$0xff]  ;;  %s8625_s2 = sld [smem:[#allocation48_spill]] }
 0x179   :  { %v833_v42 = vld [vmem:[%s8618_s17 + $0x8] sm:$0xff]  ;;  %v891_v43 = vld [vmem:[%s8617_s3] sm:$0xff]  ;;  %s8626_s1 = sld [smem:[#allocation71_spill]] }
 0x17a   :  { %790 = vmatpush.msrb.mxu3 %v771_v28  ;;  %820 = vmatpush.msra.mxu0 %v766_v35  ;;  %v832_v45 = vld [vmem:[%s8618_s17] sm:$0xff]  ;;  %v968_v48 = vld [vmem:[%s8621_s22 + $0x18] sm:$0xff]  ;;  %v831_v49 = vld [vmem:[%s8619_s18 + $0x8] sm:$0x7f]  ;;  %s8627_s20 = sld [smem:[#allocation63_spill]] }
 0x17b   :  { %v830_v46 = vld [vmem:[%s8619_s18] sm:$0xff]  ;;  %v967_v50 = vld [vmem:[%s8621_s22 + $0x10] sm:$0xff]  ;;  %v966_v51 = vld [vmem:[%s8621_s22 + $0x8] sm:$0xff]  ;;  %s8628_s6 = sld [smem:[#allocation69_spill]] }
 0x17c   :  { %791 = vmatpush.msrb.mxu3 %v770_v29  ;;  %821 = vmatpush.msra.mxu0 %v765_v38  ;;  %v556_v47 = vld [vmem:[%s8620_s16] sm:$0xff]  ;;  %v7447_v19 = vld [vmem:[%s8623_s23 + $0x8] sm:$0x3f]  ;;  %s8629_s11 = sld [smem:[#allocation70_spill]] }
 0x17d   :  { %558 = vst.msk [vmem:[#allocation2] sm:$0xff] %vm557_vm5, %v556_v47  ;;  %v965_v52 = vld [vmem:[%s8621_s22] sm:$0xff]  ;;  %v888_v28 = vld [vmem:[%s8624_s8 + $0x8] sm:$0xff]  ;;  %s8630_s10 = sld [smem:[#allocation66_spill]] }
 0x17e   :  { %792 = vmatpush.msrb.mxu3 %v769_v30  ;;  %822 = vmatpush.msra.mxu0 %v764_v41  ;;  %v887_v29 = vld [vmem:[%s8624_s8] sm:$0xff]  ;;  %v868_v41 = vld [vmem:[%s8625_s2 + $0x8] sm:$0x7f]  ;;  %s8631_s27 = sld [smem:[#allocation65_spill]] }
 0x17f   :  { %s8632_s29 = sld [smem:[#allocation61_spill]] }
 0x180   :  { %793 = vmatpush.msrb.mxu3 %v768_v32  ;;  %v6901_v32 = vmov 0   ;;  %s8633_s25 = sld [smem:[#allocation62_spill]] }
 0x181   :  { %6059 = vset.pattern.permute.xlu2 %v6901_v32  ;;  %6060 = vset.pattern.permute.xlu0 %v6901_v32  ;;  %s8634_s15 = sld [smem:[#allocation68_spill]] }
 0x182   :  { %s8635_s3 = sld [smem:[#allocation67_spill]] }
 0x183   :  { %s8636_s17 = sld [smem:[#allocation83_spill]] }
 0x184   :  { %v7410_v0 = vld [vmem:[#allocation2] sm:$0xff]  ;;  %s8637_s18 = sld [smem:[#allocation51_spill]] }
 0x185   :  { %s8638_s16 = sld [smem:[#allocation82_spill]] }
 0x1ec   :  { %v548_v9 = vpop.f32.mrf.mxu0 }
 0x1ed   :  { %v549_v10 = vadd.f32 %v6061_v7, %v548_v9 }
 0x1ef   :  { %v555_v11 = vadd.f32 %v6062_v8, %v549_v10 }
 0x1f1   :  { %560 = vst.msk [vmem:[#allocation2 + $0x8] sm:$0x3f] %vm559_vm2, %v555_v11  ;;  %5620 = vmatpush.msk.msra.mxu1 %vm572_vm3, %v555_v11  ;;  %5623 = vmatpush.msk.msra.mxu2 %vm572_vm3, %v555_v11 }
 0x1f2   :  { %5621 = vmatmul.msk.f32.vlgmr.msra.gmra.mxu1 %vm565_vm4, %v563_v12  ;;  %5624 = vmatmul.msk.f32.vlgmr.msra.gmra.mxu2 %vm565_vm4, %v599_v13 }
 0x1f3   :  { %5960 = vmatpush.msrb.mxu1 %v633_v3  ;;  %5633 = vmatpush.msk.msrb.mxu2 %vm572_vm3, %v555_v11 }
 0x1f5   :  { %5961 = vmatpush.msrb.mxu1 %v632_v4  ;;  %913 = vmatpush.msra.mxu2 %v894_v34 }
 0x1f7   :  { %5962 = vmatpush.msrb.mxu1 %v631_v5  ;;  %914 = vmatpush.msra.mxu2 %v893_v37  ;;  %v6064_v5 = vld [vmem:[%s8622_s19] ss:$0 sm:$0xff] }
 0x1f8   :  { %v7414_v1 = vld [vmem:[#allocation2 + $0x8] sm:$0x3f] }
 0x1f9   :  { %5963 = vmatpush.msrb.mxu1 %v630_v6  ;;  %915 = vmatpush.msra.mxu2 %v892_v40  ;;  %v867_v40 = vld [vmem:[%s8625_s2] sm:$0xff]  ;;  %s8643_s2 = sld [smem:[#allocation78_spill]] }
 0x1fa   :  { %5625 = vmatmul.msk.f32.gmra.mxu2 %vm565_vm4, %v600_v14  ;;  %5622 = vmatmul.msk.f32.gmra.mxu1 %vm565_vm4, %v564_v15  ;;  %v7442_v14 = vld [vmem:[%s8623_s23] sm:$0xff] }
 0x1fb   :  { %5630 = vmatpush.msk.msra.mxu1 %vm572_vm3, %v555_v11  ;;  %916 = vmatpush.msra.mxu2 %v891_v43 }
 0x202   :  { %5634 = vmatmul.msk.f32.vlgmr.msrb.gmra.mxu2 %vm565_vm4, %v733_v18 }
 0x20a   :  { %5635 = vmatmul.msk.f32.gmra.mxu2 %vm565_vm4, %v734_v21 }
 0x26f   :  { %v593_v22 = vpop.f32.mrf.mxu1 }
 0x270   :  { %5628 = vmatmul.msk.f32.vlgmr.msrb.gmra.mxu0 %vm557_vm5, %v593_v22 }
 0x271   :  { %991 = vmatpush.msrb.mxu0 %v968_v48  ;;  %v1002_v48 = vld [vmem:[%s8626_s1] sm:$0xff] }
 0x273   :  { %992 = vmatpush.msrb.mxu0 %v967_v50  ;;  %v6065_v50 = vld [vmem:[#allocation7] ss:$0 sm:$0xff] }
 0x275   :  { %v624_v23 = vpop.f32.mrf.mxu2  ;;  %993 = vmatpush.msrb.mxu0 %v966_v51 }
 0x276   :  { %5626 = vmatmul.msk.f32.vlgmr.msra.gmra.mxu3 %vm557_vm5, %v624_v23 }
 0x277   :  { %v596_v24 = vpop.f32.mrf.mxu1  ;;  %994 = vmatpush.msrb.mxu0 %v965_v52 }
 0x278   :  { %5629 = vmatmul.msk.f32.vlgmr.msrb.gmra.mxu1 %vm557_vm5, %v596_v24  ;;  %v890_v24 = vld [vmem:[%s8624_s8 + $0x18] sm:$0xff] }
 0x279   :  { %854 = vmatpush.msrb.mxu1 %v835_v36  ;;  %942 = vmatpush.msra.mxu3 %v890_v24 }
 0x27b   :  { %855 = vmatpush.msrb.mxu1 %v834_v39 }
 0x27d   :  { %v627_v25 = vpop.f32.mrf.mxu2  ;;  %856 = vmatpush.msrb.mxu1 %v833_v42 }
 0x27e   :  { %5627 = vmatmul.msk.f32.gmra.mxu3 %vm557_vm5, %v627_v25  ;;  %v889_v25 = vld [vmem:[%s8624_s8 + $0x10] sm:$0xff]  ;;  %s8642_s8 = sld [smem:[#allocation52_spill]] }
 0x27f   :  { %857 = vmatpush.msrb.mxu1 %v832_v45  ;;  %943 = vmatpush.msra.mxu3 %v889_v25 }
 0x280   :  { %5631 = vmatmul.msk.f32.vlgmr.msra.gmra.mxu1 %vm565_vm4, %v702_v26 }
 0x281   :  { %944 = vmatpush.msra.mxu3 %v888_v28 }
 0x283   :  { %945 = vmatpush.msra.mxu3 %v887_v29 }
 0x285   :  { %v758_v31 = vpop.f32.mrf.mxu2 }
 0x286   :  { %5636 = vmatmul.msk.f32.vlgmr.msrb.gmra.mxu3 %vm557_vm5, %v758_v31 }
 0x288   :  { %5632 = vmatmul.msk.f32.gmra.mxu1 %vm565_vm4, %v703_v27 }
 0x28d   :  { %v761_v44 = vpop.f32.mrf.mxu2 }
 0x28e   :  { %5637 = vmatmul.msk.f32.gmra.mxu3 %vm557_vm5, %v761_v44 }
 0x290   :  { %5640 = vmatmul.msk.f32.vlgmr.msrb.gmra.mxu1 %vm557_vm5, %v830_v46 }
 0x298   :  { %5641 = vmatmul.msk.f32.gmra.mxu1 %vm557_vm5, %v831_v49 }
 0x2ed   :  { %v690_v55 = vpop.f32.mrf.mxu0 }
 0x2f5   :  { %v693_v53 = vpop.f32.mrf.mxu1 }
 0x2f9   :  { %v661_v56 = vpop.f32.mrf.mxu3 }
 0x2fa   :  { %v691_v57 = vadd.f32 %v690_v55, %v661_v56 }
 0x2fc   :  { %v700_v58 = vadd.f32 %v6063_v54, %v691_v57 }
 0x2fd   :  { %v727_v59 = vpop.f32.mrf.mxu1 }
 0x2fe   :  { %5642 = vmatmul.msk.f32.vlgmr.msra.gmra.mxu2 %vm557_vm5, %v700_v58  ;;  %5638 = vmatmul.msk.f32.vlgmr.msra.gmra.mxu0 %vm557_vm5, %v727_v59 }
 0x301   :  { %v664_v60 = vpop.f32.mrf.mxu3 }
 0x302   :  { %v694_v61 = vadd.f32 %v693_v53, %v664_v60 }
 0x304   :  { %v701_v62 = vadd.f32 %v6063_v54, %v694_v61 }
 0x305   :  { %v730_v63 = vpop.f32.mrf.mxu1 }
 0x306   :  { %5643 = vmatmul.msk.f32.gmra.mxu2 %vm557_vm5, %v701_v62  ;;  %5639 = vmatmul.msk.f32.gmra.mxu0 %vm557_vm5, %v730_v63 }
 0x309   :  { %v795_v44 = vpop.f32.mrf.mxu3 }
 0x30d   :  { %v7437_v11 = vpop.f32.mrf.mxu1 }
 0x30e   :  { %5646 = vmatmul.msk.f32.vlgmr.msrb.gmra.mxu0 %vm557_vm5, %v7410_v0 }
 0x311   :  { %v798_v55 = vpop.f32.mrf.mxu3 }
 0x315   :  { %v7439_v12 = vpop.f32.mrf.mxu1 }
 0x316   :  { %5647 = vmatmul.msk.f32.gmra.mxu0 %vm557_vm5, %v7414_v1 }
 0x37b   :  { %v7418_v2 = vpop.f32.mrf.mxu0 }
 0x37c   :  { %v825_v49 = vadd.f32 %v7418_v2, %v795_v44 }
 0x37e   :  { %v865_v53 = vadd.f32 %v7437_v11, %v825_v49 }
 0x383   :  { %v7420_v3 = vpop.f32.mrf.mxu0 }
 0x384   :  { %v828_v58 = vadd.f32 %v7420_v3, %v798_v55 }
 0x386   :  { %v866_v60 = vadd.f32 %v7439_v12, %v828_v58 }
 0x38b   :  { %v996_v4 = vpop.f32.mrf.mxu0 }
 0x38c   :  { %v7427_v8 = vadd.f32 %v6064_v5, %v996_v4 }
 0x393   :  { %v999_v6 = vpop.f32.mrf.mxu0 }
 0x394   :  { %v7423_v7 = vadd.f32 %v6064_v5, %v999_v6 }
 0x396   :  { %1011 = vrot.lane.b32.xlu0 %v7423_v7, %s6895_s24 }
 0x39e   :  { %1009 = vrot.lane.b32.xlu0 %v7427_v8, %s6895_s24 }
 0x408   :  { %v1012_v9 = vpop.permute.xlu0 %1011 }
 0x409   :  { %5648 = vmatpush.xpose.msk.msra.mxu1 %vm1013_vm6, %v1012_v9 }
 0x410   :  { %v1010_v10 = vpop.permute.xlu0 %1009 }
 0x411   :  { %5649 = vmatpush.xpose.msk.msra.mxu1 %vm1013_vm6, %v1010_v10 }
 0x414   :  { %5650 = vmatmul.msk.f32.vlgmr.msra.gmra.mxu1 %vm1013_vm6, %v7427_v8 }
 0x41c   :  { %5651 = vmatmul.msk.f32.gmra.mxu1 %vm1013_vm6, %v7423_v7 }
 0x491   :  { %v1039_v13 = vpop.f32.mrf.mxu1 }
 0x492   :  { %v1045_v15 = vmul.f32 0.35355338, %v1039_v13  ;;  %v7507_v13 = vpop.f32.mrf.mxu2 }
 0x494   :  { %v1047_v16 = vadd.f32 %v1045_v15, %v7442_v14 }
 0x496   :  { %v1050_v17 = vsel %vm1049_vm7, %v1047_v16, -inf }
 0x497   :  { %1051 = vmax.xlane.f32.xlu1 %v1050_v17 }
 0x499   :  { %v1042_v18 = vpop.f32.mrf.mxu1 }
 0x49a   :  { %v1046_v20 = vmul.f32 0.35355338, %v1042_v18  ;;  %v7509_v15 = vpop.f32.mrf.mxu2 }
 0x49c   :  { %v1048_v21 = vadd.f32 %v1046_v20, %v7447_v19 }
 0x49e   :  { %v1054_v22 = vsel %vm1053_vm8, %v1048_v21, -inf }
 0x49f   :  { %1055 = vmax.xlane.f32.xlu1 %v1054_v22 }
 0x4b8   :  { %1073 = vrot.lane.b32.xlu1 %v7427_v8, %s6896_s5 }
 0x4c0   :  { %1115 = vrot.lane.b32.xlu1 %v7423_v7, %s6897_s0 }
 0x4c8   :  { %1109 = vrot.lane.b32.xlu1 %v7427_v8, %s6898_s12 }
 0x4d0   :  { %1111 = vrot.lane.b32.xlu1 %v7423_v7, %s6898_s12 }
 0x4d8   :  { %1400 = vrot.lane.b32.xlu1 %v7427_v8, %s6899_s26 }
 0x4e0   :  { %1268 = vrot.lane.b32.xlu1 %v7427_v8, %s6900_s28 }
 0x50a   :  { %v1052_v23 = vpop.xlane.xlu1 %1051 }
 0x50b   :  { %v1057_v26 = vsub.f32 %v1047_v16, %v1052_v23 }
 0x50d   :  { %v1059_v27 = vmul.f32 1.442695, %v1057_v26 }
 0x50f   :  { %6113 = vpow2.f32 %v1059_v27 }
 0x512   :  { %v1056_v30 = vpop.xlane.xlu1 %1055 }
 0x513   :  { %v1058_v31 = vsub.f32 %v1048_v21, %v1056_v30 }
 0x515   :  { %v6114_v33 = vpop.eup %6113  ;;  %v1061_v34 = vmul.f32 1.442695, %v1058_v31 }
 0x516   :  { %v1063_v35 = vsel %vm1049_vm7, %v6114_v33, 0.0 }
 0x517   :  { %6115 = vpow2.f32 %v1061_v34  ;;  %1064 = vadd.xlane.f32.xlu2 %v1063_v35 }
 0x51d   :  { %v6116_v36 = vpop.eup %6115 }
 0x51e   :  { %v1066_v37 = vsel %vm1053_vm8, %v6116_v36, 0.0 }
 0x51f   :  { %1067 = vadd.xlane.f32.xlu0 %v1066_v37 }
 0x52a   :  { %v1074_v38 = vpop.permute.xlu1 %1073 }
 0x52f   :  { %1075 = vrot.lane.b32.xlu2 %v7423_v7, %s6896_s5 }
 0x532   :  { %v1116_v39 = vpop.permute.xlu1 %1115 }
 0x533   :  { %1274 = vrot.lane.b32.xlu0 %v7423_v7, %s6902_s7  ;;  %5655 = vmatpush.xpose.msk.msrb.mxu3 %vm1013_vm6, %v1116_v39 }
 0x537   :  { %872 = vperm.xlu2 %6059, %v867_v40  }
 0x53a   :  { %v1110_v63 = vpop.permute.xlu1 %1109 }
 0x53b   :  { %1402 = vrot.lane.b32.xlu0 %v7423_v7, %s6899_s26 }
 0x53f   :  { %877 = vperm.xlu2 %6059, %v868_v41  }
 0x542   :  { %v1112_v5 = vpop.permute.xlu1 %1111 }
 0x547   :  { %1113 = vrot.lane.b32.xlu2 %v7427_v8, %s6897_s0 }
 0x54a   :  { %v1401_v9 = vpop.permute.xlu1 %1400 }
 0x54f   :  { %1406 = vrot.lane.b32.xlu2 %v7423_v7, %s6903_s14 }
 0x552   :  { %v1269_v11 = vpop.permute.xlu1 %1268 }
 0x557   :  { %1404 = vrot.lane.b32.xlu2 %v7427_v8, %s6903_s14 }
 0x55f   :  { %1272 = vrot.lane.b32.xlu2 %v7427_v8, %s6902_s7 }
 0x567   :  { %1270 = vrot.lane.b32.xlu2 %v7423_v7, %s6900_s28 }
 0x58a   :  { %v1065_v42 = vpop.xlane.xlu2 %1064 }
 0x58b   :  { %6117 = vrcp.f32 %v1065_v42 }
 0x591   :  { %v6118_v43 = vpop.eup %6117 }
 0x592   :  { %v1076_v45 = vpop.permute.xlu2 %1075  ;;  %v1068_v46 = vpop.xlane.xlu0 %1067  ;;  %v1071_v47 = vmul.f32 %v6118_v43, %v6114_v33 }
 0x593   :  { %6119 = vrcp.f32 %v1068_v46  ;;  %5652 = vmatpush.msk.msrb.mxu2 %vm572_vm3, %v1076_v45 }
 0x595   :  { %1101 = vmatpush.msrb.mxu2 %v1074_v38 }
 0x596   :  { %5653 = vmatmul.msk.f32.vlgmr.msrb.gmra.mxu2 %vm1049_vm7, %v1071_v47 }
 0x597   :  { %1260 = vmatpush.msra.mxu2 %v1002_v48 }
 0x599   :  { %v6120_v51 = vpop.eup %6119 }
 0x59a   :  { %v873_v52 = vpop.permute.xlu2 %872  ;;  %v1072_v56 = vmul.f32 %v6120_v51, %v6116_v36 }
 0x59b   :  { %v883_v54 = vmul.f32 %v6065_v50, %v873_v52 }
 0x59d   :  { %v885_v57 = vadd.f32 %v883_v54, %v865_v53 }
 0x59e   :  { %5654 = vmatmul.msk.f32.gmra.mxu2 %vm1049_vm7, %v1072_v56 }
 0x59f   :  { %5644 = vmatmul.msk.f32.vlgmr.msra.gmra.mxu3 %vm557_vm5, %v885_v57 }
 0x5a2   :  { %v878_v59 = vpop.permute.xlu2 %877 }
 0x5a3   :  { %v884_v61 = vmul.f32 %v6065_v50, %v878_v59 }
 0x5a5   :  { %v886_v62 = vadd.f32 %v884_v61, %v866_v60  ;;  %v1275_v4 = vpop.permute.xlu0 %1274 }
 0x5a7   :  { %5645 = vmatmul.msk.f32.gmra.mxu3 %vm557_vm5, %v886_v62 }
 0x5aa   :  { %v1114_v2 = vpop.permute.xlu2 %1113 }
 0x5ab   :  { %5656 = vmatpush.xpose.msk.msrb.mxu3 %vm1013_vm6, %v1114_v2 }
 0x5ad   :  { %v1403_v21 = vpop.permute.xlu0 %1402 }
 0x5af   :  { %5666 = vmatpush.xpose.msk.msra.mxu3 %vm1013_vm6, %v1275_v4 }
 0x5b0   :  { %5657 = vmatmul.msk.f32.vlgmr.msrb.gmra.mxu3 %vm1013_vm6, %v1110_v63 }
 0x5b2   :  { %v1407_v3 = vpop.permute.xlu2 %1406 }
 0x5b3   :  { %5675 = vmatpush.xpose.msk.msrb.mxu2 %vm1013_vm6, %v1407_v3 }
 0x5b8   :  { %5658 = vmatmul.msk.f32.gmra.mxu3 %vm1013_vm6, %v1112_v5 }
 0x5ba   :  { %v1405_v6 = vpop.permute.xlu2 %1404 }
 0x5bb   :  { %5676 = vmatpush.xpose.msk.msrb.mxu2 %vm1013_vm6, %v1405_v6 }
 0x5c2   :  { %v1273_v10 = vpop.permute.xlu2 %1272 }
 0x5c3   :  { %5667 = vmatpush.xpose.msk.msra.mxu3 %vm1013_vm6, %v1273_v10 }
 0x5c6   :  { %5668 = vmatmul.msk.f32.vlgmr.msra.gmra.mxu3 %vm1013_vm6, %v1269_v11 }
 0x5ca   :  { %v1271_v12 = vpop.permute.xlu2 %1270 }
 0x5ce   :  { %5669 = vmatmul.msk.f32.gmra.mxu3 %vm1013_vm6, %v1271_v12 }
 0x619   :  { %v1103_v16 = vpop.f32.mrf.mxu2 }
 0x61a   :  { %5664 = vmatmul.msk.f32.vlgmr.msra.gmra.mxu2 %vm1013_vm6, %v1103_v16 }
 0x621   :  { %v1106_v17 = vpop.f32.mrf.mxu2 }
 0x622   :  { %v7512_v18 = vpop.f32.mrf.mxu3  ;;  %5665 = vmatmul.msk.f32.gmra.mxu2 %vm1013_vm6, %v1106_v17 }
 0x62a   :  { %v7515_v20 = vpop.f32.mrf.mxu3  ;;  %5677 = vmatmul.msk.f32.vlgmr.msrb.gmra.mxu2 %vm1013_vm6, %v1401_v9 }
 0x632   :  { %5678 = vmatmul.msk.f32.gmra.mxu2 %vm1013_vm6, %v1403_v21 }
 0x633   :  { %v1142_v22 = vpop.f32.mrf.mxu3 }
 0x634   :  { %v1148_v23 = vmul.f32 0.35355338, %v1142_v22 }
 0x636   :  { %v1150_v24 = vadd.f32 %v1148_v23, %v7442_v14 }
 0x638   :  { %v1152_v25 = vsel %vm1049_vm7, %v1150_v24, -inf }
 0x639   :  { %1153 = vmax.xlane.f32.xlu1 %v1152_v25 }
 0x63b   :  { %v1145_v26 = vpop.f32.mrf.mxu3 }
 0x63c   :  { %v1149_v27 = vmul.f32 0.35355338, %v1145_v26 }
 0x63e   :  { %v1151_v28 = vadd.f32 %v1149_v27, %v7447_v19 }
 0x640   :  { %v1155_v29 = vsel %vm1053_vm8, %v1151_v28, -inf }
 0x641   :  { %1156 = vmax.xlane.f32.xlu0 %v1155_v29 }
 0x649   :  { %v1301_v30 = vpop.f32.mrf.mxu3 }
 0x64a   :  { %v1307_v31 = vmul.f32 0.35355338, %v1301_v30 }
 0x64c   :  { %v1309_v32 = vadd.f32 %v1307_v31, %v7442_v14 }
 0x64e   :  { %v1311_v33 = vsel %vm1049_vm7, %v1309_v32, -inf }
 0x64f   :  { %1312 = vmax.xlane.f32.xlu1 %v1311_v33 }
 0x651   :  { %v1304_v41 = vpop.f32.mrf.mxu3 }
 0x652   :  { %v1308_v43 = vmul.f32 0.35355338, %v1304_v41 }
 0x654   :  { %v1310_v51 = vadd.f32 %v1308_v43, %v7447_v19 }
 0x655   :  { %1176 = vrot.lane.b32.xlu0 %v7423_v7, %s6904_s9 }
 0x656   :  { %v1314_v55 = vsel %vm1053_vm8, %v1310_v51, -inf }
 0x69d   :  { %v7527_v34 = vpop.f32.mrf.mxu2 }
 0x6a5   :  { %v7529_v35 = vpop.f32.mrf.mxu2 }
 0x6ac   :  { %v1154_v36 = vpop.xlane.xlu1 %1153 }
 0x6ad   :  { %v1158_v37 = vsub.f32 %v1150_v24, %v1154_v36  ;;  %v1433_v38 = vpop.f32.mrf.mxu2 }
 0x6ae   :  { %v1439_v40 = vmul.f32 0.35355338, %v1433_v38 }
 0x6af   :  { %v1160_v39 = vmul.f32 1.442695, %v1158_v37 }
 0x6b0   :  { %v1441_v42 = vadd.f32 %v1439_v40, %v7442_v14 }
 0x6b1   :  { %6121 = vpow2.f32 %v1160_v39  ;;  %v1003_v39 = vld [vmem:[%s8626_s1 + $0x8] sm:$0xff] }
 0x6b2   :  { %v1443_v44 = vsel %vm1049_vm7, %v1441_v42, -inf  ;;  %1231 = vmatpush.msrb.mxu1 %v1003_v39 }
 0x6b3   :  { %1444 = vmax.xlane.f32.xlu2 %v1443_v44  ;;  %v1004_v44 = vld [vmem:[%s8626_s1 + $0x10] sm:$0xff] }
 0x6b4   :  { %v1157_v45 = vpop.xlane.xlu0 %1156  ;;  %1390 = vmatpush.msra.mxu1 %v1004_v44 }
 0x6b5   :  { %v1159_v46 = vsub.f32 %v1151_v28, %v1157_v45  ;;  %v1436_v47 = vpop.f32.mrf.mxu2  ;;  %v1005_v45 = vld [vmem:[%s8626_s1 + $0x18] sm:$0xff] }
 0x6b6   :  { %v1440_v50 = vmul.f32 0.35355338, %v1436_v47 }
 0x6b7   :  { %v6122_v48 = vpop.eup %6121  ;;  %v1162_v49 = vmul.f32 1.442695, %v1159_v46 }
 0x6b8   :  { %v1164_v52 = vsel %vm1049_vm7, %v6122_v48, 0.0  ;;  %v1442_v53 = vadd.f32 %v1440_v50, %v7447_v19 }
 0x6b9   :  { %1165 = vadd.xlane.f32.xlu1 %v1164_v52  ;;  %6123 = vpow2.f32 %v1162_v49 }
 0x6ba   :  { %v1446_v54 = vsel %vm1053_vm8, %v1442_v53, -inf }
 0x6bb   :  { %1447 = vmax.xlane.f32.xlu0 %v1446_v54  ;;  %1315 = vmax.xlane.f32.xlu2 %v1314_v55 }
 0x6bf   :  { %v6124_v56 = vpop.eup %6123 }
 0x6c0   :  { %v1167_v58 = vsel %vm1053_vm8, %v6124_v56, 0.0 }
 0x6c2   :  { %v1313_v57 = vpop.xlane.xlu1 %1312 }
 0x6c3   :  { %v1317_v59 = vsub.f32 %v1309_v32, %v1313_v57  ;;  %1168 = vadd.xlane.f32.xlu2 %v1167_v58 }
 0x6c5   :  { %v1319_v60 = vmul.f32 1.442695, %v1317_v59 }
 0x6c7   :  { %v1177_v61 = vpop.permute.xlu0 %1176  ;;  %6125 = vpow2.f32 %v1319_v60 }
 0x6c8   :  { %5659 = vmatpush.msk.msra.mxu0 %vm572_vm3, %v1177_v61 }
 0x6cd   :  { %v6126_v62 = vpop.eup %6125 }
 0x6ce   :  { %v1323_v63 = vsel %vm1049_vm7, %v6126_v62, 0.0 }
 0x6cf   :  { %1467 = vrot.lane.b32.xlu0 %v7423_v7, %s6905_s13  ;;  %1324 = vadd.xlane.f32.xlu2 %v1323_v63 }
 0x6d2   :  { %1174 = vrot.lane.b32.xlu1 %v7427_v8, %s6904_s9 }
 0x6d7   :  { %1465 = vrot.lane.b32.xlu0 %v7427_v8, %s6905_s13 }
 0x6da   :  { %1335 = vrot.lane.b32.xlu1 %v7423_v7, %s6906_s4 }
 0x6df   :  { %1333 = vrot.lane.b32.xlu0 %v7427_v8, %s6906_s4 }
 0x726   :  { %v1445_v2 = vpop.xlane.xlu2 %1444 }
 0x727   :  { %v1449_v4 = vsub.f32 %v1441_v42, %v1445_v2 }
 0x729   :  { %v1451_v5 = vmul.f32 1.442695, %v1449_v4 }
 0x72b   :  { %6127 = vpow2.f32 %v1451_v5 }
 0x72c   :  { %v1166_v21 = vpop.xlane.xlu1 %1165 }
 0x72e   :  { %v1448_v3 = vpop.xlane.xlu0 %1447  ;;  %v1316_v6 = vpop.xlane.xlu2 %1315 }
 0x72f   :  { %v1450_v9 = vsub.f32 %v1442_v53, %v1448_v3  ;;  %v1318_v12 = vsub.f32 %v1310_v51, %v1316_v6 }
 0x731   :  { %v6128_v10 = vpop.eup %6127  ;;  %v1453_v11 = vmul.f32 1.442695, %v1450_v9  ;;  %v1321_v17 = vmul.f32 1.442695, %v1318_v12 }
 0x732   :  { %v1455_v16 = vsel %vm1049_vm7, %v6128_v10, 0.0 }
 0x733   :  { %6129 = vpow2.f32 %v1453_v11  ;;  %1456 = vadd.xlane.f32.xlu2 %v1455_v16 }
 0x734   :  { %6131 = vpow2.f32 %v1321_v17 }
 0x735   :  { %6133 = vrcp.f32 %v1166_v21  ;;  %v6907_v21 = vmov 32.0  }
 0x736   :  { %v1169_v23 = vpop.xlane.xlu2 %1168 }
 0x737   :  { %6135 = vrcp.f32 %v1169_v23 }
 0x739   :  { %v6130_v7 = vpop.eup %6129 }
 0x73a   :  { %v1458_v8 = vsel %vm1053_vm8, %v6130_v7, 0.0  ;;  %v6132_v22 = vpop.eup %6131 }
 0x73b   :  { %1459 = vadd.xlane.f32.xlu2 %v1458_v8  ;;  %v6134_v24 = vpop.eup %6133  ;;  %v1326_v26 = vsel %vm1053_vm8, %v6132_v22, 0.0 }
 0x73c   :  { %v1172_v27 = vmul.f32 %v6134_v24, %v6122_v48 }
 0x73d   :  { %v6136_v30 = vpop.eup %6135 }
 0x73e   :  { %v1173_v33 = vmul.f32 %v6136_v30, %v6124_v56 }
 0x741   :  { %v1468_v25 = vpop.permute.xlu0 %1467 }
 0x742   :  { %5679 = vmatpush.msk.msrb.mxu3 %vm572_vm3, %v1468_v25  ;;  %v1325_v29 = vpop.xlane.xlu2 %1324 }
 0x743   :  { %1327 = vadd.xlane.f32.xlu2 %v1326_v26  ;;  %6137 = vrcp.f32 %v1325_v29 }
 0x744   :  { %v1175_v28 = vpop.permute.xlu1 %1174 }
 0x745   :  { %1202 = vmatpush.msra.mxu0 %v1175_v28 }
 0x746   :  { %5660 = vmatmul.msk.f32.vlgmr.msra.gmra.mxu0 %vm1049_vm7, %v1172_v27 }
 0x749   :  { %v1466_v31 = vpop.permute.xlu0 %1465  ;;  %v6138_v36 = vpop.eup %6137 }
 0x74a   :  { %1493 = vmatpush.msrb.mxu3 %v1466_v31  ;;  %v1331_v38 = vmul.f32 %v6138_v36, %v6126_v62  ;;  %v6067_v62 = vld [vmem:[%s8627_s20] ss:$0 sm:$0xff]  ;;  %v1604_v36 = vld [vmem:[%s8628_s6 + $0x10] sm:$0xff] }
 0x74c   :  { %v1336_v32 = vpop.permute.xlu1 %1335 }
 0x74d   :  { %5670 = vmatpush.msk.msrb.mxu0 %vm572_vm3, %v1336_v32 }
 0x74e   :  { %5661 = vmatmul.msk.f32.gmra.mxu0 %vm1049_vm7, %v1173_v33  ;;  %v1605_v33 = vld [vmem:[%s8628_s6 + $0x18] sm:$0xff] }
 0x751   :  { %v1334_v37 = vpop.permute.xlu0 %1333 }
 0x752   :  { %1361 = vmatpush.msrb.mxu0 %v1334_v37  ;;  %v1603_v37 = vld [vmem:[%s8628_s6 + $0x8] sm:$0xff] }
 0x754   :  { %1522 = vmatpush.msra.mxu0 %v1005_v45  ;;  %v1612_v45 = vld [vmem:[%s8629_s11 + $0x28] sm:$0xff] }
 0x756   :  { %5671 = vmatmul.msk.f32.vlgmr.msrb.gmra.mxu0 %vm1049_vm7, %v1331_v38  ;;  %v1602_v38 = vld [vmem:[%s8628_s6] sm:$0xff] }
 0x7a6   :  { %v1457_v40 = vpop.xlane.xlu2 %1456 }
 0x7a7   :  { %6139 = vrcp.f32 %v1457_v40 }
 0x7ad   :  { %v6140_v41 = vpop.eup %6139 }
 0x7ae   :  { %v1463_v42 = vmul.f32 %v6140_v41, %v6128_v10  ;;  %v1460_v43 = vpop.xlane.xlu2 %1459 }
 0x7af   :  { %6141 = vrcp.f32 %v1460_v43  ;;  %v1613_v43 = vld [vmem:[%s8629_s11 + $0x30] sm:$0xff] }
 0x7b0   :  { %5680 = vmatmul.msk.f32.vlgmr.msrb.gmra.mxu3 %vm1049_vm7, %v1463_v42  ;;  %v1614_v42 = vld [vmem:[%s8629_s11 + $0x38] sm:$0xff] }
 0x7b1   :  { %1668 = vmatpush.msra.mxu2 %v1614_v42 }
 0x7b3   :  { %1669 = vmatpush.msra.mxu2 %v1613_v43 }
 0x7b5   :  { %v6142_v46 = vpop.eup %6141  ;;  %1670 = vmatpush.msra.mxu2 %v1612_v45  ;;  %v5690_v45 = vld [vmem:[%s8621_s22 + $0x30] sm:$0xff] }
 0x7b6   :  { %v1328_v47 = vpop.xlane.xlu2 %1327  ;;  %v1464_v48 = vmul.f32 %v6142_v46, %v6130_v7 }
 0x7b7   :  { %6143 = vrcp.f32 %v1328_v47 }
 0x7b8   :  { %5681 = vmatmul.msk.f32.gmra.mxu3 %vm1049_vm7, %v1464_v48  ;;  %6145 = vrcp.f32 %v6907_v21 }
 0x7bd   :  { %v6144_v49 = vpop.eup %6143 }
 0x7be   :  { %v1332_v50 = vmul.f32 %v6144_v49, %v6132_v22  ;;  %v6146_v7 = vpop.eup %6145  ;;  %v1611_v49 = vld [vmem:[%s8629_s11 + $0x20] sm:$0xff] }
 0x7bf   :  { %v1548_v8 = vmul.f32 32.0, %v6146_v7  ;;  %vm1552_vm9 = vweird.f32 %v6146_v7  ;;  %1671 = vmatpush.msra.mxu2 %v1611_v49 }
 0x7c0   :  { %5672 = vmatmul.msk.f32.gmra.mxu0 %vm1049_vm7, %v1332_v50 }
 0x7c3   :  { %v1204_v51 = vpop.f32.mrf.mxu0 }
 0x7c4   :  { %5662 = vmatmul.msk.f32.vlgmr.msrb.gmra.mxu1 %vm1013_vm6, %v1204_v51 }
 0x7c5   :  { %1637 = vmatpush.msrb.mxu1 %v1605_v33 }
 0x7c7   :  { %1638 = vmatpush.msrb.mxu1 %v1604_v36 }
 0x7c9   :  { %1639 = vmatpush.msrb.mxu1 %v1603_v37 }
 0x7cb   :  { %v1207_v52 = vpop.f32.mrf.mxu0  ;;  %1640 = vmatpush.msrb.mxu1 %v1602_v38 }
 0x7cc   :  { %5663 = vmatmul.msk.f32.gmra.mxu1 %vm1013_vm6, %v1207_v52  ;;  %v1610_v52 = vld [vmem:[%s8629_s11 + $0x18] sm:$0xff] }
 0x7cd   :  { %1672 = vmatpush.msra.mxu2 %v1610_v52 }
 0x7d3   :  { %v1363_v53 = vpop.f32.mrf.mxu0 }
 0x7d4   :  { %5673 = vmatmul.msk.f32.vlgmr.msra.gmra.mxu1 %vm1013_vm6, %v1363_v53 }
 0x833   :  { %v1495_v54 = vpop.f32.mrf.mxu3 }
 0x834   :  { %5682 = vmatmul.msk.f32.vlgmr.msra.gmra.mxu0 %vm1013_vm6, %v1495_v54 }
 0x83b   :  { %v1498_v55 = vpop.f32.mrf.mxu3 }
 0x83c   :  { %5683 = vmatmul.msk.f32.gmra.mxu0 %vm1013_vm6, %v1498_v55 }
 0x83d   :  { %v1366_v56 = vpop.f32.mrf.mxu0 }
 0x83e   :  { %5674 = vmatmul.msk.f32.gmra.mxu1 %vm1013_vm6, %v1366_v56  ;;  %v6068_v56 = vld [vmem:[%s8630_s10] ss:$0 sm:$0xff] }
 0x841   :  { %v1233_v57 = vpop.f32.mrf.mxu1 }
 0x842   :  { %v1263_v60 = vadd.f32 %v7527_v34, %v1233_v57 }
 0x849   :  { %v1236_v58 = vpop.f32.mrf.mxu1 }
 0x84a   :  { %v1266_v6 = vadd.f32 %v7529_v35, %v1236_v58 }
 0x851   :  { %v1392_v59 = vpop.f32.mrf.mxu1 }
 0x852   :  { %v1398_v61 = vadd.f32 %v1392_v59, %v1263_v60  ;;  %v6069_v60 = vld [vmem:[%s8631_s27] ss:$0 sm:$0xff] }
 0x8b1   :  { %v1524_v63 = vpop.f32.mrf.mxu0 }
 0x8b2   :  { %v1530_v2 = vadd.f32 %v1524_v63, %v1398_v61 }
 0x8b4   :  { %v1535_v4 = vadd.f32 %v6067_v62, %v1530_v2 }
 0x8b6   :  { %v1537_v5 = vadd.f32 %v1535_v4, %v7410_v0  ;;  %v1549_v0 = vsub.f32 1.0, %v1548_v8 }
 0x8b8   :  { %v1541_v3 = vsel %vm557_vm5, %v1537_v5, 0.0  ;;  %v1550_v22 = vmul.f32 %v6146_v7, %v1549_v0 }
 0x8b9   :  { %1542 = vadd.xlane.f32.xlu1 %v1541_v3  ;;  %v1527_v11 = vpop.f32.mrf.mxu0 }
 0x8ba   :  { %v1551_v23 = vadd.f32 %v6146_v7, %v1550_v22 }
 0x8bb   :  { %v1395_v9 = vpop.f32.mrf.mxu1 }
 0x8bc   :  { %v1399_v10 = vadd.f32 %v1395_v9, %v1266_v6  ;;  %v7578_v35 = vsel %vm1552_vm9, %v6146_v7, %v1551_v23 }
 0x8be   :  { %v1531_v12 = vadd.f32 %v1527_v11, %v1399_v10 }
 0x8c0   :  { %v1536_v16 = vadd.f32 %v6067_v62, %v1531_v12  ;;  %v1609_v12 = vld [vmem:[%s8629_s11 + $0x10] sm:$0xff] }
 0x8c1   :  { %1673 = vmatpush.msra.mxu2 %v1609_v12 }
 0x8c2   :  { %v1538_v17 = vadd.f32 %v1536_v16, %v7414_v1  ;;  %v1608_v16 = vld [vmem:[%s8629_s11 + $0x8] sm:$0xff] }
 0x8c3   :  { %1674 = vmatpush.msra.mxu2 %v1608_v16 }
 0x8c4   :  { %v1544_v34 = vsel %vm559_vm2, %v1538_v17, 0.0 }
 0x8c5   :  { %1545 = vadd.xlane.f32.xlu2 %v1544_v34  ;;  %v6070_v34 = vld [vmem:[%s8632_s29] ss:$0 sm:$0xff] }
 0x92c   :  { %v1543_v24 = vpop.xlane.xlu1 %1542 }
 0x92d   :  { %v1554_v25 = vmul.f32 %v7578_v35, %v1543_v24  ;;  %v6071_v24 = vld [vmem:[%s8633_s25] ss:$0 sm:$0xff] }
 0x92f   :  { %v1556_v1 = vsub.f32 %v1537_v5, %v1554_v25 }
 0x931   :  { %v1558_v26 = vmul.f32 %v1556_v1, %v1556_v1 }
 0x933   :  { %v1560_v27 = vsel %vm557_vm5, %v1558_v26, 0.0 }
 0x934   :  { %1561 = vadd.xlane.f32.xlu0 %v1560_v27 }
 0x938   :  { %v1546_v28 = vpop.xlane.xlu2 %1545 }
 0x939   :  { %v1555_v29 = vmul.f32 %v7578_v35, %v1546_v28 }
 0x93b   :  { %v1557_v30 = vsub.f32 %v1538_v17, %v1555_v29  ;;  %v1607_v17 = vld [vmem:[%s8629_s11] sm:$0xff] }
 0x93c   :  { %1675 = vmatpush.msra.mxu2 %v1607_v17 }
 0x93d   :  { %v1559_v31 = vmul.f32 %v1557_v30, %v1557_v30 }
 0x93f   :  { %v1563_v32 = vsel %vm559_vm2, %v1559_v31, 0.0 }
 0x940   :  { %1564 = vadd.xlane.f32.xlu2 %v1563_v32 }
 0x9a7   :  { %v1562_v39 = vpop.xlane.xlu0 %1561 }
 0x9a8   :  { %v1566_v40 = vmul.f32 %v1562_v39, %v7578_v35 }
 0x9aa   :  { %v1568_v41 = vadd.f32 1e-05, %v1566_v40 }
 0x9ac   :  { %6147 = vrsqrt.f32 %v1568_v41  ;;  %vm1576_vm11 = vweird.f32 %v1568_v41 }
 0x9b2   :  { %v6148_v44 = vpop.eup %6147 }
 0x9b3   :  { %v1571_v46 = vmul.f32 %v6148_v44, %v1568_v41  ;;  %v1565_v47 = vpop.xlane.xlu2 %1564  ;;  %vm1577_vm10 = vweird.f32 %v6148_v44 }
 0x9b4   :  { %v1567_v48 = vmul.f32 %v1565_v47, %v7578_v35  ;;  %vm1578_vm12 = vmor %vm1576_vm11, %vm1577_vm10  ;;  %v5688_v47 = vld [vmem:[%s8621_s22 + $0x20] sm:$0xff] }
 0x9b5   :  { %v1572_v50 = vmul.f32 %v6148_v44, %v1571_v46  ;;  %v5689_v46 = vld [vmem:[%s8621_s22 + $0x28] sm:$0xff] }
 0x9b6   :  { %v1569_v51 = vadd.f32 1e-05, %v1567_v48 }
 0x9b7   :  { %v1573_v53 = vmul.f32 0.5, %v1572_v50 }
 0x9b8   :  { %6149 = vrsqrt.f32 %v1569_v51  ;;  %vm1586_vm14 = vweird.f32 %v1569_v51 }
 0x9b9   :  { %v1574_v54 = vsub.f32 1.5, %v1573_v53 }
 0x9bb   :  { %v1575_v55 = vmul.f32 %v6148_v44, %v1574_v54 }
 0x9bd   :  { %v1579_v57 = vsel %vm1578_vm12, %v6148_v44, %v1575_v55  ;;  %v5691_v44 = vld [vmem:[%s8621_s22 + $0x38] sm:$0xff]  ;;  %s8639_s22 = sld [smem:[#allocation77_spill]] }
 0x9be   :  { %v6150_v58 = vpop.eup %6149  ;;  %v1590_v59 = vmul.f32 %v1579_v57, %v1556_v1  ;;  %1769 = vmatpush.msra.mxu3 %v5691_v44 }
 0x9bf   :  { %v1581_v61 = vmul.f32 %v6150_v58, %v1569_v51  ;;  %vm1587_vm13 = vweird.f32 %v6150_v58 }
 0x9c0   :  { %v1595_v62 = vmul.f32 %v6068_v56, %v1590_v59  ;;  %vm1588_vm15 = vmor %vm1586_vm14, %vm1587_vm13  ;;  %1770 = vmatpush.msra.mxu3 %v5690_v45  ;;  %vm2661_vm13 = vcmask 120832  }
 0x9c1   :  { %v1582_v63 = vmul.f32 %v6150_v58, %v1581_v61 }
 0x9c2   :  { %v1600_v2 = vadd.f32 %v6069_v60, %v1595_v62  ;;  %1771 = vmatpush.msra.mxu3 %v5689_v46 }
 0x9c3   :  { %v1583_v4 = vmul.f32 0.5, %v1582_v63 }
 0x9c4   :  { %5684 = vmatmul.msk.f32.vlgmr.msrb.gmra.mxu1 %vm557_vm5, %v1600_v2  ;;  %1772 = vmatpush.msra.mxu3 %v5688_v47 }
 0x9c5   :  { %v1584_v5 = vsub.f32 1.5, %v1583_v4 }
 0x9c7   :  { %v1585_v3 = vmul.f32 %v6150_v58, %v1584_v5 }
 0x9c9   :  { %v1589_v6 = vsel %vm1588_vm15, %v6150_v58, %v1585_v3 }
 0x9ca   :  { %v1591_v9 = vmul.f32 %v1589_v6, %v1557_v30 }
 0x9cc   :  { %v1596_v10 = vmul.f32 %v6068_v56, %v1591_v9 }
 0x9ce   :  { %v1601_v11 = vadd.f32 %v6069_v60, %v1596_v10  ;;  %v6072_v60 = vld [vmem:[%s8634_s15] ss:$0 sm:$0xff] }
 0x9d0   :  { %5685 = vmatmul.msk.f32.gmra.mxu1 %vm557_vm5, %v1601_v11 }
 0xa41   :  { %v1642_v21 = vpop.f32.mrf.mxu1 }
 0xa42   :  { %v1643_v7 = vadd.f32 %v6070_v34, %v1642_v21  ;;  %v6074_v21 = vld [vmem:[%s8622_s19 + $0x1] ss:$0 sm:$0xff]  ;;  %s8640_s19 = sld [smem:[#allocation79_spill]] }
 0xa44   :  { %v1648_v8 = vmax.f32 %v1643_v7, 0.0 }
 0xa46   :  { %5686 = vmatmul.msk.f32.vlgmr.msra.gmra.mxu2 %vm1653_vm0, %v1648_v8 }
 0xa4d   :  { %v1645_v0 = vpop.f32.mrf.mxu1 }
 0xa4e   :  { %v1646_v22 = vadd.f32 %v6070_v34, %v1645_v0 }
 0xa50   :  { %v1649_v23 = vmax.f32 %v1646_v22, 0.0 }
 0xa52   :  { %5687 = vmatmul.msk.f32.gmra.mxu2 %vm1653_vm0, %v1649_v23 }
 0xac9   :  { %v1677_v25 = vpop.f32.mrf.mxu2 }
 0xaca   :  { %v1678_v1 = vadd.f32 %v6071_v24, %v1677_v25 }
 0xacc   :  { %v1683_v26 = vadd.f32 %v1678_v1, %v1600_v2  ;;  %v6073_v2 = vld [vmem:[%s8635_s3] ss:$0 sm:$0xff] }
 0xace   :  { %v1687_v27 = vsel %vm557_vm5, %v1683_v26, 0.0 }
 0xacf   :  { %1688 = vadd.xlane.f32.xlu2 %v1687_v27 }
 0xad5   :  { %v1680_v28 = vpop.f32.mrf.mxu2 }
 0xad6   :  { %v1681_v29 = vadd.f32 %v6071_v24, %v1680_v28 }
 0xad8   :  { %v1684_v30 = vadd.f32 %v1681_v29, %v1601_v11 }
 0xada   :  { %v1690_v31 = vsel %vm559_vm2, %v1684_v30, 0.0 }
 0xadb   :  { %1691 = vadd.xlane.f32.xlu2 %v1690_v31 }
 0xb42   :  { %v1689_v32 = vpop.xlane.xlu2 %1688 }
 0xb43   :  { %v1693_v33 = vmul.f32 %v1689_v32, %v7578_v35 }
 0xb45   :  { %v1695_v36 = vsub.f32 %v1683_v26, %v1693_v33 }
 0xb47   :  { %v1697_v37 = vmul.f32 %v1695_v36, %v1695_v36 }
 0xb49   :  { %v1699_v38 = vsel %vm557_vm5, %v1697_v37, 0.0 }
 0xb4a   :  { %1700 = vadd.xlane.f32.xlu2 %v1699_v38 }
 0xb4e   :  { %v1692_v39 = vpop.xlane.xlu2 %1691 }
 0xb4f   :  { %v1694_v40 = vmul.f32 %v1692_v39, %v7578_v35 }
 0xb51   :  { %v1696_v41 = vsub.f32 %v1684_v30, %v1694_v40 }
 0xb53   :  { %v1698_v42 = vmul.f32 %v1696_v41, %v1696_v41 }
 0xb55   :  { %v1702_v43 = vsel %vm559_vm2, %v1698_v42, 0.0 }
 0xb56   :  { %1703 = vadd.xlane.f32.xlu1 %v1702_v43 }
 0xbbd   :  { %v1701_v48 = vpop.xlane.xlu2 %1700 }
 0xbbe   :  { %v1705_v49 = vmul.f32 %v1701_v48, %v7578_v35 }
 0xbc0   :  { %v1707_v50 = vadd.f32 1e-05, %v1705_v49 }
 0xbc2   :  { %6151 = vrsqrt.f32 %v1707_v50  ;;  %vm1715_vm4 = vweird.f32 %v1707_v50 }
 0xbc8   :  { %v6152_v51 = vpop.eup %6151 }
 0xbc9   :  { %v1710_v52 = vmul.f32 %v6152_v51, %v1707_v50  ;;  %v1704_v53 = vpop.xlane.xlu1 %1703  ;;  %vm1716_vm1 = vweird.f32 %v6152_v51 }
 0xbca   :  { %v1706_v54 = vmul.f32 %v1704_v53, %v7578_v35  ;;  %vm1717_vm9 = vmor %vm1715_vm4, %vm1716_vm1 }
 0xbcb   :  { %v1711_v55 = vmul.f32 %v6152_v51, %v1710_v52 }
 0xbcc   :  { %v1708_v56 = vadd.f32 1e-05, %v1706_v54 }
 0xbcd   :  { %v1712_v57 = vmul.f32 0.5, %v1711_v55 }
 0xbce   :  { %6153 = vrsqrt.f32 %v1708_v56  ;;  %vm1725_vm11 = vweird.f32 %v1708_v56 }
 0xbcf   :  { %v1713_v58 = vsub.f32 1.5, %v1712_v57 }
 0xbd1   :  { %v1714_v59 = vmul.f32 %v6152_v51, %v1713_v58 }
 0xbd3   :  { %v1718_v61 = vsel %vm1717_vm9, %v6152_v51, %v1714_v59  ;;  %v5695_v51 = vld [vmem:[%s8626_s1 + $0x20] sm:$0xff] }
 0xbd4   :  { %v6154_v62 = vpop.eup %6153  ;;  %v1729_v63 = vmul.f32 %v1718_v61, %v1695_v36 }
 0xbd5   :  { %v1720_v4 = vmul.f32 %v6154_v62, %v1708_v56  ;;  %vm1726_vm10 = vweird.f32 %v6154_v62 }
 0xbd6   :  { %v1734_v5 = vmul.f32 %v6072_v60, %v1729_v63  ;;  %vm1727_vm12 = vmor %vm1725_vm11, %vm1726_vm10  ;;  %vm2692_vm11 = vcmask 1046528  }
 0xbd7   :  { %v1721_v3 = vmul.f32 %v6154_v62, %v1720_v4 }
 0xbd8   :  { %v7620_v6 = vadd.f32 %v6073_v2, %v1734_v5 }
 0xbd9   :  { %v1722_v9 = vmul.f32 0.5, %v1721_v3  ;;  %v6355_v3 = vld [vmem:[%s8623_s23] sm:$0xff] }
 0xbda   :  { %5693 = vmatmul.msk.f32.vlgmr.msra.gmra.mxu3 %vm557_vm5, %v7620_v6 }
 0xbdb   :  { %v1723_v10 = vsub.f32 1.5, %v1722_v9 }
 0xbdd   :  { %v1724_v11 = vmul.f32 %v6154_v62, %v1723_v10 }
 0xbdf   :  { %v1728_v12 = vsel %vm1727_vm12, %v6154_v62, %v1724_v11 }
 0xbe0   :  { %v1730_v16 = vmul.f32 %v1728_v12, %v1696_v41 }
 0xbe2   :  { %v1735_v17 = vmul.f32 %v6072_v60, %v1730_v16  ;;  %v6356_v16 = vld [vmem:[%s8623_s23 + $0x8] sm:$0x3f]  ;;  %s8641_s23 = sld [smem:[#allocation75_spill]] }
 0xbe4   :  { %v7624_v34 = vadd.f32 %v6073_v2, %v1735_v17 }
 0xbe6   :  { %5694 = vmatmul.msk.f32.gmra.mxu3 %vm557_vm5, %v7624_v34 }
 0xc5d   :  { %v1774_v7 = vpop.f32.mrf.mxu3 }
 0xc5e   :  { %v7629_v8 = vadd.f32 %v6074_v21, %v1774_v7 }
 0xc60   :  { %1789 = vrot.lane.b32.xlu0 %v7629_v8, %s6895_s24 }
 0xc69   :  { %v1777_v0 = vpop.f32.mrf.mxu3 }
 0xc6a   :  { %v7633_v22 = vadd.f32 %v6074_v21, %v1777_v0 }
 0xc6c   :  { %1791 = vrot.lane.b32.xlu2 %v7633_v22, %s6895_s24 }
 0xc74   :  { %1852 = vrot.lane.b32.xlu2 %v7633_v22, %s6896_s5 }
 0xc7c   :  { %2183 = vrot.lane.b32.xlu2 %v7633_v22, %s6903_s14 }
 0xc84   :  { %2181 = vrot.lane.b32.xlu2 %v7629_v8, %s6903_s14 }
 0xc8c   :  { %2177 = vrot.lane.b32.xlu2 %v7629_v8, %s6899_s26 }
 0xc94   :  { %1890 = vrot.lane.b32.xlu2 %v7629_v8, %s6897_s0 }
 0xc9c   :  { %1886 = vrot.lane.b32.xlu2 %v7629_v8, %s6898_s12 }
 0xca4   :  { %2049 = vrot.lane.b32.xlu2 %v7629_v8, %s6902_s7 }
 0xcac   :  { %2047 = vrot.lane.b32.xlu2 %v7633_v22, %s6900_s28 }
 0xcc6   :  { %v1792_v23 = vpop.permute.xlu2 %1791 }
 0xcc7   :  { %5700 = vmatpush.xpose.msk.msrb.mxu0 %vm1013_vm6, %v1792_v23 }
 0xcce   :  { %v1853_v24 = vpop.permute.xlu2 %1852 }
 0xccf   :  { %5704 = vmatpush.msk.msra.mxu1 %vm572_vm3, %v1853_v24 }
 0xcd2   :  { %v1790_v25 = vpop.permute.xlu0 %1789 }
 0xcd3   :  { %5701 = vmatpush.xpose.msk.msrb.mxu0 %vm1013_vm6, %v1790_v25 }
 0xcd6   :  { %5702 = vmatmul.msk.f32.vlgmr.msrb.gmra.mxu0 %vm1013_vm6, %v7629_v8 }
 0xcde   :  { %5703 = vmatmul.msk.f32.gmra.mxu0 %vm1013_vm6, %v7633_v22 }
 0xd53   :  { %v1818_v1 = vpop.f32.mrf.mxu0 }
 0xd54   :  { %v1824_v26 = vmul.f32 0.35355338, %v1818_v1 }
 0xd56   :  { %v1826_v27 = vadd.f32 %v1824_v26, %v7442_v14 }
 0xd58   :  { %v1828_v28 = vsel %vm1049_vm7, %v1826_v27, -inf }
 0xd59   :  { %1829 = vmax.xlane.f32.xlu1 %v1828_v28 }
 0xd5b   :  { %v1821_v29 = vpop.f32.mrf.mxu0 }
 0xd5c   :  { %v1825_v30 = vmul.f32 0.35355338, %v1821_v29 }
 0xd5e   :  { %v1827_v31 = vadd.f32 %v1825_v30, %v7447_v19  ;;  %v2184_v19 = vpop.permute.xlu2 %2183 }
 0xd60   :  { %v1831_v32 = vsel %vm1053_vm8, %v1827_v31, -inf }
 0xd61   :  { %1832 = vmax.xlane.f32.xlu1 %v1831_v32 }
 0xd66   :  { %v2182_v44 = vpop.permute.xlu2 %2181 }
 0xd6e   :  { %v2178_v46 = vpop.permute.xlu2 %2177 }
 0xd76   :  { %v1891_v53 = vpop.permute.xlu2 %1890 }
 0xd7e   :  { %v1887_v56 = vpop.permute.xlu2 %1886 }
 0xd86   :  { %v2050_v60 = vpop.permute.xlu2 %2049 }
 0xd8e   :  { %v2048_v62 = vpop.permute.xlu2 %2047 }
 0xdcc   :  { %v1830_v33 = vpop.xlane.xlu1 %1829 }
 0xdcd   :  { %v1834_v36 = vsub.f32 %v1826_v27, %v1830_v33 }
 0xdcf   :  { %v1836_v37 = vmul.f32 1.442695, %v1834_v36 }
 0xdd1   :  { %6155 = vpow2.f32 %v1836_v37 }
 0xdd4   :  { %v1833_v38 = vpop.xlane.xlu1 %1832 }
 0xdd5   :  { %v1835_v39 = vsub.f32 %v1827_v31, %v1833_v38 }
 0xdd7   :  { %v6156_v40 = vpop.eup %6155  ;;  %v1838_v41 = vmul.f32 1.442695, %v1835_v39 }
 0xdd8   :  { %v1840_v14 = vsel %vm1049_vm7, %v6156_v40, 0.0 }
 0xdd9   :  { %6157 = vpow2.f32 %v1838_v41  ;;  %1841 = vadd.xlane.f32.xlu1 %v1840_v14 }
 0xddf   :  { %v6158_v42 = vpop.eup %6157 }
 0xde0   :  { %v1843_v43 = vsel %vm1053_vm8, %v6158_v42, 0.0 }
 0xde1   :  { %1844 = vadd.xlane.f32.xlu0 %v1843_v43 }
 0xdf2   :  { %1850 = vrot.lane.b32.xlu1 %v7629_v8, %s6896_s5 }
 0xdf5   :  { %1888 = vrot.lane.b32.xlu0 %v7633_v22, %s6898_s12 }
 0xdfa   :  { %1892 = vrot.lane.b32.xlu1 %v7633_v22, %s6897_s0 }
 0xe02   :  { %2179 = vrot.lane.b32.xlu1 %v7633_v22, %s6899_s26 }
 0xe0a   :  { %2051 = vrot.lane.b32.xlu1 %v7633_v22, %s6902_s7 }
 0xe12   :  { %2045 = vrot.lane.b32.xlu1 %v7629_v8, %s6900_s28 }
 0xe4c   :  { %v1842_v45 = vpop.xlane.xlu1 %1841 }
 0xe4d   :  { %6159 = vrcp.f32 %v1842_v45 }
 0xe53   :  { %v6160_v48 = vpop.eup %6159 }
 0xe54   :  { %v1845_v47 = vpop.xlane.xlu0 %1844  ;;  %v1848_v49 = vmul.f32 %v6160_v48, %v6156_v40 }
 0xe55   :  { %6161 = vrcp.f32 %v1845_v47 }
 0xe5b   :  { %v6162_v52 = vpop.eup %6161 }
 0xe5c   :  { %v1849_v55 = vmul.f32 %v6162_v52, %v6158_v42 }
 0xe64   :  { %v1851_v50 = vpop.permute.xlu1 %1850 }
 0xe65   :  { %1878 = vmatpush.msra.mxu1 %v1851_v50 }
 0xe66   :  { %5705 = vmatmul.msk.f32.vlgmr.msra.gmra.mxu1 %vm1049_vm7, %v1848_v49 }
 0xe67   :  { %2037 = vmatpush.msrb.mxu1 %v5695_v51  ;;  %v1889_v58 = vpop.permute.xlu0 %1888 }
 0xe69   :  { %5727 = vmatpush.xpose.msk.msra.mxu1 %vm1013_vm6, %v2184_v19 }
 0xe6c   :  { %v1893_v54 = vpop.permute.xlu1 %1892 }
 0xe6d   :  { %5728 = vmatpush.xpose.msk.msra.mxu1 %vm1013_vm6, %v2182_v44  ;;  %5707 = vmatpush.xpose.msk.msrb.mxu2 %vm1013_vm6, %v1893_v54 }
 0xe6e   :  { %5706 = vmatmul.msk.f32.gmra.mxu1 %vm1049_vm7, %v1849_v55 }
 0xe71   :  { %5708 = vmatpush.xpose.msk.msrb.mxu2 %vm1013_vm6, %v1891_v53 }
 0xe74   :  { %5709 = vmatmul.msk.f32.vlgmr.msrb.gmra.mxu2 %vm1013_vm6, %v1887_v56  ;;  %v2180_v57 = vpop.permute.xlu1 %2179 }
 0xe7c   :  { %5710 = vmatmul.msk.f32.gmra.mxu2 %vm1013_vm6, %v1889_v58  ;;  %v2052_v59 = vpop.permute.xlu1 %2051 }
 0xe7d   :  { %5718 = vmatpush.xpose.msk.msra.mxu2 %vm1013_vm6, %v2052_v59 }
 0xe81   :  { %5719 = vmatpush.xpose.msk.msra.mxu2 %vm1013_vm6, %v2050_v60 }
 0xe84   :  { %v2046_v61 = vpop.permute.xlu1 %2045 }
 0xe85   :  { %5720 = vmatmul.msk.f32.vlgmr.msra.gmra.mxu2 %vm1013_vm6, %v2046_v61 }
 0xe8d   :  { %5721 = vmatmul.msk.f32.gmra.mxu2 %vm1013_vm6, %v2048_v62 }
 0xee3   :  { %v1880_v63 = vpop.f32.mrf.mxu1 }
 0xee4   :  { %5716 = vmatmul.msk.f32.vlgmr.msrb.gmra.mxu1 %vm1013_vm6, %v1880_v63 }
 0xeeb   :  { %v1883_v2 = vpop.f32.mrf.mxu1 }
 0xeec   :  { %5717 = vmatmul.msk.f32.gmra.mxu1 %vm1013_vm6, %v1883_v2 }
 0xef4   :  { %5729 = vmatmul.msk.f32.vlgmr.msra.gmra.mxu1 %vm1013_vm6, %v2178_v46 }
 0xef7   :  { %v1919_v4 = vpop.f32.mrf.mxu2 }
 0xef8   :  { %v1925_v5 = vmul.f32 0.35355338, %v1919_v4 }
 0xefa   :  { %v1927_v9 = vadd.f32 %v6355_v3, %v1925_v5 }
 0xefc   :  { %5730 = vmatmul.msk.f32.gmra.mxu1 %vm1013_vm6, %v2180_v57  ;;  %v1929_v10 = vsel %vm1049_vm7, %v1927_v9, -inf }
 0xefd   :  { %1930 = vmax.xlane.f32.xlu2 %v1929_v10 }
 0xeff   :  { %v1922_v11 = vpop.f32.mrf.mxu2 }
 0xf00   :  { %v1926_v12 = vmul.f32 0.35355338, %v1922_v11 }
 0xf02   :  { %v1928_v17 = vadd.f32 %v6356_v16, %v1926_v12 }
 0xf04   :  { %v1932_v21 = vsel %vm1053_vm8, %v1928_v17, -inf }
 0xf05   :  { %1933 = vmax.xlane.f32.xlu1 %v1932_v21 }
 0xf08   :  { %v2078_v7 = vpop.f32.mrf.mxu2 }
 0xf09   :  { %v2084_v0 = vmul.f32 0.35355338, %v2078_v7 }
 0xf0b   :  { %v7699_v23 = vadd.f32 %v6355_v3, %v2084_v0 }
 0xf0d   :  { %v2088_v24 = vsel %vm1049_vm7, %v7699_v23, -inf }
 0xf0e   :  { %2089 = vmax.xlane.f32.xlu0 %v2088_v24 }
 0xf10   :  { %v2081_v25 = vpop.f32.mrf.mxu2 }
 0xf11   :  { %v2085_v1 = vmul.f32 0.35355338, %v2081_v25 }
 0xf13   :  { %v2087_v26 = vadd.f32 %v6356_v16, %v2085_v1  ;;  %v948_v1 = vadd.f32 %v7512_v18, %v7507_v13  ;;  %v951_v13 = vadd.f32 %v7515_v20, %v7509_v15 }
 0xf15   :  { %v2091_v27 = vsel %vm1053_vm8, %v2087_v26, -inf }
 0xf16   :  { %2092 = vmax.xlane.f32.xlu2 %v2091_v27 }
 0xf61   :  { %v7704_v28 = vpop.f32.mrf.mxu1 }
 0xf69   :  { %v7706_v29 = vpop.f32.mrf.mxu1 }
 0xf70   :  { %v1931_v30 = vpop.xlane.xlu2 %1930 }
 0xf71   :  { %v1935_v31 = vsub.f32 %v1927_v9, %v1931_v30  ;;  %v2210_v32 = vpop.f32.mrf.mxu1 }
 0xf72   :  { %v2216_v33 = vmul.f32 0.35355338, %v2210_v32 }
 0xf73   :  { %v1937_v36 = vmul.f32 1.442695, %v1935_v31 }
 0xf74   :  { %v2218_v37 = vadd.f32 %v6355_v3, %v2216_v33 }
 0xf75   :  { %6163 = vpow2.f32 %v1937_v36 }
 0xf76   :  { %v2220_v38 = vsel %vm1049_vm7, %v2218_v37, -inf }
 0xf77   :  { %2221 = vmax.xlane.f32.xlu1 %v2220_v38 }
 0xf78   :  { %v1934_v19 = vpop.xlane.xlu1 %1933 }
 0xf79   :  { %v2213_v39 = vpop.f32.mrf.mxu1  ;;  %v1936_v44 = vsub.f32 %v1928_v17, %v1934_v19  ;;  %v2574_v17 = vld [vmem:[%s8636_s17] sm:$0xff]  ;;  %v5696_v19 = vld [vmem:[%s8626_s1 + $0x28] sm:$0xff] }
 0xf7a   :  { %v2217_v40 = vmul.f32 0.35355338, %v2213_v39  ;;  %2008 = vmatpush.msra.mxu0 %v5696_v19  ;;  %v5743_v19 = vld [vmem:[%s8629_s11 + $0x40] sm:$0xff] }
 0xf7b   :  { %v7709_v41 = vpop.eup %6163  ;;  %v1939_v45 = vmul.f32 1.442695, %v1936_v44 }
 0xf7c   :  { %v1941_v14 = vsel %vm1049_vm7, %v7709_v41, 0.0  ;;  %v2219_v42 = vadd.f32 %v6356_v16, %v2217_v40  ;;  %v2576_v16 = vld [vmem:[%s8636_s17 + $0x10] sm:$0xff] }
 0xf7d   :  { %1942 = vadd.xlane.f32.xlu2 %v1941_v14  ;;  %6165 = vpow2.f32 %v1939_v45 }
 0xf7e   :  { %v2223_v43 = vsel %vm1053_vm8, %v2219_v42, -inf }
 0xf7f   :  { %2224 = vmax.xlane.f32.xlu0 %v2223_v43  ;;  %v5698_v43 = vld [vmem:[%s8626_s1 + $0x38] sm:$0xff] }
 0xf81   :  { %v2090_v49 = vpop.xlane.xlu0 %2089 }
 0xf82   :  { %v2094_v2 = vsub.f32 %v7699_v23, %v2090_v49 }
 0xf83   :  { %v7720_v46 = vpop.eup %6165 }
 0xf84   :  { %v1944_v47 = vsel %vm1053_vm8, %v7720_v46, 0.0  ;;  %v2096_v4 = vmul.f32 1.442695, %v2094_v2  ;;  %v6076_v2 = vld [vmem:[%s8627_s20 + $0x1] ss:$0 sm:$0xff]  ;;  %s8645_s20 = sld [smem:[#allocation84_spill]] }
 0xf89   :  { %v2093_v48 = vpop.xlane.xlu2 %2092 }
 0xf8a   :  { %v2095_v5 = vsub.f32 %v2087_v26, %v2093_v48  ;;  %v6066_v26 = vld [vmem:[#allocation8] ss:$0 sm:$0xff] }
 0xf8b   :  { %v7745_v31 = vadd.f32 %v6066_v26, %v948_v1  ;;  %v7754_v38 = vadd.f32 %v6066_v26, %v951_v13 }
 0xf8c   :  { %v2098_v3 = vmul.f32 1.442695, %v2095_v5 }
 0xf90   :  { %2242 = vrot.lane.b32.xlu1 %v7629_v8, %s6905_s13 }
 0xf93   :  { %2244 = vrot.lane.b32.xlu0 %v7633_v22, %s6905_s13 }
 0xf95   :  { %1953 = vrot.lane.b32.xlu2 %v7633_v22, %s6904_s9 }
 0xfbd   :  { %1945 = vadd.xlane.f32.xlu0 %v1944_v47 }
 0xfd1   :  { %2110 = vrot.lane.b32.xlu0 %v7629_v8, %s6906_s4 }
 0xfea   :  { %v2222_v50 = vpop.xlane.xlu1 %2221 }
 0xfeb   :  { %v2226_v51 = vsub.f32 %v2218_v37, %v2222_v50 }
 0xfed   :  { %v2228_v52 = vmul.f32 1.442695, %v2226_v51 }
 0xfef   :  { %6167 = vpow2.f32 %v2228_v52 }
 0xff0   :  { %v1943_v53 = vpop.xlane.xlu2 %1942 }
 0xff2   :  { %v2225_v54 = vpop.xlane.xlu0 %2224 }
 0xff3   :  { %v2227_v55 = vsub.f32 %v2219_v42, %v2225_v54 }
 0xff5   :  { %v6168_v56 = vpop.eup %6167  ;;  %v2230_v57 = vmul.f32 1.442695, %v2227_v55 }
 0xff6   :  { %v2232_v58 = vsel %vm1049_vm7, %v6168_v56, 0.0 }
 0xff7   :  { %6169 = vpow2.f32 %v2230_v57  ;;  %2233 = vadd.xlane.f32.xlu1 %v2232_v58 }
 0xff8   :  { %v1954_v59 = vpop.permute.xlu2 %1953  ;;  %6171 = vpow2.f32 %v2096_v4 }
 0xff9   :  { %5711 = vmatpush.msk.msrb.mxu3 %vm572_vm3, %v1954_v59  ;;  %6173 = vpow2.f32 %v2098_v3 }
 0xffd   :  { %v6170_v60 = vpop.eup %6169 }
 0xffe   :  { %v2235_v61 = vsel %vm1053_vm8, %v6170_v60, 0.0  ;;  %v6172_v9 = vpop.eup %6171 }
 0xfff   :  { %2236 = vadd.xlane.f32.xlu2 %v2235_v61  ;;  %v2100_v10 = vsel %vm1049_vm7, %v6172_v9, 0.0  ;;  %v6174_v11 = vpop.eup %6173 }
0x1000   :  { %v2103_v12 = vsel %vm1053_vm8, %v6174_v11, 0.0  ;;  %vm2657_vm8 = vcmask 121856  }
0x1002   :  { %v2243_v63 = vpop.permute.xlu1 %2242 }
0x1005   :  { %v2245_v62 = vpop.permute.xlu0 %2244 }
0x1006   :  { %5731 = vmatpush.msk.msrb.mxu2 %vm572_vm3, %v2245_v62 }
0x1008   :  { %2270 = vmatpush.msrb.mxu2 %v2243_v63 }
0x1010   :  { %1951 = vrot.lane.b32.xlu1 %v7629_v8, %s6904_s9  ;;  %v2577_v8 = vld [vmem:[%s8636_s17 + $0x18] sm:$0xff] }
0x1011   :  { %2600 = vmatpush.msra.mxu2 %v2577_v8 }
0x1013   :  { %2601 = vmatpush.msra.mxu2 %v2576_v16 }
0x1017   :  { %2112 = vrot.lane.b32.xlu2 %v7633_v22, %s6906_s4  ;;  %v2575_v22 = vld [vmem:[%s8636_s17 + $0x8] sm:$0xff] }
0x1018   :  { %2602 = vmatpush.msra.mxu2 %v2575_v22 }
0x101a   :  { %2603 = vmatpush.msra.mxu2 %v2574_v17 }
0x1030   :  { %v1946_v27 = vpop.xlane.xlu0 %1945 }
0x103a   :  { %2101 = vadd.xlane.f32.xlu1 %v2100_v10 }
0x1040   :  { %2104 = vadd.xlane.f32.xlu2 %v2103_v12 }
0x1043   :  { %v2111_v18 = vpop.permute.xlu0 %2110 }
0x106a   :  { %v2234_v21 = vpop.xlane.xlu1 %2233 }
0x106b   :  { %6175 = vrcp.f32 %v2234_v21 }
0x1071   :  { %v6176_v7 = vpop.eup %6175 }
0x1072   :  { %v2240_v0 = vmul.f32 %v6176_v7, %v6168_v56  ;;  %v2237_v23 = vpop.xlane.xlu2 %2236  ;;  %v7793_v7 = vld [vmem:[%s8637_s18] sm:$0xff] }
0x1073   :  { %6177 = vrcp.f32 %v2237_v23 }
0x1074   :  { %5732 = vmatmul.msk.f32.vlgmr.msrb.gmra.mxu2 %vm1049_vm7, %v2240_v0  ;;  %6179 = vrcp.f32 %v1943_v53  ;;  %v5697_v53 = vld [vmem:[%s8626_s1 + $0x30] sm:$0xff]  ;;  %s8644_s1 = sld [smem:[#allocation76_spill]] }
0x1075   :  { %6181 = vrcp.f32 %v1946_v27  ;;  %2167 = vmatpush.msrb.mxu0 %v5697_v53 }
0x1079   :  { %v6178_v24 = vpop.eup %6177 }
0x107a   :  { %v2241_v25 = vmul.f32 %v6178_v24, %v6170_v60  ;;  %v6180_v30 = vpop.eup %6179  ;;  %v2113_v36 = vpop.permute.xlu2 %2112  ;;  %v7798_v24 = vld [vmem:[%s8637_s18 + $0x8] sm:$0x7f] }
0x107b   :  { %v1949_v32 = vmul.f32 %v6180_v30, %v7709_v41  ;;  %v6182_v37 = vpop.eup %6181 }
0x107c   :  { %5733 = vmatmul.msk.f32.gmra.mxu2 %vm1049_vm7, %v2241_v25  ;;  %v1950_v39 = vmul.f32 %v6182_v37, %v7720_v46  ;;  %v6075_v46 = vld [vmem:[#allocation25] ss:$0 sm:$0xff] }
0x1082   :  { %v1952_v33 = vpop.permute.xlu1 %1951 }
0x1083   :  { %1979 = vmatpush.msrb.mxu3 %v1952_v33 }
0x1084   :  { %5712 = vmatmul.msk.f32.vlgmr.msrb.gmra.mxu3 %vm1049_vm7, %v1949_v32  ;;  %5758 = vmatmul.msk.f32.vlgmr.msra.gmra.mxu2 %vm557_vm5, %v7745_v31 }
0x1085   :  { %5722 = vmatpush.msk.msra.mxu3 %vm572_vm3, %v2113_v36 }
0x1087   :  { %2138 = vmatpush.msra.mxu3 %v2111_v18 }
0x1089   :  { %2299 = vmatpush.msrb.mxu3 %v5698_v43  ;;  %v5744_v43 = vld [vmem:[%s8629_s11 + $0x48] sm:$0xff] }
0x108c   :  { %5713 = vmatmul.msk.f32.gmra.mxu3 %vm1049_vm7, %v1950_v39  ;;  %5759 = vmatmul.msk.f32.gmra.mxu2 %vm557_vm5, %v7754_v38 }
0x10ad   :  { %v2102_v40 = vpop.xlane.xlu1 %2101 }
0x10ae   :  { %6183 = vrcp.f32 %v2102_v40  ;;  %v5750_v40 = vld [vmem:[%s8629_s11 + $0x78] sm:$0xff] }
0x10af   :  { %2443 = vmatpush.msrb.mxu1 %v5750_v40 }
0x10b3   :  { %v2105_v41 = vpop.xlane.xlu2 %2104 }
0x10b4   :  { %v6184_v14 = vpop.eup %6183  ;;  %6185 = vrcp.f32 %v2105_v41  ;;  %v5749_v41 = vld [vmem:[%s8629_s11 + $0x70] sm:$0xff] }
0x10b5   :  { %v2108_v15 = vmul.f32 %v6184_v14, %v6172_v9  ;;  %2444 = vmatpush.msrb.mxu1 %v5749_v41  ;;  %v5748_v14 = vld [vmem:[%s8629_s11 + $0x68] sm:$0xff]  ;;  %v2611_v41 = vld [vmem:[%s8638_s16] sm:$0xff] }
0x10b7   :  { %5723 = vmatmul.msk.f32.vlgmr.msra.gmra.mxu3 %vm1049_vm7, %v2108_v15  ;;  %v5747_v15 = vld [vmem:[%s8629_s11 + $0x60] sm:$0xff]  ;;  %2445 = vmatpush.msrb.mxu1 %v5748_v14 }
0x10b9   :  { %2446 = vmatpush.msrb.mxu1 %v5747_v15 }
0x10ba   :  { %v6186_v20 = vpop.eup %6185 }
0x10bb   :  { %v2109_v42 = vmul.f32 %v6186_v20, %v6174_v11  ;;  %v5746_v20 = vld [vmem:[%s8629_s11 + $0x58] sm:$0xff] }
0x10bc   :  { %2447 = vmatpush.msrb.mxu1 %v5746_v20 }
0x10bf   :  { %5724 = vmatmul.msk.f32.gmra.mxu3 %vm1049_vm7, %v2109_v42  ;;  %v5745_v42 = vld [vmem:[%s8629_s11 + $0x50] sm:$0xff]  ;;  %s8647_s11 = sld [smem:[#allocation73_spill]] }
0x10c0   :  { %2448 = vmatpush.msrb.mxu1 %v5745_v42 }
0x10c2   :  { %2449 = vmatpush.msrb.mxu1 %v5744_v43 }
0x10c4   :  { %2450 = vmatpush.msrb.mxu1 %v5743_v19 }
0x10f7   :  { %v2272_v44 = vpop.f32.mrf.mxu2 }
0x10f8   :  { %5734 = vmatmul.msk.f32.vlgmr.msrb.gmra.mxu3 %vm1013_vm6, %v2272_v44 }
0x10ff   :  { %v2275_v45 = vpop.f32.mrf.mxu2 }
0x1100   :  { %5735 = vmatmul.msk.f32.gmra.mxu3 %vm1013_vm6, %v2275_v45 }
0x1107   :  { %v1981_v47 = vpop.f32.mrf.mxu3  ;;  %v2605_v48 = vpop.f32.mrf.mxu2 }
0x1108   :  { %v7766_v49 = vadd.f32 %v6075_v46, %v2605_v48  ;;  %5714 = vmatmul.msk.f32.vlgmr.msra.gmra.mxu0 %vm1013_vm6, %v1981_v47 }
0x110a   :  { %2618 = vrot.lane.b32.xlu1 %v7766_v49, %s6895_s24 }
0x110f   :  { %v1984_v50 = vpop.f32.mrf.mxu3  ;;  %v2608_v51 = vpop.f32.mrf.mxu2 }
0x1110   :  { %v7771_v52 = vadd.f32 %v6075_v46, %v2608_v51  ;;  %5715 = vmatmul.msk.f32.gmra.mxu0 %vm1013_vm6, %v1984_v50 }
0x1112   :  { %2620 = vrot.lane.b32.xlu0 %v7771_v52, %s6895_s24 }
0x113a   :  { %v2140_v54 = vpop.f32.mrf.mxu3 }
0x113b   :  { %5725 = vmatmul.msk.f32.vlgmr.msrb.gmra.mxu0 %vm1013_vm6, %v2140_v54 }
0x1142   :  { %v2143_v55 = vpop.f32.mrf.mxu3 }
0x1143   :  { %5726 = vmatmul.msk.f32.gmra.mxu0 %vm1013_vm6, %v2143_v55 }
0x117b   :  { %v2301_v61 = vpop.f32.mrf.mxu3 }
0x117c   :  { %v2619_v57 = vpop.permute.xlu1 %2618 }
0x1183   :  { %v2304_v8 = vpop.f32.mrf.mxu3 }
0x1184   :  { %v2621_v56 = vpop.permute.xlu0 %2620 }
0x1185   :  { %5760 = vmatpush.xpose.msk.msra.mxu3 %vm1013_vm6, %v2621_v56  ;;  %v2010_v58 = vpop.f32.mrf.mxu0  ;;  %v5741_v56 = vld [vmem:[%s8628_s6 + $0x38] sm:$0xff] }
0x1186   :  { %v2040_v60 = vadd.f32 %v7704_v28, %v2010_v58  ;;  %2413 = vmatpush.msra.mxu0 %v5741_v56  ;;  %v5740_v58 = vld [vmem:[%s8628_s6 + $0x30] sm:$0xff] }
0x1188   :  { %2414 = vmatpush.msra.mxu0 %v5740_v58 }
0x1189   :  { %5761 = vmatpush.xpose.msk.msra.mxu3 %vm1013_vm6, %v2619_v57 }
0x118c   :  { %5762 = vmatmul.msk.f32.vlgmr.msra.gmra.mxu3 %vm1013_vm6, %v7766_v49 }
0x118d   :  { %v2013_v59 = vpop.f32.mrf.mxu0 }
0x118e   :  { %v2043_v3 = vadd.f32 %v7706_v29, %v2013_v59  ;;  %v5739_v59 = vld [vmem:[%s8628_s6 + $0x28] sm:$0xff] }
0x118f   :  { %2415 = vmatpush.msra.mxu0 %v5739_v59 }
0x1194   :  { %5763 = vmatmul.msk.f32.gmra.mxu3 %vm1013_vm6, %v7771_v52 }
0x11b8   :  { %v2169_v62 = vpop.f32.mrf.mxu0 }
0x11b9   :  { %v2175_v63 = vadd.f32 %v2169_v62, %v2040_v60  ;;  %v5738_v60 = vld [vmem:[%s8628_s6 + $0x20] sm:$0xff]  ;;  %s8646_s6 = sld [smem:[#allocation85_spill]] }
0x11ba   :  { %2416 = vmatpush.msra.mxu0 %v5738_v60 }
0x11bb   :  { %v2307_v4 = vadd.f32 %v2301_v61, %v2175_v63 }
0x11bd   :  { %v2312_v5 = vadd.f32 %v6076_v2, %v2307_v4 }
0x11bf   :  { %v2314_v9 = vadd.f32 %v2312_v5, %v7620_v6 }
0x11c0   :  { %v2172_v10 = vpop.f32.mrf.mxu0 }
0x11c1   :  { %v2176_v11 = vadd.f32 %v2172_v10, %v2043_v3  ;;  %v2320_v12 = vsel %vm557_vm5, %v2314_v9, 0.0 }
0x11c2   :  { %2321 = vadd.xlane.f32.xlu2 %v2320_v12 }
0x11c3   :  { %v2308_v16 = vadd.f32 %v2304_v8, %v2176_v11 }
0x11c5   :  { %v2313_v28 = vadd.f32 %v6076_v2, %v2308_v16 }
0x11c7   :  { %v2315_v22 = vadd.f32 %v2313_v28, %v7624_v34 }
0x11c9   :  { %v2323_v17 = vsel %vm559_vm2, %v2315_v22, 0.0 }
0x11ca   :  { %2324 = vadd.xlane.f32.xlu0 %v2323_v17 }
0x120f   :  { %v2647_v21 = vpop.f32.mrf.mxu3 }
0x1210   :  { %v2653_v29 = vmul.f32 0.35355338, %v2647_v21 }
0x1212   :  { %v2655_v6 = vadd.f32 %v2653_v29, %v7793_v7 }
0x1214   :  { %v2658_v0 = vsel %vm2657_vm8, %v2655_v6, -inf }
0x1215   :  { %2659 = vmax.xlane.f32.xlu2 %v2658_v0 }
0x1217   :  { %v2650_v23 = vpop.f32.mrf.mxu3 }
0x1218   :  { %v2654_v25 = vmul.f32 0.35355338, %v2650_v23 }
0x121a   :  { %v2656_v34 = vadd.f32 %v2654_v25, %v7798_v24 }
0x121c   :  { %v2662_v1 = vsel %vm2661_vm13, %v2656_v34, -inf }
0x121d   :  { %2663 = vmax.xlane.f32.xlu1 %v2662_v1 }
0x1235   :  { %v2322_v26 = vpop.xlane.xlu2 %2321 }
0x1236   :  { %v2326_v27 = vmul.f32 %v2322_v26, %v7578_v35  ;;  %2724 = vrot.lane.b32.xlu1 %v7771_v52, %s6897_s0 }
0x1238   :  { %v7805_v30 = vsub.f32 %v2314_v9, %v2326_v27 }
0x123a   :  { %v2330_v32 = vmul.f32 %v7805_v30, %v7805_v30 }
0x123c   :  { %v2332_v33 = vsel %vm557_vm5, %v2330_v32, 0.0 }
0x123d   :  { %v2325_v36 = vpop.xlane.xlu0 %2324  ;;  %2333 = vadd.xlane.f32.xlu2 %v2332_v33 }
0x123e   :  { %v2327_v13 = vmul.f32 %v2325_v36, %v7578_v35  ;;  %2877 = vrot.lane.b32.xlu1 %v7766_v49, %s6900_s28 }
0x1240   :  { %v7813_v18 = vsub.f32 %v2315_v22, %v2327_v13  ;;  %v6077_v22 = vld [vmem:[%s8630_s10 + $0x1] ss:$0 sm:$0xff]  ;;  %s8648_s10 = sld [smem:[#allocation74_spill]] }
0x1242   :  { %v2331_v37 = vmul.f32 %v7813_v18, %v7813_v18 }
0x1244   :  { %v2335_v39 = vsel %vm559_vm2, %v2331_v37, 0.0 }
0x1245   :  { %2336 = vadd.xlane.f32.xlu2 %v2335_v39 }
0x1246   :  { %2879 = vrot.lane.b32.xlu1 %v7771_v52, %s6900_s28 }
0x1288   :  { %v2660_v44 = vpop.xlane.xlu2 %2659 }
0x1289   :  { %v2665_v45 = vsub.f32 %v2655_v6, %v2660_v44  ;;  %v6078_v6 = vld [vmem:[%s8631_s27 + $0x1] ss:$0 sm:$0xff] }
0x128b   :  { %v2667_v46 = vmul.f32 1.442695, %v2665_v45 }
0x128d   :  { %6187 = vpow2.f32 %v2667_v46  ;;  %v6079_v46 = vld [vmem:[%s8632_s29 + $0x1] ss:$0 sm:$0xff] }
0x1290   :  { %v2664_v47 = vpop.xlane.xlu1 %2663 }
0x1291   :  { %v2666_v48 = vsub.f32 %v2656_v34, %v2664_v47 }
0x1293   :  { %v7828_v50 = vpop.eup %6187  ;;  %v2669_v51 = vmul.f32 1.442695, %v2666_v48 }
0x1294   :  { %v2671_v53 = vsel %vm2657_vm8, %v7828_v50, 0.0 }
0x1295   :  { %6189 = vpow2.f32 %v2669_v51  ;;  %2672 = vadd.xlane.f32.xlu2 %v2671_v53 }
0x129b   :  { %v7832_v54 = vpop.eup %6189 }
0x129c   :  { %v2674_v55 = vsel %vm2661_vm13, %v7832_v54, 0.0 }
0x129d   :  { %2675 = vadd.xlane.f32.xlu0 %v2674_v55 }
0x12a8   :  { %v2725_v57 = vpop.permute.xlu1 %2724 }
0x12a9   :  { %5767 = vmatpush.xpose.msk.msra.mxu1 %vm1013_vm6, %v2725_v57 }
0x12ad   :  { %2683 = vrot.lane.b32.xlu2 %v7771_v52, %s6896_s5 }
0x12b0   :  { %v2334_v61 = vpop.xlane.xlu2 %2333  ;;  %v2878_v55 = vpop.permute.xlu1 %2877 }
0x12b1   :  { %v2338_v62 = vmul.f32 %v2334_v61, %v7578_v35  ;;  %2681 = vrot.lane.b32.xlu0 %v7766_v49, %s6896_s5 }
0x12b3   :  { %v2340_v63 = vadd.f32 1e-05, %v2338_v62 }
0x12b5   :  { %6191 = vrsqrt.f32 %v2340_v63  ;;  %2722 = vrot.lane.b32.xlu2 %v7766_v49, %s6897_s0  ;;  %vm2348_vm15 = vweird.f32 %v2340_v63 }
0x12b8   :  { %v2337_v2 = vpop.xlane.xlu2 %2336  ;;  %v2880_v56 = vpop.permute.xlu1 %2879 }
0x12b9   :  { %v2339_v4 = vmul.f32 %v2337_v2, %v7578_v35  ;;  %2718 = vrot.lane.b32.xlu0 %v7766_v49, %s6898_s12 }
0x12bb   :  { %v6192_v5 = vpop.eup %6191  ;;  %v2341_v3 = vadd.f32 1e-05, %v2339_v4 }
0x12bc   :  { %v2343_v9 = vmul.f32 %v6192_v5, %v2340_v63  ;;  %vm2349_vm14 = vweird.f32 %v6192_v5 }
0x12bd   :  { %6193 = vrsqrt.f32 %v2341_v3  ;;  %2720 = vrot.lane.b32.xlu2 %v7771_v52, %s6898_s12  ;;  %vm2350_vm1 = vmor %vm2348_vm15, %vm2349_vm14  ;;  %vm2358_vm9 = vweird.f32 %v2341_v3 }
0x12be   :  { %v2344_v10 = vmul.f32 %v6192_v5, %v2343_v9 }
0x12c0   :  { %v2345_v11 = vmul.f32 0.5, %v2344_v10 }
0x12c1   :  { %2883 = vrot.lane.b32.xlu0 %v7771_v52, %s6902_s7 }
0x12c2   :  { %v2346_v12 = vsub.f32 1.5, %v2345_v11 }
0x12c3   :  { %v6194_v8 = vpop.eup %6193 }
0x12c4   :  { %v2347_v16 = vmul.f32 %v6192_v5, %v2346_v12  ;;  %v2353_v28 = vmul.f32 %v6194_v8, %v2341_v3  ;;  %vm2359_vm4 = vweird.f32 %v6194_v8 }
0x12c5   :  { %2881 = vrot.lane.b32.xlu2 %v7766_v49, %s6902_s7  ;;  %vm2360_vm10 = vmor %vm2358_vm9, %vm2359_vm4 }
0x12c6   :  { %v2351_v17 = vsel %vm2350_vm1, %v6192_v5, %v2347_v16  ;;  %v2354_v21 = vmul.f32 %v6194_v8, %v2353_v28 }
0x12c7   :  { %v2362_v29 = vmul.f32 %v2351_v17, %v7805_v30 }
0x12c8   :  { %v2355_v0 = vmul.f32 0.5, %v2354_v21 }
0x12c9   :  { %v2367_v23 = vmul.f32 %v6077_v22, %v2362_v29  ;;  %3015 = vrot.lane.b32.xlu0 %v7771_v52, %s6903_s14 }
0x12ca   :  { %v2356_v25 = vsub.f32 1.5, %v2355_v0 }
0x12cb   :  { %v7862_v34 = vadd.f32 %v6078_v6, %v2367_v23 }
0x12cc   :  { %v2357_v1 = vmul.f32 %v6194_v8, %v2356_v25 }
0x12cd   :  { %3013 = vrot.lane.b32.xlu2 %v7766_v49, %s6903_s14  ;;  %5752 = vmatmul.msk.f32.vlgmr.msra.gmra.mxu0 %vm557_vm5, %v7862_v34 }
0x12ce   :  { %v2361_v26 = vsel %vm2360_vm10, %v6194_v8, %v2357_v1  ;;  %vm3153_vm10 = vcmask 260096  }
0x12cf   :  { %v2363_v27 = vmul.f32 %v2361_v26, %v7813_v18 }
0x12d1   :  { %3009 = vrot.lane.b32.xlu0 %v7766_v49, %s6899_s26  ;;  %v2368_v30 = vmul.f32 %v6077_v22, %v2363_v27 }
0x12d3   :  { %v7871_v32 = vadd.f32 %v6078_v6, %v2368_v30 }
0x12d5   :  { %3011 = vrot.lane.b32.xlu2 %v7771_v52, %s6899_s26  ;;  %5753 = vmatmul.msk.f32.gmra.mxu0 %vm557_vm5, %v7871_v32 }
0x1308   :  { %v2673_v33 = vpop.xlane.xlu2 %2672 }
0x1309   :  { %6195 = vrcp.f32 %v2673_v33 }
0x130f   :  { %v6196_v37 = vpop.eup %6195 }
0x1310   :  { %v2684_v36 = vpop.permute.xlu2 %2683  ;;  %v2676_v18 = vpop.xlane.xlu0 %2675  ;;  %v2679_v39 = vmul.f32 %v6196_v37, %v7828_v50 }
0x1311   :  { %5764 = vmatpush.msk.msrb.mxu0 %vm2692_vm11, %v2684_v36  ;;  %6197 = vrcp.f32 %v2676_v18 }
0x1317   :  { %v6198_v14 = vpop.eup %6197 }
0x1318   :  { %v2723_v13 = vpop.permute.xlu2 %2722  ;;  %v2680_v42 = vmul.f32 %v6198_v14, %v7832_v54 }
0x1319   :  { %5768 = vmatpush.xpose.msk.msra.mxu1 %vm1013_vm6, %v2723_v13 }
0x1320   :  { %v2721_v15 = vpop.permute.xlu2 %2720 }
0x1323   :  { %v2682_v40 = vpop.permute.xlu0 %2681 }
0x1324   :  { %2710 = vmatpush.msrb.mxu0 %v2682_v40 }
0x1325   :  { %5765 = vmatmul.msk.f32.vlgmr.msrb.gmra.mxu0 %vm2657_vm8, %v2679_v39 }
0x1326   :  { %2869 = vmatpush.msra.mxu0 %v2611_v41 }
0x1328   :  { %v2882_v19 = vpop.permute.xlu2 %2881 }
0x132b   :  { %v2719_v20 = vpop.permute.xlu0 %2718 }
0x132d   :  { %5766 = vmatmul.msk.f32.gmra.mxu0 %vm2657_vm8, %v2680_v42 }
0x1330   :  { %v3014_v45 = vpop.permute.xlu2 %3013 }
0x1333   :  { %v2884_v43 = vpop.permute.xlu0 %2883 }
0x1338   :  { %v3012_v60 = vpop.permute.xlu2 %3011 }
0x133b   :  { %v3016_v44 = vpop.permute.xlu0 %3015 }
0x133c   :  { %5787 = vmatpush.xpose.msk.msrb.mxu0 %vm1013_vm6, %v3016_v44 }
0x1340   :  { %5788 = vmatpush.xpose.msk.msrb.mxu0 %vm1013_vm6, %v3014_v45 }
0x1343   :  { %v3010_v59 = vpop.permute.xlu0 %3009 }
0x134a   :  { %v2418_v47 = vpop.f32.mrf.mxu0 }
0x134b   :  { %v2419_v48 = vadd.f32 %v6079_v46, %v2418_v47 }
0x134d   :  { %v2424_v50 = vmax.f32 %v2419_v48, 0.0 }
0x134f   :  { %5754 = vmatmul.msk.f32.vlgmr.msrb.gmra.mxu1 %vm1653_vm0, %v2424_v50 }
0x1350   :  { %5778 = vmatpush.xpose.msk.msrb.mxu1 %vm1013_vm6, %v2884_v43 }
0x1352   :  { %v2421_v51 = vpop.f32.mrf.mxu0 }
0x1353   :  { %v2422_v53 = vadd.f32 %v6079_v46, %v2421_v51 }
0x1354   :  { %5779 = vmatpush.xpose.msk.msrb.mxu1 %vm1013_vm6, %v2882_v19 }
0x1355   :  { %v2425_v54 = vmax.f32 %v2422_v53, 0.0 }
0x1357   :  { %5755 = vmatmul.msk.f32.gmra.mxu1 %vm1653_vm0, %v2425_v54 }
0x135f   :  { %5769 = vmatmul.msk.f32.vlgmr.msra.gmra.mxu1 %vm1013_vm6, %v2719_v20 }
0x1367   :  { %5770 = vmatmul.msk.f32.gmra.mxu1 %vm1013_vm6, %v2721_v15 }
0x136f   :  { %5780 = vmatmul.msk.f32.vlgmr.msrb.gmra.mxu1 %vm1013_vm6, %v2878_v55 }
0x1377   :  { %5781 = vmatmul.msk.f32.gmra.mxu1 %vm1013_vm6, %v2880_v56  ;;  %v6080_v56 = vld [vmem:[%s8633_s25 + $0x1] ss:$0 sm:$0xff] }
0x13a2   :  { %v2712_v57 = vpop.f32.mrf.mxu0 }
0x13a3   :  { %5776 = vmatmul.msk.f32.vlgmr.msra.gmra.mxu0 %vm1013_vm6, %v2712_v57 }
0x13aa   :  { %v2715_v58 = vpop.f32.mrf.mxu0 }
0x13ab   :  { %5777 = vmatmul.msk.f32.gmra.mxu0 %vm1013_vm6, %v2715_v58 }
0x13b3   :  { %5789 = vmatmul.msk.f32.vlgmr.msrb.gmra.mxu0 %vm1013_vm6, %v3010_v59 }
0x13bb   :  { %5790 = vmatmul.msk.f32.gmra.mxu0 %vm1013_vm6, %v3012_v60 }
0x13cc   :  { %v7899_v61 = vpop.f32.mrf.mxu1 }
0x13d4   :  { %v7901_v62 = vpop.f32.mrf.mxu1 }
0x13dc   :  { %v2751_v63 = vpop.f32.mrf.mxu1 }
0x13dd   :  { %v2757_v2 = vmul.f32 0.35355338, %v2751_v63  ;;  %v2453_v63 = vadd.f32 %v6080_v56, %v7899_v61 }
0x13df   :  { %v2759_v4 = vadd.f32 %v2757_v2, %v7793_v7 }
0x13e1   :  { %v2761_v5 = vsel %vm2657_vm8, %v2759_v4, -inf }
0x13e2   :  { %2762 = vmax.xlane.f32.xlu1 %v2761_v5  ;;  %v2456_v5 = vadd.f32 %v6080_v56, %v7901_v62 }
0x13e4   :  { %v2754_v3 = vpop.f32.mrf.mxu1  ;;  %v2459_v61 = vadd.f32 %v2456_v5, %v7871_v32 }
0x13e5   :  { %v2758_v9 = vmul.f32 0.35355338, %v2754_v3 }
0x13e7   :  { %v2760_v10 = vadd.f32 %v2758_v9, %v7798_v24 }
0x13e9   :  { %v2764_v11 = vsel %vm2661_vm13, %v2760_v10, -inf }
0x13ea   :  { %2765 = vmax.xlane.f32.xlu0 %v2764_v11 }
0x13ec   :  { %v2910_v12 = vpop.f32.mrf.mxu1 }
0x13ed   :  { %v2916_v8 = vmul.f32 0.35355338, %v2910_v12 }
0x13ef   :  { %v2918_v16 = vadd.f32 %v2916_v8, %v7793_v7 }
0x13f1   :  { %v2920_v28 = vsel %vm2657_vm8, %v2918_v16, -inf }
0x13f2   :  { %2921 = vmax.xlane.f32.xlu2 %v2920_v28 }
0x13f4   :  { %v2913_v22 = vpop.f32.mrf.mxu1 }
0x13f5   :  { %v2917_v17 = vmul.f32 0.35355338, %v2913_v22 }
0x13f7   :  { %v2919_v21 = vadd.f32 %v2917_v17, %v7798_v24 }
0x13f9   :  { %v2923_v29 = vsel %vm2661_vm13, %v2919_v21, -inf }
0x13fa   :  { %2924 = vmax.xlane.f32.xlu1 %v2923_v29 }
0x140a   :  { %2944 = vrot.lane.b32.xlu2 %v7771_v52, %s6906_s4 }
0x1420   :  { %v7913_v6 = vpop.f32.mrf.mxu0 }
0x1428   :  { %v7915_v0 = vpop.f32.mrf.mxu0 }
0x1430   :  { %v3042_v23 = vpop.f32.mrf.mxu0 }
0x1431   :  { %v3048_v25 = vmul.f32 0.35355338, %v3042_v23 }
0x1433   :  { %v3050_v1 = vadd.f32 %v3048_v25, %v7793_v7 }
0x1435   :  { %v3052_v26 = vsel %vm2657_vm8, %v3050_v1, -inf }
0x1436   :  { %3053 = vmax.xlane.f32.xlu0 %v3052_v26 }
0x1438   :  { %v3045_v27 = vpop.f32.mrf.mxu0 }
0x1439   :  { %v3049_v30 = vmul.f32 0.35355338, %v3045_v27 }
0x143b   :  { %v3051_v33 = vadd.f32 %v3049_v30, %v7798_v24 }
0x143d   :  { %v3055_v36 = vsel %vm2661_vm13, %v3051_v33, -inf }
0x143e   :  { %3056 = vmax.xlane.f32.xlu2 %v3055_v36 }
0x144a   :  { %2785 = vrot.lane.b32.xlu0 %v7771_v52, %s6904_s9 }
0x1455   :  { %v2763_v13 = vpop.xlane.xlu1 %2762 }
0x1456   :  { %v2767_v18 = vsub.f32 %v2759_v4, %v2763_v13 }
0x1458   :  { %v2769_v37 = vmul.f32 1.442695, %v2767_v18 }
0x145a   :  { %6199 = vpow2.f32 %v2769_v37 }
0x145d   :  { %v2766_v39 = vpop.xlane.xlu0 %2765 }
0x145e   :  { %v2768_v40 = vsub.f32 %v2760_v10, %v2766_v39  ;;  %v2467_v10 = vsel %vm559_vm2, %v2459_v61, 0.0 }
0x1460   :  { %v6200_v7 = vpop.eup %6199  ;;  %v2771_v41 = vmul.f32 1.442695, %v2768_v40 }
0x1461   :  { %v2773_v14 = vsel %vm2657_vm8, %v6200_v7, 0.0 }
0x1462   :  { %6201 = vpow2.f32 %v2771_v41  ;;  %2774 = vadd.xlane.f32.xlu1 %v2773_v14 }
0x1465   :  { %v2922_v15 = vpop.xlane.xlu2 %2921 }
0x1466   :  { %v2926_v24 = vsub.f32 %v2918_v16, %v2922_v15 }
0x1468   :  { %v6202_v20 = vpop.eup %6201  ;;  %v2928_v42 = vmul.f32 1.442695, %v2926_v24 }
0x1469   :  { %v2776_v43 = vsel %vm2661_vm13, %v6202_v20, 0.0 }
0x146a   :  { %6203 = vpow2.f32 %v2928_v42  ;;  %2777 = vadd.xlane.f32.xlu2 %v2776_v43  ;;  %v2612_v43 = vld [vmem:[%s8638_s16 + $0x8] sm:$0xff] }
0x146b   :  { %2840 = vmatpush.msrb.mxu3 %v2612_v43 }
0x146d   :  { %v2925_v19 = vpop.xlane.xlu1 %2924  ;;  %v2945_v51 = vpop.permute.xlu2 %2944 }
0x146e   :  { %v2927_v44 = vsub.f32 %v2919_v21, %v2925_v19  ;;  %v2613_v19 = vld [vmem:[%s8638_s16 + $0x10] sm:$0xff] }
0x146f   :  { %2999 = vmatpush.msra.mxu3 %v2613_v19 }
0x1470   :  { %v6204_v45 = vpop.eup %6203  ;;  %v2930_v46 = vmul.f32 1.442695, %v2927_v44 }
0x1471   :  { %v2932_v47 = vsel %vm2657_vm8, %v6204_v45, 0.0 }
0x1472   :  { %6205 = vpow2.f32 %v2930_v46  ;;  %2933 = vadd.xlane.f32.xlu2 %v2932_v47 }
0x1478   :  { %v6206_v48 = vpop.eup %6205 }
0x1479   :  { %v2935_v50 = vsel %vm2661_vm13, %v6206_v48, 0.0 }
0x147a   :  { %2936 = vadd.xlane.f32.xlu0 %v2935_v50 }
0x147b   :  { %2783 = vrot.lane.b32.xlu1 %v7766_v49, %s6904_s9 }
0x148a   :  { %2942 = vrot.lane.b32.xlu2 %v7766_v49, %s6906_s4 }
0x148e   :  { %3074 = vrot.lane.b32.xlu0 %v7766_v49, %s6905_s13  ;;  %v2458_v49 = vadd.f32 %v2453_v63, %v7862_v34 }
0x1490   :  { %v2464_v9 = vsel %vm557_vm5, %v2458_v49, 0.0 }
0x1492   :  { %3076 = vrot.lane.b32.xlu2 %v7771_v52, %s6905_s13 }
0x14a9   :  { %v3054_v53 = vpop.xlane.xlu0 %3053 }
0x14aa   :  { %v3058_v54 = vsub.f32 %v3050_v1, %v3054_v53 }
0x14ac   :  { %v3060_v55 = vmul.f32 1.442695, %v3058_v54 }
0x14ae   :  { %6207 = vpow2.f32 %v3060_v55 }
0x14b1   :  { %v3057_v57 = vpop.xlane.xlu2 %3056 }
0x14b2   :  { %v3059_v58 = vsub.f32 %v3051_v33, %v3057_v57 }
0x14b4   :  { %v6208_v59 = vpop.eup %6207  ;;  %v3062_v60 = vmul.f32 1.442695, %v3059_v58 }
0x14b5   :  { %v3064_v2 = vsel %vm2657_vm8, %v6208_v59, 0.0 }
0x14b6   :  { %6209 = vpow2.f32 %v3062_v60  ;;  %3065 = vadd.xlane.f32.xlu1 %v3064_v2 }
0x14bc   :  { %v6210_v4 = vpop.eup %6209  ;;  %v2786_v52 = vpop.permute.xlu0 %2785 }
0x14bd   :  { %5771 = vmatpush.msk.msrb.mxu2 %vm2692_vm11, %v2786_v52  ;;  %v3067_v3 = vsel %vm2661_vm13, %v6210_v4, 0.0 }
0x14be   :  { %3068 = vadd.xlane.f32.xlu2 %v3067_v3  ;;  %2465 = vadd.xlane.f32.xlu1 %v2464_v9  ;;  %v6081_v3 = vld [vmem:[%s8634_s15 + $0x1] ss:$0 sm:$0xff] }
0x14c6   :  { %2468 = vadd.xlane.f32.xlu1 %v2467_v10 }
0x14d5   :  { %v2775_v12 = vpop.xlane.xlu1 %2774 }
0x14d6   :  { %6211 = vrcp.f32 %v2775_v12 }
0x14dc   :  { %v6212_v8 = vpop.eup %6211 }
0x14dd   :  { %v2778_v11 = vpop.xlane.xlu2 %2777  ;;  %v2781_v16 = vmul.f32 %v6212_v8, %v6200_v7 }
0x14de   :  { %6213 = vrcp.f32 %v2778_v11  ;;  %v6082_v11 = vld [vmem:[%s8635_s3 + $0x1] ss:$0 sm:$0xff] }
0x14e4   :  { %v6214_v22 = vpop.eup %6213 }
0x14e5   :  { %v2934_v34 = vpop.xlane.xlu2 %2933  ;;  %v2782_v17 = vmul.f32 %v6214_v22, %v6202_v20 }
0x14e6   :  { %6215 = vrcp.f32 %v2934_v34 }
0x14ec   :  { %v6216_v29 = vpop.eup %6215 }
0x14ed   :  { %v2943_v62 = vpop.permute.xlu2 %2942  ;;  %v2784_v28 = vpop.permute.xlu1 %2783  ;;  %v2940_v23 = vmul.f32 %v6216_v29, %v6204_v45 }
0x14ee   :  { %2811 = vmatpush.msrb.mxu2 %v2784_v28  ;;  %v2937_v21 = vpop.xlane.xlu0 %2936 }
0x14ef   :  { %5772 = vmatmul.msk.f32.vlgmr.msrb.gmra.mxu2 %vm2657_vm8, %v2781_v16  ;;  %6217 = vrcp.f32 %v2937_v21 }
0x14f0   :  { %5782 = vmatpush.msk.msra.mxu2 %vm2692_vm11, %v2945_v51 }
0x14f2   :  { %2970 = vmatpush.msra.mxu2 %v2943_v62 }
0x14f5   :  { %v3077_v32 = vpop.permute.xlu2 %3076  ;;  %v6218_v1 = vpop.eup %6217 }
0x14f6   :  { %5791 = vmatpush.msk.msra.mxu1 %vm2692_vm11, %v3077_v32  ;;  %v2941_v26 = vmul.f32 %v6218_v1, %v6206_v48  ;;  %v2614_v48 = vld [vmem:[%s8638_s16 + $0x18] sm:$0xff] }
0x14f7   :  { %5773 = vmatmul.msk.f32.gmra.mxu2 %vm2657_vm8, %v2782_v17 }
0x14f8   :  { %3131 = vmatpush.msrb.mxu2 %v2614_v48 }
0x14ff   :  { %5783 = vmatmul.msk.f32.vlgmr.msra.gmra.mxu2 %vm2657_vm8, %v2940_v23 }
0x1500   :  { %v3075_v25 = vpop.permute.xlu0 %3074 }
0x1501   :  { %3102 = vmatpush.msra.mxu1 %v3075_v25 }
0x1507   :  { %5784 = vmatmul.msk.f32.gmra.mxu2 %vm2657_vm8, %v2941_v26 }
0x1529   :  { %v3066_v27 = vpop.xlane.xlu1 %3065 }
0x152a   :  { %6219 = vrcp.f32 %v3066_v27 }
0x1530   :  { %v6220_v30 = vpop.eup %6219 }
0x1531   :  { %v3072_v33 = vmul.f32 %v6220_v30, %v6208_v59  ;;  %v3069_v36 = vpop.xlane.xlu2 %3068  ;;  %v2466_v13 = vpop.xlane.xlu1 %2465  ;;  %v6083_v30 = vld [vmem:[#allocation23] ss:$0 sm:$0xff] }
0x1532   :  { %6221 = vrcp.f32 %v3069_v36  ;;  %v2470_v18 = vmul.f32 %v2466_v13, %v7578_v35 }
0x1533   :  { %5792 = vmatmul.msk.f32.vlgmr.msra.gmra.mxu1 %vm2657_vm8, %v3072_v33 }
0x1534   :  { %v2472_v37 = vsub.f32 %v2458_v49, %v2470_v18 }
0x1536   :  { %v2474_v39 = vmul.f32 %v2472_v37, %v2472_v37 }
0x1538   :  { %v6222_v40 = vpop.eup %6221  ;;  %v2476_v7 = vsel %vm557_vm5, %v2474_v39, 0.0 }
0x1539   :  { %2477 = vadd.xlane.f32.xlu0 %v2476_v7  ;;  %v2469_v41 = vpop.xlane.xlu1 %2468  ;;  %v3073_v14 = vmul.f32 %v6222_v40, %v6210_v4 }
0x153a   :  { %v2471_v15 = vmul.f32 %v2469_v41, %v7578_v35 }
0x153b   :  { %5793 = vmatmul.msk.f32.gmra.mxu1 %vm2657_vm8, %v3073_v14 }
0x153c   :  { %v2473_v24 = vsub.f32 %v2459_v61, %v2471_v15 }
0x153e   :  { %v2475_v20 = vmul.f32 %v2473_v24, %v2473_v24 }
0x1540   :  { %v2479_v42 = vsel %vm559_vm2, %v2475_v20, 0.0 }
0x1541   :  { %2480 = vadd.xlane.f32.xlu1 %v2479_v42 }
0x1572   :  { %v2813_v44 = vpop.f32.mrf.mxu2 }
0x1573   :  { %5774 = vmatmul.msk.f32.vlgmr.msrb.gmra.mxu3 %vm1013_vm6, %v2813_v44 }
0x157a   :  { %v2816_v45 = vpop.f32.mrf.mxu2 }
0x157b   :  { %5775 = vmatmul.msk.f32.gmra.mxu3 %vm1013_vm6, %v2816_v45 }
0x1582   :  { %v2972_v46 = vpop.f32.mrf.mxu2 }
0x1583   :  { %5785 = vmatmul.msk.f32.vlgmr.msra.gmra.mxu3 %vm1013_vm6, %v2972_v46 }
0x158a   :  { %v2975_v47 = vpop.f32.mrf.mxu2 }
0x158b   :  { %5786 = vmatmul.msk.f32.gmra.mxu3 %vm1013_vm6, %v2975_v47 }
0x15ac   :  { %v2478_v50 = vpop.xlane.xlu0 %2477 }
0x15ad   :  { %v2482_v51 = vmul.f32 %v2478_v50, %v7578_v35 }
0x15af   :  { %v2484_v53 = vadd.f32 1e-05, %v2482_v51  ;;  %v3244_v51 = vld [vmem:[%s8639_s22 + $0x10] sm:$0xff] }
0x15b0   :  { %v3104_v54 = vpop.f32.mrf.mxu1 }
0x15b1   :  { %6223 = vrsqrt.f32 %v2484_v53  ;;  %5794 = vmatmul.msk.f32.vlgmr.msrb.gmra.mxu2 %vm1013_vm6, %v3104_v54  ;;  %vm2492_vm14 = vweird.f32 %v2484_v53  ;;  %v3243_v54 = vld [vmem:[%s8639_s22 + $0x8] sm:$0xff] }
0x15b4   :  { %v2481_v55 = vpop.xlane.xlu1 %2480 }
0x15b5   :  { %v2483_v56 = vmul.f32 %v2481_v55, %v7578_v35 }
0x15b7   :  { %v6224_v57 = vpop.eup %6223  ;;  %v2485_v58 = vadd.f32 1e-05, %v2483_v56  ;;  %v3242_v56 = vld [vmem:[%s8639_s22] sm:$0xff] }
0x15b8   :  { %v2487_v59 = vmul.f32 %v6224_v57, %v2484_v53  ;;  %v3107_v60 = vpop.f32.mrf.mxu1  ;;  %vm2493_vm12 = vweird.f32 %v6224_v57 }
0x15b9   :  { %6225 = vrsqrt.f32 %v2485_v58  ;;  %5795 = vmatmul.msk.f32.gmra.mxu2 %vm1013_vm6, %v3107_v60  ;;  %vm2494_vm15 = vmor %vm2492_vm14, %vm2493_vm12  ;;  %vm2502_vm4 = vweird.f32 %v2485_v58 }
0x15ba   :  { %v2488_v63 = vmul.f32 %v6224_v57, %v2487_v59 }
0x15bc   :  { %v2489_v2 = vmul.f32 0.5, %v2488_v63 }
0x15be   :  { %v2490_v49 = vsub.f32 1.5, %v2489_v2 }
0x15bf   :  { %v6226_v4 = vpop.eup %6225 }
0x15c0   :  { %v2491_v52 = vmul.f32 %v6224_v57, %v2490_v49  ;;  %v2497_v5 = vmul.f32 %v6226_v4, %v2485_v58  ;;  %vm2503_vm1 = vweird.f32 %v6226_v4 }
0x15c1   :  { %vm2504_vm9 = vmor %vm2502_vm4, %vm2503_vm1 }
0x15c2   :  { %v2498_v9 = vmul.f32 %v6226_v4, %v2497_v5  ;;  %v2495_v61 = vsel %vm2494_vm15, %v6224_v57, %v2491_v52 }
0x15c3   :  { %v2506_v10 = vmul.f32 %v2495_v61, %v2472_v37 }
0x15c4   :  { %v2499_v12 = vmul.f32 0.5, %v2498_v9 }
0x15c5   :  { %v2511_v34 = vmul.f32 %v6081_v3, %v2506_v10 }
0x15c6   :  { %v2500_v8 = vsub.f32 1.5, %v2499_v12 }
0x15c7   :  { %v2516_v62 = vadd.f32 %v6082_v11, %v2511_v34 }
0x15c8   :  { %v2501_v16 = vmul.f32 %v6226_v4, %v2500_v8 }
0x15c9   :  { %v2520_v28 = vsel %vm557_vm5, %v2516_v62, 0.0 }
0x15ca   :  { %2521 = vadd.xlane.f32.xlu1 %v2520_v28  ;;  %v2505_v22 = vsel %vm2504_vm9, %v6226_v4, %v2501_v16  ;;  %v6084_v28 = vld [vmem:[#allocation10] ss:$0 sm:$0xff] }
0x15cb   :  { %v2507_v32 = vmul.f32 %v2505_v22, %v2473_v24 }
0x15cd   :  { %v2512_v17 = vmul.f32 %v6081_v3, %v2507_v32 }
0x15cf   :  { %v2517_v21 = vadd.f32 %v6082_v11, %v2512_v17  ;;  %v6085_v17 = vld [vmem:[#allocation11] ss:$0 sm:$0xff] }
0x15d1   :  { %v2523_v29 = vsel %vm559_vm2, %v2517_v21, 0.0 }
0x15d2   :  { %2524 = vadd.xlane.f32.xlu2 %v2523_v29 }
0x15f6   :  { %v2842_v23 = vpop.f32.mrf.mxu3 }
0x15f7   :  { %v2872_v26 = vadd.f32 %v7913_v6, %v2842_v23 }
0x15fe   :  { %v2845_v25 = vpop.f32.mrf.mxu3 }
0x15ff   :  { %v2875_v37 = vadd.f32 %v7915_v0, %v2845_v25 }
0x1606   :  { %v3001_v1 = vpop.f32.mrf.mxu3 }
0x1607   :  { %v3007_v27 = vadd.f32 %v3001_v1, %v2872_v26 }
0x160e   :  { %v3004_v18 = vpop.f32.mrf.mxu3 }
0x160f   :  { %v3008_v40 = vadd.f32 %v3004_v18, %v2875_v37  ;;  %v3207_v18 = vld [vmem:[%s8640_s19 + $0x10] sm:$0xff]  ;;  %v3206_v37 = vld [vmem:[%s8640_s19 + $0x8] sm:$0xff] }
0x1634   :  { %v3133_v33 = vpop.f32.mrf.mxu2 }
0x1635   :  { %v3139_v36 = vadd.f32 %v3133_v33, %v3007_v27 }
0x1637   :  { %v3144_v13 = vadd.f32 %v6083_v30, %v3139_v36 }
0x1639   :  { %v3146_v39 = vadd.f32 %v3144_v13, %v7745_v31  ;;  %v3208_v13 = vld [vmem:[%s8640_s19 + $0x18] sm:$0xff] }
0x163a   :  { %3231 = vmatpush.msrb.mxu3 %v3208_v13 }
0x163b   :  { %v3150_v7 = vsel %vm557_vm5, %v3146_v39, 0.0 }
0x163c   :  { %v3136_v41 = vpop.f32.mrf.mxu2  ;;  %3151 = vadd.xlane.f32.xlu1 %v3150_v7  ;;  %3232 = vmatpush.msrb.mxu3 %v3207_v18 }
0x163d   :  { %v3140_v14 = vadd.f32 %v3136_v41, %v3008_v40  ;;  %v2522_v15 = vpop.xlane.xlu1 %2521 }
0x163e   :  { %v2526_v24 = vmul.f32 %v2522_v15, %v7578_v35  ;;  %3233 = vmatpush.msrb.mxu3 %v3206_v37 }
0x163f   :  { %v3145_v6 = vadd.f32 %v6083_v30, %v3140_v14 }
0x1640   :  { %v2528_v20 = vsub.f32 %v2516_v62, %v2526_v24 }
0x1641   :  { %v3147_v42 = vadd.f32 %v3145_v6, %v7754_v38  ;;  %v3245_v38 = vld [vmem:[%s8639_s22 + $0x18] sm:$0xff] }
0x1642   :  { %v2530_v43 = vmul.f32 %v2528_v20, %v2528_v20  ;;  %3268 = vmatpush.msra.mxu0 %v3245_v38 }
0x1643   :  { %v3154_v0 = vsel %vm3153_vm10, %v3147_v42, 0.0 }
0x1644   :  { %3155 = vadd.xlane.f32.xlu2 %v3154_v0  ;;  %v2532_v31 = vsel %vm557_vm5, %v2530_v43, 0.0  ;;  %3269 = vmatpush.msra.mxu0 %v3244_v51 }
0x1645   :  { %v2525_v19 = vpop.xlane.xlu2 %2524  ;;  %2533 = vadd.xlane.f32.xlu1 %v2532_v31 }
0x1646   :  { %v2527_v44 = vmul.f32 %v2525_v19, %v7578_v35  ;;  %3270 = vmatpush.msra.mxu0 %v3243_v54 }
0x1648   :  { %v2529_v45 = vsub.f32 %v2517_v21, %v2527_v44  ;;  %3271 = vmatpush.msra.mxu0 %v3242_v56 }
0x164a   :  { %v2531_v46 = vmul.f32 %v2529_v45, %v2529_v45 }
0x164c   :  { %v2535_v47 = vsel %vm559_vm2, %v2531_v46, 0.0 }
0x164d   :  { %2536 = vadd.xlane.f32.xlu2 %v2535_v47 }
0x16af   :  { %v3152_v48 = vpop.xlane.xlu1 %3151 }
0x16b0   :  { %v3157_v50 = vmul.f32 %v3152_v48, %v7578_v35  ;;  %v6087_v48 = vld [vmem:[#allocation14] ss:$0 sm:$0xff] }
0x16b2   :  { %v7985_v53 = vsub.f32 %v3146_v39, %v3157_v50  ;;  %v3205_v39 = vld [vmem:[%s8640_s19] sm:$0xff] }
0x16b3   :  { %3234 = vmatpush.msrb.mxu3 %v3205_v39 }
0x16b4   :  { %v3161_v55 = vmul.f32 %v7985_v53, %v7985_v53 }
0x16b6   :  { %v3163_v57 = vsel %vm557_vm5, %v3161_v55, 0.0 }
0x16b7   :  { %v3156_v58 = vpop.xlane.xlu2 %3155  ;;  %3164 = vadd.xlane.f32.xlu1 %v3163_v57 }
0x16b8   :  { %v3158_v59 = vmul.f32 %v3156_v58, %v7578_v35  ;;  %v2534_v60 = vpop.xlane.xlu1 %2533 }
0x16b9   :  { %v2538_v63 = vmul.f32 %v2534_v60, %v7578_v35 }
0x16ba   :  { %v7994_v2 = vsub.f32 %v3147_v42, %v3158_v59 }
0x16bb   :  { %v2540_v49 = vadd.f32 1e-05, %v2538_v63  ;;  %v6088_v63 = vld [vmem:[%s8641_s23] ss:$0 sm:$0xff] }
0x16bc   :  { %v3162_v4 = vmul.f32 %v7994_v2, %v7994_v2 }
0x16bd   :  { %6227 = vrsqrt.f32 %v2540_v49  ;;  %vm2548_vm12 = vweird.f32 %v2540_v49 }
0x16be   :  { %v3166_v52 = vsel %vm3153_vm10, %v3162_v4, 0.0 }
0x16bf   :  { %3167 = vadd.xlane.f32.xlu2 %v3166_v52 }
0x16c0   :  { %v2537_v5 = vpop.xlane.xlu2 %2536 }
0x16c1   :  { %v2539_v3 = vmul.f32 %v2537_v5, %v7578_v35 }
0x16c3   :  { %v6228_v9 = vpop.eup %6227  ;;  %v2541_v61 = vadd.f32 1e-05, %v2539_v3 }
0x16c4   :  { %v2543_v10 = vmul.f32 %v6228_v9, %v2540_v49  ;;  %vm2549_vm2 = vweird.f32 %v6228_v9 }
0x16c5   :  { %6229 = vrsqrt.f32 %v2541_v61  ;;  %vm2550_vm14 = vmor %vm2548_vm12, %vm2549_vm2  ;;  %vm2558_vm1 = vweird.f32 %v2541_v61 }
0x16c6   :  { %v2544_v11 = vmul.f32 %v6228_v9, %v2543_v10 }
0x16c8   :  { %v2545_v12 = vmul.f32 0.5, %v2544_v11  ;;  %v8036_v11 = vld [vmem:[%s8642_s8] sm:$0xff] }
0x16ca   :  { %v2546_v34 = vsub.f32 1.5, %v2545_v12 }
0x16cb   :  { %v6230_v8 = vpop.eup %6229 }
0x16cc   :  { %v2547_v62 = vmul.f32 %v6228_v9, %v2546_v34  ;;  %v2553_v16 = vmul.f32 %v6230_v8, %v2541_v61  ;;  %vm2559_vm15 = vweird.f32 %v6230_v8 }
0x16cd   :  { %vm2560_vm4 = vmor %vm2558_vm1, %vm2559_vm15 }
0x16ce   :  { %v2551_v22 = vsel %vm2550_vm14, %v6228_v9, %v2547_v62  ;;  %v2554_v32 = vmul.f32 %v6230_v8, %v2553_v16  ;;  %v8041_v16 = vld [vmem:[%s8642_s8 + $0x8] sm:$0x7f] }
0x16cf   :  { %v2562_v21 = vmul.f32 %v2551_v22, %v2528_v20 }
0x16d0   :  { %v2555_v29 = vmul.f32 0.5, %v2554_v32 }
0x16d1   :  { %v2567_v23 = vmul.f32 %v6084_v28, %v2562_v21 }
0x16d2   :  { %v2556_v25 = vsub.f32 1.5, %v2555_v29 }
0x16d3   :  { %v8000_v1 = vadd.f32 %v6085_v17, %v2567_v23 }
0x16d4   :  { %v2557_v26 = vmul.f32 %v6230_v8, %v2556_v25 }
0x16d5   :  { %5798 = vmatmul.msk.f32.vlgmr.msra.gmra.mxu0 %vm557_vm5, %v8000_v1 }
0x16d6   :  { %v2561_v27 = vsel %vm2560_vm4, %v6230_v8, %v2557_v26  ;;  %vm3326_vm4 = vcmask 112640  }
0x16d7   :  { %v2563_v30 = vmul.f32 %v2561_v27, %v2529_v45  ;;  %v6086_v45 = vld [vmem:[#allocation16] ss:$0 sm:$0xff] }
0x16d9   :  { %v2568_v33 = vmul.f32 %v6084_v28, %v2563_v30 }
0x16db   :  { %v8004_v36 = vadd.f32 %v6085_v17, %v2568_v33 }
0x16dd   :  { %5799 = vmatmul.msk.f32.gmra.mxu0 %vm557_vm5, %v8004_v36 }
0x172a   :  { %v3165_v40 = vpop.xlane.xlu1 %3164 }
0x172b   :  { %v3169_v7 = vmul.f32 %v3165_v40, %v7578_v35 }
0x172d   :  { %v3171_v41 = vadd.f32 1e-05, %v3169_v7 }
0x172f   :  { %6231 = vrsqrt.f32 %v3171_v41  ;;  %vm3179_vm2 = vweird.f32 %v3171_v41 }
0x1732   :  { %v3168_v14 = vpop.xlane.xlu2 %3167 }
0x1733   :  { %v3170_v15 = vmul.f32 %v3168_v14, %v7578_v35  ;;  %v3279_v14 = vld [vmem:[%s8643_s2] sm:$0xff] }
0x1735   :  { %v6232_v24 = vpop.eup %6231  ;;  %v3172_v6 = vadd.f32 1e-05, %v3170_v15 }
0x1736   :  { %v3174_v20 = vmul.f32 %v6232_v24, %v3171_v41  ;;  %vm3180_vm9 = vweird.f32 %v6232_v24 }
0x1737   :  { %6233 = vrsqrt.f32 %v3172_v6  ;;  %vm3181_vm12 = vmor %vm3179_vm2, %vm3180_vm9  ;;  %vm3189_vm15 = vweird.f32 %v3172_v6 }
0x1738   :  { %v3175_v42 = vmul.f32 %v6232_v24, %v3174_v20 }
0x173a   :  { %v3176_v43 = vmul.f32 0.5, %v3175_v42 }
0x173c   :  { %v3177_v0 = vsub.f32 1.5, %v3176_v43 }
0x173d   :  { %v6234_v31 = vpop.eup %6233 }
0x173e   :  { %v3178_v19 = vmul.f32 %v6232_v24, %v3177_v0  ;;  %v3184_v44 = vmul.f32 %v6234_v31, %v3172_v6  ;;  %vm3190_vm14 = vweird.f32 %v6234_v31 }
0x173f   :  { %vm3191_vm1 = vmor %vm3189_vm15, %vm3190_vm14 }
0x1740   :  { %v3182_v46 = vsel %vm3181_vm12, %v6232_v24, %v3178_v19  ;;  %v3185_v47 = vmul.f32 %v6234_v31, %v3184_v44 }
0x1741   :  { %v3193_v38 = vmul.f32 %v3182_v46, %v7985_v53 }
0x1742   :  { %v3186_v50 = vmul.f32 0.5, %v3185_v47 }
0x1743   :  { %v3198_v51 = vmul.f32 %v6086_v45, %v3193_v38 }
0x1744   :  { %v3187_v54 = vsub.f32 1.5, %v3186_v50 }
0x1745   :  { %v8015_v55 = vadd.f32 %v6087_v48, %v3198_v51 }
0x1746   :  { %v3188_v56 = vmul.f32 %v6234_v31, %v3187_v54 }
0x1747   :  { %5796 = vmatmul.msk.f32.vlgmr.msrb.gmra.mxu3 %vm557_vm5, %v8015_v55 }
0x1748   :  { %v3192_v57 = vsel %vm3191_vm1, %v6234_v31, %v3188_v56 }
0x1749   :  { %v3194_v58 = vmul.f32 %v3192_v57, %v7994_v2  ;;  %v6089_v2 = vld [vmem:[#allocation13] ss:$0 sm:$0xff] }
0x174b   :  { %v3199_v59 = vmul.f32 %v6086_v45, %v3194_v58 }
0x174d   :  { %v8020_v60 = vadd.f32 %v6087_v48, %v3199_v59 }
0x174f   :  { %5797 = vmatmul.msk.f32.gmra.mxu3 %vm557_vm5, %v8020_v60 }
0x1752   :  { %v3273_v53 = vpop.f32.mrf.mxu0 }
0x1753   :  { %v8029_v52 = vadd.f32 %v6088_v63, %v3273_v53 }
0x175a   :  { %v3276_v49 = vpop.f32.mrf.mxu0 }
0x175b   :  { %v8025_v4 = vadd.f32 %v6088_v63, %v3276_v49 }
0x175d   :  { %5800 = vmatpush.xpose.msk.msrb.mxu1 %vm1013_vm6, %v8025_v4 }
0x1761   :  { %5801 = vmatpush.xpose.msk.msrb.mxu1 %vm1013_vm6, %v8029_v52 }
0x17ca   :  { %v3236_v5 = vpop.f32.mrf.mxu3 }
0x17cb   :  { %v3237_v3 = vadd.f32 %v6089_v2, %v3236_v5 }
0x17cd   :  { %5802 = vmatmul.msk.f32.vlgmr.msrb.gmra.mxu1 %vm1013_vm6, %v3237_v3 }
0x17d2   :  { %v3239_v9 = vpop.f32.mrf.mxu3 }
0x17d3   :  { %v3240_v61 = vadd.f32 %v6089_v2, %v3239_v9 }
0x17d5   :  { %5803 = vmatmul.msk.f32.gmra.mxu1 %vm1013_vm6, %v3240_v61 }
0x184a   :  { %v3313_v10 = vpop.f32.mrf.mxu1 }
0x184b   :  { %v3319_v12 = vmul.f32 0.35355338, %v3313_v10 }
0x184d   :  { %v3321_v34 = vadd.f32 %v3319_v12, %v8036_v11 }
0x184f   :  { %v3323_v8 = vsel %vm1049_vm7, %v3321_v34, -inf }
0x1850   :  { %3324 = vmax.xlane.f32.xlu0 %v3323_v8 }
0x1852   :  { %v3316_v62 = vpop.f32.mrf.mxu1 }
0x1853   :  { %v3320_v28 = vmul.f32 0.35355338, %v3316_v62 }
0x1855   :  { %v3322_v22 = vadd.f32 %v3320_v28, %v8041_v16 }
0x1857   :  { %v3327_v32 = vsel %vm3326_vm4, %v3322_v22, -inf }
0x1858   :  { %3328 = vmax.xlane.f32.xlu1 %v3327_v32 }
0x1864   :  { %3348 = vrot.lane.b32.xlu0 %v8025_v4, %s6895_s24 }
0x186c   :  { %3386 = vrot.lane.b32.xlu0 %v8029_v52, %s6898_s12 }
0x1874   :  { %3382 = vrot.lane.b32.xlu0 %v3237_v3, %s6898_s12 }
0x187c   :  { %3384 = vrot.lane.b32.xlu0 %v3240_v61, %s6898_s12 }
0x1884   :  { %3673 = vrot.lane.b32.xlu0 %v3237_v3, %s6899_s26 }
0x188c   :  { %3675 = vrot.lane.b32.xlu0 %v3240_v61, %s6899_s26 }
0x18c3   :  { %v3325_v17 = vpop.xlane.xlu0 %3324 }
0x18c4   :  { %v3330_v21 = vsub.f32 %v3321_v34, %v3325_v17 }
0x18c6   :  { %v3332_v29 = vmul.f32 1.442695, %v3330_v21 }
0x18c8   :  { %6235 = vpow2.f32 %v3332_v29 }
0x18cb   :  { %v3329_v23 = vpop.xlane.xlu1 %3328 }
0x18cc   :  { %v3331_v25 = vsub.f32 %v3322_v22, %v3329_v23 }
0x18ce   :  { %v6236_v26 = vpop.eup %6235  ;;  %v3334_v27 = vmul.f32 1.442695, %v3331_v25 }
0x18cf   :  { %v3336_v30 = vsel %vm1049_vm7, %v6236_v26, 0.0 }
0x18d0   :  { %6237 = vpow2.f32 %v3334_v27  ;;  %3337 = vadd.xlane.f32.xlu2 %v3336_v30 }
0x18d6   :  { %v6238_v33 = vpop.eup %6237  ;;  %v3349_v13 = vpop.permute.xlu0 %3348 }
0x18d7   :  { %5804 = vmatpush.msk.msra.mxu2 %vm572_vm3, %v3349_v13  ;;  %v3339_v18 = vsel %vm3326_vm4, %v6238_v33, 0.0 }
0x18d8   :  { %3340 = vadd.xlane.f32.xlu1 %v3339_v18 }
0x18de   :  { %v3387_v20 = vpop.permute.xlu0 %3386 }
0x18e6   :  { %v3383_v0 = vpop.permute.xlu0 %3382 }
0x18e8   :  { %3346 = vrot.lane.b32.xlu2 %v8029_v52, %s6895_s24 }
0x18ee   :  { %v3385_v44 = vpop.permute.xlu0 %3384 }
0x18f0   :  { %3679 = vrot.lane.b32.xlu2 %v8025_v4, %s6899_s26 }
0x18f1   :  { %3388 = vrot.lane.b32.xlu1 %v8025_v4, %s6898_s12 }
0x18f6   :  { %v3674_v38 = vpop.permute.xlu0 %3673 }
0x18f8   :  { %3547 = vrot.lane.b32.xlu2 %v8025_v4, %s6900_s28 }
0x18f9   :  { %3677 = vrot.lane.b32.xlu1 %v8029_v52, %s6899_s26 }
0x18fe   :  { %v3676_v50 = vpop.permute.xlu0 %3675 }
0x1900   :  { %3545 = vrot.lane.b32.xlu2 %v8029_v52, %s6900_s28 }
0x1901   :  { %3541 = vrot.lane.b32.xlu1 %v3237_v3, %s6900_s28 }
0x1908   :  { %3543 = vrot.lane.b32.xlu2 %v3240_v61, %s6900_s28 }
0x1943   :  { %v3338_v37 = vpop.xlane.xlu2 %3337 }
0x1944   :  { %6239 = vrcp.f32 %v3338_v37 }
0x194a   :  { %v6240_v39 = vpop.eup %6239 }
0x194b   :  { %v3344_v40 = vmul.f32 %v6240_v39, %v6236_v26  ;;  %v3347_v7 = vpop.permute.xlu2 %3346  ;;  %v3341_v41 = vpop.xlane.xlu1 %3340 }
0x194c   :  { %6241 = vrcp.f32 %v3341_v41  ;;  %3374 = vmatpush.msra.mxu2 %v3347_v7 }
0x194d   :  { %5805 = vmatmul.msk.f32.vlgmr.msra.gmra.mxu2 %vm1049_vm7, %v3344_v40 }
0x194e   :  { %3533 = vmatpush.msrb.mxu2 %v3279_v14 }
0x1952   :  { %v6242_v15 = vpop.eup %6241 }
0x1953   :  { %v3680_v24 = vpop.permute.xlu2 %3679  ;;  %v3345_v6 = vmul.f32 %v6242_v15, %v6238_v33 }
0x1954   :  { %5827 = vmatpush.xpose.msk.msra.mxu2 %vm1013_vm6, %v3680_v24 }
0x1955   :  { %5806 = vmatmul.msk.f32.gmra.mxu2 %vm1049_vm7, %v3345_v6 }
0x195b   :  { %v3548_v42 = vpop.permute.xlu2 %3547 }
0x1963   :  { %v3389_v43 = vpop.permute.xlu1 %3388  ;;  %v3546_v19 = vpop.permute.xlu2 %3545 }
0x1964   :  { %5807 = vmatpush.xpose.msk.msra.mxu3 %vm1013_vm6, %v3389_v43 }
0x1968   :  { %5808 = vmatpush.xpose.msk.msra.mxu3 %vm1013_vm6, %v3387_v20 }
0x196b   :  { %5809 = vmatmul.msk.f32.vlgmr.msra.gmra.mxu3 %vm1013_vm6, %v3383_v0  ;;  %v3678_v31 = vpop.permute.xlu1 %3677  ;;  %v3544_v46 = vpop.permute.xlu2 %3543 }
0x196c   :  { %5818 = vmatpush.xpose.msk.msrb.mxu3 %vm1013_vm6, %v3548_v42  ;;  %5828 = vmatpush.xpose.msk.msra.mxu2 %vm1013_vm6, %v3678_v31 }
0x1970   :  { %5819 = vmatpush.xpose.msk.msrb.mxu3 %vm1013_vm6, %v3546_v19 }
0x1973   :  { %5810 = vmatmul.msk.f32.gmra.mxu3 %vm1013_vm6, %v3385_v44  ;;  %v3542_v45 = vpop.permute.xlu1 %3541 }
0x197b   :  { %5820 = vmatmul.msk.f32.vlgmr.msrb.gmra.mxu3 %vm1013_vm6, %v3542_v45 }
0x1983   :  { %5821 = vmatmul.msk.f32.gmra.mxu3 %vm1013_vm6, %v3544_v46 }
0x19d0   :  { %v3376_v47 = vpop.f32.mrf.mxu2 }
0x19d1   :  { %5816 = vmatmul.msk.f32.vlgmr.msrb.gmra.mxu2 %vm1013_vm6, %v3376_v47 }
0x19d8   :  { %v3379_v48 = vpop.f32.mrf.mxu2 }
0x19d9   :  { %5817 = vmatmul.msk.f32.gmra.mxu2 %vm1013_vm6, %v3379_v48 }
0x19e1   :  { %5829 = vmatmul.msk.f32.vlgmr.msra.gmra.mxu2 %vm1013_vm6, %v3674_v38 }
0x19e9   :  { %5830 = vmatmul.msk.f32.gmra.mxu2 %vm1013_vm6, %v3676_v50 }
0x19ee   :  { %v3415_v51 = vpop.f32.mrf.mxu3 }
0x19ef   :  { %v3421_v54 = vmul.f32 0.35355338, %v3415_v51 }
0x19f1   :  { %v3423_v56 = vadd.f32 %v3421_v54, %v8036_v11 }
0x19f3   :  { %v3425_v57 = vsel %vm1049_vm7, %v3423_v56, -inf }
0x19f4   :  { %3426 = vmax.xlane.f32.xlu1 %v3425_v57 }
0x19f6   :  { %v3418_v58 = vpop.f32.mrf.mxu3 }
0x19f7   :  { %v3422_v59 = vmul.f32 0.35355338, %v3418_v58 }
0x19f9   :  { %v3424_v53 = vadd.f32 %v3422_v59, %v8041_v16 }
0x19fb   :  { %v3428_v63 = vsel %vm3326_vm4, %v3424_v53, -inf }
0x19fc   :  { %3429 = vmax.xlane.f32.xlu0 %v3428_v63 }
0x19fe   :  { %v3574_v49 = vpop.f32.mrf.mxu3 }
0x19ff   :  { %v3580_v2 = vmul.f32 0.35355338, %v3574_v49 }
0x1a01   :  { %v3582_v5 = vadd.f32 %v3580_v2, %v8036_v11 }
0x1a03   :  { %v3584_v3 = vsel %vm1049_vm7, %v3582_v5, -inf }
0x1a04   :  { %3585 = vmax.xlane.f32.xlu1 %v3584_v3 }
0x1a06   :  { %v3577_v34 = vpop.f32.mrf.mxu3 }
0x1a07   :  { %v3581_v22 = vmul.f32 0.35355338, %v3577_v34 }
0x1a09   :  { %v3583_v29 = vadd.f32 %v3581_v22, %v8041_v16 }
0x1a54   :  { %v8093_v9 = vpop.f32.mrf.mxu2 }
0x1a5c   :  { %v8095_v61 = vpop.f32.mrf.mxu2 }
0x1a64   :  { %v3706_v10 = vpop.f32.mrf.mxu2 }
0x1a65   :  { %v3712_v12 = vmul.f32 0.35355338, %v3706_v10 }
0x1a67   :  { %v3714_v8 = vadd.f32 %v3712_v12, %v8036_v11  ;;  %v3427_v62 = vpop.xlane.xlu1 %3426  ;;  %v3587_v11 = vsel %vm3326_vm4, %v3583_v29, -inf  ;;  %v3280_v12 = vld [vmem:[%s8643_s2 + $0x8] sm:$0xff] }
0x1a68   :  { %v3431_v28 = vsub.f32 %v3423_v56, %v3427_v62  ;;  %3504 = vmatpush.msra.mxu1 %v3280_v12 }
0x1a69   :  { %v3716_v32 = vsel %vm1049_vm7, %v3714_v8, -inf }
0x1a6a   :  { %v3433_v17 = vmul.f32 1.442695, %v3431_v28  ;;  %3717 = vmax.xlane.f32.xlu2 %v3716_v32 }
0x1a6c   :  { %6243 = vpow2.f32 %v3433_v17  ;;  %v3709_v21 = vpop.f32.mrf.mxu2  ;;  %v3281_v17 = vld [vmem:[%s8643_s2 + $0x10] sm:$0xff] }
0x1a6d   :  { %v3713_v23 = vmul.f32 0.35355338, %v3709_v21  ;;  %3663 = vmatpush.msrb.mxu1 %v3281_v17  ;;  %v3282_v21 = vld [vmem:[%s8643_s2 + $0x18] sm:$0xff] }
0x1a6f   :  { %v3430_v25 = vpop.xlane.xlu0 %3429  ;;  %v3715_v26 = vadd.f32 %v3713_v23, %v8041_v16 }
0x1a70   :  { %v3432_v27 = vsub.f32 %v3424_v53, %v3430_v25 }
0x1a71   :  { %v3719_v30 = vsel %vm3326_vm4, %v3715_v26, -inf }
0x1a72   :  { %v6244_v33 = vpop.eup %6243  ;;  %v3435_v13 = vmul.f32 1.442695, %v3432_v27  ;;  %3720 = vmax.xlane.f32.xlu0 %v3719_v30  ;;  %3588 = vmax.xlane.f32.xlu2 %v3587_v11 }
0x1a73   :  { %v3437_v18 = vsel %vm1049_vm7, %v6244_v33, 0.0 }
0x1a74   :  { %6245 = vpow2.f32 %v3435_v13  ;;  %3438 = vadd.xlane.f32.xlu1 %v3437_v18 }
0x1a77   :  { %v3586_v37 = vpop.xlane.xlu1 %3585 }
0x1a78   :  { %v3590_v39 = vsub.f32 %v3582_v5, %v3586_v37 }
0x1a7a   :  { %v6246_v40 = vpop.eup %6245  ;;  %v3592_v7 = vmul.f32 1.442695, %v3590_v39 }
0x1a7b   :  { %v3440_v41 = vsel %vm3326_vm4, %v6246_v40, 0.0 }
0x1a7c   :  { %6247 = vpow2.f32 %v3592_v7  ;;  %3441 = vadd.xlane.f32.xlu2 %v3440_v41  ;;  %v6090_v7 = vld [vmem:[%s8644_s1] ss:$0 sm:$0xff] }
0x1a82   :  { %v6248_v16 = vpop.eup %6247 }
0x1a83   :  { %v3596_v14 = vsel %vm1049_vm7, %v6248_v16, 0.0 }
0x1a84   :  { %3597 = vadd.xlane.f32.xlu2 %v3596_v14 }
0x1a86   :  { %3449 = vrot.lane.b32.xlu0 %v8025_v4, %s6897_s0 }
0x1a8d   :  { %3447 = vrot.lane.b32.xlu1 %v8029_v52, %s6897_s0 }
0x1a8e   :  { %3740 = vrot.lane.b32.xlu0 %v8025_v4, %s6903_s14 }
0x1a95   :  { %3738 = vrot.lane.b32.xlu1 %v8029_v52, %s6903_s14 }
0x1a96   :  { %3608 = vrot.lane.b32.xlu0 %v8025_v4, %s6902_s7 }
0x1a9d   :  { %3606 = vrot.lane.b32.xlu1 %v8029_v52, %s6902_s7 }
0x1add   :  { %v3718_v15 = vpop.xlane.xlu2 %3717 }
0x1ade   :  { %v3722_v24 = vsub.f32 %v3714_v8, %v3718_v15 }
0x1ae0   :  { %v3724_v6 = vmul.f32 1.442695, %v3722_v24 }
0x1ae2   :  { %6249 = vpow2.f32 %v3724_v6 }
0x1ae5   :  { %v3721_v20 = vpop.xlane.xlu0 %3720  ;;  %v3589_v42 = vpop.xlane.xlu2 %3588 }
0x1ae6   :  { %v3723_v43 = vsub.f32 %v3715_v26, %v3721_v20  ;;  %v3591_v19 = vsub.f32 %v3583_v29, %v3589_v42 }
0x1ae7   :  { %v3439_v52 = vpop.xlane.xlu1 %3438 }
0x1ae8   :  { %v6250_v0 = vpop.eup %6249  ;;  %v3726_v31 = vmul.f32 1.442695, %v3723_v43  ;;  %v3594_v45 = vmul.f32 1.442695, %v3591_v19 }
0x1ae9   :  { %v3728_v44 = vsel %vm1049_vm7, %v6250_v0, 0.0 }
0x1aea   :  { %6251 = vpow2.f32 %v3726_v31  ;;  %3729 = vadd.xlane.f32.xlu2 %v3728_v44 }
0x1aeb   :  { %6253 = vpow2.f32 %v3594_v45 }
0x1aec   :  { %6255 = vrcp.f32 %v3439_v52 }
0x1aef   :  { %v3442_v38 = vpop.xlane.xlu2 %3441 }
0x1af0   :  { %v6252_v46 = vpop.eup %6251  ;;  %6257 = vrcp.f32 %v3442_v38  ;;  %v3871_v38 = vld [vmem:[%s8645_s20 + $0x18] sm:$0xff] }
0x1af1   :  { %v3731_v4 = vsel %vm3326_vm4, %v6252_v46, 0.0  ;;  %v6254_v47 = vpop.eup %6253 }
0x1af2   :  { %3732 = vadd.xlane.f32.xlu2 %v3731_v4  ;;  %v3599_v50 = vsel %vm3326_vm4, %v6254_v47, 0.0  ;;  %v6256_v51 = vpop.eup %6255 }
0x1af3   :  { %v3445_v54 = vmul.f32 %v6256_v51, %v6244_v33  ;;  %v3869_v51 = vld [vmem:[%s8645_s20 + $0x8] sm:$0xff] }
0x1af6   :  { %v6258_v59 = vpop.eup %6257 }
0x1af7   :  { %v3598_v58 = vpop.xlane.xlu2 %3597  ;;  %v3446_v63 = vmul.f32 %v6258_v59, %v6246_v40  ;;  %v3880_v59 = vld [vmem:[%s8646_s6 + $0x38] sm:$0xff] }
0x1af8   :  { %v3450_v48 = vpop.permute.xlu0 %3449  ;;  %6259 = vrcp.f32 %v3598_v58  ;;  %3933 = vmatpush.msrb.mxu2 %v3880_v59  ;;  %v5841_v59 = vld [vmem:[%s8636_s17 + $0x28] sm:$0xff] }
0x1af9   :  { %5811 = vmatpush.msk.msrb.mxu0 %vm572_vm3, %v3450_v48 }
0x1afa   :  { %3600 = vadd.xlane.f32.xlu2 %v3599_v50  ;;  %v3870_v50 = vld [vmem:[%s8645_s20 + $0x10] sm:$0xff] }
0x1afe   :  { %v6260_v2 = vpop.eup %6259 }
0x1aff   :  { %v3448_v56 = vpop.permute.xlu1 %3447  ;;  %v3604_v5 = vmul.f32 %v6260_v2, %v6248_v16 }
0x1b00   :  { %v3741_v57 = vpop.permute.xlu0 %3740  ;;  %3475 = vmatpush.msrb.mxu0 %v3448_v56 }
0x1b01   :  { %5812 = vmatmul.msk.f32.vlgmr.msrb.gmra.mxu0 %vm1049_vm7, %v3445_v54  ;;  %5831 = vmatpush.msk.msra.mxu3 %vm572_vm3, %v3741_v57  ;;  %v3868_v54 = vld [vmem:[%s8645_s20] sm:$0xff] }
0x1b07   :  { %v3739_v53 = vpop.permute.xlu1 %3738 }
0x1b08   :  { %v3609_v49 = vpop.permute.xlu0 %3608  ;;  %3766 = vmatpush.msra.mxu3 %v3739_v53  ;;  %v3879_v53 = vld [vmem:[%s8646_s6 + $0x30] sm:$0xff] }
0x1b09   :  { %5813 = vmatmul.msk.f32.gmra.mxu0 %vm1049_vm7, %v3446_v63  ;;  %3934 = vmatpush.msrb.mxu2 %v3879_v53  ;;  %v5840_v53 = vld [vmem:[%s8636_s17 + $0x20] sm:$0xff] }
0x1b0a   :  { %5822 = vmatpush.msk.msra.mxu0 %vm572_vm3, %v3609_v49  ;;  %v3878_v49 = vld [vmem:[%s8646_s6 + $0x28] sm:$0xff] }
0x1b0b   :  { %3935 = vmatpush.msrb.mxu2 %v3878_v49 }
0x1b0f   :  { %v3607_v3 = vpop.permute.xlu1 %3606 }
0x1b10   :  { %3634 = vmatpush.msra.mxu0 %v3607_v3 }
0x1b11   :  { %5823 = vmatmul.msk.f32.vlgmr.msra.gmra.mxu0 %vm1049_vm7, %v3604_v5 }
0x1b12   :  { %3795 = vmatpush.msrb.mxu0 %v3282_v21 }
0x1b5d   :  { %v3730_v10 = vpop.xlane.xlu2 %3729 }
0x1b5e   :  { %6261 = vrcp.f32 %v3730_v10  ;;  %v3877_v10 = vld [vmem:[%s8646_s6 + $0x20] sm:$0xff] }
0x1b5f   :  { %3936 = vmatpush.msrb.mxu2 %v3877_v10 }
0x1b64   :  { %v6262_v34 = vpop.eup %6261 }
0x1b65   :  { %v3736_v8 = vmul.f32 %v6262_v34, %v6250_v0  ;;  %v3733_v62 = vpop.xlane.xlu2 %3732 }
0x1b66   :  { %6263 = vrcp.f32 %v3733_v62 }
0x1b67   :  { %5832 = vmatmul.msk.f32.vlgmr.msra.gmra.mxu3 %vm1049_vm7, %v3736_v8  ;;  %v3876_v8 = vld [vmem:[%s8646_s6 + $0x18] sm:$0xff] }
0x1b68   :  { %3937 = vmatpush.msrb.mxu2 %v3876_v8 }
0x1b6c   :  { %v6264_v28 = vpop.eup %6263 }
0x1b6d   :  { %v3601_v22 = vpop.xlane.xlu2 %3600  ;;  %v3737_v32 = vmul.f32 %v6264_v28, %v6252_v46 }
0x1b6e   :  { %6265 = vrcp.f32 %v3601_v22 }
0x1b6f   :  { %5833 = vmatmul.msk.f32.gmra.mxu3 %vm1049_vm7, %v3737_v32  ;;  %v6091_v32 = vld [vmem:[#allocation19] ss:$0 sm:$0xff] }
0x1b74   :  { %v6266_v29 = vpop.eup %6265 }
0x1b75   :  { %v3605_v23 = vmul.f32 %v6266_v29, %v6254_v47  ;;  %v6092_v29 = vld [vmem:[#allocation17] ss:$0 sm:$0xff] }
0x1b77   :  { %5824 = vmatmul.msk.f32.gmra.mxu0 %vm1049_vm7, %v3605_v23 }
0x1b7e   :  { %v3477_v25 = vpop.f32.mrf.mxu0 }
0x1b7f   :  { %5814 = vmatmul.msk.f32.vlgmr.msra.gmra.mxu1 %vm1013_vm6, %v3477_v25 }
0x1b80   :  { %3903 = vmatpush.msra.mxu1 %v3871_v38 }
0x1b82   :  { %3904 = vmatpush.msra.mxu1 %v3870_v50 }
0x1b84   :  { %3905 = vmatpush.msra.mxu1 %v3869_v51 }
0x1b86   :  { %v3480_v26 = vpop.f32.mrf.mxu0  ;;  %3906 = vmatpush.msra.mxu1 %v3868_v54 }
0x1b87   :  { %5815 = vmatmul.msk.f32.gmra.mxu1 %vm1013_vm6, %v3480_v26 }
0x1b8e   :  { %v3636_v27 = vpop.f32.mrf.mxu0 }
0x1b8f   :  { %5825 = vmatmul.msk.f32.vlgmr.msrb.gmra.mxu1 %vm1013_vm6, %v3636_v27 }
0x1bea   :  { %v3768_v30 = vpop.f32.mrf.mxu3 }
0x1beb   :  { %5834 = vmatmul.msk.f32.vlgmr.msrb.gmra.mxu0 %vm1013_vm6, %v3768_v30 }
0x1bf2   :  { %v3771_v11 = vpop.f32.mrf.mxu3 }
0x1bf3   :  { %5835 = vmatmul.msk.f32.gmra.mxu0 %vm1013_vm6, %v3771_v11 }
0x1bf4   :  { %v3639_v33 = vpop.f32.mrf.mxu0 }
0x1bf5   :  { %5826 = vmatmul.msk.f32.gmra.mxu1 %vm1013_vm6, %v3639_v33 }
0x1bfc   :  { %v3506_v13 = vpop.f32.mrf.mxu1 }
0x1bfd   :  { %v3536_v39 = vadd.f32 %v8093_v9, %v3506_v13 }
0x1c04   :  { %v3509_v18 = vpop.f32.mrf.mxu1 }
0x1c05   :  { %v3539_v6 = vadd.f32 %v8095_v61, %v3509_v18 }
0x1c0c   :  { %v3665_v37 = vpop.f32.mrf.mxu1 }
0x1c0d   :  { %v3671_v40 = vadd.f32 %v3665_v37, %v3536_v39 }
0x1c68   :  { %v3797_v41 = vpop.f32.mrf.mxu0 }
0x1c69   :  { %v3803_v16 = vadd.f32 %v3797_v41, %v3671_v40  ;;  %v3874_v41 = vld [vmem:[%s8646_s6 + $0x8] sm:$0xff] }
0x1c6b   :  { %v3808_v14 = vadd.f32 %v6090_v7, %v3803_v16  ;;  %v3873_v16 = vld [vmem:[%s8646_s6] sm:$0xff] }
0x1c6d   :  { %v3810_v15 = vadd.f32 %v3808_v14, %v8015_v55  ;;  %v6093_v14 = vld [vmem:[%s8647_s11] ss:$0 sm:$0xff] }
0x1c6f   :  { %v3814_v24 = vsel %vm557_vm5, %v3810_v15, 0.0 }
0x1c70   :  { %3815 = vadd.xlane.f32.xlu0 %v3814_v24  ;;  %v3800_v43 = vpop.f32.mrf.mxu0 }
0x1c72   :  { %v3668_v20 = vpop.f32.mrf.mxu1 }
0x1c73   :  { %v3672_v42 = vadd.f32 %v3668_v20, %v3539_v6 }
0x1c75   :  { %v3804_v0 = vadd.f32 %v3800_v43, %v3672_v42 }
0x1c77   :  { %v3809_v31 = vadd.f32 %v6090_v7, %v3804_v0  ;;  %v3875_v7 = vld [vmem:[%s8646_s6 + $0x10] sm:$0xff]  ;;  %v6094_v0 = vld [vmem:[%s8648_s10] ss:$0 sm:$0xff] }
0x1c78   :  { %3938 = vmatpush.msrb.mxu2 %v3875_v7  ;;  %v6097_v7 = vld [vmem:[#allocation25 + $0x1] ss:$0 sm:$0xff] }
0x1c79   :  { %v3811_v9 = vadd.f32 %v3809_v31, %v8020_v60 }
0x1c7a   :  { %3939 = vmatpush.msrb.mxu2 %v3874_v41 }
0x1c7b   :  { %v3817_v19 = vsel %vm3153_vm10, %v3811_v9, 0.0 }
0x1c7c   :  { %3818 = vadd.xlane.f32.xlu2 %v3817_v19  ;;  %3940 = vmatpush.msrb.mxu2 %v3873_v16 }
0x1ce3   :  { %v3816_v44 = vpop.xlane.xlu0 %3815 }
0x1ce4   :  { %v3820_v55 = vmul.f32 %v3816_v44, %v7578_v35 }
0x1ce6   :  { %v3822_v45 = vsub.f32 %v3810_v15, %v3820_v55 }
0x1ce8   :  { %v3824_v46 = vmul.f32 %v3822_v45, %v3822_v45 }
0x1cea   :  { %v3826_v61 = vsel %vm557_vm5, %v3824_v46, 0.0 }
0x1ceb   :  { %3827 = vadd.xlane.f32.xlu1 %v3826_v61 }
0x1cef   :  { %v3819_v4 = vpop.xlane.xlu2 %3818 }
0x1cf0   :  { %v3821_v52 = vmul.f32 %v3819_v4, %v7578_v35 }
0x1cf2   :  { %v3823_v47 = vsub.f32 %v3811_v9, %v3821_v52 }
0x1cf4   :  { %v3825_v60 = vmul.f32 %v3823_v47, %v3823_v47 }
0x1cf6   :  { %v3829_v48 = vsel %vm3153_vm10, %v3825_v60, 0.0 }
0x1cf7   :  { %3830 = vadd.xlane.f32.xlu2 %v3829_v48 }
0x1d5e   :  { %v3828_v56 = vpop.xlane.xlu1 %3827 }
0x1d5f   :  { %v3832_v57 = vmul.f32 %v3828_v56, %v7578_v35 }
0x1d61   :  { %v3834_v58 = vadd.f32 1e-05, %v3832_v57  ;;  %v5843_v57 = vld [vmem:[%s8636_s17 + $0x38] sm:$0xff] }
0x1d62   :  { %4034 = vmatpush.msrb.mxu3 %v5843_v57 }
0x1d63   :  { %6267 = vrsqrt.f32 %v3834_v58  ;;  %vm3842_vm2 = vweird.f32 %v3834_v58 }
0x1d69   :  { %v6268_v63 = vpop.eup %6267 }
0x1d6a   :  { %v3837_v2 = vmul.f32 %v6268_v63, %v3834_v58  ;;  %v3831_v5 = vpop.xlane.xlu2 %3830  ;;  %vm3843_vm9 = vweird.f32 %v6268_v63  ;;  %v5842_v58 = vld [vmem:[%s8636_s17 + $0x30] sm:$0xff] }
0x1d6b   :  { %v3833_v3 = vmul.f32 %v3831_v5, %v7578_v35  ;;  %vm3844_vm12 = vmor %vm3842_vm2, %vm3843_vm9  ;;  %4035 = vmatpush.msrb.mxu3 %v5842_v58  ;;  %v5846_v58 = vld [vmem:[%s8638_s16 + $0x20] sm:$0xff] }
0x1d6c   :  { %v3838_v12 = vmul.f32 %v6268_v63, %v3837_v2 }
0x1d6d   :  { %v3835_v34 = vadd.f32 1e-05, %v3833_v3  ;;  %4036 = vmatpush.msrb.mxu3 %v5841_v59 }
0x1d6e   :  { %v3839_v62 = vmul.f32 0.5, %v3838_v12 }
0x1d6f   :  { %6269 = vrsqrt.f32 %v3835_v34  ;;  %vm3852_vm15 = vweird.f32 %v3835_v34  ;;  %4037 = vmatpush.msrb.mxu3 %v5840_v53 }
0x1d70   :  { %v3840_v28 = vsub.f32 1.5, %v3839_v62 }
0x1d72   :  { %v3841_v22 = vmul.f32 %v6268_v63, %v3840_v28 }
0x1d74   :  { %v3845_v17 = vsel %vm3844_vm12, %v6268_v63, %v3841_v22 }
0x1d75   :  { %v6270_v21 = vpop.eup %6269  ;;  %v3856_v23 = vmul.f32 %v3845_v17, %v3822_v45 }
0x1d76   :  { %v3847_v25 = vmul.f32 %v6270_v21, %v3835_v34  ;;  %vm3853_vm14 = vweird.f32 %v6270_v21 }
0x1d77   :  { %v3861_v26 = vmul.f32 %v6091_v32, %v3856_v23  ;;  %vm3854_vm1 = vmor %vm3852_vm15, %vm3853_vm14 }
0x1d78   :  { %v3848_v27 = vmul.f32 %v6270_v21, %v3847_v25 }
0x1d79   :  { %v3866_v30 = vadd.f32 %v6092_v29, %v3861_v26 }
0x1d7a   :  { %v3849_v11 = vmul.f32 0.5, %v3848_v27 }
0x1d7b   :  { %5836 = vmatmul.msk.f32.vlgmr.msra.gmra.mxu1 %vm557_vm5, %v3866_v30 }
0x1d7c   :  { %v3850_v33 = vsub.f32 1.5, %v3849_v11 }
0x1d7e   :  { %v3851_v13 = vmul.f32 %v6270_v21, %v3850_v33 }
0x1d80   :  { %v3855_v18 = vsel %vm3854_vm1, %v6270_v21, %v3851_v13 }
0x1d81   :  { %v3857_v37 = vmul.f32 %v3855_v18, %v3823_v47 }
0x1d83   :  { %v3862_v39 = vmul.f32 %v6091_v32, %v3857_v37  ;;  %v6095_v32 = vld [vmem:[#allocation22] ss:$0 sm:$0xff] }
0x1d85   :  { %v3867_v40 = vadd.f32 %v6092_v29, %v3862_v39  ;;  %v6096_v29 = vld [vmem:[#allocation20] ss:$0 sm:$0xff] }
0x1d87   :  { %5837 = vmatmul.msk.f32.gmra.mxu1 %vm557_vm5, %v3867_v40 }
0x1df8   :  { %v3908_v15 = vpop.f32.mrf.mxu1 }
0x1df9   :  { %v3909_v24 = vadd.f32 %v6093_v14, %v3908_v15 }
0x1dfb   :  { %v3914_v6 = vmax.f32 %v3909_v24, 0.0 }
0x1dfd   :  { %5838 = vmatmul.msk.f32.vlgmr.msrb.gmra.mxu2 %vm1653_vm0, %v3914_v6 }
0x1e04   :  { %v3911_v20 = vpop.f32.mrf.mxu1 }
0x1e05   :  { %v3912_v42 = vadd.f32 %v6093_v14, %v3911_v20 }
0x1e07   :  { %v3915_v43 = vmax.f32 %v3912_v42, 0.0 }
0x1e09   :  { %5839 = vmatmul.msk.f32.gmra.mxu2 %vm1653_vm0, %v3915_v43 }
0x1e80   :  { %v3942_v31 = vpop.f32.mrf.mxu2 }
0x1e81   :  { %v3943_v9 = vadd.f32 %v6094_v0, %v3942_v31 }
0x1e83   :  { %v3948_v19 = vadd.f32 %v3943_v9, %v3866_v30  ;;  %v8229_v9 = vld [vmem:[%s8637_s18] sm:$0xff] }
0x1e85   :  { %v3952_v44 = vsel %vm557_vm5, %v3948_v19, 0.0 }
0x1e86   :  { %3953 = vadd.xlane.f32.xlu2 %v3952_v44 }
0x1e8c   :  { %v3945_v55 = vpop.f32.mrf.mxu2 }
0x1e8d   :  { %v3946_v45 = vadd.f32 %v6094_v0, %v3945_v55 }
0x1e8f   :  { %v3949_v46 = vadd.f32 %v3946_v45, %v3867_v40 }
0x1e91   :  { %v3955_v61 = vsel %vm3153_vm10, %v3949_v46, 0.0 }
0x1e92   :  { %3956 = vadd.xlane.f32.xlu2 %v3955_v61 }
0x1ef9   :  { %v3954_v4 = vpop.xlane.xlu2 %3953 }
0x1efa   :  { %v3958_v52 = vmul.f32 %v3954_v4, %v7578_v35 }
0x1efc   :  { %v3960_v47 = vsub.f32 %v3948_v19, %v3958_v52 }
0x1efe   :  { %v3962_v60 = vmul.f32 %v3960_v47, %v3960_v47 }
0x1f00   :  { %v3964_v48 = vsel %vm557_vm5, %v3962_v60, 0.0 }
0x1f01   :  { %3965 = vadd.xlane.f32.xlu2 %v3964_v48 }
0x1f05   :  { %v3957_v38 = vpop.xlane.xlu2 %3956 }
0x1f06   :  { %v3959_v50 = vmul.f32 %v3957_v38, %v7578_v35 }
0x1f08   :  { %v3961_v51 = vsub.f32 %v3949_v46, %v3959_v50  ;;  %v8234_v46 = vld [vmem:[%s8637_s18 + $0x8] sm:$0x7f] }
0x1f0a   :  { %v3963_v54 = vmul.f32 %v3961_v51, %v3961_v51 }
0x1f0c   :  { %v3967_v56 = vsel %vm3153_vm10, %v3963_v54, 0.0 }
0x1f0d   :  { %3968 = vadd.xlane.f32.xlu0 %v3967_v56 }
0x1f74   :  { %v3966_v63 = vpop.xlane.xlu2 %3965 }
0x1f75   :  { %v3970_v49 = vmul.f32 %v3966_v63, %v7578_v35 }
0x1f77   :  { %v3972_v2 = vadd.f32 1e-05, %v3970_v49 }
0x1f79   :  { %6271 = vrsqrt.f32 %v3972_v2  ;;  %vm3980_vm2 = vweird.f32 %v3972_v2 }
0x1f7f   :  { %v6272_v5 = vpop.eup %6271 }
0x1f80   :  { %v3975_v3 = vmul.f32 %v6272_v5, %v3972_v2  ;;  %v3969_v10 = vpop.xlane.xlu0 %3968  ;;  %vm3981_vm9 = vweird.f32 %v6272_v5 }
0x1f81   :  { %v3971_v12 = vmul.f32 %v3969_v10, %v7578_v35  ;;  %vm3982_vm12 = vmor %vm3980_vm2, %vm3981_vm9 }
0x1f82   :  { %v3976_v34 = vmul.f32 %v6272_v5, %v3975_v3 }
0x1f83   :  { %v3973_v8 = vadd.f32 1e-05, %v3971_v12 }
0x1f84   :  { %v3977_v62 = vmul.f32 0.5, %v3976_v34 }
0x1f85   :  { %6273 = vrsqrt.f32 %v3973_v8  ;;  %vm3990_vm15 = vweird.f32 %v3973_v8 }
0x1f86   :  { %v3978_v28 = vsub.f32 1.5, %v3977_v62 }
0x1f88   :  { %v3979_v22 = vmul.f32 %v6272_v5, %v3978_v28 }
0x1f8a   :  { %v3983_v17 = vsel %vm3982_vm12, %v6272_v5, %v3979_v22 }
0x1f8b   :  { %v6274_v21 = vpop.eup %6273  ;;  %v3994_v23 = vmul.f32 %v3983_v17, %v3960_v47  ;;  %v5895_v17 = vld [vmem:[%s8639_s22 + $0x38] sm:$0xff] }
0x1f8c   :  { %v3985_v25 = vmul.f32 %v6274_v21, %v3973_v8  ;;  %vm3991_vm14 = vweird.f32 %v6274_v21 }
0x1f8d   :  { %v3999_v26 = vmul.f32 %v6095_v32, %v3994_v23  ;;  %vm3992_vm1 = vmor %vm3990_vm15, %vm3991_vm14  ;;  %v5893_v23 = vld [vmem:[%s8639_s22 + $0x28] sm:$0xff] }
0x1f8e   :  { %v3986_v27 = vmul.f32 %v6274_v21, %v3985_v25  ;;  %v5892_v25 = vld [vmem:[%s8639_s22 + $0x20] sm:$0xff] }
0x1f8f   :  { %v8182_v30 = vadd.f32 %v6096_v29, %v3999_v26 }
0x1f90   :  { %v3987_v11 = vmul.f32 0.5, %v3986_v27 }
0x1f91   :  { %5844 = vmatmul.msk.f32.vlgmr.msrb.gmra.mxu3 %vm557_vm5, %v8182_v30 }
0x1f92   :  { %v3988_v33 = vsub.f32 1.5, %v3987_v11 }
0x1f94   :  { %v3989_v13 = vmul.f32 %v6274_v21, %v3988_v33 }
0x1f96   :  { %v3993_v18 = vsel %vm3992_vm1, %v6274_v21, %v3989_v13 }
0x1f97   :  { %v3995_v37 = vmul.f32 %v3993_v18, %v3961_v51 }
0x1f99   :  { %v4000_v39 = vmul.f32 %v6095_v32, %v3995_v37 }
0x1f9b   :  { %v8186_v40 = vadd.f32 %v6096_v29, %v4000_v39  ;;  %v5894_v29 = vld [vmem:[%s8639_s22 + $0x30] sm:$0xff] }
0x1f9d   :  { %5845 = vmatmul.msk.f32.gmra.mxu3 %vm557_vm5, %v8186_v40 }
0x2014   :  { %v4039_v41 = vpop.f32.mrf.mxu3 }
0x2015   :  { %v8190_v16 = vadd.f32 %v6097_v7, %v4039_v41 }
0x2017   :  { %4054 = vrot.lane.b32.xlu1 %v8190_v16, %s6895_s24 }
0x201f   :  { %4115 = vrot.lane.b32.xlu1 %v8190_v16, %s6896_s5 }
0x2020   :  { %v4042_v14 = vpop.f32.mrf.mxu3 }
0x2021   :  { %v8196_v15 = vadd.f32 %v6097_v7, %v4042_v14 }
0x2023   :  { %4056 = vrot.lane.b32.xlu2 %v8196_v15, %s6895_s24 }
0x2027   :  { %4151 = vrot.lane.b32.xlu1 %v8190_v16, %s6898_s12 }
0x202b   :  { %4117 = vrot.lane.b32.xlu2 %v8196_v15, %s6896_s5 }
0x202f   :  { %4316 = vrot.lane.b32.xlu1 %v8196_v15, %s6902_s7 }
0x2033   :  { %4157 = vrot.lane.b32.xlu2 %v8196_v15, %s6897_s0 }
0x2037   :  { %4314 = vrot.lane.b32.xlu1 %v8190_v16, %s6902_s7 }
0x203b   :  { %4153 = vrot.lane.b32.xlu2 %v8196_v15, %s6898_s12 }
0x203f   :  { %4442 = vrot.lane.b32.xlu1 %v8190_v16, %s6899_s26 }
0x2043   :  { %4448 = vrot.lane.b32.xlu2 %v8196_v15, %s6903_s14 }
0x204b   :  { %4446 = vrot.lane.b32.xlu2 %v8190_v16, %s6903_s14 }
0x2053   :  { %4312 = vrot.lane.b32.xlu2 %v8196_v15, %s6900_s28 }
0x207d   :  { %v4057_v24 = vpop.permute.xlu2 %4056 }
0x207e   :  { %5850 = vmatpush.xpose.msk.msra.mxu0 %vm1013_vm6, %v4057_v24 }
0x2085   :  { %v4118_v6 = vpop.permute.xlu2 %4117 }
0x2086   :  { %5854 = vmatpush.msk.msrb.mxu1 %vm2692_vm11, %v4118_v6 }
0x2089   :  { %v4055_v20 = vpop.permute.xlu1 %4054 }
0x208a   :  { %5851 = vmatpush.xpose.msk.msra.mxu0 %vm1013_vm6, %v4055_v20 }
0x208d   :  { %v4158_v42 = vpop.permute.xlu2 %4157  ;;  %5852 = vmatmul.msk.f32.vlgmr.msra.gmra.mxu0 %vm1013_vm6, %v8190_v16 }
0x208e   :  { %5857 = vmatpush.xpose.msk.msra.mxu2 %vm1013_vm6, %v4158_v42 }
0x2091   :  { %v4116_v43 = vpop.permute.xlu1 %4115 }
0x2092   :  { %4143 = vmatpush.msrb.mxu1 %v4116_v43 }
0x2094   :  { %4302 = vmatpush.msra.mxu1 %v5846_v58 }
0x2095   :  { %5853 = vmatmul.msk.f32.gmra.mxu0 %vm1013_vm6, %v8196_v15  ;;  %v4154_v59 = vpop.permute.xlu2 %4153 }
0x2099   :  { %v4152_v3 = vpop.permute.xlu1 %4151 }
0x209d   :  { %v4449_v63 = vpop.permute.xlu2 %4448 }
0x20a1   :  { %v4317_v8 = vpop.permute.xlu1 %4316 }
0x20a5   :  { %v4447_v10 = vpop.permute.xlu2 %4446 }
0x20a9   :  { %v4315_v28 = vpop.permute.xlu1 %4314 }
0x20ad   :  { %v4313_v32 = vpop.permute.xlu2 %4312 }
0x20b1   :  { %v4443_v27 = vpop.permute.xlu1 %4442 }
0x210a   :  { %v4083_v0 = vpop.f32.mrf.mxu0 }
0x210b   :  { %v4089_v31 = vmul.f32 0.35355338, %v4083_v0 }
0x210d   :  { %v4091_v19 = vadd.f32 %v8229_v9, %v4089_v31 }
0x210f   :  { %v4093_v44 = vsel %vm2657_vm8, %v4091_v19, -inf }
0x2110   :  { %4094 = vmax.xlane.f32.xlu0 %v4093_v44 }
0x2112   :  { %v4086_v55 = vpop.f32.mrf.mxu0 }
0x2113   :  { %v4090_v45 = vmul.f32 0.35355338, %v4086_v55 }
0x2115   :  { %v4092_v61 = vadd.f32 %v8234_v46, %v4090_v45 }
0x2117   :  { %v4096_v4 = vsel %vm2661_vm13, %v4092_v61, -inf }
0x2118   :  { %4097 = vmax.xlane.f32.xlu0 %v4096_v4 }
0x2183   :  { %v4095_v52 = vpop.xlane.xlu0 %4094 }
0x2184   :  { %v4099_v47 = vsub.f32 %v4091_v19, %v4095_v52 }
0x2186   :  { %v4101_v60 = vmul.f32 1.442695, %v4099_v47 }
0x2188   :  { %6275 = vpow2.f32 %v4101_v60 }
0x218b   :  { %v4098_v48 = vpop.xlane.xlu0 %4097 }
0x218c   :  { %v4100_v38 = vsub.f32 %v4092_v61, %v4098_v48 }
0x218e   :  { %v6276_v50 = vpop.eup %6275  ;;  %v4103_v51 = vmul.f32 1.442695, %v4100_v38 }
0x218f   :  { %v4105_v54 = vsel %vm2657_vm8, %v6276_v50, 0.0 }
0x2190   :  { %6277 = vpow2.f32 %v4103_v51  ;;  %4106 = vadd.xlane.f32.xlu0 %v4105_v54 }
0x2196   :  { %v6278_v56 = vpop.eup %6277 }
0x2197   :  { %v4108_v57 = vsel %vm2661_vm13, %v6278_v56, 0.0 }
0x2198   :  { %4109 = vadd.xlane.f32.xlu0 %v4108_v57 }
0x21ac   :  { %4155 = vrot.lane.b32.xlu0 %v8190_v16, %s6897_s0 }
0x21b4   :  { %4310 = vrot.lane.b32.xlu0 %v8190_v16, %s6900_s28 }
0x21bc   :  { %4444 = vrot.lane.b32.xlu0 %v8196_v15, %s6899_s26 }
0x2203   :  { %v4107_v53 = vpop.xlane.xlu0 %4106 }
0x2204   :  { %6279 = vrcp.f32 %v4107_v53 }
0x220a   :  { %v6280_v49 = vpop.eup %6279 }
0x220b   :  { %v4113_v2 = vmul.f32 %v6280_v49, %v6276_v50  ;;  %v4110_v5 = vpop.xlane.xlu0 %4109 }
0x220c   :  { %6281 = vrcp.f32 %v4110_v5 }
0x220d   :  { %5855 = vmatmul.msk.f32.vlgmr.msrb.gmra.mxu1 %vm2657_vm8, %v4113_v2 }
0x220e   :  { %5877 = vmatpush.xpose.msk.msrb.mxu1 %vm1013_vm6, %v4449_v63 }
0x2212   :  { %v6282_v12 = vpop.eup %6281  ;;  %5878 = vmatpush.xpose.msk.msrb.mxu1 %vm1013_vm6, %v4447_v10 }
0x2213   :  { %v4114_v34 = vmul.f32 %v6282_v12, %v6278_v56 }
0x2215   :  { %5856 = vmatmul.msk.f32.gmra.mxu1 %vm2657_vm8, %v4114_v34 }
0x221e   :  { %v4156_v62 = vpop.permute.xlu0 %4155 }
0x221f   :  { %5858 = vmatpush.xpose.msk.msra.mxu2 %vm1013_vm6, %v4156_v62 }
0x2222   :  { %5859 = vmatmul.msk.f32.vlgmr.msra.gmra.mxu2 %vm1013_vm6, %v4152_v3 }
0x2223   :  { %5868 = vmatpush.xpose.msk.msrb.mxu2 %vm1013_vm6, %v4317_v8 }
0x2226   :  { %v4311_v22 = vpop.permute.xlu0 %4310 }
0x2227   :  { %5869 = vmatpush.xpose.msk.msrb.mxu2 %vm1013_vm6, %v4315_v28 }
0x222a   :  { %5860 = vmatmul.msk.f32.gmra.mxu2 %vm1013_vm6, %v4154_v59 }
0x222e   :  { %v4445_v11 = vpop.permute.xlu0 %4444 }
0x2232   :  { %5870 = vmatmul.msk.f32.vlgmr.msrb.gmra.mxu2 %vm1013_vm6, %v4311_v22 }
0x223a   :  { %5871 = vmatmul.msk.f32.gmra.mxu2 %vm1013_vm6, %v4313_v32 }
0x228a   :  { %v4145_v21 = vpop.f32.mrf.mxu1 }
0x228b   :  { %5866 = vmatmul.msk.f32.vlgmr.msra.gmra.mxu1 %vm1013_vm6, %v4145_v21 }
0x228c   :  { %4700 = vmatpush.msra.mxu1 %v5895_v17 }
0x228e   :  { %4701 = vmatpush.msra.mxu1 %v5894_v29 }
0x2290   :  { %4702 = vmatpush.msra.mxu1 %v5893_v23 }
0x2292   :  { %v4148_v26 = vpop.f32.mrf.mxu1  ;;  %4703 = vmatpush.msra.mxu1 %v5892_v25 }
0x2293   :  { %5867 = vmatmul.msk.f32.gmra.mxu1 %vm1013_vm6, %v4148_v26 }
0x229b   :  { %5879 = vmatmul.msk.f32.vlgmr.msrb.gmra.mxu1 %vm1013_vm6, %v4443_v27 }
0x22a3   :  { %5880 = vmatmul.msk.f32.gmra.mxu1 %vm1013_vm6, %v4445_v11 }
0x22a5   :  { %v4184_v33 = vpop.f32.mrf.mxu2 }
0x22a6   :  { %v4190_v13 = vmul.f32 0.35355338, %v4184_v33 }
0x22a8   :  { %v4192_v18 = vadd.f32 %v8229_v9, %v4190_v13 }
0x22aa   :  { %v4194_v37 = vsel %vm2657_vm8, %v4192_v18, -inf }
0x22ab   :  { %4195 = vmax.xlane.f32.xlu1 %v4194_v37  ;;  %5897 = vmatmul.msk.f32.vlgmr.msra.gmra.mxu1 %vm557_vm5, %v8000_v1 }
0x22ad   :  { %v4187_v39 = vpop.f32.mrf.mxu2 }
0x22ae   :  { %v4191_v7 = vmul.f32 0.35355338, %v4187_v39 }
0x22b0   :  { %v4193_v41 = vadd.f32 %v8234_v46, %v4191_v7 }
0x22b2   :  { %v4197_v14 = vsel %vm2661_vm13, %v4193_v41, -inf }
0x22b3   :  { %4198 = vmax.xlane.f32.xlu2 %v4197_v14  ;;  %5898 = vmatmul.msk.f32.gmra.mxu1 %vm557_vm5, %v8004_v36  ;;  %v6098_v14 = vld [vmem:[%s8641_s23 + $0x1] ss:$0 sm:$0xff] }
0x22b5   :  { %v4343_v24 = vpop.f32.mrf.mxu2 }
0x22b6   :  { %v4349_v6 = vmul.f32 0.35355338, %v4343_v24 }
0x22b8   :  { %v4351_v20 = vadd.f32 %v8229_v9, %v4349_v6 }
0x22ba   :  { %v4353_v42 = vsel %vm2657_vm8, %v4351_v20, -inf }
0x22bb   :  { %4354 = vmax.xlane.f32.xlu1 %v4353_v42 }
0x22bd   :  { %v4346_v19 = vpop.f32.mrf.mxu2 }
0x22be   :  { %v4350_v55 = vmul.f32 0.35355338, %v4346_v19 }
0x22c0   :  { %v4352_v52 = vadd.f32 %v8234_v46, %v4350_v55 }
0x22c2   :  { %v4356_v38 = vsel %vm2661_vm13, %v4352_v52, -inf }
0x2308   :  { %v8276_v43 = vpop.f32.mrf.mxu1 }
0x2310   :  { %v8278_v1 = vpop.f32.mrf.mxu1 }
0x2318   :  { %v4475_v0 = vpop.f32.mrf.mxu1 }
0x2319   :  { %v4481_v31 = vmul.f32 0.35355338, %v4475_v0 }
0x231b   :  { %v4483_v44 = vadd.f32 %v8229_v9, %v4481_v31 }
0x231d   :  { %v4485_v45 = vsel %vm2657_vm8, %v4483_v44, -inf }
0x231e   :  { %4486 = vmax.xlane.f32.xlu0 %v4485_v45  ;;  %v4196_v36 = vpop.xlane.xlu1 %4195 }
0x231f   :  { %v4200_v61 = vsub.f32 %v4192_v18, %v4196_v36 }
0x2320   :  { %v4478_v4 = vpop.f32.mrf.mxu1 }
0x2321   :  { %v4202_v47 = vmul.f32 1.442695, %v4200_v61  ;;  %v4482_v60 = vmul.f32 0.35355338, %v4478_v4  ;;  %v5847_v61 = vld [vmem:[%s8638_s16 + $0x28] sm:$0xff] }
0x2322   :  { %4273 = vmatpush.msrb.mxu0 %v5847_v61 }
0x2323   :  { %6283 = vpow2.f32 %v4202_v47  ;;  %v4484_v48 = vadd.f32 %v8234_v46, %v4482_v60 }
0x2325   :  { %v4488_v50 = vsel %vm2661_vm13, %v4484_v48, -inf }
0x2326   :  { %v4199_v51 = vpop.xlane.xlu2 %4198  ;;  %4357 = vmax.xlane.f32.xlu0 %v4356_v38  ;;  %4489 = vmax.xlane.f32.xlu2 %v4488_v50  ;;  %v5848_v38 = vld [vmem:[%s8638_s16 + $0x30] sm:$0xff] }
0x2327   :  { %v4201_v9 = vsub.f32 %v4193_v41, %v4199_v51  ;;  %4432 = vmatpush.msra.mxu0 %v5848_v38 }
0x2328   :  { %v4705_v11 = vpop.f32.mrf.mxu1 }
0x2329   :  { %v6284_v54 = vpop.eup %6283  ;;  %v4204_v56 = vmul.f32 1.442695, %v4201_v9  ;;  %v8314_v42 = vadd.f32 %v6098_v14, %v4705_v11 }
0x232a   :  { %v4206_v57 = vsel %vm2657_vm8, %v6284_v54, 0.0 }
0x232b   :  { %6285 = vpow2.f32 %v4204_v56  ;;  %4207 = vadd.xlane.f32.xlu1 %v4206_v57 }
0x232e   :  { %v4355_v58 = vpop.xlane.xlu1 %4354 }
0x232f   :  { %v4359_v59 = vsub.f32 %v4351_v20, %v4355_v58 }
0x2330   :  { %v4708_v41 = vpop.f32.mrf.mxu1 }
0x2331   :  { %v6286_v53 = vpop.eup %6285  ;;  %v4361_v63 = vmul.f32 1.442695, %v4359_v59  ;;  %v8309_v24 = vadd.f32 %v6098_v14, %v4708_v41 }
0x2332   :  { %v4209_v46 = vsel %vm2661_vm13, %v6286_v53, 0.0 }
0x2333   :  { %6287 = vpow2.f32 %v4361_v63  ;;  %4210 = vadd.xlane.f32.xlu0 %v4209_v46 }
0x2339   :  { %v6288_v49 = vpop.eup %6287 }
0x233a   :  { %v4365_v2 = vsel %vm2657_vm8, %v6288_v49, 0.0 }
0x233b   :  { %4366 = vadd.xlane.f32.xlu0 %v4365_v2  ;;  %v6099_v2 = vld [vmem:[#allocation23 + $0x1] ss:$0 sm:$0xff] }
0x233e   :  { %4218 = vrot.lane.b32.xlu2 %v8196_v15, %s6904_s9 }
0x2344   :  { %4216 = vrot.lane.b32.xlu1 %v8190_v16, %s6904_s9 }
0x2346   :  { %4509 = vrot.lane.b32.xlu2 %v8196_v15, %s6905_s13 }
0x234c   :  { %4507 = vrot.lane.b32.xlu1 %v8190_v16, %s6905_s13 }
0x234e   :  { %4377 = vrot.lane.b32.xlu2 %v8196_v15, %s6906_s4 }
0x2354   :  { %4375 = vrot.lane.b32.xlu1 %v8190_v16, %s6906_s4 }
0x2391   :  { %v4487_v5 = vpop.xlane.xlu0 %4486 }
0x2392   :  { %v4491_v3 = vsub.f32 %v4483_v44, %v4487_v5 }
0x2394   :  { %v4493_v10 = vmul.f32 1.442695, %v4491_v3 }
0x2396   :  { %6289 = vpow2.f32 %v4493_v10 }
0x2399   :  { %v4490_v12 = vpop.xlane.xlu2 %4489  ;;  %v4358_v34 = vpop.xlane.xlu0 %4357 }
0x239a   :  { %v4492_v8 = vsub.f32 %v4484_v48, %v4490_v12  ;;  %v4360_v22 = vsub.f32 %v4352_v52, %v4358_v34 }
0x239c   :  { %v6290_v62 = vpop.eup %6289  ;;  %v4495_v28 = vmul.f32 1.442695, %v4492_v8  ;;  %v4363_v17 = vmul.f32 1.442695, %v4360_v22 }
0x239d   :  { %v4497_v32 = vsel %vm2657_vm8, %v6290_v62, 0.0 }
0x239e   :  { %4498 = vadd.xlane.f32.xlu0 %v4497_v32  ;;  %6291 = vpow2.f32 %v4495_v28  ;;  %v4208_v23 = vpop.xlane.xlu1 %4207 }
0x239f   :  { %6293 = vpow2.f32 %v4363_v17 }
0x23a0   :  { %6295 = vrcp.f32 %v4208_v23 }
0x23a1   :  { %v4219_v21 = vpop.permute.xlu2 %4218 }
0x23a2   :  { %5861 = vmatpush.msk.msra.mxu3 %vm2692_vm11, %v4219_v21 }
0x23a4   :  { %v6292_v15 = vpop.eup %6291 }
0x23a5   :  { %v4500_v16 = vsel %vm2661_vm13, %v6292_v15, 0.0  ;;  %v6294_v25 = vpop.eup %6293 }
0x23a6   :  { %4501 = vadd.xlane.f32.xlu0 %v4500_v16  ;;  %v4368_v26 = vsel %vm2661_vm13, %v6294_v25, 0.0  ;;  %v4211_v27 = vpop.xlane.xlu0 %4210  ;;  %v6296_v33 = vpop.eup %6295 }
0x23a7   :  { %6297 = vrcp.f32 %v4211_v27  ;;  %v4214_v13 = vmul.f32 %v6296_v33, %v6284_v54  ;;  %v5849_v54 = vld [vmem:[%s8638_s16 + $0x38] sm:$0xff] }
0x23a8   :  { %v5889_v33 = vld [vmem:[%s8640_s19 + $0x38] sm:$0xff] }
0x23a9   :  { %v4510_v29 = vpop.permute.xlu2 %4509 }
0x23aa   :  { %5881 = vmatpush.msk.msra.mxu2 %vm2692_vm11, %v4510_v29 }
0x23ad   :  { %v6298_v7 = vpop.eup %6297 }
0x23ae   :  { %4369 = vadd.xlane.f32.xlu0 %v4368_v26  ;;  %v4367_v39 = vpop.xlane.xlu0 %4366  ;;  %v4215_v20 = vmul.f32 %v6298_v7, %v6286_v53 }
0x23af   :  { %6299 = vrcp.f32 %v4367_v39 }
0x23b1   :  { %v4378_v37 = vpop.permute.xlu2 %4377 }
0x23b5   :  { %v6300_v0 = vpop.eup %6299 }
0x23b6   :  { %v4217_v18 = vpop.permute.xlu1 %4216  ;;  %v4373_v31 = vmul.f32 %v6300_v0, %v6288_v49 }
0x23b7   :  { %4244 = vmatpush.msra.mxu3 %v4217_v18  ;;  %v5887_v18 = vld [vmem:[%s8640_s19 + $0x28] sm:$0xff] }
0x23b8   :  { %5862 = vmatmul.msk.f32.vlgmr.msra.gmra.mxu3 %vm2657_vm8, %v4214_v13  ;;  %v5888_v13 = vld [vmem:[%s8640_s19 + $0x30] sm:$0xff] }
0x23b9   :  { %5872 = vmatpush.msk.msrb.mxu3 %vm2692_vm11, %v4378_v37  ;;  %v5886_v37 = vld [vmem:[%s8640_s19 + $0x20] sm:$0xff] }
0x23be   :  { %v4508_v6 = vpop.permute.xlu1 %4507 }
0x23bf   :  { %4535 = vmatpush.msra.mxu2 %v4508_v6 }
0x23c0   :  { %5863 = vmatmul.msk.f32.gmra.mxu3 %vm2657_vm8, %v4215_v20 }
0x23c1   :  { %5904 = vmatpush.xpose.msk.msrb.mxu2 %vm1013_vm6, %v8309_v24 }
0x23c5   :  { %5905 = vmatpush.xpose.msk.msrb.mxu2 %vm1013_vm6, %v8314_v42 }
0x23c6   :  { %v4376_v19 = vpop.permute.xlu1 %4375 }
0x23c7   :  { %4403 = vmatpush.msrb.mxu3 %v4376_v19 }
0x23c8   :  { %5873 = vmatmul.msk.f32.vlgmr.msrb.gmra.mxu3 %vm2657_vm8, %v4373_v31 }
0x23c9   :  { %4564 = vmatpush.msra.mxu3 %v5849_v54 }
0x2411   :  { %v4499_v44 = vpop.xlane.xlu0 %4498 }
0x2412   :  { %6301 = vrcp.f32 %v4499_v44 }
0x2418   :  { %v6302_v55 = vpop.eup %6301 }
0x2419   :  { %v4505_v45 = vmul.f32 %v6302_v55, %v6290_v62  ;;  %v4502_v36 = vpop.xlane.xlu0 %4501 }
0x241a   :  { %6303 = vrcp.f32 %v4502_v36  ;;  %v6100_v36 = vld [vmem:[#allocation16 + $0x1] ss:$0 sm:$0xff] }
0x241b   :  { %5882 = vmatmul.msk.f32.vlgmr.msra.gmra.mxu2 %vm2657_vm8, %v4505_v45 }
0x2420   :  { %v6304_v4 = vpop.eup %6303 }
0x2421   :  { %v4370_v52 = vpop.xlane.xlu0 %4369  ;;  %v4506_v47 = vmul.f32 %v6304_v4, %v6292_v15  ;;  %v6101_v4 = vld [vmem:[#allocation14 + $0x1] ss:$0 sm:$0xff] }
0x2422   :  { %6305 = vrcp.f32 %v4370_v52 }
0x2423   :  { %5883 = vmatmul.msk.f32.gmra.mxu2 %vm2657_vm8, %v4506_v47 }
0x2428   :  { %v6306_v60 = vpop.eup %6305 }
0x2429   :  { %v4374_v48 = vmul.f32 %v6306_v60, %v6294_v25 }
0x242b   :  { %5874 = vmatmul.msk.f32.gmra.mxu3 %vm2657_vm8, %v4374_v48 }
0x243b   :  { %v4246_v50 = vpop.f32.mrf.mxu3 }
0x243c   :  { %5864 = vmatmul.msk.f32.vlgmr.msrb.gmra.mxu0 %vm1013_vm6, %v4246_v50 }
0x243d   :  { %4667 = vmatpush.msrb.mxu0 %v5889_v33  ;;  %v5899_v33 = vld [vmem:[%s8643_s2 + $0x20] sm:$0xff] }
0x243f   :  { %4668 = vmatpush.msrb.mxu0 %v5888_v13 }
0x2441   :  { %4669 = vmatpush.msrb.mxu0 %v5887_v18 }
0x2443   :  { %v4249_v51 = vpop.f32.mrf.mxu3  ;;  %4670 = vmatpush.msrb.mxu0 %v5886_v37 }
0x2444   :  { %5865 = vmatmul.msk.f32.gmra.mxu0 %vm1013_vm6, %v4249_v51 }
0x244b   :  { %v4405_v9 = vpop.f32.mrf.mxu3 }
0x244c   :  { %5875 = vmatmul.msk.f32.vlgmr.msra.gmra.mxu0 %vm1013_vm6, %v4405_v9 }
0x249e   :  { %v4537_v56 = vpop.f32.mrf.mxu2 }
0x249f   :  { %5884 = vmatmul.msk.f32.vlgmr.msra.gmra.mxu3 %vm1013_vm6, %v4537_v56 }
0x24a6   :  { %v4540_v57 = vpop.f32.mrf.mxu2 }
0x24a7   :  { %5885 = vmatmul.msk.f32.gmra.mxu3 %vm1013_vm6, %v4540_v57 }
0x24ae   :  { %v4408_v58 = vpop.f32.mrf.mxu3 }
0x24af   :  { %5876 = vmatmul.msk.f32.gmra.mxu0 %vm1013_vm6, %v4408_v58 }
0x24b9   :  { %v4275_v59 = vpop.f32.mrf.mxu0 }
0x24ba   :  { %v4305_v46 = vadd.f32 %v8276_v43, %v4275_v59 }
0x24c1   :  { %v4278_v53 = vpop.f32.mrf.mxu0 }
0x24c2   :  { %v4308_v8 = vadd.f32 %v8278_v1, %v4278_v53 }
0x24c9   :  { %v4434_v63 = vpop.f32.mrf.mxu0 }
0x24ca   :  { %v4440_v49 = vadd.f32 %v4434_v63, %v4305_v46  ;;  %v6102_v63 = vld [vmem:[#allocation13 + $0x1] ss:$0 sm:$0xff] }
0x2522   :  { %v4566_v5 = vpop.f32.mrf.mxu3 }
0x2523   :  { %v4572_v3 = vadd.f32 %v4566_v5, %v4440_v49 }
0x2525   :  { %v4577_v10 = vadd.f32 %v6099_v2, %v4572_v3 }
0x2527   :  { %v4579_v12 = vadd.f32 %v4577_v10, %v8182_v30 }
0x2529   :  { %v4585_v34 = vsel %vm557_vm5, %v4579_v12, 0.0 }
0x252a   :  { %4586 = vadd.xlane.f32.xlu2 %v4585_v34  ;;  %v4569_v22 = vpop.f32.mrf.mxu3 }
0x252c   :  { %v4437_v62 = vpop.f32.mrf.mxu0 }
0x252d   :  { %v4441_v28 = vadd.f32 %v4437_v62, %v4308_v8 }
0x252f   :  { %v4573_v32 = vadd.f32 %v4569_v22, %v4441_v28  ;;  %v8379_v22 = vld [vmem:[%s8642_s8 + $0x8] sm:$0x7f] }
0x2531   :  { %v4578_v17 = vadd.f32 %v6099_v2, %v4573_v32 }
0x2533   :  { %v4580_v21 = vadd.f32 %v4578_v17, %v8186_v40 }
0x2535   :  { %v4588_v43 = vsel %vm3153_vm10, %v4580_v21, 0.0 }
0x2536   :  { %4589 = vadd.xlane.f32.xlu0 %v4588_v43 }
0x2542   :  { %4781 = vrot.lane.b32.xlu2 %v8309_v24, %s6895_s24 }
0x254a   :  { %4819 = vrot.lane.b32.xlu2 %v8314_v42, %s6898_s12 }
0x259d   :  { %v4587_v30 = vpop.xlane.xlu2 %4586 }
0x259e   :  { %v4591_v15 = vmul.f32 %v4587_v30, %v7578_v35 }
0x25a0   :  { %v4593_v1 = vsub.f32 %v4579_v12, %v4591_v15  ;;  %v8374_v12 = vld [vmem:[%s8642_s8] sm:$0xff] }
0x25a2   :  { %v4595_v16 = vmul.f32 %v4593_v1, %v4593_v1 }
0x25a4   :  { %v4597_v29 = vsel %vm557_vm5, %v4595_v16, 0.0 }
0x25a5   :  { %4598 = vadd.xlane.f32.xlu1 %v4597_v29  ;;  %v4782_v40 = vpop.permute.xlu2 %4781 }
0x25a6   :  { %5908 = vmatpush.msk.msrb.mxu3 %vm572_vm3, %v4782_v40 }
0x25a9   :  { %v4590_v23 = vpop.xlane.xlu0 %4589 }
0x25aa   :  { %v4592_v25 = vmul.f32 %v4590_v23, %v7578_v35 }
0x25ac   :  { %v4594_v26 = vsub.f32 %v4580_v21, %v4592_v25 }
0x25ae   :  { %v4596_v27 = vmul.f32 %v4594_v26, %v4594_v26 }
0x25b0   :  { %v4600_v11 = vsel %vm3153_vm10, %v4596_v27, 0.0 }
0x25b1   :  { %4601 = vadd.xlane.f32.xlu0 %v4600_v11 }
0x25be   :  { %4779 = vrot.lane.b32.xlu1 %v8314_v42, %s6895_s24 }
0x25c6   :  { %4980 = vrot.lane.b32.xlu1 %v8309_v24, %s6900_s28 }
0x25ce   :  { %5110 = vrot.lane.b32.xlu1 %v8314_v42, %s6899_s26 }
0x2618   :  { %v4599_v39 = vpop.xlane.xlu1 %4598 }
0x2619   :  { %v4603_v7 = vmul.f32 %v4599_v39, %v7578_v35  ;;  %v4820_v39 = vpop.permute.xlu2 %4819 }
0x261b   :  { %v4605_v41 = vadd.f32 1e-05, %v4603_v7 }
0x261d   :  { %6307 = vrsqrt.f32 %v4605_v41  ;;  %vm4613_vm13 = vweird.f32 %v4605_v41 }
0x2623   :  { %v6308_v14 = vpop.eup %6307 }
0x2624   :  { %v4608_v6 = vmul.f32 %v6308_v14, %v4605_v41  ;;  %v4602_v20 = vpop.xlane.xlu0 %4601  ;;  %vm4614_vm8 = vweird.f32 %v6308_v14 }
0x2625   :  { %v4604_v31 = vmul.f32 %v4602_v20, %v7578_v35  ;;  %vm4615_vm11 = vmor %vm4613_vm13, %vm4614_vm8 }
0x2626   :  { %v4609_v0 = vmul.f32 %v6308_v14, %v4608_v6 }
0x2627   :  { %v4606_v44 = vadd.f32 1e-05, %v4604_v31 }
0x2628   :  { %v4610_v19 = vmul.f32 0.5, %v4609_v0 }
0x2629   :  { %6309 = vrsqrt.f32 %v4606_v44  ;;  %vm4623_vm2 = vweird.f32 %v4606_v44 }
0x262a   :  { %v4611_v55 = vsub.f32 1.5, %v4610_v19 }
0x262c   :  { %v4612_v45 = vmul.f32 %v6308_v14, %v4611_v55 }
0x262e   :  { %v4616_v61 = vsel %vm4615_vm11, %v6308_v14, %v4612_v45 }
0x262f   :  { %v4627_v52 = vmul.f32 %v4616_v61, %v4593_v1  ;;  %v6310_v47 = vpop.eup %6309 }
0x2630   :  { %v4780_v60 = vpop.permute.xlu1 %4779  ;;  %v4618_v38 = vmul.f32 %v6310_v47, %v4606_v44  ;;  %vm4624_vm9 = vweird.f32 %v6310_v47 }
0x2631   :  { %v4632_v48 = vmul.f32 %v6100_v36, %v4627_v52  ;;  %4807 = vmatpush.msrb.mxu3 %v4780_v60  ;;  %vm4625_vm12 = vmor %vm4623_vm2, %vm4624_vm9 }
0x2632   :  { %v4619_v51 = vmul.f32 %v6310_v47, %v4618_v38 }
0x2633   :  { %v8358_v50 = vadd.f32 %v6101_v4, %v4632_v48  ;;  %4966 = vmatpush.msra.mxu3 %v5899_v33 }
0x2634   :  { %v4620_v9 = vmul.f32 0.5, %v4619_v51 }
0x2635   :  { %5890 = vmatmul.msk.f32.vlgmr.msrb.gmra.mxu0 %vm557_vm5, %v8358_v50 }
0x2636   :  { %v4621_v54 = vsub.f32 1.5, %v4620_v9 }
0x2638   :  { %v4622_v56 = vmul.f32 %v6310_v47, %v4621_v54  ;;  %v4981_v14 = vpop.permute.xlu1 %4980 }
0x263a   :  { %v4626_v57 = vsel %vm4625_vm12, %v6310_v47, %v4622_v56 }
0x263b   :  { %v4628_v58 = vmul.f32 %v4626_v57, %v4594_v26 }
0x263d   :  { %v4633_v59 = vmul.f32 %v6100_v36, %v4628_v58 }
0x263f   :  { %v8362_v53 = vadd.f32 %v6101_v4, %v4633_v59 }
0x2640   :  { %v5111_v31 = vpop.permute.xlu1 %5110 }
0x2641   :  { %5891 = vmatmul.msk.f32.gmra.mxu0 %vm557_vm5, %v8362_v53 }
0x26b2   :  { %v4672_v46 = vpop.f32.mrf.mxu0 }
0x26b3   :  { %v4673_v49 = vadd.f32 %v6102_v63, %v4672_v46 }
0x26b5   :  { %5906 = vmatmul.msk.f32.vlgmr.msrb.gmra.mxu2 %vm1013_vm6, %v4673_v49 }
0x26be   :  { %v4675_v2 = vpop.f32.mrf.mxu0 }
0x26bf   :  { %v4676_v5 = vadd.f32 %v6102_v63, %v4675_v2 }
0x26c1   :  { %4976 = vrot.lane.b32.xlu1 %v4676_v5, %s6900_s28  ;;  %4817 = vrot.lane.b32.xlu2 %v4676_v5, %s6898_s12 }
0x26c2   :  { %5907 = vmatmul.msk.f32.gmra.mxu2 %vm1013_vm6, %v4676_v5 }
0x26c9   :  { %4978 = vrot.lane.b32.xlu2 %v8314_v42, %s6900_s28 }
0x26d1   :  { %5106 = vrot.lane.b32.xlu2 %v4673_v49, %s6899_s26 }
0x271b   :  { %v4818_v7 = vpop.permute.xlu2 %4817 }
0x2723   :  { %v4979_v20 = vpop.permute.xlu2 %4978 }
0x272b   :  { %v5107_v36 = vpop.permute.xlu2 %5106 }
0x2733   :  { %v4977_v44 = vpop.permute.xlu1 %4976 }
0x2738   :  { %v4747_v3 = vpop.f32.mrf.mxu2 }
0x2739   :  { %v4753_v10 = vmul.f32 0.35355338, %v4747_v3 }
0x273b   :  { %v4755_v34 = vadd.f32 %v8374_v12, %v4753_v10 }
0x273d   :  { %v4757_v8 = vsel %vm1049_vm7, %v4755_v34, -inf }
0x273e   :  { %4758 = vmax.xlane.f32.xlu0 %v4757_v8 }
0x2745   :  { %v4750_v62 = vpop.f32.mrf.mxu2 }
0x2746   :  { %v4754_v28 = vmul.f32 0.35355338, %v4750_v62 }
0x2748   :  { %v4756_v32 = vadd.f32 %v8379_v22, %v4754_v28 }
0x274a   :  { %v4760_v17 = vsel %vm3326_vm4, %v4756_v32, -inf }
0x274b   :  { %4761 = vmax.xlane.f32.xlu0 %v4760_v17 }
0x27b1   :  { %v4759_v21 = vpop.xlane.xlu0 %4758 }
0x27b2   :  { %v4763_v43 = vsub.f32 %v4755_v34, %v4759_v21 }
0x27b4   :  { %v4765_v30 = vmul.f32 1.442695, %v4763_v43 }
0x27b6   :  { %6311 = vpow2.f32 %v4765_v30 }
0x27bc   :  { %v6312_v15 = vpop.eup %6311 }
0x27bd   :  { %v4769_v1 = vsel %vm1049_vm7, %v6312_v15, 0.0 }
0x27be   :  { %4770 = vadd.xlane.f32.xlu0 %v4769_v1  ;;  %v4762_v16 = vpop.xlane.xlu0 %4761 }
0x27bf   :  { %v4764_v29 = vsub.f32 %v4756_v32, %v4762_v16 }
0x27c1   :  { %v4767_v40 = vmul.f32 1.442695, %v4764_v29 }
0x27c3   :  { %6313 = vpow2.f32 %v4767_v40 }
0x27c9   :  { %v6314_v23 = vpop.eup %6313 }
0x27ca   :  { %v4772_v25 = vsel %vm3326_vm4, %v6314_v23, 0.0 }
0x27cb   :  { %4773 = vadd.xlane.f32.xlu0 %v4772_v25 }
0x27df   :  { %4821 = vrot.lane.b32.xlu0 %v8309_v24, %s6898_s12 }
0x27e7   :  { %4815 = vrot.lane.b32.xlu0 %v4673_v49, %s6898_s12 }
0x27ef   :  { %5112 = vrot.lane.b32.xlu0 %v8309_v24, %s6899_s26 }
0x27f7   :  { %4974 = vrot.lane.b32.xlu0 %v4673_v49, %s6900_s28 }
0x27ff   :  { %5108 = vrot.lane.b32.xlu0 %v4676_v5, %s6899_s26 }
0x2831   :  { %v4771_v26 = vpop.xlane.xlu0 %4770 }
0x2832   :  { %6315 = vrcp.f32 %v4771_v26 }
0x2838   :  { %v6316_v27 = vpop.eup %6315 }
0x2839   :  { %v4777_v11 = vmul.f32 %v6316_v27, %v6312_v15 }
0x283b   :  { %5909 = vmatmul.msk.f32.vlgmr.msrb.gmra.mxu3 %vm1049_vm7, %v4777_v11 }
0x283e   :  { %v4774_v13 = vpop.xlane.xlu0 %4773 }
0x283f   :  { %6317 = vrcp.f32 %v4774_v13 }
0x2845   :  { %v6318_v18 = vpop.eup %6317 }
0x2846   :  { %v4778_v37 = vmul.f32 %v6318_v18, %v6314_v23 }
0x2848   :  { %5910 = vmatmul.msk.f32.gmra.mxu3 %vm1049_vm7, %v4778_v37 }
0x2851   :  { %v4822_v41 = vpop.permute.xlu0 %4821 }
0x2852   :  { %5911 = vmatpush.xpose.msk.msra.mxu0 %vm1013_vm6, %v4822_v41 }
0x2856   :  { %5912 = vmatpush.xpose.msk.msra.mxu0 %vm1013_vm6, %v4820_v39 }
0x2859   :  { %v4816_v6 = vpop.permute.xlu0 %4815 }
0x285a   :  { %5922 = vmatpush.xpose.msk.msrb.mxu0 %vm1013_vm6, %v4981_v14 }
0x285b   :  { %5913 = vmatmul.msk.f32.vlgmr.msra.gmra.mxu0 %vm1013_vm6, %v4816_v6 }
0x285e   :  { %5923 = vmatpush.xpose.msk.msrb.mxu0 %vm1013_vm6, %v4979_v20 }
0x2861   :  { %v5113_v0 = vpop.permute.xlu0 %5112 }
0x2862   :  { %5931 = vmatpush.xpose.msk.msrb.mxu3 %vm1013_vm6, %v5113_v0 }
0x2863   :  { %5914 = vmatmul.msk.f32.gmra.mxu0 %vm1013_vm6, %v4818_v7 }
0x2866   :  { %5932 = vmatpush.xpose.msk.msrb.mxu3 %vm1013_vm6, %v5111_v31 }
0x2869   :  { %v4975_v19 = vpop.permute.xlu0 %4974 }
0x286b   :  { %5924 = vmatmul.msk.f32.vlgmr.msrb.gmra.mxu0 %vm1013_vm6, %v4975_v19 }
0x2871   :  { %v5109_v47 = vpop.permute.xlu0 %5108 }
0x2873   :  { %5925 = vmatmul.msk.f32.gmra.mxu0 %vm1013_vm6, %v4977_v44 }
0x28be   :  { %v4809_v55 = vpop.f32.mrf.mxu3 }
0x28bf   :  { %5920 = vmatmul.msk.f32.vlgmr.msra.gmra.mxu3 %vm1013_vm6, %v4809_v55 }
0x28cb   :  { %v4812_v45 = vpop.f32.mrf.mxu3 }
0x28cc   :  { %5921 = vmatmul.msk.f32.gmra.mxu3 %vm1013_vm6, %v4812_v45 }
0x28d4   :  { %5933 = vmatmul.msk.f32.vlgmr.msrb.gmra.mxu3 %vm1013_vm6, %v5107_v36 }
0x28d8   :  { %v4848_v61 = vpop.f32.mrf.mxu0 }
0x28d9   :  { %v4854_v4 = vmul.f32 0.35355338, %v4848_v61 }
0x28db   :  { %v4856_v52 = vadd.f32 %v8374_v12, %v4854_v4 }
0x28dc   :  { %5934 = vmatmul.msk.f32.gmra.mxu3 %vm1013_vm6, %v5109_v47 }
0x28dd   :  { %v4858_v60 = vsel %vm1049_vm7, %v4856_v52, -inf }
0x28de   :  { %4859 = vmax.xlane.f32.xlu2 %v4858_v60 }
0x28e0   :  { %v4851_v48 = vpop.f32.mrf.mxu0 }
0x28e1   :  { %v4855_v38 = vmul.f32 0.35355338, %v4851_v48 }
0x28e3   :  { %v4857_v51 = vadd.f32 %v8379_v22, %v4855_v38 }
0x28e5   :  { %v4861_v9 = vsel %vm3326_vm4, %v4857_v51, -inf }
0x28e6   :  { %4862 = vmax.xlane.f32.xlu1 %v4861_v9 }
0x28e8   :  { %v5007_v54 = vpop.f32.mrf.mxu0 }
0x28e9   :  { %v5013_v56 = vmul.f32 0.35355338, %v5007_v54 }
0x28eb   :  { %v5015_v57 = vadd.f32 %v8374_v12, %v5013_v56 }
0x28ed   :  { %v5017_v58 = vsel %vm1049_vm7, %v5015_v57, -inf }
0x28ee   :  { %5018 = vmax.xlane.f32.xlu0 %v5017_v58 }
0x28f0   :  { %v5010_v59 = vpop.f32.mrf.mxu0 }
0x28f1   :  { %v5014_v63 = vmul.f32 0.35355338, %v5010_v59 }
0x28f3   :  { %v5016_v46 = vadd.f32 %v8379_v22, %v5014_v63  ;;  %v5900_v63 = vld [vmem:[%s8643_s2 + $0x28] sm:$0xff] }
0x28f4   :  { %4937 = vmatpush.msra.mxu2 %v5900_v63  ;;  %v5952_v63 = vld [vmem:[%s8646_s6 + $0x78] sm:$0xff] }
0x28f5   :  { %v5020_v49 = vsel %vm3326_vm4, %v5016_v46, -inf  ;;  %5372 = vmatpush.msra.mxu3 %v5952_v63 }
0x28f6   :  { %5021 = vmax.xlane.f32.xlu2 %v5020_v49 }
0x2942   :  { %v8417_v2 = vpop.f32.mrf.mxu3 }
0x294f   :  { %v8419_v5 = vpop.f32.mrf.mxu3 }
0x2951   :  { %v4860_v3 = vpop.xlane.xlu2 %4859 }
0x2952   :  { %v4864_v10 = vsub.f32 %v4856_v52, %v4860_v3 }
0x2954   :  { %v4866_v34 = vmul.f32 1.442695, %v4864_v10 }
0x2956   :  { %6319 = vpow2.f32 %v4866_v34 }
0x2957   :  { %v5139_v8 = vpop.f32.mrf.mxu3 }
0x2958   :  { %v5145_v62 = vmul.f32 0.35355338, %v5139_v8  ;;  %v5901_v8 = vld [vmem:[%s8643_s2 + $0x30] sm:$0xff] }
0x2959   :  { %v4863_v28 = vpop.xlane.xlu1 %4862  ;;  %5096 = vmatpush.msrb.mxu2 %v5901_v8 }
0x295a   :  { %v4865_v32 = vsub.f32 %v4857_v51, %v4863_v28  ;;  %v5147_v17 = vadd.f32 %v8374_v12, %v5145_v62 }
0x295c   :  { %v6320_v21 = vpop.eup %6319  ;;  %v4868_v43 = vmul.f32 1.442695, %v4865_v32  ;;  %v5149_v30 = vsel %vm1049_vm7, %v5147_v17, -inf }
0x295d   :  { %v4870_v15 = vsel %vm1049_vm7, %v6320_v21, 0.0  ;;  %5150 = vmax.xlane.f32.xlu1 %v5149_v30 }
0x295e   :  { %6321 = vpow2.f32 %v4868_v43  ;;  %4871 = vadd.xlane.f32.xlu2 %v4870_v15 }
0x295f   :  { %v5142_v13 = vpop.f32.mrf.mxu3 }
0x2960   :  { %v5146_v37 = vmul.f32 0.35355338, %v5142_v13 }
0x2961   :  { %v5019_v1 = vpop.xlane.xlu0 %5018 }
0x2962   :  { %v5023_v16 = vsub.f32 %v5015_v57, %v5019_v1  ;;  %v5148_v39 = vadd.f32 %v8379_v22, %v5146_v37 }
0x2964   :  { %v6322_v29 = vpop.eup %6321  ;;  %v5025_v40 = vmul.f32 1.442695, %v5023_v16  ;;  %v5152_v7 = vsel %vm3326_vm4, %v5148_v39, -inf }
0x2965   :  { %v4873_v23 = vsel %vm3326_vm4, %v6322_v29, 0.0 }
0x2966   :  { %6323 = vpow2.f32 %v5025_v40  ;;  %4874 = vadd.xlane.f32.xlu0 %v4873_v23 }
0x2969   :  { %v5022_v26 = vpop.xlane.xlu2 %5021 }
0x296a   :  { %v5024_v27 = vsub.f32 %v5016_v46, %v5022_v26 }
0x296c   :  { %v6324_v25 = vpop.eup %6323  ;;  %v5027_v11 = vmul.f32 1.442695, %v5024_v27 }
0x296d   :  { %v5029_v12 = vsel %vm1049_vm7, %v6324_v25, 0.0 }
0x296e   :  { %5030 = vadd.xlane.f32.xlu0 %v5029_v12  ;;  %6325 = vpow2.f32 %v5027_v11 }
0x2974   :  { %v6326_v33 = vpop.eup %6325 }
0x2975   :  { %v5032_v18 = vsel %vm3326_vm4, %v6326_v33, 0.0 }
0x2976   :  { %4880 = vrot.lane.b32.xlu2 %v8314_v42, %s6897_s0  ;;  %4882 = vrot.lane.b32.xlu1 %v8309_v24, %s6897_s0 }
0x2982   :  { %5041 = vrot.lane.b32.xlu0 %v8309_v24, %s6902_s7 }
0x29a0   :  { %5033 = vadd.xlane.f32.xlu1 %v5032_v18 }
0x29ac   :  { %5153 = vmax.xlane.f32.xlu0 %v5152_v7 }
0x29b9   :  { %5171 = vrot.lane.b32.xlu1 %v8314_v42, %s6903_s14 }
0x29c0   :  { %5039 = vrot.lane.b32.xlu0 %v8314_v42, %s6902_s7 }
0x29c8   :  { %5173 = vrot.lane.b32.xlu0 %v8309_v24, %s6903_s14 }
0x29d0   :  { %v5151_v41 = vpop.xlane.xlu1 %5150 }
0x29d1   :  { %v5155_v14 = vsub.f32 %v5147_v17, %v5151_v41  ;;  %v4872_v22 = vpop.xlane.xlu2 %4871 }
0x29d3   :  { %v5157_v6 = vmul.f32 1.442695, %v5155_v14 }
0x29d5   :  { %6327 = vpow2.f32 %v5157_v6 }
0x29d6   :  { %6329 = vrcp.f32 %v4872_v22 }
0x29d9   :  { %v4875_v31 = vpop.xlane.xlu0 %4874  ;;  %v4881_v55 = vpop.permute.xlu2 %4880 }
0x29da   :  { %6331 = vrcp.f32 %v4875_v31 }
0x29db   :  { %v6328_v20 = vpop.eup %6327 }
0x29dc   :  { %v5161_v0 = vsel %vm1049_vm7, %v6328_v20, 0.0  ;;  %v6330_v19 = vpop.eup %6329 }
0x29dd   :  { %5162 = vadd.xlane.f32.xlu2 %v5161_v0  ;;  %v4878_v42 = vmul.f32 %v6330_v19, %v6320_v21  ;;  %v5902_v21 = vld [vmem:[%s8643_s2 + $0x38] sm:$0xff] }
0x29e0   :  { %v6332_v24 = vpop.eup %6331 }
0x29e1   :  { %v5031_v45 = vpop.xlane.xlu0 %5030  ;;  %v4879_v36 = vmul.f32 %v6332_v24, %v6322_v29  ;;  %v5940_v24 = vld [vmem:[%s8645_s20 + $0x20] sm:$0xff] }
0x29e8   :  { %v4883_v44 = vpop.permute.xlu1 %4882 }
0x29e9   :  { %5915 = vmatpush.msk.msrb.mxu1 %vm572_vm3, %v4883_v44 }
0x29eb   :  { %4908 = vmatpush.msrb.mxu1 %v4881_v55  ;;  %v5942_v55 = vld [vmem:[%s8645_s20 + $0x30] sm:$0xff] }
0x29ec   :  { %5916 = vmatmul.msk.f32.vlgmr.msrb.gmra.mxu1 %vm1049_vm7, %v4878_v42  ;;  %v5943_v42 = vld [vmem:[%s8645_s20 + $0x38] sm:$0xff] }
0x29f4   :  { %v5042_v61 = vpop.permute.xlu0 %5041  ;;  %5917 = vmatmul.msk.f32.gmra.mxu1 %vm1049_vm7, %v4879_v36 }
0x29f5   :  { %5926 = vmatpush.msk.msra.mxu1 %vm572_vm3, %v5042_v61 }
0x2a13   :  { %v5034_v38 = vpop.xlane.xlu1 %5033 }
0x2a1f   :  { %v5154_v4 = vpop.xlane.xlu0 %5153 }
0x2a20   :  { %v5156_v52 = vsub.f32 %v5148_v39, %v5154_v4 }
0x2a22   :  { %v5159_v47 = vmul.f32 1.442695, %v5156_v52 }
0x2a24   :  { %6333 = vpow2.f32 %v5159_v47 }
0x2a25   :  { %6335 = vrcp.f32 %v5031_v45  ;;  %v5941_v45 = vld [vmem:[%s8645_s20 + $0x28] sm:$0xff] }
0x2a26   :  { %6337 = vrcp.f32 %v5034_v38 }
0x2a2a   :  { %v6334_v60 = vpop.eup %6333 }
0x2a2b   :  { %v5164_v48 = vsel %vm3326_vm4, %v6334_v60, 0.0  ;;  %v6336_v51 = vpop.eup %6335  ;;  %v5172_v59 = vpop.permute.xlu1 %5171 }
0x2a2c   :  { %5165 = vadd.xlane.f32.xlu0 %v5164_v48  ;;  %v5037_v9 = vmul.f32 %v6336_v51, %v6324_v25  ;;  %v6338_v56 = vpop.eup %6337  ;;  %v6103_v25 = vld [vmem:[%s8644_s1 + $0x1] ss:$0 sm:$0xff] }
0x2a2d   :  { %v5038_v58 = vmul.f32 %v6338_v56, %v6326_v33  ;;  %v6105_v56 = vld [vmem:[#allocation17 + $0x1] ss:$0 sm:$0xff] }
0x2a32   :  { %v5040_v54 = vpop.permute.xlu0 %5039 }
0x2a33   :  { %5067 = vmatpush.msra.mxu1 %v5040_v54 }
0x2a34   :  { %5927 = vmatmul.msk.f32.vlgmr.msra.gmra.mxu1 %vm1049_vm7, %v5037_v9  ;;  %v6104_v9 = vld [vmem:[#allocation19 + $0x1] ss:$0 sm:$0xff] }
0x2a35   :  { %5228 = vmatpush.msrb.mxu1 %v5902_v21 }
0x2a3a   :  { %v5174_v57 = vpop.permute.xlu0 %5173 }
0x2a3b   :  { %5935 = vmatpush.msk.msra.mxu0 %vm572_vm3, %v5174_v57 }
0x2a3c   :  { %5928 = vmatmul.msk.f32.gmra.mxu1 %vm1049_vm7, %v5038_v58 }
0x2a3d   :  { %5199 = vmatpush.msra.mxu0 %v5172_v59 }
0x2a50   :  { %v5163_v46 = vpop.xlane.xlu2 %5162 }
0x2a51   :  { %6339 = vrcp.f32 %v5163_v46  ;;  %v5951_v46 = vld [vmem:[%s8646_s6 + $0x70] sm:$0xff] }
0x2a52   :  { %5373 = vmatpush.msra.mxu3 %v5951_v46 }
0x2a57   :  { %v6340_v49 = vpop.eup %6339 }
0x2a58   :  { %v5169_v3 = vmul.f32 %v6340_v49, %v6328_v20  ;;  %v5950_v49 = vld [vmem:[%s8646_s6 + $0x68] sm:$0xff] }
0x2a59   :  { %5374 = vmatpush.msra.mxu3 %v5950_v49 }
0x2a5a   :  { %5936 = vmatmul.msk.f32.vlgmr.msra.gmra.mxu0 %vm1049_vm7, %v5169_v3 }
0x2a69   :  { %v4910_v10 = vpop.f32.mrf.mxu1 }
0x2a6a   :  { %5918 = vmatmul.msk.f32.vlgmr.msra.gmra.mxu2 %vm1013_vm6, %v4910_v10 }
0x2a6b   :  { %5342 = vmatpush.msra.mxu2 %v5943_v42 }
0x2a6d   :  { %5343 = vmatpush.msra.mxu2 %v5942_v55 }
0x2a6f   :  { %5344 = vmatpush.msra.mxu2 %v5941_v45 }
0x2a71   :  { %v4913_v34 = vpop.f32.mrf.mxu1  ;;  %5345 = vmatpush.msra.mxu2 %v5940_v24 }
0x2a72   :  { %5919 = vmatmul.msk.f32.gmra.mxu2 %vm1013_vm6, %v4913_v34  ;;  %v5949_v34 = vld [vmem:[%s8646_s6 + $0x60] sm:$0xff] }
0x2a73   :  { %5375 = vmatpush.msra.mxu3 %v5949_v34 }
0x2a9f   :  { %v5166_v62 = vpop.xlane.xlu0 %5165 }
0x2aa0   :  { %6341 = vrcp.f32 %v5166_v62  ;;  %v5948_v62 = vld [vmem:[%s8646_s6 + $0x58] sm:$0xff] }
0x2aa1   :  { %5376 = vmatpush.msra.mxu3 %v5948_v62 }
0x2aa6   :  { %v6342_v28 = vpop.eup %6341 }
0x2aa7   :  { %v5170_v32 = vmul.f32 %v6342_v28, %v6334_v60 }
0x2aa9   :  { %5937 = vmatmul.msk.f32.gmra.mxu0 %vm1049_vm7, %v5170_v32 }
0x2ab1   :  { %v5069_v17 = vpop.f32.mrf.mxu1 }
0x2ab2   :  { %5929 = vmatmul.msk.f32.vlgmr.msrb.gmra.mxu2 %vm1013_vm6, %v5069_v17 }
0x2ab9   :  { %v5072_v43 = vpop.f32.mrf.mxu1 }
0x2aba   :  { %5930 = vmatmul.msk.f32.gmra.mxu2 %vm1013_vm6, %v5072_v43 }
0x2ad7   :  { %v5201_v30 = vpop.f32.mrf.mxu0 }
0x2ad8   :  { %5938 = vmatmul.msk.f32.vlgmr.msrb.gmra.mxu1 %vm1013_vm6, %v5201_v30 }
0x2aed   :  { %v4939_v1 = vpop.f32.mrf.mxu2 }
0x2aee   :  { %v4969_v40 = vadd.f32 %v8417_v2, %v4939_v1 }
0x2af5   :  { %v4942_v16 = vpop.f32.mrf.mxu2 }
0x2af6   :  { %v4972_v18 = vadd.f32 %v8419_v5, %v4942_v16 }
0x2b26   :  { %v5204_v15 = vpop.f32.mrf.mxu0 }
0x2b27   :  { %5939 = vmatmul.msk.f32.gmra.mxu1 %vm1013_vm6, %v5204_v15 }
0x2b35   :  { %v5098_v29 = vpop.f32.mrf.mxu2 }
0x2b36   :  { %v5104_v23 = vadd.f32 %v5098_v29, %v4969_v40  ;;  %v5947_v40 = vld [vmem:[%s8646_s6 + $0x50] sm:$0xff] }
0x2b37   :  { %5377 = vmatpush.msra.mxu3 %v5947_v40 }
0x2b3d   :  { %v5101_v13 = vpop.f32.mrf.mxu2 }
0x2b3e   :  { %v5105_v37 = vadd.f32 %v5101_v13, %v4972_v18 }
0x2b55   :  { %v5230_v12 = vpop.f32.mrf.mxu1 }
0x2b56   :  { %v5236_v26 = vadd.f32 %v5230_v12, %v5104_v23  ;;  %v5946_v23 = vld [vmem:[%s8646_s6 + $0x48] sm:$0xff]  ;;  %v6106_v12 = vld [vmem:[%s8647_s11 + $0x1] ss:$0 sm:$0xff] }
0x2b57   :  { %5378 = vmatpush.msra.mxu3 %v5946_v23 }
0x2b58   :  { %v5241_v27 = vadd.f32 %v6103_v25, %v5236_v26 }
0x2b5a   :  { %v5243_v11 = vadd.f32 %v5241_v27, %v8358_v50 }
0x2b5c   :  { %v5249_v33 = vsel %vm557_vm5, %v5243_v11, 0.0 }
0x2b5d   :  { %5250 = vadd.xlane.f32.xlu2 %v5249_v33 }
0x2ba4   :  { %v5233_v39 = vpop.f32.mrf.mxu1 }
0x2ba5   :  { %v5237_v7 = vadd.f32 %v5233_v39, %v5105_v37  ;;  %v6107_v37 = vld [vmem:[%s8648_s10 + $0x1] ss:$0 sm:$0xff] }
0x2ba7   :  { %v5242_v41 = vadd.f32 %v6103_v25, %v5237_v7  ;;  %v5945_v25 = vld [vmem:[%s8646_s6 + $0x40] sm:$0xff] }
0x2ba8   :  { %5379 = vmatpush.msra.mxu3 %v5945_v25 }
0x2ba9   :  { %v5244_v2 = vadd.f32 %v5242_v41, %v8362_v53 }
0x2bab   :  { %v5252_v14 = vsel %vm3153_vm10, %v5244_v2, 0.0 }
0x2bac   :  { %5253 = vadd.xlane.f32.xlu2 %v5252_v14 }
0x2bd0   :  { %v5251_v6 = vpop.xlane.xlu2 %5250 }
0x2bd1   :  { %v5255_v50 = vmul.f32 %v5251_v6, %v7578_v35 }
0x2bd3   :  { %v5257_v20 = vsub.f32 %v5243_v11, %v5255_v50 }
0x2bd5   :  { %v5259_v0 = vmul.f32 %v5257_v20, %v5257_v20 }
0x2bd7   :  { %v5261_v5 = vsel %vm557_vm5, %v5259_v0, 0.0 }
0x2bd8   :  { %5262 = vadd.xlane.f32.xlu2 %v5261_v5 }
0x2c1f   :  { %v5254_v22 = vpop.xlane.xlu2 %5253 }
0x2c20   :  { %v5256_v31 = vmul.f32 %v5254_v22, %v7578_v35 }
0x2c22   :  { %v5258_v19 = vsub.f32 %v5244_v2, %v5256_v31 }
0x2c24   :  { %v5260_v44 = vmul.f32 %v5258_v19, %v5258_v19 }
0x2c26   :  { %v5264_v53 = vsel %vm3153_vm10, %v5260_v44, 0.0 }
0x2c27   :  { %5265 = vadd.xlane.f32.xlu1 %v5264_v53 }
0x2c4b   :  { %v5263_v36 = vpop.xlane.xlu2 %5262 }
0x2c4c   :  { %v5267_v61 = vmul.f32 %v5263_v36, %v7578_v35 }
0x2c4e   :  { %v5269_v4 = vadd.f32 1e-05, %v5267_v61 }
0x2c50   :  { %6343 = vrsqrt.f32 %v5269_v4  ;;  %vm5277_vm6 = vweird.f32 %v5269_v4 }
0x2c56   :  { %v6344_v52 = vpop.eup %6343 }
0x2c57   :  { %v5272_v47 = vmul.f32 %v6344_v52, %v5269_v4  ;;  %vm5278_vm3 = vweird.f32 %v6344_v52 }
0x2c58   :  { %vm5279_vm7 = vmor %vm5277_vm6, %vm5278_vm3 }
0x2c59   :  { %v5273_v60 = vmul.f32 %v6344_v52, %v5272_v47 }
0x2c5b   :  { %v5274_v48 = vmul.f32 0.5, %v5273_v60 }
0x2c5d   :  { %v5275_v38 = vsub.f32 1.5, %v5274_v48 }
0x2c5f   :  { %v5276_v51 = vmul.f32 %v6344_v52, %v5275_v38 }
0x2c61   :  { %v5280_v54 = vsel %vm5279_vm7, %v6344_v52, %v5276_v51  ;;  %v6108_v51 = vld [vmem:[#allocation22 + $0x1] ss:$0 sm:$0xff] }
0x2c62   :  { %v5291_v57 = vmul.f32 %v5280_v54, %v5257_v20 }
0x2c64   :  { %v5296_v58 = vmul.f32 %v6104_v9, %v5291_v57 }
0x2c66   :  { %v5301_v59 = vadd.f32 %v6105_v56, %v5296_v58 }
0x2c68   :  { %5954 = vmatmul.msk.f32.vlgmr.msra.gmra.mxu2 %vm557_vm5, %v5301_v59 }
0x2c9a   :  { %v5266_v3 = vpop.xlane.xlu1 %5265 }
0x2c9b   :  { %v5268_v10 = vmul.f32 %v5266_v3, %v7578_v35 }
0x2c9d   :  { %v5270_v8 = vadd.f32 1e-05, %v5268_v10 }
0x2c9f   :  { %6345 = vrsqrt.f32 %v5270_v8  ;;  %vm5287_vm14 = vweird.f32 %v5270_v8 }
0x2ca5   :  { %v6346_v28 = vpop.eup %6345 }
0x2ca6   :  { %v5282_v32 = vmul.f32 %v6346_v28, %v5270_v8  ;;  %vm5288_vm4 = vweird.f32 %v6346_v28 }
0x2ca7   :  { %vm5289_vm15 = vmor %vm5287_vm14, %vm5288_vm4 }
0x2ca8   :  { %v5283_v17 = vmul.f32 %v6346_v28, %v5282_v32 }
0x2caa   :  { %v5284_v21 = vmul.f32 0.5, %v5283_v17 }
0x2cac   :  { %v5285_v43 = vsub.f32 1.5, %v5284_v21 }
0x2cae   :  { %v5286_v30 = vmul.f32 %v6346_v28, %v5285_v43 }
0x2cb0   :  { %v5290_v15 = vsel %vm5289_vm15, %v6346_v28, %v5286_v30 }
0x2cb1   :  { %v5292_v1 = vmul.f32 %v5290_v15, %v5258_v19 }
0x2cb3   :  { %v5297_v16 = vmul.f32 %v6104_v9, %v5292_v1 }
0x2cb5   :  { %v5302_v29 = vadd.f32 %v6105_v56, %v5297_v16  ;;  %v6109_v56 = vld [vmem:[#allocation20 + $0x1] ss:$0 sm:$0xff] }
0x2cb7   :  { %5955 = vmatmul.msk.f32.gmra.mxu2 %vm557_vm5, %v5302_v29 }
0x2ceb   :  { %v5347_v26 = vpop.f32.mrf.mxu2 }
0x2cec   :  { %v5348_v27 = vadd.f32 %v6106_v12, %v5347_v26 }
0x2cee   :  { %v5353_v11 = vmax.f32 %v5348_v27, 0.0 }
0x2cf0   :  { %5956 = vmatmul.msk.f32.vlgmr.msra.gmra.mxu3 %vm1653_vm0, %v5353_v11  ;;  %v5506_v11 = vld [vmem:[%s7216_s30 + $0x18] sm:$0xff] }
0x2cf1   :  { %5529 = vmatpush.msrb.mxu0 %v5506_v11 }
0x2d3a   :  { %v5350_v33 = vpop.f32.mrf.mxu2 }
0x2d3b   :  { %v5351_v13 = vadd.f32 %v6106_v12, %v5350_v33  ;;  %v5505_v33 = vld [vmem:[%s7216_s30 + $0x10] sm:$0xff] }
0x2d3c   :  { %5530 = vmatpush.msrb.mxu0 %v5505_v33 }
0x2d3d   :  { %v5354_v18 = vmax.f32 %v5351_v13, 0.0  ;;  %v5504_v13 = vld [vmem:[%s7216_s30 + $0x8] sm:$0xff] }
0x2d3e   :  { %5531 = vmatpush.msrb.mxu0 %v5504_v13 }
0x2d3f   :  { %5957 = vmatmul.msk.f32.gmra.mxu3 %vm1653_vm0, %v5354_v18  ;;  %v5503_v18 = vld [vmem:[%s7216_s30] sm:$0xff] }
0x2d40   :  { %5532 = vmatpush.msrb.mxu0 %v5503_v18 }
0x2d73   :  { %v5381_v39 = vpop.f32.mrf.mxu3 }
0x2d74   :  { %v5382_v7 = vadd.f32 %v6107_v37, %v5381_v39 }
0x2d76   :  { %v5387_v41 = vadd.f32 %v5382_v7, %v5301_v59 }
0x2d78   :  { %v5393_v2 = vsel %vm557_vm5, %v5387_v41, 0.0 }
0x2d79   :  { %5394 = vadd.xlane.f32.xlu2 %v5393_v2 }
0x2dc2   :  { %v5384_v14 = vpop.f32.mrf.mxu3 }
0x2dc3   :  { %v5385_v6 = vadd.f32 %v6107_v37, %v5384_v14 }
0x2dc5   :  { %v5388_v50 = vadd.f32 %v5385_v6, %v5302_v29 }
0x2dc7   :  { %v5396_v20 = vsel %vm3153_vm10, %v5388_v50, 0.0 }
0x2dc8   :  { %5397 = vadd.xlane.f32.xlu0 %v5396_v20 }
0x2dec   :  { %v5395_v0 = vpop.xlane.xlu2 %5394 }
0x2ded   :  { %v5399_v5 = vmul.f32 %v5395_v0, %v7578_v35  ;;  %v6110_v0 = vld [vmem:[#allocation26] ss:$0 sm:$0xff] }
0x2def   :  { %v5401_v22 = vsub.f32 %v5387_v41, %v5399_v5 }
0x2df1   :  { %v5403_v31 = vmul.f32 %v5401_v22, %v5401_v22 }
0x2df3   :  { %v5405_v19 = vsel %vm557_vm5, %v5403_v31, 0.0 }
0x2df4   :  { %5406 = vadd.xlane.f32.xlu2 %v5405_v19 }
0x2e3b   :  { %v5398_v44 = vpop.xlane.xlu0 %5397 }
0x2e3c   :  { %v5400_v53 = vmul.f32 %v5398_v44, %v7578_v35 }
0x2e3e   :  { %v5402_v42 = vsub.f32 %v5388_v50, %v5400_v53 }
0x2e40   :  { %v5404_v55 = vmul.f32 %v5402_v42, %v5402_v42 }
0x2e42   :  { %v5408_v45 = vsel %vm3153_vm10, %v5404_v55, 0.0 }
0x2e43   :  { %5409 = vadd.xlane.f32.xlu0 %v5408_v45 }
0x2e67   :  { %v5407_v24 = vpop.xlane.xlu2 %5406 }
0x2e68   :  { %v5411_v36 = vmul.f32 %v5407_v24, %v7578_v35 }
0x2e6a   :  { %v5413_v61 = vadd.f32 1e-05, %v5411_v36 }
0x2e6c   :  { %6347 = vrsqrt.f32 %v5413_v61  ;;  %vm5421_vm1 = vweird.f32 %v5413_v61 }
0x2e72   :  { %v6348_v4 = vpop.eup %6347 }
0x2e73   :  { %v5416_v52 = vmul.f32 %v6348_v4, %v5413_v61  ;;  %vm5422_vm0 = vweird.f32 %v6348_v4 }
0x2e74   :  { %vm5423_vm8 = vmor %vm5421_vm1, %vm5422_vm0 }
0x2e75   :  { %v5417_v47 = vmul.f32 %v6348_v4, %v5416_v52 }
0x2e77   :  { %v5418_v60 = vmul.f32 0.5, %v5417_v47 }
0x2e79   :  { %v5419_v48 = vsub.f32 1.5, %v5418_v60 }
0x2e7b   :  { %v5420_v38 = vmul.f32 %v6348_v4, %v5419_v48 }
0x2e7d   :  { %v5424_v9 = vsel %vm5423_vm8, %v6348_v4, %v5420_v38 }
0x2e7e   :  { %v5435_v54 = vmul.f32 %v5424_v9, %v5401_v22  ;;  %v6111_v22 = vld [vmem:[#allocation28] ss:$0 sm:$0xff] }
0x2e80   :  { %v5440_v57 = vmul.f32 %v6108_v51, %v5435_v54 }
0x2e82   :  { %v5445_v58 = vadd.f32 %v6109_v56, %v5440_v57 }
0x2e84   :  { %v5449_v59 = vsel %vm557_vm5, %v5445_v58, 0.0 }
0x2e85   :  { %5450 = vadd.xlane.f32.xlu2 %v5449_v59 }
0x2eb6   :  { %v5410_v63 = vpop.xlane.xlu0 %5409 }
0x2eb7   :  { %v5412_v46 = vmul.f32 %v5410_v63, %v7578_v35 }
0x2eb9   :  { %v5414_v49 = vadd.f32 1e-05, %v5412_v46 }
0x2ebb   :  { %6349 = vrsqrt.f32 %v5414_v49  ;;  %vm5431_vm11 = vweird.f32 %v5414_v49 }
0x2ec1   :  { %v6350_v3 = vpop.eup %6349 }
0x2ec2   :  { %v5426_v10 = vmul.f32 %v6350_v3, %v5414_v49  ;;  %vm5432_vm13 = vweird.f32 %v6350_v3 }
0x2ec3   :  { %vm5433_vm9 = vmor %vm5431_vm11, %vm5432_vm13 }
0x2ec4   :  { %v5427_v34 = vmul.f32 %v6350_v3, %v5426_v10 }
0x2ec6   :  { %v5428_v8 = vmul.f32 0.5, %v5427_v34 }
0x2ec8   :  { %v5429_v62 = vsub.f32 1.5, %v5428_v8 }
0x2eca   :  { %v5430_v28 = vmul.f32 %v6350_v3, %v5429_v62 }
0x2ecc   :  { %v5434_v32 = vsel %vm5433_vm9, %v6350_v3, %v5430_v28 }
0x2ecd   :  { %v5436_v17 = vmul.f32 %v5434_v32, %v5402_v42 }
0x2ecf   :  { %v5441_v21 = vmul.f32 %v6108_v51, %v5436_v17 }
0x2ed1   :  { %v5446_v43 = vadd.f32 %v6109_v56, %v5441_v21 }
0x2ed3   :  { %v5452_v30 = vsel %vm3153_vm10, %v5446_v43, 0.0 }
0x2ed4   :  { %5453 = vadd.xlane.f32.xlu0 %v5452_v30 }
0x2ef8   :  { %v5451_v15 = vpop.xlane.xlu2 %5450 }
0x2ef9   :  { %v5455_v1 = vmul.f32 %v5451_v15, %v7578_v35 }
0x2efb   :  { %v5457_v16 = vsub.f32 %v5445_v58, %v5455_v1 }
0x2efd   :  { %v5459_v29 = vmul.f32 %v5457_v16, %v5457_v16 }
0x2eff   :  { %v5461_v40 = vsel %vm557_vm5, %v5459_v29, 0.0 }
0x2f00   :  { %5462 = vadd.xlane.f32.xlu2 %v5461_v40 }
0x2f47   :  { %v5454_v23 = vpop.xlane.xlu0 %5453 }
0x2f48   :  { %v5456_v25 = vmul.f32 %v5454_v23, %v7578_v35 }
0x2f4a   :  { %v5458_v12 = vsub.f32 %v5446_v43, %v5456_v25 }
0x2f4c   :  { %v5460_v26 = vmul.f32 %v5458_v12, %v5458_v12 }
0x2f4e   :  { %v5464_v27 = vsel %vm3153_vm10, %v5460_v26, 0.0 }
0x2f4f   :  { %5465 = vadd.xlane.f32.xlu0 %v5464_v27 }
0x2f73   :  { %v5463_v37 = vpop.xlane.xlu2 %5462 }
0x2f74   :  { %v5467_v39 = vmul.f32 %v5463_v37, %v7578_v35 }
0x2f76   :  { %v5469_v7 = vadd.f32 1e-05, %v5467_v39 }
0x2f78   :  { %6351 = vrsqrt.f32 %v5469_v7  ;;  %vm5477_vm2 = vweird.f32 %v5469_v7 }
0x2f7e   :  { %v6352_v41 = vpop.eup %6351 }
0x2f7f   :  { %v5472_v2 = vmul.f32 %v6352_v41, %v5469_v7  ;;  %vm5478_vm10 = vweird.f32 %v6352_v41 }
0x2f80   :  { %vm5479_vm12 = vmor %vm5477_vm2, %vm5478_vm10 }
0x2f81   :  { %v5473_v14 = vmul.f32 %v6352_v41, %v5472_v2 }
0x2f83   :  { %v5474_v6 = vmul.f32 0.5, %v5473_v14 }
0x2f85   :  { %v5475_v50 = vsub.f32 1.5, %v5474_v6 }
0x2f87   :  { %v5476_v20 = vmul.f32 %v6352_v41, %v5475_v50 }
0x2f89   :  { %v5480_v5 = vsel %vm5479_vm12, %v6352_v41, %v5476_v20 }
0x2f8a   :  { %v5491_v31 = vmul.f32 %v5480_v5, %v5457_v16 }
0x2f8c   :  { %v5496_v19 = vmul.f32 %v6110_v0, %v5491_v31 }
0x2f8e   :  { %v5501_v44 = vadd.f32 %v6111_v22, %v5496_v19 }
0x2f90   :  { %5958 = vmatmul.msk.f32.vlgmr.msrb.gmra.mxu0 %vm557_vm5, %v5501_v44 }
0x2fc2   :  { %v5466_v53 = vpop.xlane.xlu0 %5465 }
0x2fc3   :  { %v5468_v42 = vmul.f32 %v5466_v53, %v7578_v35  ;;  %v6112_v35 = vld [vmem:[#allocation29] ss:$0 sm:$0xff] }
0x2fc5   :  { %v5470_v55 = vadd.f32 1e-05, %v5468_v42 }
0x2fc7   :  { %6353 = vrsqrt.f32 %v5470_v55  ;;  %vm5487_vm6 = vweird.f32 %v5470_v55 }
0x2fcd   :  { %v6354_v45 = vpop.eup %6353 }
0x2fce   :  { %v5482_v24 = vmul.f32 %v6354_v45, %v5470_v55  ;;  %vm5488_vm3 = vweird.f32 %v6354_v45 }
0x2fcf   :  { %vm5489_vm7 = vmor %vm5487_vm6, %vm5488_vm3 }
0x2fd0   :  { %v5483_v36 = vmul.f32 %v6354_v45, %v5482_v24 }
0x2fd2   :  { %v5484_v61 = vmul.f32 0.5, %v5483_v36 }
0x2fd4   :  { %v5485_v4 = vsub.f32 1.5, %v5484_v61 }
0x2fd6   :  { %v5486_v52 = vmul.f32 %v6354_v45, %v5485_v4 }
0x2fd8   :  { %v5490_v47 = vsel %vm5489_vm7, %v6354_v45, %v5486_v52 }
0x2fd9   :  { %v5492_v60 = vmul.f32 %v5490_v47, %v5458_v12 }
0x2fdb   :  { %v5497_v48 = vmul.f32 %v6110_v0, %v5492_v60 }
0x2fdd   :  { %v5502_v38 = vadd.f32 %v6111_v22, %v5497_v48 }
0x2fdf   :  { %5959 = vmatmul.msk.f32.gmra.mxu0 %vm557_vm5, %v5502_v38 }
0x300d   :  { %v5534_v51 = vpop.f32.mrf.mxu0 }
0x300e   :  { %v5535_v9 = vadd.f32 %v6112_v35, %v5534_v51 }
0x3010   :  { %5540 = vst [vmem:[%s7226_s21] sm:$0xff] %v5535_v9 }
0x305c   :  { %v5537_v54 = vpop.f32.mrf.mxu0 }
0x305d   :  { %v5538_v56 = vadd.f32 %v6112_v35, %v5537_v54 }
0x305f   :  { %5541 = vst [vmem:[%s7226_s21 + $0x8] sm:$0x7f] %v5538_v56 }
0x3060   :  { %5546 = vsyncpa [#allocation4], 1 }
0x3061   :  { %5547 = vsyncpa [#allocation6], 1 }
0x3062   :  { %5548 = vsyncpa [#allocation9], 1 }
0x3063   :  { %5549 = vsyncpa [#allocation12], 1 }
0x3064   :  { %5550 = vsyncpa [#allocation15], 1 }
0x3065   :  { %5551 = vsyncpa [#allocation18], 1 }
0x3066   :  { %5552 = vsyncpa [#allocation21], 1 }
0x3067   :  { %5553 = vsyncpa [#allocation24], 1 }
0x3068   :  { %5554 = vsyncpa [#allocation27], 1 }
0x3069   :  { %5555 = vsyncpa [#allocation30], 1 }

</bundles_post_ra>
